<compile_context>
chip_gen: v7x
topology: tpu7x:2x2x1
jax: 0.10.0
libtpu: 0.0.40
codegen_flags: <defaults>
</compile_context>

<pallas_src>
import numpy as np
import jax
import jax.numpy as jnp
from jax.experimental import pallas as pl
from jax.experimental.pallas import tpu as pltpu


# ----------------------------------------------------------------------------
# In-kernel helpers
# ----------------------------------------------------------------------------
def _maxpool2x2(y_rows, Bb, H, W):
    """2x2 / stride-2 max pool.

    y_rows: (Bb*H*W, C) f32 conv output (rows ordered b, h, w).
    Returns (Bb, H//2, W//2, C) bf16 (cast once, ready for the next MXU stage).
    """
    C = y_rows.shape[-1]
    # Pool H: tile-aligned reshape (W, C stay the two minor dims), pairwise max.
    y = y_rows.reshape(Bb, H // 2, 2, W, C)
    y = jnp.maximum(y[:, :, 0], y[:, :, 1])                   # (Bb, H//2, W, C)
    # Pool W (sublane axis): shifted pairwise max, then gather the even columns
    # with unit-stride slices (strided value slices don't lower on Mosaic).
    y = jnp.maximum(y[:, :, 0:W - 1, :], y[:, :, 1:W, :])     # (Bb, H//2, W-1, C)
    y = jnp.concatenate([y[:, :, 2 * i:2 * i + 1, :] for i in range(W // 2)],
                        axis=2)                               # (Bb, H//2, W//2, C)
    return y.astype(jnp.bfloat16)


def _conv5x5_ky_accum(a, w_ref, b_ref):
    """5x5 'same' conv + bias via kx-only im2col and per-ky MXU accumulation.

    a:     (Bb, H, W, Cin) bf16 activation
    w_ref: (5, 5*Cin, Cout) bf16 ref; slab ky has rows ordered [kx][cin]
    b_ref: (1, Cout) f32 ref
    Returns (Bb*H*W, Cout) f32 pre-pool conv output.
    """
    Bb, H, W, Cin = a.shape
    Cout = w_ref.shape[-1]
    K, P = 5, 2

    # Zero-pad H and W by 2 entirely in VMEM, already in bf16 (halves the
    # largest intermediates vs. the previous f32 im2col).
    zh = jnp.zeros((Bb, P, W, Cin), jnp.bfloat16)
    xp = jnp.concatenate([zh, a, zh], axis=1)                 # (Bb, H+4, W, Cin)
    zw = jnp.zeros((Bb, H + 2 * P, P, Cin), jnp.bfloat16)
    xp = jnp.concatenate([zw, xp, zw], axis=2)                # (Bb, H+4, W+4, Cin)

    # kx-only im2col: last-dim order [kx][cin] (K*Cin = 160 lanes).
    xw = jnp.concatenate([xp[:, :, kx:kx + W, :] for kx in range(K)], axis=-1)

    # Accumulate 5 matmuls over ky (bf16 operands, f32 accumulation).
    acc = jnp.zeros((Bb * H * W, Cout), jnp.float32)
    for ky in range(K):
        sl = xw[:, ky:ky + H, :, :].reshape(Bb * H * W, K * Cin)
        acc = acc + jnp.dot(sl, w_ref[ky], preferred_element_type=jnp.float32)
    return acc + b_ref[...]


def _hgl_kernel(p1_ref, w1_ref, b1_ref, w2_ref, b2_ref, w3_ref, b3_ref,
                fw_ref, fb_ref, o_ref):
    Bb = p1_ref.shape[0]

    # ---- Layer 1: im2col was hoisted to the wrapper -> one 128-aligned matmul.
    p1 = p1_ref[...].reshape(Bb * 1024, 128)                  # bf16
    y = jnp.dot(p1, w1_ref[...], preferred_element_type=jnp.float32)
    y = y + b1_ref[...]                                       # (Bb*1024, 32) f32
    a = _maxpool2x2(y, Bb, 32, 32)                            # (Bb, 16, 16, 32) bf16

    # ---- Layer 2
    y = _conv5x5_ky_accum(a, w2_ref, b2_ref)                  # (Bb*256, 32) f32
    a = _maxpool2x2(y, Bb, 16, 16)                            # (Bb, 8, 8, 32) bf16

    # ---- Layer 3
    y = _conv5x5_ky_accum(a, w3_ref, b3_ref)                  # (Bb*64, 64) f32
    a = _maxpool2x2(y, Bb, 8, 8)                              # (Bb, 4, 4, 64) bf16

    # Flatten to a lane-dense (Bb, 1024) bf16 slab (position-major; PyTorch's
    # NCHW flatten order is folded into the FC weight host-side).
    flat = jnp.concatenate([a[:, p // 4, p % 4, :] for p in range(16)], axis=-1)

    # Folded fc1@fc2 (bf16 weight, f32 accumulate); output padded to 128 lanes
    # so the HBM store is unmasked / lane-dense.
    out = jnp.dot(flat, fw_ref[...], preferred_element_type=jnp.float32)
    o_ref[...] = (out + fb_ref[...]).astype(o_ref.dtype)


# ----------------------------------------------------------------------------
# Wrapper
# ----------------------------------------------------------------------------
def _full_spec(arr):
    nd = arr.ndim
    return pl.BlockSpec(arr.shape, lambda i, _nd=nd: (0,) * _nd)


def hgl_forward(x_nchw, kparams):
    """x_nchw: (B, 3, 32, 32) float32 -> logits (B, 10)."""
    B = x_nchw.shape[0]
    K, P, H, W, Cin = 5, 2, 32, 32, 3

    # Layer-1 im2col hoisted to XLA: lane-dense (B, 1024, 128) bf16 patch with
    # row order [ky][kx][cin], zero-padded 75 -> 128 on the contraction dim.
    x = jnp.transpose(x_nchw, (0, 2, 3, 1))                   # NCHW -> NHWC
    xp = jnp.pad(x, ((0, 0), (P, P), (P, P), (0, 0)))
    cols = [xp[:, ky:ky + H, kx:kx + W, :]
            for ky in range(K) for kx in range(K)]
    patch = jnp.concatenate(cols, axis=-1)                    # (B, 32, 32, 75)
    patch = jnp.pad(patch, ((0, 0), (0, 0), (0, 0), (0, 128 - K * K * Cin)))
    patch = patch.astype(jnp.bfloat16).reshape(B, H * W, 128)

    # Batch blocking: block of up to 8 images, batch padded to a multiple of it
    # (avoids the pathological block-1 case for odd / prime batch sizes).
    b_blk = min(8, B)
    n_blk = pl.cdiv(B, b_blk)
    B_pad = n_blk * b_blk
    if B_pad != B:
        patch = jnp.pad(patch, ((0, B_pad - B), (0, 0), (0, 0)))

    order = ("w1", "b1", "w2", "b2", "w3", "b3", "fw", "fb")
    weights = [kparams[k] for k in order]

    in_specs = [pl.BlockSpec((b_blk, H * W, 128), lambda i: (i, 0, 0))]
    in_specs += [_full_spec(wt) for wt in weights]

    out = pl.pallas_call(
        _hgl_kernel,
        out_shape=jax.ShapeDtypeStruct((B_pad, 128), jnp.float32),
        grid=(n_blk,),
        in_specs=in_specs,
        out_specs=pl.BlockSpec((b_blk, 128), lambda i: (i, 0)),
        compiler_params=pltpu.CompilerParams(
            dimension_semantics=("parallel",),                # 2 TCs on v7x
            vmem_limit_bytes=64 * 1024 * 1024),
    )(patch, *weights)
    return out[:B, :10]


# ----------------------------------------------------------------------------
# Parameters (PyTorch layouts) and conversion to kernel layouts
# ----------------------------------------------------------------------------
def init_torch_params(key):
    ks = jax.random.split(key, 10)

    def u(k, shape, fan_in):
        bound = 1.0 / float(np.sqrt(fan_in))
        return jax.random.uniform(k, shape, jnp.float32, -bound, bound)

    return {
        "conv1_w": u(ks[0], (32, 3, 5, 5), 3 * 25),   "conv1_b": u(ks[1], (32,), 3 * 25),
        "conv2_w": u(ks[2], (32, 32, 5, 5), 32 * 25), "conv2_b": u(ks[3], (32,), 32 * 25),
        "conv3_w": u(ks[4], (64, 32, 5, 5), 32 * 25), "conv3_b": u(ks[5], (64,), 32 * 25),
        "fc1_w": u(ks[6], (64, 1024), 1024),          "fc1_b": u(ks[7], (64,), 1024),
        "fc2_w": u(ks[8], (10, 64), 64),              "fc2_b": u(ks[9], (10,), 64),
    }


def prepare_kernel_params(tp):
    """PyTorch layouts -> layouts the fused kernel consumes."""
    def conv_w_ky(w):
        # (Cout, Cin, Ky, Kx) -> (Ky, Kx*Cin, Cout), bf16 for the MXU.
        cout, cin, k, _ = w.shape
        return (jnp.transpose(w, (2, 3, 1, 0))                # (ky, kx, cin, cout)
                .reshape(k, k * cin, cout).astype(jnp.bfloat16))

    # Layer-1 weight: rows ordered [ky][kx][cin], zero-padded 75 -> 128 rows to
    # match the hoisted lane-dense patch.
    w1 = jnp.transpose(tp["conv1_w"], (2, 3, 1, 0)).reshape(75, 32)
    w1 = jnp.pad(w1, ((0, 128 - 75), (0, 0))).astype(jnp.bfloat16)

    # Fold PyTorch's NCHW flatten (index = c*16 + p, p = h*4 + w) into fc1 so
    # the kernel's NHWC position-major flatten (p*64 + c) is consumed directly,
    # then fold fc1 @ fc2 into one (1024, 10) linear (exact: no nonlinearity in
    # between), pad the output dim to 128 lanes and cast the weight to bf16.
    fw1 = jnp.transpose(tp["fc1_w"], (1, 0)).reshape(64, 16, 64)   # (c, p, d)
    fw1 = jnp.transpose(fw1, (1, 0, 2)).reshape(16 * 64, 64)       # (p*64+c, d)
    fw = fw1 @ jnp.transpose(tp["fc2_w"], (1, 0))                  # (1024, 10)
    fb = tp["fc1_b"] @ jnp.transpose(tp["fc2_w"], (1, 0)) + tp["fc2_b"]
    fw = jnp.pad(fw, ((0, 0), (0, 128 - 10))).astype(jnp.bfloat16)
    fb = jnp.pad(fb, (0, 128 - 10)).reshape(1, 128)                # f32

    return {
        "w1": w1,                        "b1": tp["conv1_b"].reshape(1, -1),
        "w2": conv_w_ky(tp["conv2_w"]),  "b2": tp["conv2_b"].reshape(1, -1),
        "w3": conv_w_ky(tp["conv3_w"]),  "b3": tp["conv3_b"].reshape(1, -1),
        "fw": fw,                        "fb": fb,
    }


# ----------------------------------------------------------------------------
# Pure-JAX reference (mirrors the PyTorch module exactly, in f32)
# ----------------------------------------------------------------------------
def reference_forward(x_nchw, tp):
    def conv(x, w, b):
        y = jax.lax.conv_general_dilated(
            x, w, window_strides=(1, 1), padding=[(2, 2), (2, 2)],
            dimension_numbers=("NCHW", "OIHW", "NCHW"))
        return y + b.reshape(1, -1, 1, 1)

    def pool(x):
        return jax.lax.reduce_window(x, -jnp.inf, jax.lax.max,
                                     (1, 1, 2, 2), (1, 1, 2, 2), "VALID")

    x = pool(conv(x_nchw, tp["conv1_w"], tp["conv1_b"]))
    x = pool(conv(x, tp["conv2_w"], tp["conv2_b"]))
    x = pool(conv(x, tp["conv3_w"], tp["conv3_b"]))
    x = x.reshape(x.shape[0], -1)                              # NCHW flatten
    h = x @ tp["fc1_w"].T + tp["fc1_b"]
    return h @ tp["fc2_w"].T + tp["fc2_b"]


# ----------------------------------------------------------------------------
if __name__ == "__main__":
    key = jax.random.PRNGKey(0)
    k_param, k_x = jax.random.split(key)

    torch_params = init_torch_params(k_param)
    kernel_params = prepare_kernel_params(torch_params)

    # Linear(64*4*4, 64) after three 2x pools implies 32x32 inputs.
    x = jax.random.normal(k_x, (2, 3, 32, 32), jnp.float32)    # NCHW like PyTorch

    out = jax.block_until_ready(jax.jit(hgl_forward)(x, kernel_params))
    assert out.shape == (2, 10), out.shape

    ref = jax.block_until_ready(jax.jit(reference_forward)(x, torch_params))
    err = float(np.max(np.abs(np.asarray(out) - np.asarray(ref))))
    # bf16 MXU operands (convs + folded FC) with f32 accumulation.
    assert np.allclose(np.asarray(out), np.asarray(ref), rtol=4e-2, atol=4e-2), (
        "mismatch vs reference (max abs err %.4g):\n%r\n%r"
        % (err, np.asarray(out), np.asarray(ref)))

    print("KERNEL_OK")
</pallas_src>

<mosaic_0001>
module attributes {stable_mosaic.version = 11 : i64} {
  func.func @_hgl_kernel(%arg0: i32, %arg1: memref<2x1024x128xbf16, #tpu.memory_space<vmem>>, %arg2: memref<128x32xbf16, #tpu.memory_space<vmem>>, %arg3: memref<1x32xf32, #tpu.memory_space<vmem>>, %arg4: memref<5x160x32xbf16, #tpu.memory_space<vmem>>, %arg5: memref<1x32xf32, #tpu.memory_space<vmem>>, %arg6: memref<5x160x64xbf16, #tpu.memory_space<vmem>>, %arg7: memref<1x64xf32, #tpu.memory_space<vmem>>, %arg8: memref<1024x128xbf16, #tpu.memory_space<vmem>>, %arg9: memref<1x128xf32, #tpu.memory_space<vmem>>, %arg10: memref<2x128xf32, #tpu.memory_space<vmem>>) attributes {dimension_semantics = [#tpu.dimension_semantics<parallel>], iteration_bounds = array<i64: 1>, scalar_prefetch = 0 : i64, scratch_operands = 0 : i64, tpu.core_type = #tpu.core_type<tc>, window_params = [{transform_indices = @transform_0, window_bounds = array<i64: 2, 1024, 128>}, {pipeline_mode = #tpu.pipeline_mode<synchronous>, transform_indices = @transform_1, window_bounds = array<i64: 128, 32>}, {pipeline_mode = #tpu.pipeline_mode<synchronous>, transform_indices = @transform_2, window_bounds = array<i64: 1, 32>}, {pipeline_mode = #tpu.pipeline_mode<synchronous>, transform_indices = @transform_3, window_bounds = array<i64: 5, 160, 32>}, {pipeline_mode = #tpu.pipeline_mode<synchronous>, transform_indices = @transform_4, window_bounds = array<i64: 1, 32>}, {pipeline_mode = #tpu.pipeline_mode<synchronous>, transform_indices = @transform_5, window_bounds = array<i64: 5, 160, 64>}, {pipeline_mode = #tpu.pipeline_mode<synchronous>, transform_indices = @transform_6, window_bounds = array<i64: 1, 64>}, {pipeline_mode = #tpu.pipeline_mode<synchronous>, transform_indices = @transform_7, window_bounds = array<i64: 1024, 128>}, {pipeline_mode = #tpu.pipeline_mode<synchronous>, transform_indices = @transform_8, window_bounds = array<i64: 1, 128>}, {transform_indices = @transform_9, window_bounds = array<i64: 2, 128>}]} {
    %c0 = arith.constant 0 : index
    %c0_0 = arith.constant 0 : index
    %c0_1 = arith.constant 0 : index
    %0 = vector.load %arg1[%c0, %c0_0, %c0_1] : memref<2x1024x128xbf16, #tpu.memory_space<vmem>>, vector<2x1024x128xbf16>
    %1 = vector.shape_cast %0 : vector<2x1024x128xbf16> to vector<2048x128xbf16>
    %c0_2 = arith.constant 0 : index
    %c0_3 = arith.constant 0 : index
    %2 = vector.load %arg2[%c0_2, %c0_3] : memref<128x32xbf16, #tpu.memory_space<vmem>>, vector<128x32xbf16>
    %cst = arith.constant dense<0.000000e+00> : vector<2048x32xf32>
    %3 = tpu.matmul %1, %2, %cst {dimension_numbers = #tpu.dot_dimension_numbers<[1], [0], [0], [1], [0, 0, 1, 1], [], []>} : vector<2048x128xbf16>, vector<128x32xbf16>, vector<2048x32xf32> -> vector<2048x32xf32>
    %c0_4 = arith.constant 0 : index
    %c0_5 = arith.constant 0 : index
    %4 = vector.load %arg3[%c0_4, %c0_5] : memref<1x32xf32, #tpu.memory_space<vmem>>, vector<1x32xf32>
    %5 = vector.broadcast %4 : vector<1x32xf32> to vector<2048x32xf32>
    %6 = arith.addf %3, %5 : vector<2048x32xf32>
    %7 = vector.shape_cast %6 : vector<2048x32xf32> to vector<2x16x2x32x32xf32>
    %8 = vector.extract_strided_slice %7 {offsets = [0, 0, 0, 0, 0], sizes = [2, 16, 1, 32, 32], strides = [1, 1, 1, 1, 1]} : vector<2x16x2x32x32xf32> to vector<2x16x1x32x32xf32>
    %9 = vector.shape_cast %8 : vector<2x16x1x32x32xf32> to vector<2x16x32x32xf32>
    %10 = vector.extract_strided_slice %7 {offsets = [0, 0, 1, 0, 0], sizes = [2, 16, 1, 32, 32], strides = [1, 1, 1, 1, 1]} : vector<2x16x2x32x32xf32> to vector<2x16x1x32x32xf32>
    %11 = vector.shape_cast %10 : vector<2x16x1x32x32xf32> to vector<2x16x32x32xf32>
    %12 = arith.maximumf %9, %11 : vector<2x16x32x32xf32>
    %13 = vector.extract_strided_slice %12 {offsets = [0, 0, 0, 0], sizes = [2, 16, 31, 32], strides = [1, 1, 1, 1]} : vector<2x16x32x32xf32> to vector<2x16x31x32xf32>
    %14 = vector.extract_strided_slice %12 {offsets = [0, 0, 1, 0], sizes = [2, 16, 31, 32], strides = [1, 1, 1, 1]} : vector<2x16x32x32xf32> to vector<2x16x31x32xf32>
    %15 = arith.maximumf %13, %14 : vector<2x16x31x32xf32>
    %16 = vector.extract_strided_slice %15 {offsets = [0, 0, 0, 0], sizes = [2, 16, 1, 32], strides = [1, 1, 1, 1]} : vector<2x16x31x32xf32> to vector<2x16x1x32xf32>
    %17 = vector.extract_strided_slice %15 {offsets = [0, 0, 2, 0], sizes = [2, 16, 1, 32], strides = [1, 1, 1, 1]} : vector<2x16x31x32xf32> to vector<2x16x1x32xf32>
    %18 = vector.extract_strided_slice %15 {offsets = [0, 0, 4, 0], sizes = [2, 16, 1, 32], strides = [1, 1, 1, 1]} : vector<2x16x31x32xf32> to vector<2x16x1x32xf32>
    %19 = vector.extract_strided_slice %15 {offsets = [0, 0, 6, 0], sizes = [2, 16, 1, 32], strides = [1, 1, 1, 1]} : vector<2x16x31x32xf32> to vector<2x16x1x32xf32>
    %20 = vector.extract_strided_slice %15 {offsets = [0, 0, 8, 0], sizes = [2, 16, 1, 32], strides = [1, 1, 1, 1]} : vector<2x16x31x32xf32> to vector<2x16x1x32xf32>
    %21 = vector.extract_strided_slice %15 {offsets = [0, 0, 10, 0], sizes = [2, 16, 1, 32], strides = [1, 1, 1, 1]} : vector<2x16x31x32xf32> to vector<2x16x1x32xf32>
    %22 = vector.extract_strided_slice %15 {offsets = [0, 0, 12, 0], sizes = [2, 16, 1, 32], strides = [1, 1, 1, 1]} : vector<2x16x31x32xf32> to vector<2x16x1x32xf32>
    %23 = vector.extract_strided_slice %15 {offsets = [0, 0, 14, 0], sizes = [2, 16, 1, 32], strides = [1, 1, 1, 1]} : vector<2x16x31x32xf32> to vector<2x16x1x32xf32>
    %24 = vector.extract_strided_slice %15 {offsets = [0, 0, 16, 0], sizes = [2, 16, 1, 32], strides = [1, 1, 1, 1]} : vector<2x16x31x32xf32> to vector<2x16x1x32xf32>
    %25 = vector.extract_strided_slice %15 {offsets = [0, 0, 18, 0], sizes = [2, 16, 1, 32], strides = [1, 1, 1, 1]} : vector<2x16x31x32xf32> to vector<2x16x1x32xf32>
    %26 = vector.extract_strided_slice %15 {offsets = [0, 0, 20, 0], sizes = [2, 16, 1, 32], strides = [1, 1, 1, 1]} : vector<2x16x31x32xf32> to vector<2x16x1x32xf32>
    %27 = vector.extract_strided_slice %15 {offsets = [0, 0, 22, 0], sizes = [2, 16, 1, 32], strides = [1, 1, 1, 1]} : vector<2x16x31x32xf32> to vector<2x16x1x32xf32>
    %28 = vector.extract_strided_slice %15 {offsets = [0, 0, 24, 0], sizes = [2, 16, 1, 32], strides = [1, 1, 1, 1]} : vector<2x16x31x32xf32> to vector<2x16x1x32xf32>
    %29 = vector.extract_strided_slice %15 {offsets = [0, 0, 26, 0], sizes = [2, 16, 1, 32], strides = [1, 1, 1, 1]} : vector<2x16x31x32xf32> to vector<2x16x1x32xf32>
    %30 = vector.extract_strided_slice %15 {offsets = [0, 0, 28, 0], sizes = [2, 16, 1, 32], strides = [1, 1, 1, 1]} : vector<2x16x31x32xf32> to vector<2x16x1x32xf32>
    %31 = vector.extract_strided_slice %15 {offsets = [0, 0, 30, 0], sizes = [2, 16, 1, 32], strides = [1, 1, 1, 1]} : vector<2x16x31x32xf32> to vector<2x16x1x32xf32>
    %32 = tpu.concatenate %16, %17, %18, %19, %20, %21, %22, %23, %24, %25, %26, %27, %28, %29, %30, %31 in 2 : vector<2x16x1x32xf32>, vector<2x16x1x32xf32>, vector<2x16x1x32xf32>, vector<2x16x1x32xf32>, vector<2x16x1x32xf32>, vector<2x16x1x32xf32>, vector<2x16x1x32xf32>, vector<2x16x1x32xf32>, vector<2x16x1x32xf32>, vector<2x16x1x32xf32>, vector<2x16x1x32xf32>, vector<2x16x1x32xf32>, vector<2x16x1x32xf32>, vector<2x16x1x32xf32>, vector<2x16x1x32xf32>, vector<2x16x1x32xf32> -> vector<2x16x16x32xf32>
    %33 = arith.truncf %32 : vector<2x16x16x32xf32> to vector<2x16x16x32xbf16>
    %cst_6 = arith.constant 0.000000e+00 : bf16
    %34 = vector.broadcast %cst_6 : bf16 to vector<2x2x16x32xbf16>
    %35 = tpu.concatenate %34, %33, %34 in 1 : vector<2x2x16x32xbf16>, vector<2x16x16x32xbf16>, vector<2x2x16x32xbf16> -> vector<2x20x16x32xbf16>
    %cst_7 = arith.constant 0.000000e+00 : bf16
    %36 = vector.broadcast %cst_7 : bf16 to vector<2x20x2x32xbf16>
    %37 = tpu.concatenate %36, %35, %36 in 2 : vector<2x20x2x32xbf16>, vector<2x20x16x32xbf16>, vector<2x20x2x32xbf16> -> vector<2x20x20x32xbf16>
    %38 = vector.extract_strided_slice %37 {offsets = [0, 0, 0, 0], sizes = [2, 20, 16, 32], strides = [1, 1, 1, 1]} : vector<2x20x20x32xbf16> to vector<2x20x16x32xbf16>
    %39 = vector.extract_strided_slice %37 {offsets = [0, 0, 1, 0], sizes = [2, 20, 16, 32], strides = [1, 1, 1, 1]} : vector<2x20x20x32xbf16> to vector<2x20x16x32xbf16>
    %40 = vector.extract_strided_slice %37 {offsets = [0, 0, 2, 0], sizes = [2, 20, 16, 32], strides = [1, 1, 1, 1]} : vector<2x20x20x32xbf16> to vector<2x20x16x32xbf16>
    %41 = vector.extract_strided_slice %37 {offsets = [0, 0, 3, 0], sizes = [2, 20, 16, 32], strides = [1, 1, 1, 1]} : vector<2x20x20x32xbf16> to vector<2x20x16x32xbf16>
    %42 = vector.extract_strided_slice %37 {offsets = [0, 0, 4, 0], sizes = [2, 20, 16, 32], strides = [1, 1, 1, 1]} : vector<2x20x20x32xbf16> to vector<2x20x16x32xbf16>
    %43 = tpu.concatenate %38, %39, %40, %41, %42 in 3 : vector<2x20x16x32xbf16>, vector<2x20x16x32xbf16>, vector<2x20x16x32xbf16>, vector<2x20x16x32xbf16>, vector<2x20x16x32xbf16> -> vector<2x20x16x160xbf16>
    %cst_8 = arith.constant 0.000000e+00 : f32
    %44 = vector.broadcast %cst_8 : f32 to vector<512x32xf32>
    %45 = vector.extract_strided_slice %43 {offsets = [0, 0, 0, 0], sizes = [2, 16, 16, 160], strides = [1, 1, 1, 1]} : vector<2x20x16x160xbf16> to vector<2x16x16x160xbf16>
    %46 = vector.shape_cast %45 : vector<2x16x16x160xbf16> to vector<512x160xbf16>
    %c0_9 = arith.constant 0 : index
    %c0_10 = arith.constant 0 : index
    %c0_11 = arith.constant 0 : index
    %47 = vector.load %arg4[%c0_9, %c0_10, %c0_11] : memref<5x160x32xbf16, #tpu.memory_space<vmem>>, vector<1x160x32xbf16>
    %48 = vector.shape_cast %47 : vector<1x160x32xbf16> to vector<160x32xbf16>
    %cst_12 = arith.constant dense<0.000000e+00> : vector<512x32xf32>
    %49 = tpu.matmul %46, %48, %cst_12 {dimension_numbers = #tpu.dot_dimension_numbers<[1], [0], [0], [1], [0, 0, 1, 1], [], []>} : vector<512x160xbf16>, vector<160x32xbf16>, vector<512x32xf32> -> vector<512x32xf32>
    %50 = arith.addf %44, %49 : vector<512x32xf32>
    %51 = vector.extract_strided_slice %43 {offsets = [0, 1, 0, 0], sizes = [2, 16, 16, 160], strides = [1, 1, 1, 1]} : vector<2x20x16x160xbf16> to vector<2x16x16x160xbf16>
    %52 = vector.shape_cast %51 : vector<2x16x16x160xbf16> to vector<512x160xbf16>
    %c1 = arith.constant 1 : index
    %c0_13 = arith.constant 0 : index
    %c0_14 = arith.constant 0 : index
    %53 = vector.load %arg4[%c1, %c0_13, %c0_14] : memref<5x160x32xbf16, #tpu.memory_space<vmem>>, vector<1x160x32xbf16>
    %54 = vector.shape_cast %53 : vector<1x160x32xbf16> to vector<160x32xbf16>
    %cst_15 = arith.constant dense<0.000000e+00> : vector<512x32xf32>
    %55 = tpu.matmul %52, %54, %cst_15 {dimension_numbers = #tpu.dot_dimension_numbers<[1], [0], [0], [1], [0, 0, 1, 1], [], []>} : vector<512x160xbf16>, vector<160x32xbf16>, vector<512x32xf32> -> vector<512x32xf32>
    %56 = arith.addf %50, %55 : vector<512x32xf32>
    %57 = vector.extract_strided_slice %43 {offsets = [0, 2, 0, 0], sizes = [2, 16, 16, 160], strides = [1, 1, 1, 1]} : vector<2x20x16x160xbf16> to vector<2x16x16x160xbf16>
    %58 = vector.shape_cast %57 : vector<2x16x16x160xbf16> to vector<512x160xbf16>
    %c2 = arith.constant 2 : index
    %c0_16 = arith.constant 0 : index
    %c0_17 = arith.constant 0 : index
    %59 = vector.load %arg4[%c2, %c0_16, %c0_17] : memref<5x160x32xbf16, #tpu.memory_space<vmem>>, vector<1x160x32xbf16>
    %60 = vector.shape_cast %59 : vector<1x160x32xbf16> to vector<160x32xbf16>
    %cst_18 = arith.constant dense<0.000000e+00> : vector<512x32xf32>
    %61 = tpu.matmul %58, %60, %cst_18 {dimension_numbers = #tpu.dot_dimension_numbers<[1], [0], [0], [1], [0, 0, 1, 1], [], []>} : vector<512x160xbf16>, vector<160x32xbf16>, vector<512x32xf32> -> vector<512x32xf32>
    %62 = arith.addf %56, %61 : vector<512x32xf32>
    %63 = vector.extract_strided_slice %43 {offsets = [0, 3, 0, 0], sizes = [2, 16, 16, 160], strides = [1, 1, 1, 1]} : vector<2x20x16x160xbf16> to vector<2x16x16x160xbf16>
    %64 = vector.shape_cast %63 : vector<2x16x16x160xbf16> to vector<512x160xbf16>
    %c3 = arith.constant 3 : index
    %c0_19 = arith.constant 0 : index
    %c0_20 = arith.constant 0 : index
    %65 = vector.load %arg4[%c3, %c0_19, %c0_20] : memref<5x160x32xbf16, #tpu.memory_space<vmem>>, vector<1x160x32xbf16>
    %66 = vector.shape_cast %65 : vector<1x160x32xbf16> to vector<160x32xbf16>
    %cst_21 = arith.constant dense<0.000000e+00> : vector<512x32xf32>
    %67 = tpu.matmul %64, %66, %cst_21 {dimension_numbers = #tpu.dot_dimension_numbers<[1], [0], [0], [1], [0, 0, 1, 1], [], []>} : vector<512x160xbf16>, vector<160x32xbf16>, vector<512x32xf32> -> vector<512x32xf32>
    %68 = arith.addf %62, %67 : vector<512x32xf32>
    %69 = vector.extract_strided_slice %43 {offsets = [0, 4, 0, 0], sizes = [2, 16, 16, 160], strides = [1, 1, 1, 1]} : vector<2x20x16x160xbf16> to vector<2x16x16x160xbf16>
    %70 = vector.shape_cast %69 : vector<2x16x16x160xbf16> to vector<512x160xbf16>
    %c4 = arith.constant 4 : index
    %c0_22 = arith.constant 0 : index
    %c0_23 = arith.constant 0 : index
    %71 = vector.load %arg4[%c4, %c0_22, %c0_23] : memref<5x160x32xbf16, #tpu.memory_space<vmem>>, vector<1x160x32xbf16>
    %72 = vector.shape_cast %71 : vector<1x160x32xbf16> to vector<160x32xbf16>
    %cst_24 = arith.constant dense<0.000000e+00> : vector<512x32xf32>
    %73 = tpu.matmul %70, %72, %cst_24 {dimension_numbers = #tpu.dot_dimension_numbers<[1], [0], [0], [1], [0, 0, 1, 1], [], []>} : vector<512x160xbf16>, vector<160x32xbf16>, vector<512x32xf32> -> vector<512x32xf32>
    %74 = arith.addf %68, %73 : vector<512x32xf32>
    %c0_25 = arith.constant 0 : index
    %c0_26 = arith.constant 0 : index
    %75 = vector.load %arg5[%c0_25, %c0_26] : memref<1x32xf32, #tpu.memory_space<vmem>>, vector<1x32xf32>
    %76 = vector.broadcast %75 : vector<1x32xf32> to vector<512x32xf32>
    %77 = arith.addf %74, %76 : vector<512x32xf32>
    %78 = vector.shape_cast %77 : vector<512x32xf32> to vector<2x8x2x16x32xf32>
    %79 = vector.extract_strided_slice %78 {offsets = [0, 0, 0, 0, 0], sizes = [2, 8, 1, 16, 32], strides = [1, 1, 1, 1, 1]} : vector<2x8x2x16x32xf32> to vector<2x8x1x16x32xf32>
    %80 = vector.shape_cast %79 : vector<2x8x1x16x32xf32> to vector<2x8x16x32xf32>
    %81 = vector.extract_strided_slice %78 {offsets = [0, 0, 1, 0, 0], sizes = [2, 8, 1, 16, 32], strides = [1, 1, 1, 1, 1]} : vector<2x8x2x16x32xf32> to vector<2x8x1x16x32xf32>
    %82 = vector.shape_cast %81 : vector<2x8x1x16x32xf32> to vector<2x8x16x32xf32>
    %83 = arith.maximumf %80, %82 : vector<2x8x16x32xf32>
    %84 = vector.extract_strided_slice %83 {offsets = [0, 0, 0, 0], sizes = [2, 8, 15, 32], strides = [1, 1, 1, 1]} : vector<2x8x16x32xf32> to vector<2x8x15x32xf32>
    %85 = vector.extract_strided_slice %83 {offsets = [0, 0, 1, 0], sizes = [2, 8, 15, 32], strides = [1, 1, 1, 1]} : vector<2x8x16x32xf32> to vector<2x8x15x32xf32>
    %86 = arith.maximumf %84, %85 : vector<2x8x15x32xf32>
    %87 = vector.extract_strided_slice %86 {offsets = [0, 0, 0, 0], sizes = [2, 8, 1, 32], strides = [1, 1, 1, 1]} : vector<2x8x15x32xf32> to vector<2x8x1x32xf32>
    %88 = vector.extract_strided_slice %86 {offsets = [0, 0, 2, 0], sizes = [2, 8, 1, 32], strides = [1, 1, 1, 1]} : vector<2x8x15x32xf32> to vector<2x8x1x32xf32>
    %89 = vector.extract_strided_slice %86 {offsets = [0, 0, 4, 0], sizes = [2, 8, 1, 32], strides = [1, 1, 1, 1]} : vector<2x8x15x32xf32> to vector<2x8x1x32xf32>
    %90 = vector.extract_strided_slice %86 {offsets = [0, 0, 6, 0], sizes = [2, 8, 1, 32], strides = [1, 1, 1, 1]} : vector<2x8x15x32xf32> to vector<2x8x1x32xf32>
    %91 = vector.extract_strided_slice %86 {offsets = [0, 0, 8, 0], sizes = [2, 8, 1, 32], strides = [1, 1, 1, 1]} : vector<2x8x15x32xf32> to vector<2x8x1x32xf32>
    %92 = vector.extract_strided_slice %86 {offsets = [0, 0, 10, 0], sizes = [2, 8, 1, 32], strides = [1, 1, 1, 1]} : vector<2x8x15x32xf32> to vector<2x8x1x32xf32>
    %93 = vector.extract_strided_slice %86 {offsets = [0, 0, 12, 0], sizes = [2, 8, 1, 32], strides = [1, 1, 1, 1]} : vector<2x8x15x32xf32> to vector<2x8x1x32xf32>
    %94 = vector.extract_strided_slice %86 {offsets = [0, 0, 14, 0], sizes = [2, 8, 1, 32], strides = [1, 1, 1, 1]} : vector<2x8x15x32xf32> to vector<2x8x1x32xf32>
    %95 = tpu.concatenate %87, %88, %89, %90, %91, %92, %93, %94 in 2 : vector<2x8x1x32xf32>, vector<2x8x1x32xf32>, vector<2x8x1x32xf32>, vector<2x8x1x32xf32>, vector<2x8x1x32xf32>, vector<2x8x1x32xf32>, vector<2x8x1x32xf32>, vector<2x8x1x32xf32> -> vector<2x8x8x32xf32>
    %96 = arith.truncf %95 : vector<2x8x8x32xf32> to vector<2x8x8x32xbf16>
    %cst_27 = arith.constant 0.000000e+00 : bf16
    %97 = vector.broadcast %cst_27 : bf16 to vector<2x2x8x32xbf16>
    %98 = tpu.concatenate %97, %96, %97 in 1 : vector<2x2x8x32xbf16>, vector<2x8x8x32xbf16>, vector<2x2x8x32xbf16> -> vector<2x12x8x32xbf16>
    %cst_28 = arith.constant 0.000000e+00 : bf16
    %99 = vector.broadcast %cst_28 : bf16 to vector<2x12x2x32xbf16>
    %100 = tpu.concatenate %99, %98, %99 in 2 : vector<2x12x2x32xbf16>, vector<2x12x8x32xbf16>, vector<2x12x2x32xbf16> -> vector<2x12x12x32xbf16>
    %101 = vector.extract_strided_slice %100 {offsets = [0, 0, 0, 0], sizes = [2, 12, 8, 32], strides = [1, 1, 1, 1]} : vector<2x12x12x32xbf16> to vector<2x12x8x32xbf16>
    %102 = vector.extract_strided_slice %100 {offsets = [0, 0, 1, 0], sizes = [2, 12, 8, 32], strides = [1, 1, 1, 1]} : vector<2x12x12x32xbf16> to vector<2x12x8x32xbf16>
    %103 = vector.extract_strided_slice %100 {offsets = [0, 0, 2, 0], sizes = [2, 12, 8, 32], strides = [1, 1, 1, 1]} : vector<2x12x12x32xbf16> to vector<2x12x8x32xbf16>
    %104 = vector.extract_strided_slice %100 {offsets = [0, 0, 3, 0], sizes = [2, 12, 8, 32], strides = [1, 1, 1, 1]} : vector<2x12x12x32xbf16> to vector<2x12x8x32xbf16>
    %105 = vector.extract_strided_slice %100 {offsets = [0, 0, 4, 0], sizes = [2, 12, 8, 32], strides = [1, 1, 1, 1]} : vector<2x12x12x32xbf16> to vector<2x12x8x32xbf16>
    %106 = tpu.concatenate %101, %102, %103, %104, %105 in 3 : vector<2x12x8x32xbf16>, vector<2x12x8x32xbf16>, vector<2x12x8x32xbf16>, vector<2x12x8x32xbf16>, vector<2x12x8x32xbf16> -> vector<2x12x8x160xbf16>
    %cst_29 = arith.constant 0.000000e+00 : f32
    %107 = vector.broadcast %cst_29 : f32 to vector<128x64xf32>
    %108 = vector.extract_strided_slice %106 {offsets = [0, 0, 0, 0], sizes = [2, 8, 8, 160], strides = [1, 1, 1, 1]} : vector<2x12x8x160xbf16> to vector<2x8x8x160xbf16>
    %109 = vector.shape_cast %108 : vector<2x8x8x160xbf16> to vector<128x160xbf16>
    %c0_30 = arith.constant 0 : index
    %c0_31 = arith.constant 0 : index
    %c0_32 = arith.constant 0 : index
    %110 = vector.load %arg6[%c0_30, %c0_31, %c0_32] : memref<5x160x64xbf16, #tpu.memory_space<vmem>>, vector<1x160x64xbf16>
    %111 = vector.shape_cast %110 : vector<1x160x64xbf16> to vector<160x64xbf16>
    %cst_33 = arith.constant dense<0.000000e+00> : vector<128x64xf32>
    %112 = tpu.matmul %109, %111, %cst_33 {dimension_numbers = #tpu.dot_dimension_numbers<[1], [0], [0], [1], [0, 0, 1, 1], [], []>} : vector<128x160xbf16>, vector<160x64xbf16>, vector<128x64xf32> -> vector<128x64xf32>
    %113 = arith.addf %107, %112 : vector<128x64xf32>
    %114 = vector.extract_strided_slice %106 {offsets = [0, 1, 0, 0], sizes = [2, 8, 8, 160], strides = [1, 1, 1, 1]} : vector<2x12x8x160xbf16> to vector<2x8x8x160xbf16>
    %115 = vector.shape_cast %114 : vector<2x8x8x160xbf16> to vector<128x160xbf16>
    %c1_34 = arith.constant 1 : index
    %c0_35 = arith.constant 0 : index
    %c0_36 = arith.constant 0 : index
    %116 = vector.load %arg6[%c1_34, %c0_35, %c0_36] : memref<5x160x64xbf16, #tpu.memory_space<vmem>>, vector<1x160x64xbf16>
    %117 = vector.shape_cast %116 : vector<1x160x64xbf16> to vector<160x64xbf16>
    %cst_37 = arith.constant dense<0.000000e+00> : vector<128x64xf32>
    %118 = tpu.matmul %115, %117, %cst_37 {dimension_numbers = #tpu.dot_dimension_numbers<[1], [0], [0], [1], [0, 0, 1, 1], [], []>} : vector<128x160xbf16>, vector<160x64xbf16>, vector<128x64xf32> -> vector<128x64xf32>
    %119 = arith.addf %113, %118 : vector<128x64xf32>
    %120 = vector.extract_strided_slice %106 {offsets = [0, 2, 0, 0], sizes = [2, 8, 8, 160], strides = [1, 1, 1, 1]} : vector<2x12x8x160xbf16> to vector<2x8x8x160xbf16>
    %121 = vector.shape_cast %120 : vector<2x8x8x160xbf16> to vector<128x160xbf16>
    %c2_38 = arith.constant 2 : index
    %c0_39 = arith.constant 0 : index
    %c0_40 = arith.constant 0 : index
    %122 = vector.load %arg6[%c2_38, %c0_39, %c0_40] : memref<5x160x64xbf16, #tpu.memory_space<vmem>>, vector<1x160x64xbf16>
    %123 = vector.shape_cast %122 : vector<1x160x64xbf16> to vector<160x64xbf16>
    %cst_41 = arith.constant dense<0.000000e+00> : vector<128x64xf32>
    %124 = tpu.matmul %121, %123, %cst_41 {dimension_numbers = #tpu.dot_dimension_numbers<[1], [0], [0], [1], [0, 0, 1, 1], [], []>} : vector<128x160xbf16>, vector<160x64xbf16>, vector<128x64xf32> -> vector<128x64xf32>
    %125 = arith.addf %119, %124 : vector<128x64xf32>
    %126 = vector.extract_strided_slice %106 {offsets = [0, 3, 0, 0], sizes = [2, 8, 8, 160], strides = [1, 1, 1, 1]} : vector<2x12x8x160xbf16> to vector<2x8x8x160xbf16>
    %127 = vector.shape_cast %126 : vector<2x8x8x160xbf16> to vector<128x160xbf16>
    %c3_42 = arith.constant 3 : index
    %c0_43 = arith.constant 0 : index
    %c0_44 = arith.constant 0 : index
    %128 = vector.load %arg6[%c3_42, %c0_43, %c0_44] : memref<5x160x64xbf16, #tpu.memory_space<vmem>>, vector<1x160x64xbf16>
    %129 = vector.shape_cast %128 : vector<1x160x64xbf16> to vector<160x64xbf16>
    %cst_45 = arith.constant dense<0.000000e+00> : vector<128x64xf32>
    %130 = tpu.matmul %127, %129, %cst_45 {dimension_numbers = #tpu.dot_dimension_numbers<[1], [0], [0], [1], [0, 0, 1, 1], [], []>} : vector<128x160xbf16>, vector<160x64xbf16>, vector<128x64xf32> -> vector<128x64xf32>
    %131 = arith.addf %125, %130 : vector<128x64xf32>
    %132 = vector.extract_strided_slice %106 {offsets = [0, 4, 0, 0], sizes = [2, 8, 8, 160], strides = [1, 1, 1, 1]} : vector<2x12x8x160xbf16> to vector<2x8x8x160xbf16>
    %133 = vector.shape_cast %132 : vector<2x8x8x160xbf16> to vector<128x160xbf16>
    %c4_46 = arith.constant 4 : index
    %c0_47 = arith.constant 0 : index
    %c0_48 = arith.constant 0 : index
    %134 = vector.load %arg6[%c4_46, %c0_47, %c0_48] : memref<5x160x64xbf16, #tpu.memory_space<vmem>>, vector<1x160x64xbf16>
    %135 = vector.shape_cast %134 : vector<1x160x64xbf16> to vector<160x64xbf16>
    %cst_49 = arith.constant dense<0.000000e+00> : vector<128x64xf32>
    %136 = tpu.matmul %133, %135, %cst_49 {dimension_numbers = #tpu.dot_dimension_numbers<[1], [0], [0], [1], [0, 0, 1, 1], [], []>} : vector<128x160xbf16>, vector<160x64xbf16>, vector<128x64xf32> -> vector<128x64xf32>
    %137 = arith.addf %131, %136 : vector<128x64xf32>
    %c0_50 = arith.constant 0 : index
    %c0_51 = arith.constant 0 : index
    %138 = vector.load %arg7[%c0_50, %c0_51] : memref<1x64xf32, #tpu.memory_space<vmem>>, vector<1x64xf32>
    %139 = vector.broadcast %138 : vector<1x64xf32> to vector<128x64xf32>
    %140 = arith.addf %137, %139 : vector<128x64xf32>
    %141 = vector.shape_cast %140 : vector<128x64xf32> to vector<2x4x2x8x64xf32>
    %142 = vector.extract_strided_slice %141 {offsets = [0, 0, 0, 0, 0], sizes = [2, 4, 1, 8, 64], strides = [1, 1, 1, 1, 1]} : vector<2x4x2x8x64xf32> to vector<2x4x1x8x64xf32>
    %143 = vector.shape_cast %142 : vector<2x4x1x8x64xf32> to vector<2x4x8x64xf32>
    %144 = vector.extract_strided_slice %141 {offsets = [0, 0, 1, 0, 0], sizes = [2, 4, 1, 8, 64], strides = [1, 1, 1, 1, 1]} : vector<2x4x2x8x64xf32> to vector<2x4x1x8x64xf32>
    %145 = vector.shape_cast %144 : vector<2x4x1x8x64xf32> to vector<2x4x8x64xf32>
    %146 = arith.maximumf %143, %145 : vector<2x4x8x64xf32>
    %147 = vector.extract_strided_slice %146 {offsets = [0, 0, 0, 0], sizes = [2, 4, 7, 64], strides = [1, 1, 1, 1]} : vector<2x4x8x64xf32> to vector<2x4x7x64xf32>
    %148 = vector.extract_strided_slice %146 {offsets = [0, 0, 1, 0], sizes = [2, 4, 7, 64], strides = [1, 1, 1, 1]} : vector<2x4x8x64xf32> to vector<2x4x7x64xf32>
    %149 = arith.maximumf %147, %148 : vector<2x4x7x64xf32>
    %150 = vector.extract_strided_slice %149 {offsets = [0, 0, 0, 0], sizes = [2, 4, 1, 64], strides = [1, 1, 1, 1]} : vector<2x4x7x64xf32> to vector<2x4x1x64xf32>
    %151 = vector.extract_strided_slice %149 {offsets = [0, 0, 2, 0], sizes = [2, 4, 1, 64], strides = [1, 1, 1, 1]} : vector<2x4x7x64xf32> to vector<2x4x1x64xf32>
    %152 = vector.extract_strided_slice %149 {offsets = [0, 0, 4, 0], sizes = [2, 4, 1, 64], strides = [1, 1, 1, 1]} : vector<2x4x7x64xf32> to vector<2x4x1x64xf32>
    %153 = vector.extract_strided_slice %149 {offsets = [0, 0, 6, 0], sizes = [2, 4, 1, 64], strides = [1, 1, 1, 1]} : vector<2x4x7x64xf32> to vector<2x4x1x64xf32>
    %154 = tpu.concatenate %150, %151, %152, %153 in 2 : vector<2x4x1x64xf32>, vector<2x4x1x64xf32>, vector<2x4x1x64xf32>, vector<2x4x1x64xf32> -> vector<2x4x4x64xf32>
    %155 = arith.truncf %154 : vector<2x4x4x64xf32> to vector<2x4x4x64xbf16>
    %156 = vector.extract_strided_slice %155 {offsets = [0, 0, 0, 0], sizes = [2, 1, 1, 64], strides = [1, 1, 1, 1]} : vector<2x4x4x64xbf16> to vector<2x1x1x64xbf16>
    %157 = vector.shape_cast %156 : vector<2x1x1x64xbf16> to vector<2x64xbf16>
    %158 = vector.extract_strided_slice %155 {offsets = [0, 0, 1, 0], sizes = [2, 1, 1, 64], strides = [1, 1, 1, 1]} : vector<2x4x4x64xbf16> to vector<2x1x1x64xbf16>
    %159 = vector.shape_cast %158 : vector<2x1x1x64xbf16> to vector<2x64xbf16>
    %160 = vector.extract_strided_slice %155 {offsets = [0, 0, 2, 0], sizes = [2, 1, 1, 64], strides = [1, 1, 1, 1]} : vector<2x4x4x64xbf16> to vector<2x1x1x64xbf16>
    %161 = vector.shape_cast %160 : vector<2x1x1x64xbf16> to vector<2x64xbf16>
    %162 = vector.extract_strided_slice %155 {offsets = [0, 0, 3, 0], sizes = [2, 1, 1, 64], strides = [1, 1, 1, 1]} : vector<2x4x4x64xbf16> to vector<2x1x1x64xbf16>
    %163 = vector.shape_cast %162 : vector<2x1x1x64xbf16> to vector<2x64xbf16>
    %164 = vector.extract_strided_slice %155 {offsets = [0, 1, 0, 0], sizes = [2, 1, 1, 64], strides = [1, 1, 1, 1]} : vector<2x4x4x64xbf16> to vector<2x1x1x64xbf16>
    %165 = vector.shape_cast %164 : vector<2x1x1x64xbf16> to vector<2x64xbf16>
    %166 = vector.extract_strided_slice %155 {offsets = [0, 1, 1, 0], sizes = [2, 1, 1, 64], strides = [1, 1, 1, 1]} : vector<2x4x4x64xbf16> to vector<2x1x1x64xbf16>
    %167 = vector.shape_cast %166 : vector<2x1x1x64xbf16> to vector<2x64xbf16>
    %168 = vector.extract_strided_slice %155 {offsets = [0, 1, 2, 0], sizes = [2, 1, 1, 64], strides = [1, 1, 1, 1]} : vector<2x4x4x64xbf16> to vector<2x1x1x64xbf16>
    %169 = vector.shape_cast %168 : vector<2x1x1x64xbf16> to vector<2x64xbf16>
    %170 = vector.extract_strided_slice %155 {offsets = [0, 1, 3, 0], sizes = [2, 1, 1, 64], strides = [1, 1, 1, 1]} : vector<2x4x4x64xbf16> to vector<2x1x1x64xbf16>
    %171 = vector.shape_cast %170 : vector<2x1x1x64xbf16> to vector<2x64xbf16>
    %172 = vector.extract_strided_slice %155 {offsets = [0, 2, 0, 0], sizes = [2, 1, 1, 64], strides = [1, 1, 1, 1]} : vector<2x4x4x64xbf16> to vector<2x1x1x64xbf16>
    %173 = vector.shape_cast %172 : vector<2x1x1x64xbf16> to vector<2x64xbf16>
    %174 = vector.extract_strided_slice %155 {offsets = [0, 2, 1, 0], sizes = [2, 1, 1, 64], strides = [1, 1, 1, 1]} : vector<2x4x4x64xbf16> to vector<2x1x1x64xbf16>
    %175 = vector.shape_cast %174 : vector<2x1x1x64xbf16> to vector<2x64xbf16>
    %176 = vector.extract_strided_slice %155 {offsets = [0, 2, 2, 0], sizes = [2, 1, 1, 64], strides = [1, 1, 1, 1]} : vector<2x4x4x64xbf16> to vector<2x1x1x64xbf16>
    %177 = vector.shape_cast %176 : vector<2x1x1x64xbf16> to vector<2x64xbf16>
    %178 = vector.extract_strided_slice %155 {offsets = [0, 2, 3, 0], sizes = [2, 1, 1, 64], strides = [1, 1, 1, 1]} : vector<2x4x4x64xbf16> to vector<2x1x1x64xbf16>
    %179 = vector.shape_cast %178 : vector<2x1x1x64xbf16> to vector<2x64xbf16>
    %180 = vector.extract_strided_slice %155 {offsets = [0, 3, 0, 0], sizes = [2, 1, 1, 64], strides = [1, 1, 1, 1]} : vector<2x4x4x64xbf16> to vector<2x1x1x64xbf16>
    %181 = vector.shape_cast %180 : vector<2x1x1x64xbf16> to vector<2x64xbf16>
    %182 = vector.extract_strided_slice %155 {offsets = [0, 3, 1, 0], sizes = [2, 1, 1, 64], strides = [1, 1, 1, 1]} : vector<2x4x4x64xbf16> to vector<2x1x1x64xbf16>
    %183 = vector.shape_cast %182 : vector<2x1x1x64xbf16> to vector<2x64xbf16>
    %184 = vector.extract_strided_slice %155 {offsets = [0, 3, 2, 0], sizes = [2, 1, 1, 64], strides = [1, 1, 1, 1]} : vector<2x4x4x64xbf16> to vector<2x1x1x64xbf16>
    %185 = vector.shape_cast %184 : vector<2x1x1x64xbf16> to vector<2x64xbf16>
    %186 = vector.extract_strided_slice %155 {offsets = [0, 3, 3, 0], sizes = [2, 1, 1, 64], strides = [1, 1, 1, 1]} : vector<2x4x4x64xbf16> to vector<2x1x1x64xbf16>
    %187 = vector.shape_cast %186 : vector<2x1x1x64xbf16> to vector<2x64xbf16>
    %188 = tpu.concatenate %157, %159, %161, %163, %165, %167, %169, %171, %173, %175, %177, %179, %181, %183, %185, %187 in 1 : vector<2x64xbf16>, vector<2x64xbf16>, vector<2x64xbf16>, vector<2x64xbf16>, vector<2x64xbf16>, vector<2x64xbf16>, vector<2x64xbf16>, vector<2x64xbf16>, vector<2x64xbf16>, vector<2x64xbf16>, vector<2x64xbf16>, vector<2x64xbf16>, vector<2x64xbf16>, vector<2x64xbf16>, vector<2x64xbf16>, vector<2x64xbf16> -> vector<2x1024xbf16>
    %c0_52 = arith.constant 0 : index
    %c0_53 = arith.constant 0 : index
    %189 = vector.load %arg8[%c0_52, %c0_53] : memref<1024x128xbf16, #tpu.memory_space<vmem>>, vector<1024x128xbf16>
    %cst_54 = arith.constant dense<0.000000e+00> : vector<2x128xf32>
    %190 = tpu.matmul %188, %189, %cst_54 {dimension_numbers = #tpu.dot_dimension_numbers<[1], [0], [0], [1], [0, 0, 1, 1], [], []>} : vector<2x1024xbf16>, vector<1024x128xbf16>, vector<2x128xf32> -> vector<2x128xf32>
    %c0_55 = arith.constant 0 : index
    %c0_56 = arith.constant 0 : index
    %191 = vector.load %arg9[%c0_55, %c0_56] : memref<1x128xf32, #tpu.memory_space<vmem>>, vector<1x128xf32>
    %192 = vector.broadcast %191 : vector<1x128xf32> to vector<2x128xf32>
    %193 = arith.addf %190, %192 : vector<2x128xf32>
    %c0_57 = arith.constant 0 : index
    %c0_58 = arith.constant 0 : index
    %194 = vector.load %arg10[%c0_57, %c0_58] : memref<2x128xf32, #tpu.memory_space<vmem>>, vector<2x128xf32>
    tpu.vector_store %arg10[%c0_57, %c0_58], %193 {strides = array<i32>} : memref<2x128xf32, #tpu.memory_space<vmem>>, vector<2x128xf32>,
    return
  }
  func.func @transform_0(%arg0: i32) -> (i32, i32, i32) {
    %c0_i32 = arith.constant 0 : i32
    %c0_i32_0 = arith.constant 0 : i32
    %c0_i32_1 = arith.constant 0 : i32
    return %arg0, %c0_i32, %c0_i32_0 : i32, i32, i32
  }
  func.func @transform_1(%arg0: i32) -> (i32, i32) {
    %c0_i32 = arith.constant 0 : i32
    %c0_i32_0 = arith.constant 0 : i32
    %c0_i32_1 = arith.constant 0 : i32
    return %c0_i32, %c0_i32_0 : i32, i32
  }
  func.func @transform_2(%arg0: i32) -> (i32, i32) {
    %c0_i32 = arith.constant 0 : i32
    %c0_i32_0 = arith.constant 0 : i32
    %c0_i32_1 = arith.constant 0 : i32
    return %c0_i32, %c0_i32_0 : i32, i32
  }
  func.func @transform_3(%arg0: i32) -> (i32, i32, i32) {
    %c0_i32 = arith.constant 0 : i32
    %c0_i32_0 = arith.constant 0 : i32
    %c0_i32_1 = arith.constant 0 : i32
    %c0_i32_2 = arith.constant 0 : i32
    return %c0_i32, %c0_i32_0, %c0_i32_1 : i32, i32, i32
  }
  func.func @transform_4(%arg0: i32) -> (i32, i32) {
    %c0_i32 = arith.constant 0 : i32
    %c0_i32_0 = arith.constant 0 : i32
    %c0_i32_1 = arith.constant 0 : i32
    return %c0_i32, %c0_i32_0 : i32, i32
  }
  func.func @transform_5(%arg0: i32) -> (i32, i32, i32) {
    %c0_i32 = arith.constant 0 : i32
    %c0_i32_0 = arith.constant 0 : i32
    %c0_i32_1 = arith.constant 0 : i32
    %c0_i32_2 = arith.constant 0 : i32
    return %c0_i32, %c0_i32_0, %c0_i32_1 : i32, i32, i32
  }
  func.func @transform_6(%arg0: i32) -> (i32, i32) {
    %c0_i32 = arith.constant 0 : i32
    %c0_i32_0 = arith.constant 0 : i32
    %c0_i32_1 = arith.constant 0 : i32
    return %c0_i32, %c0_i32_0 : i32, i32
  }
  func.func @transform_7(%arg0: i32) -> (i32, i32) {
    %c0_i32 = arith.constant 0 : i32
    %c0_i32_0 = arith.constant 0 : i32
    %c0_i32_1 = arith.constant 0 : i32
    return %c0_i32, %c0_i32_0 : i32, i32
  }
  func.func @transform_8(%arg0: i32) -> (i32, i32) {
    %c0_i32 = arith.constant 0 : i32
    %c0_i32_0 = arith.constant 0 : i32
    %c0_i32_1 = arith.constant 0 : i32
    return %c0_i32, %c0_i32_0 : i32, i32
  }
  func.func @transform_9(%arg0: i32) -> (i32, i32) {
    %c0_i32 = arith.constant 0 : i32
    %c0_i32_0 = arith.constant 0 : i32
    return %arg0, %c0_i32 : i32, i32
  }
}

</mosaic_0001>

<bundles_post_ra>
// kernel: hgl_forward.1
= control target key start
LH: loop header
LB: loop body
LE: loop exit
PB: predicated region body
PF: predicated region fallthrough
CT: control target
= control target key end

     0   :  { %14 = vsyncpa [#allocation3], 0  ;;  %s19744_s0 = inlined_call_operand.hbm [shape: bf16[2,1024,128], index: 0, kind: input, shape index: {}]   ;;  %s19745_s1 = inlined_call_operand.hbm [shape: bf16[128,32], index: 1, kind: input, shape index: {}]   ;;  %s19746_s2 = inlined_call_operand.hbm [shape: f32[1,32], index: 2, kind: input, shape index: {}]   ;;  %s19747_s3 = inlined_call_operand.hbm [shape: bf16[5,160,32], index: 3, kind: input, shape index: {}]   ;;  %s19748_s4 = inlined_call_operand.hbm [shape: f32[1,32], index: 4, kind: input, shape index: {}]   ;;  %s19749_s5 = inlined_call_operand.hbm [shape: bf16[5,160,64], index: 5, kind: input, shape index: {}]   ;;  %s19750_s6 = inlined_call_operand.hbm [shape: f32[1,64], index: 6, kind: input, shape index: {}]   ;;  %s19751_s7 = inlined_call_operand.hbm [shape: bf16[1024,128], index: 7, kind: input, shape index: {}]   ;;  %s19752_s8 = inlined_call_operand.hbm [shape: f32[1,128], index: 8, kind: input, shape index: {}]   ;;  %s19753_s9 = inlined_call_operand.hbm [shape: f32[2,128], index: 9, kind: output, shape index: {}]  }
   0x1   :  { %15 = vsyncpa [#allocation6], 0 }
   0x2   :  { %16 = vsyncpa [#allocation9], 0 }
   0x3   :  { %17 = vsyncpa [#allocation12], 0 }
   0x4   :  { %18 = vsyncpa [#allocation15], 0 }
   0x5   :  { %19 = vsyncpa [#allocation4], 0  ;;  %s12965_s30 = smov [#allocation5]   ;;  %s12966_s11 = smov [#allocation8]  }
   0x6   :  { %s37_s10 = sshll.u32 %s12965_s30, 4  ;;  %s59_s12 = sshll.u32 %s12966_s11, 4  ;;  %s38_s10 = int_to_ptr.vmem [resolvable:$true] %s37_s10  ;;  %s13030_s12 = int_to_ptr.vmem [resolvable:$true] %s59_s12 }
   0x7   :  { %s12733_s15 = scalar_lea.hbm %s19745_s1, 1024 }
   0x8   :  { %p12734_p0 = scmp.ne.s32.totalorder %s19745_s1, %s12733_s15  ;;  %p12737_p1 = scmp.lt.u32.totalorder %s12733_s15, %s19745_s1 }
   0xa   :  { %p12739_p2 = pnand %p12737_p1, %p12734_p0 }
   0xc   :  { %12742 = shalt.err (!%p12739_p2)
}
   0xd   :  { %s12743_s20 = scalar_lea.vmem %s38_s10, 1024  ;;  %p12748_p4 = scmp.lt.s32.totalorder %s38_s10, %s38_s10 }
   0xe   :  { %p12744_p3 = scmp.ne.s32.totalorder %s38_s10, %s12743_s20  ;;  %p12749_p5 = scmp.lt.s32.totalorder %s12743_s20, %s12743_s20 }
  0x10   :  { %p12750_p6 = por %p12749_p5, %p12748_p4 }
  0x12   :  { %p12751_p7 = pnand %p12750_p6, %p12744_p3 }
  0x14   :  { %12754 = shalt.err (!%p12751_p7)
}
  0x15   :  { %s12967_s21 = smov 64   ;;  %s12968_s22 = smov 4  }
  0x16   :  { %43 = dma.hbm_to_vmem [thread:$0]  %s19745_s1, 1024, %s38_s10, [#allocation6], %s12967_s21, %s12967_s21, %s12968_s22  }
  0x17   :  { %s12755_s27 = scalar_lea.hbm %s19747_s3, 6400 }
  0x18   :  { %p12756_p8 = scmp.ne.s32.totalorder %s19747_s3, %s12755_s27  ;;  %p12759_p9 = scmp.lt.u32.totalorder %s12755_s27, %s19747_s3 }
  0x1a   :  { %p12761_p10 = pnand %p12759_p9, %p12756_p8 }
  0x1c   :  { %12764 = shalt.err (!%p12761_p10)
}
  0x1d   :  { %s12765_s13 = scalar_lea.vmem %s13030_s12, 6400  ;;  %p12770_p12 = scmp.lt.s32.totalorder %s13030_s12, %s13030_s12 }
  0x1e   :  { %p12766_p11 = scmp.ne.s32.totalorder %s13030_s12, %s12765_s13  ;;  %p12771_p13 = scmp.lt.s32.totalorder %s12765_s13, %s12765_s13 }
  0x20   :  { %p12772_p0 = por %p12771_p13, %p12770_p12 }
  0x22   :  { %p12773_p1 = pnand %p12772_p0, %p12766_p11 }
  0x24   :  { %12776 = shalt.err (!%p12773_p1)
}
  0x25   :  { %65 = dma.hbm_to_vmem [thread:$0]  %s19747_s3, 6400, %s13030_s12, [#allocation9], %s12967_s21, %s12967_s21, %s12968_s22  }
  0x26   :  { %s12969_s14 = smov [#allocation11]   ;;  %s12970_s16 = smov [#allocation14]  }
  0x27   :  { %s81_s15 = sshll.u32 %s12969_s14, 4  ;;  %s103_s17 = sshll.u32 %s12970_s16, 4  ;;  %s82_s15 = int_to_ptr.vmem [resolvable:$true] %s81_s15  ;;  %s13067_s17 = int_to_ptr.vmem [resolvable:$true] %s103_s17 }
  0x28   :  { %s12777_s20 = scalar_lea.hbm %s19749_s5, 6400 }
  0x29   :  { %p12778_p2 = scmp.ne.s32.totalorder %s19749_s5, %s12777_s20  ;;  %p12781_p3 = scmp.lt.u32.totalorder %s12777_s20, %s19749_s5 }
  0x2b   :  { %p12783_p4 = pnand %p12781_p3, %p12778_p2 }
  0x2d   :  { %12786 = shalt.err (!%p12783_p4)
}
  0x2e   :  { %s12787_s3 = scalar_lea.vmem %s82_s15, 6400  ;;  %p12792_p6 = scmp.lt.s32.totalorder %s82_s15, %s82_s15 }
  0x2f   :  { %p12788_p5 = scmp.ne.s32.totalorder %s82_s15, %s12787_s3  ;;  %p12793_p7 = scmp.lt.s32.totalorder %s12787_s3, %s12787_s3 }
  0x31   :  { %p12794_p8 = por %p12793_p7, %p12792_p6 }
  0x33   :  { %p12795_p9 = pnand %p12794_p8, %p12788_p5 }
  0x35   :  { %12798 = shalt.err (!%p12795_p9)
}
  0x36   :  { %87 = dma.hbm_to_vmem [thread:$0]  %s19749_s5, 6400, %s82_s15, [#allocation12], %s12967_s21, %s12967_s21, %s12968_s22  }
  0x37   :  { %s12799_s30 = scalar_lea.hbm %s19751_s7, 8192 }
  0x38   :  { %p12800_p10 = scmp.ne.s32.totalorder %s19751_s7, %s12799_s30  ;;  %p12803_p11 = scmp.lt.u32.totalorder %s12799_s30, %s19751_s7 }
  0x3a   :  { %p12805_p12 = pnand %p12803_p11, %p12800_p10 }
  0x3c   :  { %12808 = shalt.err (!%p12805_p12)
}
  0x3d   :  { %s12809_s14 = scalar_lea.vmem %s13067_s17, 8192  ;;  %p12814_p0 = scmp.lt.s32.totalorder %s13067_s17, %s13067_s17 }
  0x3e   :  { %p12810_p13 = scmp.ne.s32.totalorder %s13067_s17, %s12809_s14  ;;  %p12815_p1 = scmp.lt.s32.totalorder %s12809_s14, %s12809_s14 }
  0x40   :  { %p12816_p2 = por %p12815_p1, %p12814_p0 }
  0x42   :  { %p12817_p3 = pnand %p12816_p2, %p12810_p13 }
  0x44   :  { %12820 = shalt.err (!%p12817_p3)
}
  0x45   :  { %109 = dma.hbm_to_vmem [thread:$0]  %s19751_s7, 8192, %s13067_s17, [#allocation15], %s12967_s21, %s12967_s21, %s12968_s22  }
  0x46   :  { %s12971_s16 = smov [#allocation2]   ;;  %s12972_s19 = smov [#allocation7]  }
  0x47   :  { %s25_s18 = sshll.u32 %s12971_s16, 4  ;;  %s50_s20 = sshll.u32 %s12972_s19, 4  ;;  %s26_s18 = int_to_ptr.vmem [resolvable:$true] %s25_s18  ;;  %s51_s20 = int_to_ptr.vmem [resolvable:$true] %s50_s20 }
  0x48   :  { %s12821_s25 = scalar_lea.hbm %s19744_s0, 16384 }
  0x49   :  { %p12822_p4 = scmp.ne.s32.totalorder %s19744_s0, %s12821_s25  ;;  %p12825_p5 = scmp.lt.u32.totalorder %s12821_s25, %s19744_s0 }
  0x4b   :  { %p12827_p6 = pnand %p12825_p5, %p12822_p4 }
  0x4d   :  { %12830 = shalt.err (!%p12827_p6)
}
  0x4e   :  { %s12831_s7 = scalar_lea.vmem %s26_s18, 16384  ;;  %p12836_p8 = scmp.lt.s32.totalorder %s26_s18, %s26_s18 }
  0x4f   :  { %p12832_p7 = scmp.ne.s32.totalorder %s26_s18, %s12831_s7  ;;  %p12837_p9 = scmp.lt.s32.totalorder %s12831_s7, %s12831_s7 }
  0x51   :  { %p12838_p10 = por %p12837_p9, %p12836_p8 }
  0x53   :  { %p12839_p11 = pnand %p12838_p10, %p12832_p7 }
  0x55   :  { %12842 = shalt.err (!%p12839_p11)
}
  0x56   :  { %31 = dma.hbm_to_vmem [thread:$0]  %s19744_s0, 16384, %s26_s18, [#allocation3], %s12967_s21, %s12967_s21, %s12968_s22  }
  0x57   :  { %s12843_s11 = scalar_lea.hbm %s19746_s2, 16 }
  0x58   :  { %p12844_p12 = scmp.ne.s32.totalorder %s19746_s2, %s12843_s11  ;;  %p12847_p13 = scmp.lt.u32.totalorder %s12843_s11, %s19746_s2 }
  0x5a   :  { %p12849_p0 = pnand %p12847_p13, %p12844_p12 }
  0x5c   :  { %12852 = shalt.err (!%p12849_p0)
}
  0x5d   :  { %s12853_s5 = scalar_lea.vmem %s51_s20, 16  ;;  %s12857_s15 = scalar_lea.vmem %s51_s20, 32 }
  0x5e   :  { %p12854_p1 = scmp.ne.s32.totalorder %s51_s20, %s12853_s5  ;;  %p12858_p2 = scmp.lt.s32.totalorder %s51_s20, %s51_s20 }
  0x5f   :  { %p12859_p3 = scmp.lt.s32.totalorder %s12857_s15, %s12853_s5 }
  0x61   :  { %p12860_p4 = por %p12859_p3, %p12858_p2 }
  0x63   :  { %p12861_p5 = pnand %p12860_p4, %p12854_p1 }
  0x65   :  { %12864 = shalt.err (!%p12861_p5)
}
  0x66   :  { %53 = dma.hbm_to_vmem [thread:$0]  %s19746_s2, 16, %s51_s20, [#allocation6]  }
  0x67   :  { %s12973_s16 = smov [#allocation10]   ;;  %s12974_s19 = smov [#allocation13]  }
  0x68   :  { %s72_s18 = sshll.u32 %s12973_s16, 4  ;;  %s94_s23 = sshll.u32 %s12974_s19, 4  ;;  %s73_s18 = int_to_ptr.vmem [resolvable:$true] %s72_s18  ;;  %s95_s23 = int_to_ptr.vmem [resolvable:$true] %s94_s23 }
  0x69   :  { %s12865_s26 = scalar_lea.hbm %s19748_s4, 16 }
  0x6a   :  { %p12866_p6 = scmp.ne.s32.totalorder %s19748_s4, %s12865_s26  ;;  %p12869_p7 = scmp.lt.u32.totalorder %s12865_s26, %s19748_s4 }
  0x6c   :  { %p12871_p8 = pnand %p12869_p7, %p12866_p6 }
  0x6e   :  { %12874 = shalt.err (!%p12871_p8)
}
  0x6f   :  { %s12875_s2 = scalar_lea.vmem %s73_s18, 16  ;;  %s12879_s20 = scalar_lea.vmem %s73_s18, 32 }
  0x70   :  { %p12876_p9 = scmp.ne.s32.totalorder %s73_s18, %s12875_s2  ;;  %p12880_p10 = scmp.lt.s32.totalorder %s73_s18, %s73_s18 }
  0x71   :  { %p12881_p11 = scmp.lt.s32.totalorder %s12879_s20, %s12875_s2 }
  0x73   :  { %p12882_p12 = por %p12881_p11, %p12880_p10 }
  0x75   :  { %p12883_p13 = pnand %p12882_p12, %p12876_p9 }
  0x77   :  { %12886 = shalt.err (!%p12883_p13)
}
  0x78   :  { %75 = dma.hbm_to_vmem [thread:$0]  %s19748_s4, 16, %s73_s18, [#allocation9]  }
  0x79   :  { %s12887_s11 = scalar_lea.hbm %s19750_s6, 16 }
  0x7a   :  { %p12888_p0 = scmp.ne.s32.totalorder %s19750_s6, %s12887_s11  ;;  %p12891_p1 = scmp.lt.u32.totalorder %s12887_s11, %s19750_s6 }
  0x7c   :  { %p12893_p2 = pnand %p12891_p1, %p12888_p0 }
  0x7e   :  { %12896 = shalt.err (!%p12893_p2)
}
  0x7f   :  { %s12897_s5 = scalar_lea.vmem %s95_s23, 16  ;;  %s12901_s15 = scalar_lea.vmem %s95_s23, 32 }
  0x80   :  { %p12898_p3 = scmp.ne.s32.totalorder %s95_s23, %s12897_s5  ;;  %p12902_p4 = scmp.lt.s32.totalorder %s95_s23, %s95_s23 }
  0x81   :  { %p12903_p5 = scmp.lt.s32.totalorder %s12901_s15, %s12897_s5 }
  0x83   :  { %p12904_p6 = por %p12903_p5, %p12902_p4 }
  0x85   :  { %p12905_p7 = pnand %p12904_p6, %p12898_p3 }
  0x87   :  { %12908 = shalt.err (!%p12905_p7)
}
  0x88   :  { %97 = dma.hbm_to_vmem [thread:$0]  %s19750_s6, 16, %s95_s23, [#allocation12]  }
  0x89   :  { %s12975_s22 = smov [#allocation16]   ;;  %s12909_s24 = scalar_lea.hbm %s19752_s8, 16 }
  0x8a   :  { %s116_s16 = sshll.u32 %s12975_s22, 4  ;;  %p12910_p8 = scmp.ne.s32.totalorder %s19752_s8, %s12909_s24  ;;  %s117_s16 = int_to_ptr.vmem [resolvable:$true] %s116_s16 }
  0x8b   :  { %p12913_p9 = scmp.lt.u32.totalorder %s12909_s24, %s19752_s8 }
  0x8d   :  { %p12915_p10 = pnand %p12913_p9, %p12910_p8 }
  0x8f   :  { %12918 = shalt.err (!%p12915_p10)
}
  0x90   :  { %s12919_s27 = scalar_lea.vmem %s117_s16, 16  ;;  %s12923_s6 = scalar_lea.vmem %s117_s16, 32 }
  0x91   :  { %p12920_p11 = scmp.ne.s32.totalorder %s117_s16, %s12919_s27  ;;  %p12924_p12 = scmp.lt.s32.totalorder %s117_s16, %s117_s16 }
  0x92   :  { %p12925_p13 = scmp.lt.s32.totalorder %s12923_s6, %s12919_s27 }
  0x94   :  { %p12926_p0 = por %p12925_p13, %p12924_p12 }
  0x96   :  { %p12927_p1 = pnand %p12926_p0, %p12920_p11 }
  0x98   :  { %12930 = shalt.err (!%p12927_p1)
}
  0x99   :  { %119 = dma.hbm_to_vmem [thread:$0]  %s19752_s8, 16, %s117_s16, [#allocation15]  }
  0x9a   :  { %12953 = dma.done.wait [#allocation3], 16384  }
  0x9b   :  { %12954 = vsyncadd [#allocation3], 4294950912 }
  0x9c   :  { %12955 = dma.done.wait [#allocation6], 1040  }
  0x9d   :  { %12956 = vsyncadd [#allocation6], 4294966256 }
  0x9e   :  { %12957 = dma.done.wait [#allocation9], 6416  }
  0x9f   :  { %12958 = vsyncadd [#allocation9], 4294960880 }
  0xa0   :  { %12959 = dma.done.wait [#allocation12], 6416  }
  0xa1   :  { %12960 = vsyncadd [#allocation12], 4294960880 }
  0xa2   :  { %12961 = dma.done.wait [#allocation15], 8208  }
  0xa3   :  { %12962 = vsyncadd [#allocation15], 4294959088  ;;  %v12426_v0 = vld [vmem:[#allocation5] sm:$0xff]   ;;  %v12427_v1 = vld [vmem:[#allocation5 + $0x8] sm:$0xff]   ;;  %v19754_v8 = vmov 0   ;;  %vm4061_vm0 = vcmask 1040384  }
  0xa4   :  { %12139 = vmatprep.subr.bf16.mxu0 %v12426_v0  ;;  %v12428_v2 = vld [vmem:[#allocation5 + $0x10] sm:$0xff]   ;;  %v12429_v3 = vld [vmem:[#allocation5 + $0x18] sm:$0xff]   ;;  %v12434_v4 = vld [vmem:[#allocation2] sm:$0xff]   ;;  %v4580_v9 = vrot.slane %v19754_v8, 7  ;;  %6234 = vmatprep.subr.bf16.mxu1 %v19754_v8  ;;  %vm2556_vm1 = vcmask 1046528   ;;  %s12977_s8 = smov 32  }
  0xa5   :  { %12140 = vmatpush3.bf16.msra.mxu0 %v12426_v0  ;;  %12155 = vmatprep.mubr.bf16.mxu0 %v12434_v4  ;;  %v12430_v5 = vld [vmem:[#allocation5 + $0x20] sm:$0xff]   ;;  %v12431_v6 = vld [vmem:[#allocation5 + $0x28] sm:$0xff]   ;;  %v12432_v7 = vld [vmem:[#allocation5 + $0x30] sm:$0xff]   ;;  %vm4713_vm2 = vsmask.f32 7424  ;;  %s12978_s2 = smov 96  }
  0xa6   :  { %12141 = vmatprep.subr.bf16.mxu0 %v12427_v1  ;;  %v12433_v10 = vld [vmem:[#allocation5 + $0x38] sm:$0xff]   ;;  %v13170_v11 = vsel %vm4061_vm0, 0, %v4580_v9  ;;  %v12435_v13 = vld [vmem:[#allocation2 + $0x8] sm:$0xff]   ;;  %v13174_v14 = vsel %vm4061_vm0, %v4580_v9, 0  ;;  %v12436_v15 = vld [vmem:[#allocation2 + $0x10] sm:$0xff]   ;;  %vm4226_vm4 = vcmask 1045504  }
  0xa7   :  { %19925 = vst [vmem:[#allocation24_spill] sm:$0xff] %v13170_v11  ;;  %v4716_v12 = vshll.u32 %v13170_v11, 16  ;;  %v4714_v16 = vshrl.u32 %v13170_v11, 16  ;;  %v4720_v18 = vshll.u32 %v13174_v14, 16  ;;  %v12437_v19 = vld [vmem:[#allocation2 + $0x18] sm:$0xff]   ;;  %v12438_v20 = vld [vmem:[#allocation2 + $0x20] sm:$0xff]  }
  0xa8   :  { %v5177_v23 = vrot.slane %v13170_v11, 1  ;;  %v5178_v24 = vrot.slane %v13174_v14, 1  ;;  %v5346_v28 = vshrl.u32 %v13174_v14, 16  ;;  %v12439_v31 = vld [vmem:[#allocation2 + $0x28] sm:$0xff]   ;;  %vm5342_vm3 = vsmask.f32 6400 }
  0xa9   :  { %12142 = vmatpush3.bf16.msra.mxu0 %v12427_v1  ;;  %v4718_v17 = vrot.slane %v4716_v12, 1  ;;  %v4722_v22 = vrot.slane %v4720_v18, 1  ;;  %v5343_v25 = vrot.slane %v4714_v16, 1  ;;  %v5344_v27 = vrot.slane %v4716_v12, 2  ;;  %v12440_v34 = vld [vmem:[#allocation2 + $0x30] sm:$0xff]   ;;  %v12441_v37 = vld [vmem:[#allocation2 + $0x38] sm:$0xff]  }
  0xaa   :  { %12143 = vmatprep.subr.bf16.mxu0 %v12428_v2  ;;  %v5349_v29 = vrot.slane %v4720_v18, 2  ;;  %v5179_v30 = vsel %vm2556_vm1, %v5177_v23, %v5178_v24  ;;  %v5348_v33 = vrot.slane %v5346_v28, 1  ;;  %v12442_v38 = vld [vmem:[#allocation2 + $0x40] sm:$0xff]   ;;  %v12443_v39 = vld [vmem:[#allocation2 + $0x48] sm:$0xff]   ;;  %v12444_v40 = vld [vmem:[#allocation2 + $0x50] sm:$0xff]   ;;  %vm5806_vm5 = vcmask 261120  }
  0xab   :  { %v4719_v21 = vor.u32 %v4718_v17, %v4714_v16  ;;  %v5345_v32 = vor.u32 %v5344_v27, %v5343_v25  ;;  %v12445_v41 = vld [vmem:[#allocation2 + $0x58] sm:$0xff]   ;;  %v12446_v42 = vld [vmem:[#allocation2 + $0x60] sm:$0xff]   ;;  %v12447_v43 = vld [vmem:[#allocation2 + $0x68] sm:$0xff]   ;;  %vm5873_vm6 = vcmask 523264   ;;  %vm5940_vm7 = vcmask 785408  }
  0xac   :  { %v5350_v35 = vor.u32 %v5349_v29, %v5348_v33  ;;  %v12448_v44 = vld [vmem:[#allocation2 + $0x70] sm:$0xff]   ;;  %v12449_v45 = vld [vmem:[#allocation2 + $0x78] sm:$0xff]   ;;  %v12450_v46 = vld [vmem:[#allocation2 + $0x80] sm:$0xff]   ;;  %vm4094_vm8 = vcmask 1041408   ;;  %vm4127_vm9 = vcmask 1042432   ;;  %vm4160_vm10 = vcmask 1043456  }
  0xad   :  { %12144 = vmatpush3.bf16.msra.mxu0 %v12428_v2  ;;  %v4723_v26 = vsel %vm4713_vm2, %v4719_v21, %v4722_v22  ;;  %v12451_v47 = vld [vmem:[#allocation2 + $0x88] sm:$0xff]   ;;  %v12452_v48 = vld [vmem:[#allocation2 + $0x90] sm:$0xff]   ;;  %v12453_v49 = vld [vmem:[#allocation2 + $0x98] sm:$0xff]   ;;  %vm4193_vm11 = vcmask 1044480   ;;  %vm10558_vm12 = vcmask 1041409  }
  0xae   :  { %12145 = vmatprep.subr.bf16.mxu0 %v12429_v3  ;;  %5044 = vrot.lane.b32.xlu0 %v4723_v26, %s12977_s8  ;;  %v5351_v36 = vsel %vm5342_vm3, %v5345_v32, %v5350_v35  ;;  %v12454_v50 = vld [vmem:[#allocation2 + $0xa0] sm:$0xff]   ;;  %v12455_v51 = vld [vmem:[#allocation2 + $0xa8] sm:$0xff]   ;;  %v12456_v52 = vld [vmem:[#allocation2 + $0xb0] sm:$0xff]  }
  0xaf   :  { %5640 = vrot.lane.b32.xlu1 %v5351_v36, %s12978_s2  ;;  %v12488_v53 = vld [vmem:[#allocation8 + $0x50] sm:$0xff]   ;;  %v12489_v55 = vld [vmem:[#allocation8 + $0x58] sm:$0xff]   ;;  %v12492_v57 = vld [vmem:[#allocation8 + $0x60] sm:$0xff]  }
  0xb0   :  { %6235 = vmatpush1.bf16.msra.mxu1 %v12488_v53  ;;  %v12457_v54 = vld [vmem:[#allocation2 + $0xb8] sm:$0xff]   ;;  %v12458_v56 = vld [vmem:[#allocation2 + $0xc0] sm:$0xff]   ;;  %v12459_v58 = vld [vmem:[#allocation2 + $0xc8] sm:$0xff]  }
  0xb1   :  { %12146 = vmatpush3.bf16.msra.mxu0 %v12429_v3  ;;  %6236 = vmatprep.subr.bf16.mxu1 %v19754_v8  ;;  %v12460_v59 = vld [vmem:[#allocation2 + $0xd0] sm:$0xff]   ;;  %v12461_v61 = vld [vmem:[#allocation2 + $0xd8] sm:$0xff]   ;;  %v12462_v63 = vld [vmem:[#allocation2 + $0xe0] sm:$0xff]  }
  0xb2   :  { %12147 = vmatprep.subr.bf16.mxu0 %v12430_v5  ;;  %5276 = vrot.lane.b32.xlu0 %v5179_v30, %s12967_s21  ;;  %v12493_v60 = vld [vmem:[#allocation8 + $0x68] sm:$0xff]   ;;  %v12496_v62 = vld [vmem:[#allocation8 + $0x70] sm:$0xff]   ;;  %v12497_v0 = vld [vmem:[#allocation8 + $0x78] sm:$0xff]  }
  0xb3   :  { %v12463_v1 = vld [vmem:[#allocation2 + $0xe8] sm:$0xff]   ;;  %v12464_v3 = vld [vmem:[#allocation2 + $0xf0] sm:$0xff]   ;;  %v12469_v21 = vld [vmem:[#allocation2 + $0x118] sm:$0xff]  }
  0xb4   :  { %6237 = vmatpush1.bf16.msra.mxu1 %v12489_v55  ;;  %v12500_v2 = vld [vmem:[#allocation8 + $0x80] sm:$0xff]   ;;  %v12501_v4 = vld [vmem:[#allocation8 + $0x88] sm:$0xff]   ;;  %v12504_v9 = vld [vmem:[#allocation8 + $0x90] sm:$0xff]  }
  0xb5   :  { %12148 = vmatpush3.bf16.msra.mxu0 %v12430_v5  ;;  %6238 = vmatprep.subr.bf16.mxu1 %v19754_v8  ;;  %v5707_v5 = vrot.slane %v13170_v11, 2  ;;  %v12468_v16 = vld [vmem:[#allocation2 + $0x110] sm:$0xff]   ;;  %v12470_v23 = vld [vmem:[#allocation2 + $0x120] sm:$0xff]   ;;  %v12471_v24 = vld [vmem:[#allocation2 + $0x128] sm:$0xff]  }
  0xb6   :  { %12149 = vmatprep.subr.bf16.mxu0 %v12431_v6  ;;  %v12472_v25 = vld [vmem:[#allocation2 + $0x130] sm:$0xff]   ;;  %v12473_v26 = vld [vmem:[#allocation2 + $0x138] sm:$0xff]   ;;  %v12474_v27 = vld [vmem:[#allocation2 + $0x140] sm:$0xff]  }
  0xb7   :  { %v12475_v28 = vld [vmem:[#allocation2 + $0x148] sm:$0xff]   ;;  %v12476_v29 = vld [vmem:[#allocation2 + $0x150] sm:$0xff]   ;;  %v12477_v30 = vld [vmem:[#allocation2 + $0x158] sm:$0xff]  }
  0xb8   :  { %6239 = vmatpush1.bf16.msra.mxu1 %v12492_v57  ;;  %v12479_v32 = vld [vmem:[#allocation2 + $0x168] sm:$0xff]   ;;  %v12480_v33 = vld [vmem:[#allocation2 + $0x170] sm:$0xff]   ;;  %v12482_v35 = vld [vmem:[#allocation2 + $0x180] sm:$0xff]  }
  0xb9   :  { %12150 = vmatpush3.bf16.msra.mxu0 %v12431_v6  ;;  %6240 = vmatprep.subr.bf16.mxu1 %v19754_v8  ;;  %v12465_v6 = vld [vmem:[#allocation2 + $0xf8] sm:$0xff]   ;;  %v12483_v36 = vld [vmem:[#allocation2 + $0x188] sm:$0xff]   ;;  %v12498_v57 = vld [vmem:[#allocation2 + $0x1d0] sm:$0xff]  }
  0xba   :  { %12151 = vmatprep.subr.bf16.mxu0 %v12432_v7  ;;  %v12495_v53 = vld [vmem:[#allocation2 + $0x1c8] sm:$0xff]  }
  0xbc   :  { %6241 = vmatpush1.bf16.msra.mxu1 %v12493_v60 }
  0xbd   :  { %12152 = vmatpush3.bf16.msra.mxu0 %v12432_v7  ;;  %6242 = vmatprep.subr.bf16.mxu1 %v19754_v8  ;;  %v5708_v7 = vrot.slane %v13174_v14, 2 }
  0xbe   :  { %12153 = vmatprep.subr.bf16.mxu0 %v12433_v10 }
  0xbf   :  { %v13200_v12 = vsel %vm4226_vm4, %v5707_v5, %v5708_v7 }
  0xc0   :  { %6243 = vmatpush1.bf16.msra.mxu1 %v12496_v62  ;;  %19926 = vst [vmem:[#allocation25_spill] sm:$0xff] %v13200_v12  ;;  %11520 = vmatprep.mubr.msk.bf16.mxu1 %vm5806_vm5, %v13200_v12 }
  0xc1   :  { %12154 = vmatpush3.bf16.msra.mxu0 %v12433_v10  ;;  %6244 = vmatprep.subr.bf16.mxu1 %v19754_v8  ;;  %v12466_v10 = vld [vmem:[#allocation2 + $0x100] sm:$0xff]  }
  0xc2   :  { %6959 = vmatprep.subr.bf16.mxu0 %v19754_v8 }
  0xc4   :  { %12156 = vmatmul.mubr.bf16.vlgmr.msra.gmra.mrb[0].mxu0 %v12435_v13  ;;  %6245 = vmatpush1.bf16.msra.mxu1 %v12497_v0  ;;  %v12505_v13 = vld [vmem:[#allocation8 + $0x98] sm:$0xff]  }
  0xc5   :  { %12159 = vmatprep.mubr.bf16.mxu0 %v12436_v15  ;;  %6246 = vmatprep.subr.bf16.mxu1 %v19754_v8  ;;  %v12467_v15 = vld [vmem:[#allocation2 + $0x108] sm:$0xff]  }
  0xc8   :  { %6247 = vmatpush1.bf16.msra.mxu1 %v12500_v2 }
  0xc9   :  { %6248 = vmatprep.subr.bf16.mxu1 %v19754_v8 }
  0xcc   :  { %12160 = vmatmul.mubr.bf16.gmra.mrb[4].mxu0 %v12437_v19  ;;  %6249 = vmatpush1.bf16.msra.mxu1 %v12501_v4 }
  0xcd   :  { %12163 = vmatprep.mubr.bf16.mxu0 %v12438_v20  ;;  %6250 = vmatprep.subr.bf16.mxu1 %v19754_v8 }
  0xd0   :  { %6251 = vmatpush1.bf16.msra.mxu1 %v12504_v9 }
  0xd1   :  { %6252 = vmatprep.subr.bf16.mxu1 %v19754_v8 }
  0xd4   :  { %12164 = vmatmul.mubr.bf16.gmra.mrb[8].mxu0 %v12439_v31  ;;  %6253 = vmatpush1.bf16.msra.mxu1 %v12505_v13  ;;  %v12478_v31 = vld [vmem:[#allocation2 + $0x160] sm:$0xff]  }
  0xd5   :  { %12167 = vmatprep.mubr.bf16.mxu0 %v12440_v34  ;;  %6583 = vmatprep.subr.bf16.mxu1 %v19754_v8  ;;  %v12481_v34 = vld [vmem:[#allocation2 + $0x178] sm:$0xff]  }
  0xdc   :  { %12168 = vmatmul.mubr.bf16.gmra.mrb[12].mxu0 %v12441_v37  ;;  %v12484_v37 = vld [vmem:[#allocation2 + $0x190] sm:$0xff]  }
  0xdd   :  { %12171 = vmatprep.mubr.bf16.mxu0 %v12442_v38  ;;  %v12485_v38 = vld [vmem:[#allocation2 + $0x198] sm:$0xff]  }
  0xe4   :  { %12172 = vmatmul.mubr.bf16.gmra.mrb[16].mxu0 %v12443_v39  ;;  %v12486_v39 = vld [vmem:[#allocation2 + $0x1a0] sm:$0xff]  }
  0xe5   :  { %12175 = vmatprep.mubr.bf16.mxu0 %v12444_v40  ;;  %v12487_v40 = vld [vmem:[#allocation2 + $0x1a8] sm:$0xff]  }
  0xec   :  { %12176 = vmatmul.mubr.bf16.gmra.mrb[20].mxu0 %v12445_v41  ;;  %v12490_v41 = vld [vmem:[#allocation2 + $0x1b0] sm:$0xff]  }
  0xed   :  { %12179 = vmatprep.mubr.bf16.mxu0 %v12446_v42 }
  0xf4   :  { %12180 = vmatmul.mubr.bf16.gmra.mrb[24].mxu0 %v12447_v43 }
  0xf5   :  { %12183 = vmatprep.mubr.bf16.mxu0 %v12448_v44  ;;  %v12491_v44 = vld [vmem:[#allocation2 + $0x1b8] sm:$0xff]  }
  0xfc   :  { %12184 = vmatmul.mubr.bf16.gmra.mrb[28].mxu0 %v12449_v45 }
  0xfd   :  { %12187 = vmatprep.mubr.bf16.mxu0 %v12450_v46  ;;  %v12494_v46 = vld [vmem:[#allocation2 + $0x1c0] sm:$0xff]  }
 0x104   :  { %12188 = vmatmul.mubr.bf16.gmra.mrb[32].mxu0 %v12451_v47 }
 0x105   :  { %12191 = vmatprep.mubr.bf16.mxu0 %v12452_v48  ;;  %v13212_v48 = vld [vmem:[#allocation7] ss:$0 sm:$0xff] }
 0x10c   :  { %12192 = vmatmul.mubr.bf16.gmra.mrb[36].mxu0 %v12453_v49 }
 0x10d   :  { %12195 = vmatprep.mubr.bf16.mxu0 %v12454_v50 }
 0x114   :  { %12196 = vmatmul.mubr.bf16.gmra.mrb[40].mxu0 %v12455_v51 }
 0x115   :  { %12199 = vmatprep.mubr.bf16.mxu0 %v12456_v52 }
 0x11c   :  { %12200 = vmatmul.mubr.bf16.gmra.mrb[44].mxu0 %v12457_v54 }
 0x11d   :  { %12203 = vmatprep.mubr.bf16.mxu0 %v12458_v56 }
 0x120   :  { %v5045_v14 = vpop.permute.xlu0 %5044 }
 0x121   :  { %v5808_v17 = vsel %vm5806_vm5, %v13170_v11, %v5045_v14  ;;  %v5641_v20 = vpop.permute.xlu1 %5640 }
 0x124   :  { %12204 = vmatmul.mubr.bf16.gmra.mrb[48].mxu0 %v12459_v58  ;;  %v5277_v18 = vpop.permute.xlu0 %5276 }
 0x125   :  { %12207 = vmatprep.mubr.bf16.mxu0 %v12460_v59  ;;  %v5875_v19 = vsel %vm5873_vm6, %v5808_v17, %v5277_v18 }
 0x126   :  { %v13209_v22 = vsel %vm5940_vm7, %v5875_v19, %v5641_v20  ;;  %v12502_v19 = vld [vmem:[#allocation2 + $0x1e0] sm:$0xff]  }
 0x127   :  { %19927 = vst [vmem:[#allocation26_spill] sm:$0xff] %v13209_v22  ;;  %6267 = vmatmul.mubr.bf16.vlgmr.msra.gmra.mrb[0].mxu1 %v13209_v22 }
 0x12c   :  { %12208 = vmatmul.mubr.bf16.gmra.mrb[52].mxu0 %v12461_v61 }
 0x12d   :  { %12211 = vmatprep.mubr.bf16.mxu0 %v12462_v63 }
 0x134   :  { %12212 = vmatmul.mubr.bf16.gmra.mrb[56].mxu0 %v12463_v1 }
 0x135   :  { %12215 = vmatprep.mubr.bf16.mxu0 %v12464_v3 }
 0x13c   :  { %12216 = vmatmul.mubr.bf16.gmra.mrb[60].mxu0 %v12465_v6 }
 0x13d   :  { %12219 = vmatprep.mubr.bf16.mxu0 %v12466_v10 }
 0x144   :  { %12220 = vmatmul.mubr.bf16.gmra.mrb[64].mxu0 %v12467_v15  ;;  %v12499_v15 = vld [vmem:[#allocation2 + $0x1d8] sm:$0xff]  }
 0x145   :  { %12223 = vmatprep.mubr.bf16.mxu0 %v12468_v16 }
 0x14c   :  { %12224 = vmatmul.mubr.bf16.gmra.mrb[68].mxu0 %v12469_v21 }
 0x14d   :  { %12227 = vmatprep.mubr.bf16.mxu0 %v12470_v23 }
 0x154   :  { %12228 = vmatmul.mubr.bf16.gmra.mrb[72].mxu0 %v12471_v24 }
 0x155   :  { %12231 = vmatprep.mubr.bf16.mxu0 %v12472_v25 }
 0x15c   :  { %12232 = vmatmul.mubr.bf16.gmra.mrb[76].mxu0 %v12473_v26 }
 0x15d   :  { %12235 = vmatprep.mubr.bf16.mxu0 %v12474_v27 }
 0x164   :  { %12236 = vmatmul.mubr.bf16.gmra.mrb[80].mxu0 %v12475_v28 }
 0x165   :  { %12239 = vmatprep.mubr.bf16.mxu0 %v12476_v29 }
 0x16c   :  { %12240 = vmatmul.mubr.bf16.gmra.mrb[84].mxu0 %v12477_v30 }
 0x16d   :  { %12243 = vmatprep.mubr.bf16.mxu0 %v12478_v31 }
 0x174   :  { %12244 = vmatmul.mubr.bf16.gmra.mrb[88].mxu0 %v12479_v32 }
 0x175   :  { %12247 = vmatprep.mubr.bf16.mxu0 %v12480_v33 }
 0x17c   :  { %12248 = vmatmul.mubr.bf16.gmra.mrb[92].mxu0 %v12481_v34 }
 0x17d   :  { %12251 = vmatprep.mubr.bf16.mxu0 %v12482_v35 }
 0x184   :  { %12252 = vmatmul.mubr.bf16.gmra.mrb[96].mxu0 %v12483_v36 }
 0x185   :  { %12255 = vmatprep.mubr.bf16.mxu0 %v12484_v37 }
 0x18c   :  { %12256 = vmatmul.mubr.bf16.gmra.mrb[100].mxu0 %v12485_v38 }
 0x18d   :  { %12259 = vmatprep.mubr.bf16.mxu0 %v12486_v39 }
 0x194   :  { %12260 = vmatmul.mubr.bf16.gmra.mrb[104].mxu0 %v12487_v40 }
 0x195   :  { %12263 = vmatprep.mubr.bf16.mxu0 %v12490_v41 }
 0x197   :  { %v12157_v42 = vpop.f32.mrb[0].mxu0 }
 0x198   :  { %v1277_v43 = vpop.f32.mrb[1].mxu0  ;;  %v1286_v50 = vadd.f32 %v12157_v42, %v13212_v48 }
 0x199   :  { %v12158_v45 = vpop.f32.mrb[2].mxu0  ;;  %v1278_v54 = vadd.f32 %v13212_v48, %v1277_v43 }
 0x19a   :  { %v1280_v47 = vpop.f32.mrb[3].mxu0  ;;  %v1289_v58 = vadd.f32 %v12158_v45, %v13212_v48 }
 0x19b   :  { %v1281_v62 = vadd.f32 %v13212_v48, %v1280_v47 }
 0x19c   :  { %12264 = vmatmul.mubr.bf16.gmra.mrb[108].mxu0 %v12491_v44 }
 0x19d   :  { %12267 = vmatprep.mubr.bf16.mxu0 %v12494_v46 }
 0x19f   :  { %v12161_v49 = vpop.f32.mrb[4].mxu0 }
 0x1a0   :  { %v1302_v51 = vadd.f32 %v12161_v49, %v13212_v48  ;;  %v1293_v52 = vpop.f32.mrb[5].mxu0 }
 0x1a1   :  { %v1294_v55 = vadd.f32 %v13212_v48, %v1293_v52  ;;  %v12162_v56 = vpop.f32.mrb[6].mxu0 }
 0x1a2   :  { %v2302_v59 = vmax.f32 %v1286_v50, %v1302_v51  ;;  %v1305_v60 = vadd.f32 %v12162_v56, %v13212_v48  ;;  %v1296_v61 = vpop.f32.mrb[7].mxu0  ;;  %v12503_v51 = vld [vmem:[#allocation2 + $0x1e8] sm:$0xff]   ;;  %v12506_v56 = vld [vmem:[#allocation2 + $0x1f0] sm:$0xff]  }
 0x1a3   :  { %v2300_v63 = vmax.f32 %v1278_v54, %v1294_v55  ;;  %v1297_v0 = vadd.f32 %v13212_v48, %v1296_v61 }
 0x1a4   :  { %v2303_v1 = vmax.f32 %v1289_v58, %v1305_v60  ;;  %12268 = vmatmul.mubr.bf16.gmra.mrb[112].mxu0 %v12495_v53  ;;  %v2560_v3 = vrot.slane %v2302_v59, 1 }
 0x1a5   :  { %v2301_v2 = vmax.f32 %v1281_v62, %v1297_v0  ;;  %12271 = vmatprep.mubr.bf16.mxu0 %v12498_v57  ;;  %v2557_v5 = vrot.slane %v2300_v63, 1 }
 0x1a6   :  { %v2562_v4 = vrot.slane %v2303_v1, 1 }
 0x1a7   :  { %v2558_v6 = vrot.slane %v2301_v2, 1  ;;  %v12165_v7 = vpop.f32.mrb[8].mxu0 }
 0x1a8   :  { %v2563_v9 = vsel %vm2556_vm1, %v2560_v3, %v2562_v4  ;;  %v2912_v10 = vmax.f32 %v2303_v1, %v2562_v4  ;;  %v1309_v13 = vpop.f32.mrb[9].mxu0  ;;  %v1318_v20 = vadd.f32 %v12165_v7, %v13212_v48 }
 0x1a9   :  { %v2911_v14 = vmax.f32 %v2302_v59, %v2563_v9  ;;  %v2559_v16 = vsel %vm2556_vm1, %v2557_v5, %v2558_v6  ;;  %v2561_v17 = vsel %vm2556_vm1, %v2558_v6, %v2560_v3  ;;  %v12166_v18 = vpop.f32.mrb[10].mxu0  ;;  %v1310_v21 = vadd.f32 %v13212_v48, %v1309_v13 }
 0x1aa   :  { %v1312_v23 = vpop.f32.mrb[11].mxu0  ;;  %v3805_v26 = vrot.slane %v2912_v10, 4  ;;  %v2909_v27 = vmax.f32 %v2300_v63, %v2559_v16  ;;  %v3869_v28 = vrot.slane %v2912_v10, 5  ;;  %v3933_v29 = vrot.slane %v2912_v10, 6 }
 0x1ab   :  { %v3581_v24 = vrot.slane %v2911_v14, 1  ;;  %v3645_v25 = vrot.slane %v2911_v14, 2  ;;  %v3997_v30 = vrot.slane %v2912_v10, 7  ;;  %v2910_v31 = vmax.f32 %v2301_v2, %v2561_v17 }
 0x1ac   :  { %12272 = vmatmul.mubr.bf16.gmra.mrb[116].mxu0 %v12499_v15  ;;  %v3709_v32 = vrot.slane %v2911_v14, 3  ;;  %v3069_v34 = vrot.slane %v2909_v27, 1  ;;  %v3133_v35 = vrot.slane %v2909_v27, 2  ;;  %v3197_v37 = vrot.slane %v2909_v27, 3 }
 0x1ad   :  { %v4291_v33 = vsel %vm4061_vm0, %v2911_v14, %v3581_v24  ;;  %12275 = vmatprep.mubr.bf16.mxu0 %v12502_v19  ;;  %v1321_v38 = vadd.f32 %v12166_v18, %v13212_v48  ;;  %v1313_v39 = vadd.f32 %v13212_v48, %v1312_v23  ;;  %v3293_v41 = vrot.slane %v2910_v31, 4  ;;  %v12507_v19 = vld [vmem:[#allocation2 + $0x1f8] sm:$0xff]  }
 0x1ae   :  { %v4323_v36 = vsel %vm4094_vm8, %v4291_v33, %v3645_v25  ;;  %v3357_v42 = vrot.slane %v2910_v31, 5  ;;  %v4062_v43 = vsel %vm4061_vm0, %v2909_v27, %v3069_v34  ;;  %v3421_v46 = vrot.slane %v2910_v31, 6 }
 0x1af   :  { %v4355_v40 = vsel %vm4127_vm9, %v4323_v36, %v3709_v32  ;;  %v12169_v44 = vpop.f32.mrb[12].mxu0  ;;  %v4095_v47 = vsel %vm4094_vm8, %v4062_v43, %v3133_v35  ;;  %v3485_v52 = vrot.slane %v2910_v31, 7 }
 0x1b0   :  { %v4387_v45 = vsel %vm4160_vm10, %v4355_v40, %v3805_v26  ;;  %v1334_v49 = vadd.f32 %v12169_v44, %v13212_v48  ;;  %v1325_v50 = vpop.f32.mrb[13].mxu0  ;;  %v4128_v53 = vsel %vm4127_vm9, %v4095_v47, %v3197_v37  ;;  %v12508_v26 = vld [vmem:[#allocation2 + $0x200] sm:$0xff]  }
 0x1b1   :  { %v1326_v54 = vadd.f32 %v13212_v48, %v1325_v50  ;;  %v12170_v55 = vpop.f32.mrb[14].mxu0  ;;  %v4419_v57 = vsel %vm4193_vm11, %v4387_v45, %v3869_v28  ;;  %v4161_v58 = vsel %vm4160_vm10, %v4128_v53, %v3293_v41  ;;  %v12533_v53 = vld [vmem:[#allocation8 + $0xa0] sm:$0xff]  }
 0x1b2   :  { %v2306_v59 = vmax.f32 %v1318_v20, %v1334_v49  ;;  %v1337_v60 = vadd.f32 %v12170_v55, %v13212_v48  ;;  %v1328_v61 = vpop.f32.mrb[15].mxu0  ;;  %v4451_v62 = vsel %vm4226_vm4, %v4419_v57, %v3933_v29  ;;  %v4194_v1 = vsel %vm4193_vm11, %v4161_v58, %v3357_v42  ;;  %6960 = vmatpush1.bf16.msra.mxu0 %v12533_v53 }
 0x1b3   :  { %v2304_v63 = vmax.f32 %v1310_v21, %v1326_v54  ;;  %v1329_v0 = vadd.f32 %v13212_v48, %v1328_v61  ;;  %v4483_v2 = vsel %vm2556_vm1, %v4451_v62, %v3997_v30  ;;  %v4227_v4 = vsel %vm4226_vm4, %v4194_v1, %v3421_v46  ;;  %v12510_v1 = vld [vmem:[#allocation2 + $0x210] sm:$0xff]   ;;  %6961 = vmatprep.subr.bf16.mxu0 %v19754_v8 }
 0x1b4   :  { %v2307_v3 = vmax.f32 %v1321_v38, %v1337_v60  ;;  %12276 = vmatmul.mubr.bf16.gmra.mrb[120].mxu0 %v12503_v51  ;;  %v4259_v6 = vsel %vm2556_vm1, %v4227_v4, %v3485_v52  ;;  %v2567_v7 = vrot.slane %v2306_v59, 1 }
 0x1b5   :  { %v2305_v5 = vmax.f32 %v1313_v39, %v1329_v0  ;;  %12279 = vmatprep.mubr.bf16.mxu0 %v12506_v56  ;;  %v4515_v10 = vpack.c.bf16 %v4483_v2, %v4259_v6  ;;  %v2564_v13 = vrot.slane %v2304_v63, 1 }
 0x1b6   :  { %v2569_v9 = vrot.slane %v2307_v3, 1 }
 0x1b7   :  { %v2565_v15 = vrot.slane %v2305_v5, 1  ;;  %v12173_v14 = vpop.f32.mrb[16].mxu0  ;;  %v4581_v20 = vrot.slane %v4515_v10, 7 }
 0x1b8   :  { %v2570_v16 = vsel %vm2556_vm1, %v2567_v7, %v2569_v9  ;;  %v13248_v17 = vmax.f32 %v2307_v3, %v2569_v9  ;;  %v1341_v18 = vpop.f32.mrb[17].mxu0  ;;  %v1350_v28 = vadd.f32 %v12173_v14, %v13212_v48 }
 0x1b9   :  { %v13250_v21 = vmax.f32 %v2306_v59, %v2570_v16  ;;  %v2566_v23 = vsel %vm2556_vm1, %v2564_v13, %v2565_v15  ;;  %v2568_v24 = vsel %vm2556_vm1, %v2565_v15, %v2567_v7  ;;  %v12174_v25 = vpop.f32.mrb[18].mxu0  ;;  %v1342_v29 = vadd.f32 %v13212_v48, %v1341_v18  ;;  %v12509_v59 = vld [vmem:[#allocation2 + $0x208] sm:$0xff]  }
 0x1ba   :  { %v3806_v27 = vrot.slane %v13248_v17, 4  ;;  %v1344_v30 = vpop.f32.mrb[19].mxu0  ;;  %v3870_v33 = vrot.slane %v13248_v17, 5  ;;  %v13260_v34 = vmax.f32 %v2304_v63, %v2566_v23  ;;  %v3934_v35 = vrot.slane %v13248_v17, 6 }
 0x1bb   :  { %v3582_v31 = vrot.slane %v13250_v21, 1  ;;  %v3646_v32 = vrot.slane %v13250_v21, 2  ;;  %v3998_v36 = vrot.slane %v13248_v17, 7  ;;  %v13264_v37 = vmax.f32 %v2305_v5, %v2568_v24 }
 0x1bc   :  { %12280 = vmatmul.mubr.bf16.gmra.mrb[124].mxu0 %v12507_v19  ;;  %v13267_v38 = vsel %vm4061_vm0, 0, %v4581_v20  ;;  %v3710_v39 = vrot.slane %v13250_v21, 3  ;;  %v3070_v41 = vrot.slane %v13260_v34, 1  ;;  %v1353_v42 = vadd.f32 %v12174_v25, %v13212_v48 }
 0x1bd   :  { %v4292_v40 = vsel %vm4061_vm0, %v13250_v21, %v3582_v31  ;;  %12283 = vmatprep.mubr.bf16.mxu0 %v12508_v26  ;;  %v3134_v44 = vrot.slane %v13260_v34, 2  ;;  %v3198_v45 = vrot.slane %v13260_v34, 3  ;;  %v1345_v46 = vadd.f32 %v13212_v48, %v1344_v30 }
 0x1be   :  { %v13275_v43 = vsel %vm4094_vm8, %v4292_v40, %v3646_v32  ;;  %v3294_v47 = vrot.slane %v13264_v37, 4  ;;  %v3358_v49 = vrot.slane %v13264_v37, 5  ;;  %v4681_v50 = vsel %vm4061_vm0, %v4581_v20, 0 }
 0x1bf   :  { %v5710_v51 = vrot.slane %v13267_v38, 2  ;;  %v12177_v52 = vpop.f32.mrb[20].mxu0  ;;  %v4063_v54 = vsel %vm4061_vm0, %v13260_v34, %v3070_v41  ;;  %v5711_v55 = vrot.slane %v4681_v50, 2  ;;  %v5180_v56 = vrot.slane %v13267_v38, 1 }
 0x1c0   :  { %v5181_v57 = vrot.slane %v4681_v50, 1  ;;  %v1357_v58 = vpop.f32.mrb[21].mxu0  ;;  %v1366_v60 = vadd.f32 %v12177_v52, %v13212_v48  ;;  %v4724_v63 = vshrl.u32 %v13267_v38, 16  ;;  %v4726_v0 = vshll.u32 %v13267_v38, 16 }
 0x1c1   :  { %v1358_v61 = vadd.f32 %v13212_v48, %v1357_v58  ;;  %v12178_v62 = vpop.f32.mrb[22].mxu0  ;;  %v13292_v2 = vsel %vm4226_vm4, %v5710_v51, %v5711_v55  ;;  %v4730_v5 = vshll.u32 %v4681_v50, 16  ;;  %v3422_v15 = vrot.slane %v13264_v37, 6  ;;  %v12511_v55 = vld [vmem:[#allocation2 + $0x218] sm:$0xff]   ;;  %v12512_v58 = vld [vmem:[#allocation2 + $0x220] sm:$0xff]  }
 0x1c2   :  { %19928 = vst [vmem:[#allocation27_spill] sm:$0xff] %v13292_v2  ;;  %v5182_v3 = vsel %vm2556_vm1, %v5180_v56, %v5181_v57  ;;  %v1369_v4 = vadd.f32 %v12178_v62, %v13212_v48  ;;  %v1360_v6 = vpop.f32.mrb[23].mxu0  ;;  %11521 = vmatprep.mubr.msk.bf16.mxu1 %vm5806_vm5, %v13292_v2  ;;  %v2310_v7 = vmax.f32 %v1350_v28, %v1366_v60  ;;  %v4728_v10 = vrot.slane %v4726_v0, 1 }
 0x1c3   :  { %5278 = vrot.lane.b32.xlu0 %v5182_v3, %s12967_s21  ;;  %v2308_v9 = vmax.f32 %v1342_v29, %v1358_v61  ;;  %v1361_v13 = vadd.f32 %v13212_v48, %v1360_v6  ;;  %v5352_v16 = vrot.slane %v4724_v63, 1  ;;  %v5353_v18 = vrot.slane %v4726_v0, 2 }
 0x1c4   :  { %v2311_v14 = vmax.f32 %v1353_v42, %v1369_v4  ;;  %12284 = vmatmul.mubr.bf16.gmra.mrb[128].mxu0 %v12509_v59  ;;  %v3486_v19 = vrot.slane %v13264_v37, 7  ;;  %v4729_v20 = vor.u32 %v4728_v10, %v4724_v63  ;;  %v4732_v23 = vrot.slane %v4730_v5, 1 }
 0x1c5   :  { %v2309_v24 = vmax.f32 %v1345_v46, %v1361_v13  ;;  %12287 = vmatprep.mubr.bf16.mxu0 %v12510_v1  ;;  %v4096_v25 = vsel %vm4094_vm8, %v4063_v54, %v3134_v44  ;;  %v2574_v26 = vrot.slane %v2310_v7, 1  ;;  %v5355_v29 = vshrl.u32 %v4681_v50, 16 }
 0x1c6   :  { %v2576_v28 = vrot.slane %v2311_v14, 1  ;;  %v2571_v30 = vrot.slane %v2308_v9, 1  ;;  %v4733_v31 = vsel %vm4713_vm2, %v4729_v20, %v4732_v23  ;;  %v5354_v40 = vor.u32 %v5353_v18, %v5352_v16 }
 0x1c7   :  { %v2572_v32 = vrot.slane %v2309_v24, 1  ;;  %v12181_v41 = vpop.f32.mrb[24].mxu0  ;;  %5046 = vrot.lane.b32.xlu1 %v4733_v31, %s12977_s8  ;;  %v5357_v52 = vrot.slane %v5355_v29, 1  ;;  %v5358_v46 = vrot.slane %v4730_v5, 2  ;;  %v4129_v57 = vsel %vm4127_vm9, %v4096_v25, %v3198_v45  ;;  %v12513_v31 = vld [vmem:[#allocation2 + $0x228] sm:$0xff]  }
 0x1c8   :  { %v2577_v42 = vsel %vm2556_vm1, %v2574_v26, %v2576_v28  ;;  %v13306_v51 = vmax.f32 %v2311_v14, %v2576_v28  ;;  %v1373_v53 = vpop.f32.mrb[25].mxu0  ;;  %v1382_v60 = vadd.f32 %v12181_v41, %v13212_v48  ;;  %v4356_v63 = vsel %vm4127_vm9, %v13275_v43, %v3710_v39 }
 0x1c9   :  { %v13309_v44 = vmax.f32 %v2310_v7, %v2577_v42  ;;  %v2573_v50 = vsel %vm2556_vm1, %v2571_v30, %v2572_v32  ;;  %v2575_v54 = vsel %vm2556_vm1, %v2572_v32, %v2574_v26  ;;  %v12182_v56 = vpop.f32.mrb[26].mxu0  ;;  %v1374_v61 = vadd.f32 %v13212_v48, %v1373_v53 }
 0x1ca   :  { %v3807_v59 = vrot.slane %v13306_v51, 4  ;;  %v1376_v62 = vpop.f32.mrb[27].mxu0  ;;  %v3871_v34 = vrot.slane %v13306_v51, 5  ;;  %v2917_v45 = vmax.f32 %v2308_v9, %v2573_v50  ;;  %v2918_v4 = vmax.f32 %v2309_v24, %v2575_v54 }
 0x1cb   :  { %v3583_v0 = vrot.slane %v13309_v44, 1  ;;  %v3647_v1 = vrot.slane %v13309_v44, 2  ;;  %v3711_v3 = vrot.slane %v13309_v44, 3  ;;  %v5359_v5 = vor.u32 %v5358_v46, %v5357_v52 }
 0x1cc   :  { %v1385_v6 = vadd.f32 %v12182_v56, %v13212_v48  ;;  %12288 = vmatmul.mubr.bf16.gmra.mrb[132].mxu0 %v12511_v55  ;;  %v3071_v7 = vrot.slane %v2917_v45, 1  ;;  %v3135_v10 = vrot.slane %v2917_v45, 2  ;;  %v1377_v39 = vadd.f32 %v13212_v48, %v1376_v62 }
 0x1cd   :  { %v4293_v21 = vsel %vm4061_vm0, %v13309_v44, %v3583_v0  ;;  %12291 = vmatprep.mubr.bf16.mxu0 %v12512_v58  ;;  %v3199_v13 = vrot.slane %v2917_v45, 3  ;;  %v3295_v14 = vrot.slane %v2918_v4, 4  ;;  %v3359_v9 = vrot.slane %v2918_v4, 5 }
 0x1ce   :  { %v4325_v43 = vsel %vm4094_vm8, %v4293_v21, %v3647_v1  ;;  %v3423_v16 = vrot.slane %v2918_v4, 6  ;;  %v4064_v18 = vsel %vm4061_vm0, %v2917_v45, %v3071_v7  ;;  %v5360_v20 = vsel %vm5342_vm3, %v5354_v40, %v5359_v5  ;;  %v12515_v21 = vld [vmem:[#allocation2 + $0x238] sm:$0xff]  }
 0x1cf   :  { %v4162_v23 = vsel %vm4160_vm10, %v4129_v57, %v3294_v47  ;;  %v12185_v24 = vpop.f32.mrb[28].mxu0  ;;  %v4097_v25 = vsel %vm4094_vm8, %v4064_v18, %v3135_v10  ;;  %5642 = vrot.lane.b32.xlu1 %v5360_v20, %s12978_s2  ;;  %v4388_v28 = vsel %vm4160_vm10, %v4356_v63, %v3806_v27  ;;  %v3487_v37 = vrot.slane %v2918_v4, 7 }
 0x1d0   :  { %v4195_v26 = vsel %vm4193_vm11, %v4162_v23, %v3358_v49  ;;  %v1398_v29 = vadd.f32 %v12185_v24, %v13212_v48  ;;  %v1389_v30 = vpop.f32.mrb[29].mxu0  ;;  %v4420_v32 = vsel %vm4193_vm11, %v4388_v28, %v3870_v33  ;;  %v12514_v49 = vld [vmem:[#allocation2 + $0x230] sm:$0xff]   ;;  %v4130_v42 = vsel %vm4127_vm9, %v4097_v25, %v3199_v13 }
 0x1d1   :  { %v4228_v47 = vsel %vm4226_vm4, %v4195_v26, %v3422_v15  ;;  %v1390_v40 = vadd.f32 %v13212_v48, %v1389_v30  ;;  %v12186_v41 = vpop.f32.mrb[30].mxu0  ;;  %v4452_v52 = vsel %vm4226_vm4, %v4420_v32, %v3934_v35  ;;  %v4163_v50 = vsel %vm4160_vm10, %v4130_v42, %v3295_v14 }
 0x1d2   :  { %v4260_v27 = vsel %vm2556_vm1, %v4228_v47, %v3486_v19  ;;  %v2314_v46 = vmax.f32 %v1382_v60, %v1398_v29  ;;  %v1401_v15 = vadd.f32 %v12186_v41, %v13212_v48  ;;  %v1392_v53 = vpop.f32.mrb[31].mxu0  ;;  %v4484_v33 = vsel %vm2556_vm1, %v4452_v52, %v3998_v36 }
 0x1d3   :  { %v2312_v55 = vmax.f32 %v1374_v61, %v1390_v40  ;;  %v1393_v44 = vadd.f32 %v13212_v48, %v1392_v53  ;;  %v4516_v54 = vpack.c.bf16 %v4484_v33, %v4260_v27  ;;  %v4196_v56 = vsel %vm4193_vm11, %v4163_v50, %v3359_v9  ;;  %v12517_v50 = vld [vmem:[#allocation2 + $0x248] sm:$0xff]  }
 0x1d4   :  { %v2315_v19 = vmax.f32 %v1385_v6, %v1401_v15  ;;  %12292 = vmatmul.mubr.bf16.gmra.mrb[136].mxu0 %v12513_v31  ;;  %v2581_v35 = vrot.slane %v2314_v46, 1  ;;  %v4229_v58 = vsel %vm4226_vm4, %v4196_v56, %v3423_v16  ;;  %v4357_v17 = vsel %vm4127_vm9, %v4325_v43, %v3711_v3  ;;  %v12516_v43 = vld [vmem:[#allocation2 + $0x240] sm:$0xff]  }
 0x1d5   :  { %v2313_v57 = vmax.f32 %v1377_v39, %v1393_v44  ;;  %12295 = vmatprep.mubr.bf16.mxu0 %v12514_v49  ;;  %v4582_v60 = vrot.slane %v4516_v54, 7  ;;  %v13370_v61 = vsel %vm2556_vm1, %v4229_v58, %v3487_v37  ;;  %v4389_v62 = vsel %vm4160_vm10, %v4357_v17, %v3807_v59 }
 0x1d6   :  { %v2583_v36 = vrot.slane %v2315_v19, 1  ;;  %v4421_v1 = vsel %vm4193_vm11, %v4389_v62, %v3871_v34  ;;  %v3935_v13 = vrot.slane %v13306_v51, 6  ;;  %v2578_v14 = vrot.slane %v2312_v55, 1 }
 0x1d7   :  { %v2579_v63 = vrot.slane %v2313_v57, 1  ;;  %v12189_v0 = vpop.f32.mrb[32].mxu0  ;;  %v13377_v45 = vsel %vm4061_vm0, 0, %v4582_v60  ;;  %v13380_v4 = vsel %vm4061_vm0, %v4582_v60, 0  ;;  %v3999_v16 = vrot.slane %v13306_v51, 7 }
 0x1d8   :  { %v2584_v3 = vsel %vm2556_vm1, %v2581_v35, %v2583_v36  ;;  %v13383_v5 = vmax.f32 %v2315_v19, %v2583_v36  ;;  %v1405_v6 = vpop.f32.mrb[33].mxu0  ;;  %v5183_v7 = vrot.slane %v13377_v45, 1  ;;  %v5184_v59 = vrot.slane %v13380_v4, 1 }
 0x1d9   :  { %v13387_v10 = vmax.f32 %v2314_v46, %v2584_v3  ;;  %v4734_v34 = vshrl.u32 %v13377_v45, 16  ;;  %v12190_v39 = vpop.f32.mrb[34].mxu0  ;;  %v4736_v24 = vshll.u32 %v13377_v45, 16  ;;  %v4740_v25 = vshll.u32 %v13380_v4, 16 }
 0x1da   :  { %v1408_v9 = vpop.f32.mrb[35].mxu0  ;;  %v5185_v18 = vsel %vm2556_vm1, %v5183_v7, %v5184_v59  ;;  %v3808_v23 = vrot.slane %v13383_v5, 4  ;;  %v2580_v26 = vsel %vm2556_vm1, %v2578_v14, %v2579_v63  ;;  %v2582_v28 = vsel %vm2556_vm1, %v2579_v63, %v2581_v35 }
 0x1db   :  { %v3584_v20 = vrot.slane %v13387_v10, 1  ;;  %5280 = vrot.lane.b32.xlu1 %v5185_v18, %s12967_s21  ;;  %v3872_v29 = vrot.slane %v13383_v5, 5  ;;  %v2921_v51 = vmax.f32 %v2312_v55, %v2580_v26  ;;  %v13401_v30 = vmax.f32 %v2313_v57, %v2582_v28  ;;  %v12518_v57 = vld [vmem:[#allocation2 + $0x250] sm:$0xff]  }
 0x1dc   :  { %12296 = vmatmul.mubr.bf16.gmra.mrb[140].mxu0 %v12515_v21  ;;  %v5361_v31 = vrot.slane %v4734_v34, 1  ;;  %v3648_v47 = vrot.slane %v13387_v10, 2  ;;  %v3936_v32 = vrot.slane %v13383_v5, 6  ;;  %v4738_v40 = vrot.slane %v4736_v24, 1 }
 0x1dd   :  { %12299 = vmatprep.mubr.bf16.mxu0 %v12516_v43  ;;  %v5362_v41 = vrot.slane %v4736_v24, 2  ;;  %v4294_v49 = vsel %vm4061_vm0, %v13387_v10, %v3584_v20  ;;  %v4742_v42 = vrot.slane %v4740_v25, 1  ;;  %v3072_v27 = vrot.slane %v2921_v51, 1 }
 0x1de   :  { %v3136_v52 = vrot.slane %v2921_v51, 2  ;;  %v4739_v15 = vor.u32 %v4738_v40, %v4734_v34  ;;  %v3200_v53 = vrot.slane %v2921_v51, 3  ;;  %v3296_v33 = vrot.slane %v13401_v30, 4 }
 0x1df   :  { %v12193_v46 = vpop.f32.mrb[36].mxu0  ;;  %v3360_v55 = vrot.slane %v13401_v30, 5  ;;  %v4065_v37 = vsel %vm4061_vm0, %v2921_v51, %v3072_v27  ;;  %v5363_v54 = vor.u32 %v5362_v41, %v5361_v31  ;;  %v5364_v19 = vshrl.u32 %v13380_v4, 16 }
 0x1e0   :  { %v1421_v44 = vpop.f32.mrb[37].mxu0  ;;  %v5367_v56 = vrot.slane %v4740_v25, 2  ;;  %v4743_v58 = vsel %vm4713_vm2, %v4739_v15, %v4742_v42  ;;  %v4098_v17 = vsel %vm4094_vm8, %v4065_v37, %v3136_v52  ;;  %v1414_v60 = vadd.f32 %v12189_v0, %v13212_v48  ;;  %v12519_v42 = vld [vmem:[#allocation2 + $0x258] sm:$0xff]  }
 0x1e1   :  { %v12194_v35 = vpop.f32.mrb[38].mxu0  ;;  %v1406_v36 = vadd.f32 %v13212_v48, %v1405_v6  ;;  %5048 = vrot.lane.b32.xlu0 %v4743_v58, %s12977_s8  ;;  %v5366_v63 = vrot.slane %v5364_v19, 1  ;;  %v1417_v3 = vadd.f32 %v12190_v39, %v13212_v48  ;;  %v1409_v21 = vadd.f32 %v13212_v48, %v1408_v9 }
 0x1e2   :  { %v1424_v62 = vpop.f32.mrb[39].mxu0  ;;  %v4453_v7 = vsel %vm4226_vm4, %v4421_v1, %v3935_v13  ;;  %v1430_v34 = vadd.f32 %v12193_v46, %v13212_v48  ;;  %v1422_v43 = vadd.f32 %v13212_v48, %v1421_v44  ;;  %v1433_v0 = vadd.f32 %v12194_v35, %v13212_v48 }
 0x1e3   :  { %v4485_v59 = vsel %vm2556_vm1, %v4453_v7, %v3999_v16  ;;  %v5368_v6 = vor.u32 %v5367_v56, %v5366_v63  ;;  %v1425_v18 = vadd.f32 %v13212_v48, %v1424_v62  ;;  %v4131_v39 = vsel %vm4127_vm9, %v4098_v17, %v3200_v53 }
 0x1e4   :  { %12300 = vmatmul.mubr.bf16.gmra.mrb[144].mxu0 %v12517_v50  ;;  %v4517_v14 = vpack.c.bf16 %v4485_v59, %v13370_v61  ;;  %v2318_v9 = vmax.f32 %v1414_v60, %v1430_v34  ;;  %v2316_v20 = vmax.f32 %v1406_v36, %v1422_v43  ;;  %v2319_v1 = vmax.f32 %v1417_v3, %v1433_v0 }
 0x1e5   :  { %12303 = vmatprep.mubr.bf16.mxu0 %v12518_v57  ;;  %v4164_v13 = vsel %vm4160_vm10, %v4131_v39, %v3296_v33  ;;  %v5369_v16 = vsel %vm5342_vm3, %v5363_v54, %v5368_v6  ;;  %v2317_v25 = vmax.f32 %v1409_v21, %v1425_v18  ;;  %v3712_v61 = vrot.slane %v13387_v10, 3  ;;  %v12520_v33 = vld [vmem:[#allocation2 + $0x260] sm:$0xff]  }
 0x1e6   :  { %v4583_v24 = vrot.slane %v4517_v14, 7  ;;  %v13429_v28 = vsel %vm4193_vm11, %v4164_v13, %v3360_v55  ;;  %v4000_v51 = vrot.slane %v13383_v5, 7  ;;  %5644 = vrot.lane.b32.xlu0 %v5369_v16, %s12978_s2  ;;  %v2588_v31 = vrot.slane %v2318_v9, 1  ;;  %v12521_v13 = vld [vmem:[#allocation2 + $0x268] sm:$0xff]  }
 0x1e7   :  { %v12197_v26 = vpop.f32.mrb[40].mxu0  ;;  %v2590_v40 = vrot.slane %v2319_v1, 1  ;;  %v13435_v27 = vsel %vm4094_vm8, %v4294_v49, %v3648_v47  ;;  %v2586_v15 = vrot.slane %v2317_v25, 1  ;;  %v3424_v47 = vrot.slane %v13401_v30, 6 }
 0x1e8   :  { %v1437_v41 = vpop.f32.mrb[41].mxu0  ;;  %v13438_v52 = vsel %vm4061_vm0, 0, %v4583_v24  ;;  %v13441_v46 = vsel %vm4061_vm0, %v4583_v24, 0  ;;  %v3488_v35 = vrot.slane %v13401_v30, 7  ;;  %v2585_v58 = vrot.slane %v2316_v20, 1 }
 0x1e9   :  { %v12198_v53 = vpop.f32.mrb[42].mxu0  ;;  %v5186_v55 = vrot.slane %v13438_v52, 1  ;;  %v5187_v44 = vrot.slane %v13441_v46, 1  ;;  %v2591_v50 = vsel %vm2556_vm1, %v2588_v31, %v2590_v40  ;;  %v13446_v37 = vmax.f32 %v2319_v1, %v2590_v40 }
 0x1ea   :  { %v1440_v54 = vpop.f32.mrb[43].mxu0  ;;  %v13449_v49 = vmax.f32 %v2318_v9, %v2591_v50  ;;  %v4744_v19 = vshrl.u32 %v13438_v52, 16  ;;  %v4746_v56 = vshll.u32 %v13438_v52, 16  ;;  %v4750_v17 = vshll.u32 %v13441_v46, 16 }
 0x1eb   :  { %v5188_v57 = vsel %vm2556_vm1, %v5186_v55, %v5187_v44  ;;  %v3809_v60 = vrot.slane %v13446_v37, 4  ;;  %v3873_v36 = vrot.slane %v13446_v37, 5  ;;  %v1446_v62 = vadd.f32 %v12197_v26, %v13212_v48 }
 0x1ec   :  { %12304 = vmatmul.mubr.bf16.gmra.mrb[148].mxu0 %v12519_v42  ;;  %5282 = vrot.lane.b32.xlu0 %v5188_v57, %s12967_s21  ;;  %v1438_v63 = vadd.f32 %v13212_v48, %v1437_v41  ;;  %v3585_v3 = vrot.slane %v13449_v49, 1  ;;  %v4748_v30 = vrot.slane %v4746_v56, 1  ;;  %v2587_v21 = vsel %vm2556_vm1, %v2585_v58, %v2586_v15  ;;  %v12522_v41 = vld [vmem:[#allocation2 + $0x270] sm:$0xff]  }
 0x1ed   :  { %12307 = vmatprep.mubr.bf16.mxu0 %v12520_v33  ;;  %v2589_v7 = vsel %vm2556_vm1, %v2586_v15, %v2588_v31  ;;  %v3937_v59 = vrot.slane %v13446_v37, 6  ;;  %v2925_v34 = vmax.f32 %v2316_v20, %v2587_v21  ;;  %v5370_v0 = vrot.slane %v4744_v19, 1 }
 0x1ee   :  { %v13465_v43 = vmax.f32 %v2317_v25, %v2589_v7  ;;  %v4749_v14 = vor.u32 %v4748_v30, %v4744_v19  ;;  %v4752_v18 = vrot.slane %v4750_v17, 1  ;;  %v5371_v39 = vrot.slane %v4746_v56, 2 }
 0x1ef   :  { %v12201_v6 = vpop.f32.mrb[44].mxu0  ;;  %v5373_v9 = vshrl.u32 %v13441_v46, 16  ;;  %v3649_v16 = vrot.slane %v13449_v49, 2  ;;  %v3713_v24 = vrot.slane %v13449_v49, 3  ;;  %v3073_v26 = vrot.slane %v2925_v34, 1 }
 0x1f0   :  { %v1453_v1 = vpop.f32.mrb[45].mxu0  ;;  %v3137_v31 = vrot.slane %v2925_v34, 2  ;;  %v4001_v20 = vrot.slane %v13446_v37, 7  ;;  %v4295_v25 = vsel %vm4061_vm0, %v13449_v49, %v3585_v3  ;;  %v4753_v42 = vsel %vm4713_vm2, %v4749_v14, %v4752_v18 }
 0x1f1   :  { %v12202_v40 = vpop.f32.mrb[46].mxu0  ;;  %v3201_v15 = vrot.slane %v2925_v34, 3  ;;  %5050 = vrot.lane.b32.xlu1 %v4753_v42, %s12977_s8  ;;  %v4066_v55 = vsel %vm4061_vm0, %v2925_v34, %v3073_v26  ;;  %v5372_v44 = vor.u32 %v5371_v39, %v5370_v0  ;;  %v5375_v50 = vrot.slane %v5373_v9, 1  ;;  %v12523_v39 = vld [vmem:[#allocation2 + $0x278] sm:$0xff]   ;;  %v12524_v26 = vld [vmem:[#allocation2 + $0x280] sm:$0xff]  }
 0x1f2   :  { %v1456_v33 = vpop.f32.mrb[47].mxu0  ;;  %v5376_v19 = vrot.slane %v4750_v17, 2  ;;  %v4099_v56 = vsel %vm4094_vm8, %v4066_v55, %v3137_v31  ;;  %v1449_v57 = vadd.f32 %v12198_v53, %v13212_v48  ;;  %v1441_v58 = vadd.f32 %v13212_v48, %v1440_v54 }
 0x1f3   :  { %v4230_v3 = vsel %vm4226_vm4, %v13429_v28, %v3424_v47  ;;  %v4358_v7 = vsel %vm4127_vm9, %v13435_v27, %v3712_v61  ;;  %v1462_v17 = vadd.f32 %v12201_v6, %v13212_v48  ;;  %v1454_v54 = vadd.f32 %v13212_v48, %v1453_v1 }
 0x1f4   :  { %12308 = vmatmul.mubr.bf16.gmra.mrb[152].mxu0 %v12521_v13  ;;  %v5377_v30 = vor.u32 %v5376_v19, %v5375_v50  ;;  %v4262_v21 = vsel %vm2556_vm1, %v4230_v3, %v3488_v35  ;;  %v4390_v53 = vsel %vm4160_vm10, %v4358_v7, %v3808_v23  ;;  %v1465_v28 = vadd.f32 %v12202_v40, %v13212_v48 }
 0x1f5   :  { %12311 = vmatprep.mubr.bf16.mxu0 %v12522_v41  ;;  %v1457_v47 = vadd.f32 %v13212_v48, %v1456_v33  ;;  %v4422_v10 = vsel %vm4193_vm11, %v4390_v53, %v3872_v29  ;;  %v2322_v61 = vmax.f32 %v1446_v62, %v1462_v17  ;;  %v4132_v34 = vsel %vm4127_vm9, %v4099_v56, %v3201_v15 }
 0x1f6   :  { %v5378_v35 = vsel %vm5342_vm3, %v5372_v44, %v5377_v30  ;;  %v4454_v23 = vsel %vm4226_vm4, %v4422_v10, %v3936_v32  ;;  %v2320_v0 = vmax.f32 %v1438_v63, %v1454_v54  ;;  %v2323_v6 = vmax.f32 %v1449_v57, %v1465_v28  ;;  %v12547_v44 = vld [vmem:[#allocation8 + $0xa8] sm:$0xff]  }
 0x1f7   :  { %v12205_v27 = vpop.f32.mrb[48].mxu0  ;;  %5646 = vrot.lane.b32.xlu1 %v5378_v35, %s12978_s2  ;;  %v2321_v14 = vmax.f32 %v1441_v58, %v1457_v47  ;;  %v4327_v9 = vsel %vm4094_vm8, %v4295_v25, %v3649_v16  ;;  %v3297_v1 = vrot.slane %v13465_v43, 4  ;;  %v4486_v29 = vsel %vm2556_vm1, %v4454_v23, %v4000_v51  ;;  %6962 = vmatpush1.bf16.msra.mxu0 %v12547_v44 }
 0x1f8   :  { %v1469_v18 = vpop.f32.mrb[49].mxu0  ;;  %v2595_v62 = vrot.slane %v2322_v61, 1  ;;  %v4518_v31 = vpack.c.bf16 %v4486_v29, %v4262_v21  ;;  %v2592_v40 = vrot.slane %v2320_v0, 1  ;;  %v2597_v41 = vrot.slane %v2323_v6, 1  ;;  %6963 = vmatprep.subr.bf16.mxu0 %v19754_v8 }
 0x1f9   :  { %v12206_v13 = vpop.f32.mrb[50].mxu0  ;;  %v2593_v32 = vrot.slane %v2321_v14, 1  ;;  %v3361_v42 = vrot.slane %v13465_v43, 5  ;;  %v3425_v15 = vrot.slane %v13465_v43, 6  ;;  %v3489_v16 = vrot.slane %v13465_v43, 7 }
 0x1fa   :  { %v1472_v63 = vpop.f32.mrb[51].mxu0  ;;  %v4165_v25 = vsel %vm4160_vm10, %v4132_v34, %v3297_v1  ;;  %v4584_v33 = vrot.slane %v4518_v31, 7  ;;  %v2598_v5 = vsel %vm2556_vm1, %v2595_v62, %v2597_v41  ;;  %v13514_v55 = vadd.f32 %v12205_v27, %v13212_v48  ;;  %v12525_v34 = vld [vmem:[#allocation2 + $0x288] sm:$0xff]   ;;  %v12526_v1 = vld [vmem:[#allocation2 + $0x290] sm:$0xff]  }
 0x1fb   :  { %v2594_v51 = vsel %vm2556_vm1, %v2592_v40, %v2593_v32  ;;  %v13516_v50 = vmax.f32 %v2322_v61, %v2598_v5  ;;  %v2596_v19 = vsel %vm2556_vm1, %v2593_v32, %v2595_v62  ;;  %v4198_v57 = vsel %vm4193_vm11, %v4165_v25, %v3361_v42 }
 0x1fc   :  { %12312 = vmatmul.mubr.bf16.gmra.mrb[156].mxu0 %v12523_v39  ;;  %v13519_v56 = vmax.f32 %v2320_v0, %v2594_v51  ;;  %v13523_v58 = vsel %vm4061_vm0, 0, %v4584_v33  ;;  %v13526_v3 = vsel %vm4061_vm0, %v4584_v33, 0  ;;  %v13528_v30 = vmax.f32 %v2323_v6, %v2597_v41 }
 0x1fd   :  { %12315 = vmatprep.mubr.bf16.mxu0 %v12524_v26  ;;  %v13531_v21 = vadd.f32 %v13212_v48, %v1469_v18  ;;  %v5189_v7 = vrot.slane %v13523_v58, 1  ;;  %v5190_v17 = vrot.slane %v13526_v3, 1  ;;  %v3586_v53 = vrot.slane %v13516_v50, 1 }
 0x1fe   :  { %v1481_v54 = vadd.f32 %v12206_v13, %v13212_v48  ;;  %v3650_v47 = vrot.slane %v13516_v50, 2  ;;  %v4754_v35 = vshrl.u32 %v13523_v58, 16  ;;  %v1473_v10 = vadd.f32 %v13212_v48, %v1472_v63 }
 0x1ff   :  { %v12209_v28 = vpop.f32.mrb[52].mxu0  ;;  %v4359_v61 = vsel %vm4127_vm9, %v4327_v9, %v3713_v24  ;;  %v5191_v23 = vsel %vm2556_vm1, %v5189_v7, %v5190_v17  ;;  %v4296_v0 = vsel %vm4061_vm0, %v13516_v50, %v3586_v53  ;;  %v4756_v6 = vshll.u32 %v13523_v58, 16 }
 0x200   :  { %v1485_v27 = vpop.f32.mrb[53].mxu0  ;;  %v4760_v18 = vshll.u32 %v13526_v3, 16  ;;  %5284 = vrot.lane.b32.xlu1 %v5191_v23, %s12967_s21  ;;  %v3810_v29 = vrot.slane %v13528_v30, 4  ;;  %v3874_v49 = vrot.slane %v13528_v30, 5  ;;  %v13552_v24 = vmax.f32 %v2321_v14, %v2596_v19 }
 0x201   :  { %v12210_v39 = vpop.f32.mrb[54].mxu0  ;;  %v3074_v9 = vrot.slane %v13519_v56, 1  ;;  %v3714_v13 = vrot.slane %v13516_v50, 3  ;;  %v3938_v26 = vrot.slane %v13528_v30, 6  ;;  %v4758_v31 = vrot.slane %v4756_v6, 1 }
 0x202   :  { %v1488_v62 = vpop.f32.mrb[55].mxu0  ;;  %v5379_v40 = vrot.slane %v4754_v35, 1  ;;  %v4002_v41 = vrot.slane %v13528_v30, 7  ;;  %v13559_v32 = vsel %vm4094_vm8, %v4296_v0, %v3650_v47  ;;  %v4762_v63 = vrot.slane %v4760_v18, 1  ;;  %v12527_v0 = vld [vmem:[#allocation2 + $0x298] sm:$0xff]  }
 0x203   :  { %v3138_v42 = vrot.slane %v13519_v56, 2  ;;  %v4759_v14 = vor.u32 %v4758_v31, %v4754_v35  ;;  %v3202_v25 = vrot.slane %v13519_v56, 3  ;;  %v5380_v33 = vrot.slane %v4756_v6, 2 }
 0x204   :  { %12316 = vmatmul.mubr.bf16.gmra.mrb[160].mxu0 %v12525_v34  ;;  %v5382_v5 = vshrl.u32 %v13526_v3, 16  ;;  %v4067_v51 = vsel %vm4061_vm0, %v13519_v56, %v3074_v9  ;;  %v5385_v44 = vrot.slane %v4760_v18, 2  ;;  %v4231_v19 = vsel %vm4226_vm4, %v4198_v57, %v3425_v15  ;;  %v13579_v57 = vld [vmem:[#allocation7] ss:$0 sm:$0xff] }
 0x205   :  { %12319 = vmatprep.mubr.bf16.mxu0 %v12526_v1  ;;  %v4391_v7 = vsel %vm4160_vm10, %v4359_v61, %v3809_v60  ;;  %v4763_v17 = vsel %vm4713_vm2, %v4759_v14, %v4762_v63  ;;  %v5381_v53 = vor.u32 %v5380_v33, %v5379_v40  ;;  %v4263_v35 = vsel %vm2556_vm1, %v4231_v19, %v3489_v16  ;;  %v12528_v1 = vld [vmem:[#allocation2 + $0x2a0] sm:$0xff]  }
 0x206   :  { %v5384_v47 = vrot.slane %v5382_v5, 1  ;;  %5052 = vrot.lane.b32.xlu0 %v4763_v17, %s12977_s8  ;;  %v4423_v56 = vsel %vm4193_vm11, %v4391_v7, %v3873_v36  ;;  %v1494_v15 = vadd.f32 %v12209_v28, %v13212_v48  ;;  %v1486_v60 = vadd.f32 %v13579_v57, %v1485_v27 }
 0x207   :  { %v12213_v34 = vpop.f32.mrb[56].mxu0  ;;  %v1497_v61 = vadd.f32 %v13579_v57, %v12210_v39  ;;  %v4100_v43 = vsel %vm4094_vm8, %v4067_v51, %v3138_v42  ;;  %v4455_v6 = vsel %vm4226_vm4, %v4423_v56, %v3937_v59  ;;  %v1489_v18 = vadd.f32 %v13579_v57, %v1488_v62 }
 0x208   :  { %v1501_v23 = vpop.f32.mrb[57].mxu0  ;;  %v5386_v16 = vor.u32 %v5385_v44, %v5384_v47  ;;  %v4487_v48 = vsel %vm2556_vm1, %v4455_v6, %v4001_v20  ;;  %v2326_v28 = vmax.f32 %v13514_v55, %v1494_v15  ;;  %v2324_v27 = vmax.f32 %v13531_v21, %v1486_v60  ;;  %v12529_v15 = vld [vmem:[#allocation2 + $0x2a8] sm:$0xff]   ;;  %v12530_v6 = vld [vmem:[#allocation2 + $0x2b0] sm:$0xff]  }
 0x209   :  { %v12214_v36 = vpop.f32.mrb[58].mxu0  ;;  %v2327_v39 = vmax.f32 %v1481_v54, %v1497_v61  ;;  %v3298_v31 = vrot.slane %v13552_v24, 4  ;;  %v4519_v63 = vpack.c.bf16 %v4487_v48, %v4263_v35  ;;  %v2325_v59 = vmax.f32 %v1473_v10, %v1489_v18 }
 0x20a   :  { %v1504_v9 = vpop.f32.mrb[59].mxu0  ;;  %v5387_v40 = vsel %vm5342_vm3, %v5381_v53, %v5386_v16  ;;  %v3362_v62 = vrot.slane %v13552_v24, 5  ;;  %v3426_v42 = vrot.slane %v13552_v24, 6  ;;  %v2602_v37 = vrot.slane %v2326_v28, 1 }
 0x20b   :  { %5648 = vrot.lane.b32.xlu0 %v5387_v40, %s12978_s2  ;;  %v2604_v20 = vrot.slane %v2327_v39, 1  ;;  %v4585_v55 = vrot.slane %v4519_v63, 7  ;;  %v2599_v14 = vrot.slane %v2324_v27, 1  ;;  %v2600_v21 = vrot.slane %v2325_v59, 1 }
 0x20c   :  { %12320 = vmatmul.mubr.bf16.gmra.mrb[164].mxu0 %v12527_v0  ;;  %v4133_v54 = vsel %vm4127_vm9, %v4100_v43, %v3202_v25  ;;  %v3490_v33 = vrot.slane %v13552_v24, 7  ;;  %v13602_v10 = vadd.f32 %v13579_v57, %v12213_v34  ;;  %v13619_v34 = vadd.f32 %v13579_v57, %v1501_v23 }
 0x20d   :  { %12323 = vmatprep.mubr.bf16.mxu0 %v12528_v1  ;;  %v2605_v5 = vsel %vm2556_vm1, %v2602_v37, %v2604_v20  ;;  %v4166_v51 = vsel %vm4160_vm10, %v4133_v54, %v3298_v31  ;;  %v13606_v44 = vsel %vm4061_vm0, 0, %v4585_v55  ;;  %v13609_v19 = vsel %vm4061_vm0, %v4585_v55, 0 }
 0x20e   :  { %v13611_v7 = vmax.f32 %v2326_v28, %v2605_v5  ;;  %v2601_v25 = vsel %vm2556_vm1, %v2599_v14, %v2600_v21  ;;  %v5192_v53 = vrot.slane %v13606_v44, 1  ;;  %v5193_v47 = vrot.slane %v13609_v19, 1 }
 0x20f   :  { %v12217_v17 = vpop.f32.mrb[60].mxu0  ;;  %v13616_v35 = vmax.f32 %v2327_v39, %v2604_v20  ;;  %v13623_v61 = vadd.f32 %v13579_v57, %v12214_v36  ;;  %v13626_v0 = vadd.f32 %v13579_v57, %v1504_v9  ;;  %v4360_v43 = vsel %vm4127_vm9, %v13559_v32, %v3714_v13 }
 0x210   :  { %v1517_v56 = vpop.f32.mrb[61].mxu0  ;;  %v3587_v60 = vrot.slane %v13611_v7, 1  ;;  %v5194_v23 = vsel %vm2556_vm1, %v5192_v53, %v5193_v47  ;;  %v3651_v18 = vrot.slane %v13611_v7, 2  ;;  %v4764_v1 = vshrl.u32 %v13606_v44, 16 }
 0x211   :  { %v12218_v16 = vpop.f32.mrb[62].mxu0  ;;  %v4766_v48 = vshll.u32 %v13606_v44, 16  ;;  %5286 = vrot.lane.b32.xlu0 %v5194_v23, %s12967_s21  ;;  %v4770_v50 = vshll.u32 %v13609_v19, 16  ;;  %v2603_v13 = vsel %vm2556_vm1, %v2600_v21, %v2602_v37  ;;  %v13641_v32 = vmax.f32 %v2324_v27, %v2601_v25 }
 0x212   :  { %v1520_v36 = vpop.f32.mrb[63].mxu0  ;;  %v4297_v28 = vsel %vm4061_vm0, %v13611_v7, %v3587_v60  ;;  %v3811_v39 = vrot.slane %v13616_v35, 4  ;;  %v3875_v9 = vrot.slane %v13616_v35, 5  ;;  %v13645_v40 = vmax.f32 %v2325_v59, %v2603_v13 }
 0x213   :  { %v4768_v31 = vrot.slane %v4766_v48, 1  ;;  %v3715_v63 = vrot.slane %v13611_v7, 3  ;;  %v3939_v20 = vrot.slane %v13616_v35, 6  ;;  %v3075_v55 = vrot.slane %v13641_v32, 1 }
 0x214   :  { %12324 = vmatmul.mubr.bf16.gmra.mrb[168].mxu0 %v12529_v15  ;;  %v5388_v14 = vrot.slane %v4764_v1, 1  ;;  %v4003_v37 = vrot.slane %v13616_v35, 7  ;;  %v13652_v27 = vsel %vm4094_vm8, %v4297_v28, %v3651_v18  ;;  %v4772_v54 = vrot.slane %v4770_v50, 1 }
 0x215   :  { %12327 = vmatprep.mubr.bf16.mxu0 %v12530_v6  ;;  %v4769_v21 = vor.u32 %v4768_v31, %v4764_v1  ;;  %v3139_v5 = vrot.slane %v13641_v32, 2  ;;  %v3203_v59 = vrot.slane %v13641_v32, 3  ;;  %v5389_v25 = vrot.slane %v4766_v48, 2  ;;  %v12531_v1 = vld [vmem:[#allocation2 + $0x2b8] sm:$0xff]  }
 0x216   :  { %v5391_v53 = vshrl.u32 %v13609_v19, 16  ;;  %v4068_v60 = vsel %vm4061_vm0, %v13641_v32, %v3075_v55  ;;  %v5394_v6 = vrot.slane %v4770_v50, 2  ;;  %v4199_v23 = vsel %vm4193_vm11, %v4166_v51, %v3362_v62  ;;  %v12532_v50 = vld [vmem:[#allocation2 + $0x2c0] sm:$0xff]  }
 0x217   :  { %v12221_v47 = vpop.f32.mrb[64].mxu0  ;;  %v4773_v15 = vsel %vm4713_vm2, %v4769_v21, %v4772_v54  ;;  %v5390_v28 = vor.u32 %v5389_v25, %v5388_v14  ;;  %v4232_v48 = vsel %vm4226_vm4, %v4199_v23, %v3426_v42  ;;  %v4392_v31 = vsel %vm4160_vm10, %v4360_v43, %v3810_v29 }
 0x218   :  { %v1533_v18 = vpop.f32.mrb[65].mxu0  ;;  %5054 = vrot.lane.b32.xlu1 %v4773_v15, %s12977_s8  ;;  %v5393_v13 = vrot.slane %v5391_v53, 1  ;;  %v4264_v62 = vsel %vm2556_vm1, %v4232_v48, %v3490_v33  ;;  %v4424_v51 = vsel %vm4193_vm11, %v4392_v31, %v3874_v49  ;;  %v1526_v14 = vadd.f32 %v13579_v57, %v12217_v17 }
 0x219   :  { %v12222_v55 = vpop.f32.mrb[66].mxu0  ;;  %v1518_v21 = vadd.f32 %v13579_v57, %v1517_v56  ;;  %v4456_v29 = vsel %vm4226_vm4, %v4424_v51, %v3938_v26  ;;  %v1529_v43 = vadd.f32 %v13579_v57, %v12218_v16  ;;  %v1521_v24 = vadd.f32 %v13579_v57, %v1520_v36 }
 0x21a   :  { %v1536_v54 = vpop.f32.mrb[67].mxu0  ;;  %v5395_v42 = vor.u32 %v5394_v6, %v5393_v13  ;;  %v3299_v33 = vrot.slane %v13645_v40, 4  ;;  %v4488_v49 = vsel %vm2556_vm1, %v4456_v29, %v4002_v41  ;;  %v2330_v17 = vmax.f32 %v13602_v10, %v1526_v14 }
 0x21b   :  { %v2328_v56 = vmax.f32 %v13619_v34, %v1518_v21  ;;  %v4520_v53 = vpack.c.bf16 %v4488_v49, %v4264_v62  ;;  %v2331_v26 = vmax.f32 %v13623_v61, %v1529_v43  ;;  %v2329_v16 = vmax.f32 %v13626_v0, %v1521_v24 }
 0x21c   :  { %12328 = vmatmul.mubr.bf16.gmra.mrb[172].mxu0 %v12531_v1  ;;  %v5396_v25 = vsel %vm5342_vm3, %v5390_v28, %v5395_v42  ;;  %v3363_v36 = vrot.slane %v13645_v40, 5  ;;  %v3427_v15 = vrot.slane %v13645_v40, 6  ;;  %v3491_v30 = vrot.slane %v13645_v40, 7 }
 0x21d   :  { %12331 = vmatprep.mubr.bf16.mxu0 %v12532_v50  ;;  %v4101_v41 = vsel %vm4094_vm8, %v4068_v60, %v3139_v5  ;;  %5650 = vrot.lane.b32.xlu1 %v5396_v25, %s12978_s2  ;;  %v4586_v10 = vrot.slane %v4520_v53, 7  ;;  %v2609_v34 = vrot.slane %v2330_v17, 1  ;;  %v2611_v6 = vrot.slane %v2331_v26, 1  ;;  %v12534_v5 = vld [vmem:[#allocation2 + $0x2c8] sm:$0xff]  }
 0x21e   :  { %v13698_v23 = vadd.f32 %v13579_v57, %v12221_v47  ;;  %v2606_v1 = vrot.slane %v2328_v56, 1  ;;  %v2607_v0 = vrot.slane %v2329_v16, 1  ;;  %v13701_v28 = vadd.f32 %v13579_v57, %v1533_v18  ;;  %v12535_v18 = vld [vmem:[#allocation2 + $0x2d0] sm:$0xff]  }
 0x21f   :  { %v12225_v61 = vpop.f32.mrb[68].mxu0  ;;  %v13704_v13 = vadd.f32 %v13579_v57, %v12222_v55  ;;  %v13709_v60 = vsel %vm4061_vm0, 0, %v4586_v10  ;;  %v13712_v31 = vsel %vm4061_vm0, %v4586_v10, 0  ;;  %v2612_v47 = vsel %vm2556_vm1, %v2609_v34, %v2611_v6 }
 0x220   :  { %v13706_v48 = vpop.f32.mrb[69].mxu0  ;;  %v13716_v50 = vadd.f32 %v13579_v57, %v1536_v54  ;;  %v5195_v51 = vrot.slane %v13709_v60, 1  ;;  %v5196_v55 = vrot.slane %v13712_v31, 1  ;;  %v13720_v14 = vmax.f32 %v2330_v17, %v2612_v47 }
 0x221   :  { %v12226_v62 = vpop.f32.mrb[70].mxu0  ;;  %v13722_v21 = vmax.f32 %v2331_v26, %v2611_v6  ;;  %v4774_v29 = vshrl.u32 %v13709_v60, 16  ;;  %v4134_v43 = vsel %vm4127_vm9, %v4101_v41, %v3203_v59  ;;  %v4361_v54 = vsel %vm4127_vm9, %v13652_v27, %v3715_v63 }
 0x222   :  { %v13724_v42 = vpop.f32.mrb[71].mxu0  ;;  %v1558_v24 = vadd.f32 %v13579_v57, %v12225_v61  ;;  %v5197_v49 = vsel %vm2556_vm1, %v5195_v51, %v5196_v55  ;;  %v3588_v17 = vrot.slane %v13720_v14, 1  ;;  %v3652_v25 = vrot.slane %v13720_v14, 2 }
 0x223   :  { %5288 = vrot.lane.b32.xlu1 %v5197_v49, %s12967_s21  ;;  %v4776_v32 = vshll.u32 %v13709_v60, 16  ;;  %v4780_v7 = vshll.u32 %v13712_v31, 16  ;;  %v2608_v59 = vsel %vm2556_vm1, %v2606_v1, %v2607_v0  ;;  %v2610_v63 = vsel %vm2556_vm1, %v2607_v0, %v2609_v34 }
 0x224   :  { %12332 = vmatmul.mubr.bf16.gmra.mrb[176].mxu0 %v12534_v5  ;;  %v4298_v26 = vsel %vm4061_vm0, %v13720_v14, %v3588_v17  ;;  %v13747_v41 = vmax.f32 %v2328_v56, %v2608_v59  ;;  %v13749_v10 = vmax.f32 %v2329_v16, %v2610_v63  ;;  %v5397_v5 = vrot.slane %v4774_v29, 1  ;;  %v12536_v56 = vld [vmem:[#allocation2 + $0x2d8] sm:$0xff]  }
 0x225   :  { %12335 = vmatprep.mubr.bf16.mxu0 %v12535_v18  ;;  %v4778_v61 = vrot.slane %v4776_v32, 1  ;;  %v5398_v47 = vrot.slane %v4776_v32, 2  ;;  %v3716_v1 = vrot.slane %v13720_v14, 3  ;;  %v13756_v18 = vsel %vm4094_vm8, %v4298_v26, %v3652_v25  ;;  %v12537_v32 = vld [vmem:[#allocation2 + $0x2e0] sm:$0xff]  }
 0x226   :  { %v4782_v16 = vrot.slane %v4780_v7, 1  ;;  %v3076_v17 = vrot.slane %v13747_v41, 1  ;;  %v3140_v59 = vrot.slane %v13747_v41, 2  ;;  %v3204_v53 = vrot.slane %v13747_v41, 3 }
 0x227   :  { %v12229_v51 = vpop.f32.mrb[72].mxu0  ;;  %v4779_v49 = vor.u32 %v4778_v61, %v4774_v29  ;;  %v5400_v34 = vshrl.u32 %v13712_v31, 16  ;;  %v5403_v0 = vrot.slane %v4780_v7, 2  ;;  %v5399_v26 = vor.u32 %v5398_v47, %v5397_v5 }
 0x228   :  { %v1565_v55 = vpop.f32.mrb[73].mxu0  ;;  %v4167_v29 = vsel %vm4160_vm10, %v4134_v43, %v3299_v33  ;;  %v4393_v61 = vsel %vm4160_vm10, %v4361_v54, %v3811_v39  ;;  %v13778_v5 = vmax.f32 %v13698_v23, %v1558_v24  ;;  %v1550_v43 = vadd.f32 %v13579_v57, %v13706_v48 }
 0x229   :  { %v12230_v63 = vpop.f32.mrb[74].mxu0  ;;  %v4783_v25 = vsel %vm4713_vm2, %v4779_v49, %v4782_v16  ;;  %v5402_v27 = vrot.slane %v5400_v34, 1  ;;  %v4200_v6 = vsel %vm4193_vm11, %v4167_v29, %v3363_v36  ;;  %v4425_v7 = vsel %vm4193_vm11, %v4393_v61, %v3875_v9 }
 0x22a   :  { %v1568_v8 = vpop.f32.mrb[75].mxu0  ;;  %5056 = vrot.lane.b32.xlu0 %v4783_v25, %s12977_s8  ;;  %v4233_v33 = vsel %vm4226_vm4, %v4200_v6, %v3427_v15  ;;  %v4457_v39 = vsel %vm4226_vm4, %v4425_v7, %v3939_v20  ;;  %v1561_v36 = vadd.f32 %v13579_v57, %v12226_v62  ;;  %v4069_v9 = vsel %vm4061_vm0, %v13747_v41, %v3076_v17 }
 0x22b   :  { %v5404_v23 = vor.u32 %v5403_v0, %v5402_v27  ;;  %v4265_v54 = vsel %vm2556_vm1, %v4233_v33, %v3491_v30  ;;  %v4489_v15 = vsel %vm2556_vm1, %v4457_v39, %v4003_v37  ;;  %v2332_v20 = vmax.f32 %v13701_v28, %v1550_v43  ;;  %v12538_v37 = vld [vmem:[#allocation2 + $0x2e8] sm:$0xff]   ;;  %v12539_v0 = vld [vmem:[#allocation2 + $0x2f0] sm:$0xff]  }
 0x22c   :  { %12336 = vmatmul.mubr.bf16.gmra.mrb[180].mxu0 %v12536_v56  ;;  %v4521_v24 = vpack.c.bf16 %v4489_v15, %v4265_v54  ;;  %v2335_v48 = vmax.f32 %v13704_v13, %v1561_v36  ;;  %v1553_v62 = vadd.f32 %v13579_v57, %v13724_v42  ;;  %v3364_v41 = vrot.slane %v13749_v10, 5 }
 0x22d   :  { %12339 = vmatprep.mubr.bf16.mxu0 %v12537_v32  ;;  %v5405_v30 = vsel %vm5342_vm3, %v5399_v26, %v5404_v23  ;;  %v2616_v13 = vrot.slane %v13778_v5, 1  ;;  %v4102_v56 = vsel %vm4094_vm8, %v4069_v9, %v3140_v59  ;;  %v13814_v49 = vadd.f32 %v13579_v57, %v12229_v51 }
 0x22e   :  { %5652 = vrot.lane.b32.xlu0 %v5405_v30, %s12978_s2  ;;  %v4587_v28 = vrot.slane %v4521_v24, 7  ;;  %v2618_v47 = vrot.slane %v2335_v48, 1  ;;  %v2333_v42 = vmax.f32 %v13716_v50, %v1553_v62  ;;  %v13817_v16 = vadd.f32 %v13579_v57, %v1565_v55  ;;  %v12540_v30 = vld [vmem:[#allocation2 + $0x2f8] sm:$0xff]  }
 0x22f   :  { %v12233_v6 = vpop.f32.mrb[76].mxu0  ;;  %v13820_v17 = vadd.f32 %v13579_v57, %v12230_v63  ;;  %v2613_v61 = vrot.slane %v2332_v20, 1  ;;  %v13840_v7 = vadd.f32 %v13579_v57, %v1568_v8  ;;  %v4135_v33 = vsel %vm4127_vm9, %v4102_v56, %v3204_v53 }
 0x230   :  { %v13805_v35 = vpop.f32.mrb[77].mxu0  ;;  %v13825_v25 = vsel %vm4061_vm0, 0, %v4587_v28  ;;  %v13828_v50 = vsel %vm4061_vm0, %v4587_v28, 0  ;;  %v2619_v26 = vsel %vm2556_vm1, %v2616_v13, %v2618_v47  ;;  %v13831_v59 = vmax.f32 %v2335_v48, %v2618_v47 }
 0x231   :  { %v13810_v34 = vpop.f32.mrb[78].mxu0  ;;  %v5198_v51 = vrot.slane %v13825_v25, 1  ;;  %v5199_v55 = vrot.slane %v13828_v50, 1  ;;  %v13836_v29 = vmax.f32 %v13778_v5, %v2619_v26  ;;  %v4784_v63 = vshrl.u32 %v13825_v25, 16 }
 0x232   :  { %v13822_v32 = vpop.f32.mrb[79].mxu0  ;;  %v4362_v39 = vsel %vm4127_vm9, %v13756_v18, %v3716_v1  ;;  %v1590_v9 = vadd.f32 %v13579_v57, %v12233_v6  ;;  %v4786_v53 = vshll.u32 %v13825_v25, 16  ;;  %v4790_v14 = vshll.u32 %v13828_v50, 16 }
 0x233   :  { %v5200_v43 = vsel %vm2556_vm1, %v5198_v51, %v5199_v55  ;;  %v3589_v5 = vrot.slane %v13836_v29, 1  ;;  %v3653_v8 = vrot.slane %v13836_v29, 2  ;;  %v2614_v23 = vrot.slane %v2333_v42, 1  ;;  %v12541_v51 = vld [vmem:[#allocation2 + $0x300] sm:$0xff]  }
 0x234   :  { %12340 = vmatmul.mubr.bf16.gmra.mrb[184].mxu0 %v12538_v37  ;;  %5290 = vrot.lane.b32.xlu0 %v5200_v43, %s12967_s21  ;;  %v5406_v1 = vrot.slane %v4784_v63, 1  ;;  %v5409_v18 = vshrl.u32 %v13828_v50, 16  ;;  %v19929_v15 = vrot.slane %v13749_v10, 4  ;;  %v19930_v48 = vrot.slane %v13722_v21, 4  ;;  %v12560_v37 = vld [vmem:[#allocation8 + $0xb0] sm:$0xff]  }
 0x235   :  { %12343 = vmatprep.mubr.bf16.mxu0 %v12539_v0  ;;  %v4299_v28 = vsel %vm4061_vm0, %v13836_v29, %v3589_v5  ;;  %v4788_v47 = vrot.slane %v4786_v53, 1  ;;  %v4792_v0 = vrot.slane %v4790_v14, 1  ;;  %v2615_v56 = vsel %vm2556_vm1, %v2613_v61, %v2614_v23  ;;  %6964 = vmatpush1.bf16.msra.mxu0 %v12560_v37 }
 0x236   :  { %v4168_v24 = vsel %vm4160_vm10, %v4135_v33, %v19929_v15  ;;  %v4394_v62 = vsel %vm4160_vm10, %v4362_v39, %v19930_v48  ;;  %v2617_v55 = vsel %vm2556_vm1, %v2614_v23, %v2616_v13  ;;  %v13872_v33 = vmax.f32 %v2332_v20, %v2615_v56 }
 0x237   :  { %v13855_v54 = vpop.f32.mrb[80].mxu0  ;;  %v5407_v43 = vrot.slane %v4786_v53, 2  ;;  %v5411_v39 = vrot.slane %v5409_v18, 1  ;;  %v4789_v48 = vor.u32 %v4788_v47, %v4784_v63  ;;  %v13876_v36 = vmax.f32 %v2333_v42, %v2617_v55 }
 0x238   :  { %v13864_v6 = vpop.f32.mrb[81].mxu0  ;;  %v5412_v5 = vrot.slane %v4790_v14, 2  ;;  %v4201_v61 = vsel %vm4193_vm11, %v4168_v24, %v3364_v41  ;;  %v19931_v40 = vmov 0   ;;  %v3077_v53 = vrot.slane %v13872_v33, 1 }
 0x239   :  { %v13869_v26 = vpop.f32.mrb[82].mxu0  ;;  %6965 = vmatprep.subr.bf16.mxu0 %v19931_v40  ;;  %v5047_v23 = vpop.permute.xlu1 %5046  ;;  %v13888_v63 = vsel %vm4094_vm8, %v4299_v28, %v3653_v8  ;;  %v4793_v14 = vsel %vm4713_vm2, %v4789_v48, %v4792_v0  ;;  %v5408_v41 = vor.u32 %v5407_v43, %v5406_v1  ;;  %v3141_v18 = vrot.slane %v13872_v33, 2 }
 0x23a   :  { %v13874_v15 = vpop.f32.mrb[83].mxu0  ;;  %5058 = vrot.lane.b32.xlu1 %v4793_v14, %s12977_s8  ;;  %v3205_v24 = vrot.slane %v13872_v33, 3  ;;  %v5413_v37 = vor.u32 %v5412_v5, %v5411_v39  ;;  %v19932_v47 = vrot.slane %v13749_v10, 6  ;;  %v3301_v56 = vrot.slane %v13876_v36, 4 }
 0x23b   :  { %v19933_v8 = vrot.slane %v13749_v10, 7  ;;  %v19934_v1 = vrot.slane %v13722_v21, 5  ;;  %v4070_v43 = vsel %vm4061_vm0, %v13872_v33, %v3077_v53  ;;  %v19935_v39 = vrot.slane %v13722_v21, 6  ;;  %v5279_v33 = vpop.permute.xlu0 %5278 }
 0x23c   :  { %12344 = vmatmul.mubr.bf16.gmra.mrb[188].mxu0 %v12540_v30  ;;  %v4234_v30 = vsel %vm4226_vm4, %v4201_v61, %v19932_v47  ;;  %v1582_v10 = vadd.f32 %v13579_v57, %v13805_v35  ;;  %v1593_v5 = vadd.f32 %v13579_v57, %v13810_v34  ;;  %v1585_v53 = vadd.f32 %v13579_v57, %v13822_v32 }
 0x23d   :  { %12347 = vmatprep.mubr.bf16.mxu0 %v12541_v51  ;;  %v4266_v28 = vsel %vm2556_vm1, %v4234_v30, %v19933_v8  ;;  %v4426_v0 = vsel %vm4193_vm11, %v4394_v62, %v19934_v1  ;;  %v13905_v51 = vmax.f32 %v13814_v49, %v1590_v9  ;;  %v12542_v62 = vld [vmem:[#allocation2 + $0x308] sm:$0xff]   ;;  %v5414_v49 = vsel %vm5342_vm3, %v5408_v41, %v5413_v37  ;;  %v12543_v30 = vld [vmem:[#allocation2 + $0x310] sm:$0xff]  }
 0x23e   :  { %v4458_v48 = vsel %vm4226_vm4, %v4426_v0, %v19935_v39  ;;  %v19936_v9 = vrot.slane %v13722_v21, 7  ;;  %v5810_v47 = vsel %vm5806_vm5, %v13267_v38, %v5047_v23  ;;  %v3365_v34 = vrot.slane %v13876_v36, 5  ;;  %5654 = vrot.lane.b32.xlu1 %v5414_v49, %s12978_s2 }
 0x23f   :  { %v13907_v55 = vpop.f32.mrb[84].mxu0  ;;  %v2336_v41 = vmax.f32 %v13817_v16, %v1582_v10  ;;  %v2339_v21 = vmax.f32 %v13820_v17, %v1593_v5  ;;  %v4103_v0 = vsel %vm4094_vm8, %v4070_v43, %v3141_v18  ;;  %v2337_v38 = vmax.f32 %v13840_v7, %v1585_v53 }
 0x240   :  { %v13918_v61 = vpop.f32.mrb[85].mxu0  ;;  %v4490_v14 = vsel %vm2556_vm1, %v4458_v48, %v19936_v9  ;;  %v5877_v23 = vsel %vm5873_vm6, %v5810_v47, %v5279_v33  ;;  %v2623_v48 = vrot.slane %v13905_v51, 1  ;;  %v13947_v17 = vadd.f32 %v13579_v57, %v13855_v54 }
 0x241   :  { %v13928_v35 = vpop.f32.mrb[86].mxu0  ;;  %v4522_v8 = vpack.c.bf16 %v4490_v14, %v4266_v28  ;;  %v5643_v37 = vpop.permute.xlu1 %5642  ;;  %v2625_v49 = vrot.slane %v2339_v21, 1  ;;  %v13951_v18 = vadd.f32 %v13579_v57, %v13864_v6  ;;  %v13955_v7 = vadd.f32 %v13579_v57, %v13869_v26 }
 0x242   :  { %v13934_v1 = vpop.f32.mrb[87].mxu0  ;;  %v13942_v28 = vsel %vm5940_vm7, %v5877_v23, %v5643_v37  ;;  %v2621_v5 = vrot.slane %v2337_v38, 1  ;;  %v2620_v33 = vrot.slane %v2336_v41, 1  ;;  %v13977_v47 = vadd.f32 %v13579_v57, %v13874_v15  ;;  %v12544_v37 = vld [vmem:[#allocation2 + $0x318] sm:$0xff]  }
 0x243   :  { %v4588_v39 = vrot.slane %v4522_v8, 7  ;;  %19937 = vst [vmem:[#allocation28_spill] sm:$0xff] %v13942_v28  ;;  %6275 = vmatmul.mubr.bf16.gmra.mrb[4].mxu1 %v13942_v28  ;;  %v2626_v54 = vsel %vm2556_vm1, %v2623_v48, %v2625_v49  ;;  %v13970_v26 = vmax.f32 %v2339_v21, %v2625_v49 }
 0x244   :  { %12348 = vmatmul.mubr.bf16.gmra.mrb[192].mxu0 %v12542_v62  ;;  %v13968_v9 = vmax.f32 %v13905_v51, %v2626_v54  ;;  %v12545_v54 = vld [vmem:[#allocation2 + $0x320] sm:$0xff]   ;;  %v2622_v13 = vsel %vm2556_vm1, %v2620_v33, %v2621_v5  ;;  %v2624_v20 = vsel %vm2556_vm1, %v2621_v5, %v2623_v48  ;;  %v19944_v33 = vrot.slane %v13831_v59, 5 }
 0x245   :  { %12351 = vmatprep.mubr.bf16.mxu0 %v12543_v30  ;;  %v13959_v43 = vsel %vm4061_vm0, 0, %v4588_v39  ;;  %v13962_v10 = vsel %vm4061_vm0, %v4588_v39, 0  ;;  %v5714_v30 = vrot.slane %v13380_v4, 2  ;;  %v4136_v39 = vsel %vm4127_vm9, %v4103_v0, %v3205_v24 }
 0x246   :  { %v5201_v62 = vrot.slane %v13959_v43, 1  ;;  %v5202_v6 = vrot.slane %v13962_v10, 1  ;;  %v4794_v53 = vshrl.u32 %v13959_v43, 16  ;;  %v3590_v51 = vrot.slane %v13968_v9, 1 }
 0x247   :  { %v13972_v14 = vpop.f32.mrb[88].mxu0  ;;  %v3654_v21 = vrot.slane %v13968_v9, 2  ;;  %v4796_v15 = vshll.u32 %v13959_v43, 16  ;;  %v4800_v4 = vshll.u32 %v13962_v10, 16  ;;  %v13998_v0 = vmax.f32 %v2336_v41, %v2622_v13 }
 0x248   :  { %v13980_v8 = vpop.f32.mrb[89].mxu0  ;;  %v5203_v23 = vsel %vm2556_vm1, %v5201_v62, %v5202_v6  ;;  %v4300_v24 = vsel %vm4061_vm0, %v13968_v9, %v3590_v51  ;;  %v14000_v27 = vmax.f32 %v2337_v38, %v2624_v20  ;;  %v5415_v32 = vrot.slane %v4794_v53, 1 }
 0x249   :  { %v13986_v49 = vpop.f32.mrb[90].mxu0  ;;  %5292 = vrot.lane.b32.xlu1 %v5203_v23, %s12967_s21  ;;  %v4798_v16 = vrot.slane %v4796_v15, 1  ;;  %v5416_v42 = vrot.slane %v4796_v15, 2  ;;  %v3078_v6 = vrot.slane %v13998_v0, 1  ;;  %v14008_v13 = vsel %vm4094_vm8, %v4300_v24, %v3654_v21 }
 0x24a   :  { %v13993_v62 = vpop.f32.mrb[91].mxu0  ;;  %v4802_v41 = vrot.slane %v4800_v4, 1  ;;  %v3142_v38 = vrot.slane %v13998_v0, 2  ;;  %v5418_v15 = vshrl.u32 %v13962_v10, 16  ;;  %v5421_v48 = vrot.slane %v4800_v4, 2 }
 0x24b   :  { %v4799_v20 = vor.u32 %v4798_v16, %v4794_v53  ;;  %v19938_v21 = vrot.slane %v13377_v45, 2  ;;  %v4169_v53 = vsel %vm4160_vm10, %v4136_v39, %v3301_v56  ;;  %v1622_v56 = vadd.f32 %v13579_v57, %v13907_v55 }
 0x24c   :  { %12352 = vmatmul.mubr.bf16.gmra.mrb[196].mxu0 %v12544_v37  ;;  %v4071_v37 = vsel %vm4061_vm0, %v13998_v0, %v3078_v6  ;;  %v12546_v6 = vld [vmem:[#allocation2 + $0x328] sm:$0xff]   ;;  %v5420_v4 = vrot.slane %v5418_v15, 1  ;;  %v19942_v15 = vrot.slane %v13831_v59, 4 }
 0x24d   :  { %12355 = vmatprep.mubr.bf16.mxu0 %v12545_v54  ;;  %v4803_v5 = vsel %vm4713_vm2, %v4799_v20, %v4802_v41  ;;  %v5417_v54 = vor.u32 %v5416_v42, %v5415_v32  ;;  %v14021_v16 = vsel %vm4226_vm4, %v19938_v21, %v5714_v30  ;;  %v4202_v42 = vsel %vm4193_vm11, %v4169_v53, %v3365_v34  ;;  %v12548_v20 = vld [vmem:[#allocation2 + $0x330] sm:$0xff]  }
 0x24e   :  { %19939 = vst [vmem:[#allocation29_spill] sm:$0xff] %v14021_v16  ;;  %5060 = vrot.lane.b32.xlu0 %v4803_v5, %s12977_s8  ;;  %11522 = vmatprep.mubr.msk.bf16.mxu1 %vm5806_vm5, %v14021_v16  ;;  %v19940_v32 = vrot.slane %v13836_v29, 3  ;;  %v19941_v5 = vrot.slane %v13876_v36, 6  ;;  %v1614_v29 = vadd.f32 %v13579_v57, %v13918_v61  ;;  %v5422_v55 = vor.u32 %v5421_v48, %v5420_v4 }
 0x24f   :  { %v14015_v23 = vpop.f32.mrb[92].mxu0  ;;  %v19943_v53 = vrot.slane %v13876_v36, 7  ;;  %v1617_v48 = vadd.f32 %v13579_v57, %v13934_v1 }
 0x250   :  { %v14026_v24 = vpop.f32.mrb[93].mxu0  ;;  %v4363_v30 = vsel %vm4127_vm9, %v13888_v63, %v19940_v32  ;;  %v4235_v41 = vsel %vm4226_vm4, %v4202_v42, %v19941_v5  ;;  %v1625_v63 = vadd.f32 %v13579_v57, %v13928_v35  ;;  %v2342_v5 = vmax.f32 %v13947_v17, %v1622_v56 }
 0x251   :  { %v14040_v39 = vpop.f32.mrb[94].mxu0  ;;  %v4395_v21 = vsel %vm4160_vm10, %v4363_v30, %v19942_v15  ;;  %v4267_v32 = vsel %vm2556_vm1, %v4235_v41, %v19943_v53  ;;  %v19945_v30 = vrot.slane %v13831_v59, 6  ;;  %v2340_v15 = vmax.f32 %v13951_v18, %v1614_v29 }
 0x252   :  { %v14052_v34 = vpop.f32.mrb[95].mxu0  ;;  %v4427_v42 = vsel %vm4193_vm11, %v4395_v21, %v19944_v33  ;;  %v2343_v35 = vmax.f32 %v13955_v7, %v1625_v63  ;;  %v5423_v33 = vsel %vm5342_vm3, %v5417_v54, %v5422_v55  ;;  %v19946_v17 = vrot.slane %v13831_v59, 7 }
 0x253   :  { %v4459_v61 = vsel %vm4226_vm4, %v4427_v42, %v19945_v30  ;;  %v5049_v41 = vpop.permute.xlu0 %5048  ;;  %5656 = vrot.lane.b32.xlu0 %v5423_v33, %s12978_s2  ;;  %v2630_v7 = vrot.slane %v2342_v5, 1  ;;  %v2341_v1 = vmax.f32 %v13977_v47, %v1617_v48  ;;  %v14079_v63 = vsel %vm4094_vm8, %v4071_v37, %v3142_v38  ;;  %v12549_v42 = vld [vmem:[#allocation2 + $0x338] sm:$0xff]   ;;  %v5281_v33 = vpop.permute.xlu1 %5280 }
 0x254   :  { %12356 = vmatmul.mubr.bf16.gmra.mrb[200].mxu0 %v12546_v6  ;;  %v4491_v56 = vsel %vm2556_vm1, %v4459_v61, %v19946_v17  ;;  %v2632_v21 = vrot.slane %v2343_v35, 1  ;;  %v14083_v59 = vadd.f32 %v13579_v57, %v13972_v14  ;;  %v5812_v47 = vsel %vm5806_vm5, %v13377_v45, %v5049_v41 }
 0x255   :  { %12359 = vmatprep.mubr.bf16.mxu0 %v12548_v20  ;;  %v4523_v18 = vpack.c.bf16 %v4491_v56, %v4267_v32  ;;  %v2627_v30 = vrot.slane %v2340_v15, 1  ;;  %v14098_v14 = vadd.f32 %v13579_v57, %v13980_v8  ;;  %v14102_v37 = vadd.f32 %v13579_v57, %v13986_v49 }
 0x256   :  { %v2633_v55 = vsel %vm2556_vm1, %v2630_v7, %v2632_v21  ;;  %v14088_v53 = vmax.f32 %v2343_v35, %v2632_v21  ;;  %v12550_v35 = vld [vmem:[#allocation2 + $0x340] sm:$0xff]   ;;  %v14114_v17 = vadd.f32 %v13579_v57, %v13993_v62  ;;  %v5717_v29 = vrot.slane %v13441_v46, 2 }
 0x257   :  { %v14085_v54 = vpop.f32.mrb[96].mxu0  ;;  %v4589_v20 = vrot.slane %v4523_v18, 7  ;;  %v14094_v38 = vmax.f32 %v2342_v5, %v2633_v55  ;;  %v2628_v5 = vrot.slane %v2341_v1, 1  ;;  %v5879_v18 = vsel %vm5873_vm6, %v5812_v47, %v5281_v33 }
 0x258   :  { %v14092_v32 = vpop.f32.mrb[97].mxu0  ;;  %v5716_v55 = vrot.slane %v13438_v52, 2  ;;  %v5645_v51 = vpop.permute.xlu0 %5644 }
 0x259   :  { %v14104_v61 = vpop.f32.mrb[98].mxu0  ;;  %v14107_v48 = vsel %vm4061_vm0, 0, %v4589_v20  ;;  %v14110_v45 = vsel %vm4061_vm0, %v4589_v20, 0  ;;  %v3591_v41 = vrot.slane %v14094_v38, 1  ;;  %v3655_v47 = vrot.slane %v14094_v38, 2 }
 0x25a   :  { %19947 = vst [vmem:[#allocation30_spill] sm:$0xff] %v14107_v48  ;;  %19948 = vst [vmem:[#allocation31_spill] sm:$0xff] %v14110_v45  ;;  %v14116_v8 = vpop.f32.mrb[99].mxu0  ;;  %v5204_v49 = vrot.slane %v14107_v48, 1  ;;  %v5205_v56 = vrot.slane %v14110_v45, 1  ;;  %v4804_v20 = vshrl.u32 %v14107_v48, 16  ;;  %v2629_v46 = vsel %vm2556_vm1, %v2627_v30, %v2628_v5 }
 0x25b   :  { %v4806_v4 = vshll.u32 %v14107_v48, 16  ;;  %v4810_v36 = vshll.u32 %v14110_v45, 16  ;;  %v4301_v33 = vsel %vm4061_vm0, %v14094_v38, %v3591_v41  ;;  %v5427_v22 = vshrl.u32 %v14110_v45, 16  ;;  %v12552_v48 = vld [vmem:[#allocation2 + $0x350] sm:$0xff]  }
 0x25c   :  { %12360 = vmatmul.mubr.bf16.gmra.mrb[204].mxu0 %v12549_v42  ;;  %v5206_v62 = vsel %vm2556_vm1, %v5204_v49, %v5205_v56  ;;  %v2631_v42 = vsel %vm2556_vm1, %v2628_v5, %v2630_v7  ;;  %v14136_v56 = vmax.f32 %v2340_v15, %v2629_v46  ;;  %v5424_v21 = vrot.slane %v4804_v20, 1  ;;  %v12569_v46 = vld [vmem:[#allocation8 + $0xb8] sm:$0xff]   ;;  %v12551_v7 = vld [vmem:[#allocation2 + $0x348] sm:$0xff]  }
 0x25d   :  { %12363 = vmatprep.mubr.bf16.mxu0 %v12550_v35  ;;  %5294 = vrot.lane.b32.xlu0 %v5206_v62, %s12967_s21  ;;  %v4808_v49 = vrot.slane %v4806_v4, 1  ;;  %v14138_v6 = vmax.f32 %v2341_v1, %v2631_v42  ;;  %v5425_v62 = vrot.slane %v4806_v4, 2  ;;  %v14145_v12 = vsel %vm5940_vm7, %v5879_v18, %v5645_v51 }
 0x25e   :  { %19949 = vst [vmem:[#allocation32_spill] sm:$0xff] %v14145_v12  ;;  %v4812_v15 = vrot.slane %v4810_v36, 1  ;;  %v5430_v5 = vrot.slane %v4810_v36, 2  ;;  %6283 = vmatmul.mubr.bf16.gmra.mrb[8].mxu1 %v14145_v12  ;;  %v14155_v4 = vsel %vm4094_vm8, %v4301_v33, %v3655_v47  ;;  %v3079_v51 = vrot.slane %v14136_v56, 1  ;;  %6966 = vmatpush1.bf16.msra.mxu0 %v12569_v46 }
 0x25f   :  { %v14140_v11 = vpop.f32.mrb[100].mxu0  ;;  %v4809_v30 = vor.u32 %v4808_v49, %v4804_v20  ;;  %v5426_v49 = vor.u32 %v5425_v62, %v5424_v21  ;;  %v5429_v45 = vrot.slane %v5427_v22, 1  ;;  %v14166_v33 = vsel %vm4226_vm4, %v5716_v55, %v5717_v29  ;;  %6967 = vmatprep.subr.bf16.mxu0 %v19931_v40 }
 0x260   :  { %v14147_v41 = vpop.f32.mrb[101].mxu0  ;;  %19950 = vst [vmem:[#allocation33_spill] sm:$0xff] %v14166_v33  ;;  %v19951_v42 = vrot.slane %v13998_v0, 3  ;;  %11523 = vmatprep.mubr.msk.bf16.mxu1 %vm5806_vm5, %v14166_v33  ;;  %v19953_v62 = vrot.slane %v14000_v27, 4  ;;  %v19954_v29 = vrot.slane %v13970_v26, 4  ;;  %v1646_v46 = vadd.f32 %v13579_v57, %v14026_v24 }
 0x261   :  { %v14151_v1 = vpop.f32.mrb[102].mxu0  ;;  %v4813_v20 = vsel %vm4713_vm2, %v4809_v30, %v4812_v15  ;;  %v19952_v30 = vrot.slane %v13968_v9, 3  ;;  %v5431_v22 = vor.u32 %v5430_v5, %v5429_v45  ;;  %v19955_v9 = vrot.slane %v14000_v27, 5 }
 0x262   :  { %v14159_v35 = vpop.f32.mrb[103].mxu0  ;;  %5062 = vrot.lane.b32.xlu1 %v4813_v20, %s12977_s8  ;;  %v4137_v18 = vsel %vm4127_vm9, %v14079_v63, %v19951_v42  ;;  %v1654_v63 = vadd.f32 %v13579_v57, %v14015_v23  ;;  %v19956_v45 = vrot.slane %v13970_v26, 5  ;;  %v1657_v42 = vadd.f32 %v13579_v57, %v14040_v39 }
 0x263   :  { %v4364_v21 = vsel %vm4127_vm9, %v14008_v13, %v19952_v30  ;;  %v4170_v15 = vsel %vm4160_vm10, %v4137_v18, %v19953_v62  ;;  %v5051_v55 = vpop.permute.xlu1 %5050  ;;  %v12572_v18 = vld [vmem:[#allocation8 + $0xc0] sm:$0xff]   ;;  %v5432_v20 = vsel %vm5342_vm3, %v5426_v49, %v5431_v22  ;;  %v19957_v23 = vrot.slane %v14000_v27, 6 }
 0x264   :  { %v4396_v0 = vsel %vm4160_vm10, %v4364_v21, %v19954_v29  ;;  %v4203_v13 = vsel %vm4193_vm11, %v4170_v15, %v19955_v9  ;;  %12364 = vmatmul.mubr.bf16.gmra.mrb[208].mxu0 %v12551_v7  ;;  %v19958_v21 = vrot.slane %v13970_v26, 6  ;;  %v14204_v15 = vmax.f32 %v14083_v59, %v1654_v63  ;;  %v5283_v63 = vpop.permute.xlu0 %5282  ;;  %v14221_v9 = vld [vmem:[#allocation7] ss:$0 sm:$0xff] }
 0x265   :  { %v4428_v5 = vsel %vm4193_vm11, %v4396_v0, %v19956_v45  ;;  %v4236_v30 = vsel %vm4226_vm4, %v4203_v13, %v19957_v23  ;;  %12367 = vmatprep.mubr.bf16.mxu0 %v12552_v48  ;;  %v19959_v57 = vrot.slane %v14000_v27, 7  ;;  %v19960_v39 = vrot.slane %v13970_v26, 7  ;;  %6968 = vmatpush1.bf16.msra.mxu0 %v12572_v18  ;;  %v12554_v23 = vld [vmem:[#allocation2 + $0x360] sm:$0xff]  }
 0x266   :  { %v4460_v62 = vsel %vm4226_vm4, %v4428_v5, %v19958_v21  ;;  %5658 = vrot.lane.b32.xlu1 %v5432_v20, %s12978_s2  ;;  %v2344_v49 = vmax.f32 %v14098_v14, %v1646_v46  ;;  %v2347_v22 = vmax.f32 %v14102_v37, %v1657_v42  ;;  %v4072_v59 = vsel %vm4061_vm0, %v14136_v56, %v3079_v51  ;;  %v12553_v42 = vld [vmem:[#allocation2 + $0x358] sm:$0xff]  }
 0x267   :  { %v14206_v29 = vpop.f32.mrb[104].mxu0  ;;  %v4268_v24 = vsel %vm2556_vm1, %v4236_v30, %v19959_v57  ;;  %v4492_v7 = vsel %vm2556_vm1, %v4460_v62, %v19960_v39  ;;  %v1649_v27 = vadd.f32 %v14221_v9, %v14052_v34  ;;  %v5814_v26 = vsel %vm5806_vm5, %v13438_v52, %v5051_v55  ;;  %6969 = vmatprep.subr.bf16.mxu0 %v19931_v40  ;;  %v12573_v30 = vld [vmem:[#allocation8 + $0xc8] sm:$0xff]  }
 0x268   :  { %v14217_v0 = vpop.f32.mrb[105].mxu0  ;;  %v4524_v48 = vpack.c.bf16 %v4492_v7, %v4268_v24  ;;  %v2637_v37 = vrot.slane %v14204_v15, 1  ;;  %v2639_v45 = vrot.slane %v2347_v22, 1  ;;  %v5881_v51 = vsel %vm5873_vm6, %v5814_v26, %v5283_v63 }
 0x269   :  { %v14227_v13 = vpop.f32.mrb[106].mxu0  ;;  %v5647_v5 = vpop.permute.xlu1 %5646  ;;  %v2345_v52 = vmax.f32 %v14114_v17, %v1649_v27  ;;  %v19962_v62 = vrot.slane %v14136_v56, 2  ;;  %v2634_v27 = vrot.slane %v2344_v49, 1  ;;  %6970 = vmatpush1.bf16.msra.mxu0 %v12573_v30  ;;  %v19965_v47 = vrot.slane %v14136_v56, 3 }
 0x26a   :  { %v14233_v46 = vpop.f32.mrb[107].mxu0  ;;  %v4590_v20 = vrot.slane %v4524_v48, 7  ;;  %v14238_v55 = vsel %vm5940_vm7, %v5881_v51, %v5647_v5  ;;  %v2640_v18 = vsel %vm2556_vm1, %v2637_v37, %v2639_v45  ;;  %v14248_v24 = vmax.f32 %v2347_v22, %v2639_v45  ;;  %6971 = vmatprep.subr.bf16.mxu0 %v19931_v40 }
 0x26b   :  { %19961 = vst [vmem:[#allocation34_spill] sm:$0xff] %v14238_v55  ;;  %v14245_v57 = vsel %vm4094_vm8, %v4072_v59, %v19962_v62  ;;  %6291 = vmatmul.mubr.bf16.gmra.mrb[12].mxu1 %v14238_v55  ;;  %v14258_v7 = vmax.f32 %v14204_v15, %v2640_v18  ;;  %v2635_v48 = vrot.slane %v2345_v52, 1  ;;  %v14264_v22 = vadd.f32 %v14221_v9, %v14085_v54  ;;  %v12576_v54 = vld [vmem:[#allocation8 + $0xd0] sm:$0xff]  }
 0x26c   :  { %v14252_v17 = vsel %vm4061_vm0, 0, %v4590_v20  ;;  %v14255_v39 = vsel %vm4061_vm0, %v4590_v20, 0  ;;  %12368 = vmatmul.mubr.bf16.gmra.mrb[212].mxu0 %v12553_v42  ;;  %v14269_v45 = vadd.f32 %v14221_v9, %v14092_v32  ;;  %v14273_v15 = vadd.f32 %v14221_v9, %v14104_v61 }
 0x26d   :  { %19963 = vst [vmem:[#allocation35_spill] sm:$0xff] %v14252_v17  ;;  %19964 = vst [vmem:[#allocation36_spill] sm:$0xff] %v14255_v39  ;;  %v5207_v63 = vrot.slane %v14252_v17, 1  ;;  %v5208_v59 = vrot.slane %v14255_v39, 1  ;;  %v3592_v26 = vrot.slane %v14258_v7, 1  ;;  %v14277_v51 = vadd.f32 %v14221_v9, %v14116_v8  ;;  %12371 = vmatprep.mubr.bf16.mxu0 %v12554_v23  ;;  %6972 = vmatpush1.bf16.msra.mxu0 %v12576_v54 }
 0x26e   :  { %v4814_v32 = vshrl.u32 %v14252_v17, 16  ;;  %v4816_v62 = vshll.u32 %v14252_v17, 16  ;;  %v3656_v61 = vrot.slane %v14258_v7, 2  ;;  %v4820_v8 = vshll.u32 %v14255_v39, 16  ;;  %6973 = vmatprep.subr.bf16.mxu0 %v19931_v40 }
 0x26f   :  { %v14279_v5 = vpop.f32.mrb[108].mxu0  ;;  %v5209_v42 = vsel %vm2556_vm1, %v5207_v63, %v5208_v59  ;;  %v2636_v23 = vsel %vm2556_vm1, %v2634_v27, %v2635_v48  ;;  %v2638_v30 = vsel %vm2556_vm1, %v2635_v48, %v2637_v37  ;;  %v4302_v59 = vsel %vm4061_vm0, %v14258_v7, %v3592_v26  ;;  %v12556_v37 = vld [vmem:[#allocation2 + $0x370] sm:$0xff]  }
 0x270   :  { %v14285_v18 = vpop.f32.mrb[109].mxu0  ;;  %5296 = vrot.lane.b32.xlu1 %v5209_v42, %s12967_s21  ;;  %v4818_v20 = vrot.slane %v4816_v62, 1  ;;  %v14297_v21 = vmax.f32 %v2344_v49, %v2636_v23  ;;  %v14299_v34 = vmax.f32 %v2345_v52, %v2638_v30  ;;  %v12555_v42 = vld [vmem:[#allocation2 + $0x368] sm:$0xff]   ;;  %v5433_v36 = vrot.slane %v4814_v32, 1  ;;  %v12577_v52 = vld [vmem:[#allocation8 + $0xd8] sm:$0xff]  }
 0x271   :  { %v14293_v63 = vpop.f32.mrb[110].mxu0  ;;  %v5434_v17 = vrot.slane %v4816_v62, 2  ;;  %v5436_v27 = vshrl.u32 %v14255_v39, 16  ;;  %v4822_v49 = vrot.slane %v4820_v8, 1  ;;  %v14310_v30 = vsel %vm4094_vm8, %v4302_v59, %v3656_v61  ;;  %6974 = vmatpush1.bf16.msra.mxu0 %v12577_v52 }
 0x272   :  { %v14301_v14 = vpop.f32.mrb[111].mxu0  ;;  %v4819_v55 = vor.u32 %v4818_v20, %v4814_v32  ;;  %v3080_v62 = vrot.slane %v14297_v21, 1  ;;  %v3208_v48 = vrot.slane %v14297_v21, 3  ;;  %v3304_v26 = vrot.slane %v14299_v34, 4  ;;  %6975 = vmatprep.subr.bf16.mxu0 %v19931_v40 }
 0x273   :  { %v5438_v20 = vrot.slane %v5436_v27, 1  ;;  %v5435_v32 = vor.u32 %v5434_v17, %v5433_v36  ;;  %v5439_v39 = vrot.slane %v4820_v8, 2  ;;  %v5719_v23 = vrot.slane %v13523_v58, 2  ;;  %v12580_v8 = vld [vmem:[#allocation8 + $0xe0] sm:$0xff]  }
 0x274   :  { %v4823_v54 = vsel %vm4713_vm2, %v4819_v55, %v4822_v49  ;;  %12372 = vmatmul.mubr.bf16.gmra.mrb[216].mxu0 %v12555_v42  ;;  %v5720_v61 = vrot.slane %v13526_v3, 2  ;;  %v4138_v55 = vsel %vm4127_vm9, %v14245_v57, %v19965_v47  ;;  %v19966_v49 = vrot.slane %v14094_v38, 3 }
 0x275   :  { %5064 = vrot.lane.b32.xlu0 %v4823_v54, %s12977_s8  ;;  %12375 = vmatprep.mubr.bf16.mxu0 %v12556_v37  ;;  %v1686_v36 = vadd.f32 %v14221_v9, %v14140_v11  ;;  %v1678_v17 = vadd.f32 %v14221_v9, %v14147_v41  ;;  %v5440_v27 = vor.u32 %v5439_v39, %v5438_v20  ;;  %v19968_v47 = vrot.slane %v14138_v6, 4 }
 0x276   :  { %v4365_v42 = vsel %vm4127_vm9, %v14155_v4, %v19966_v49  ;;  %v14337_v56 = vsel %vm4226_vm4, %v5719_v23, %v5720_v61  ;;  %v19969_v4 = vrot.slane %v14088_v53, 4  ;;  %v19970_v41 = vrot.slane %v14138_v6, 5  ;;  %6976 = vmatpush1.bf16.msra.mxu0 %v12580_v8 }
 0x277   :  { %v14320_v59 = vpop.f32.mrb[112].mxu0  ;;  %19967 = vst [vmem:[#allocation37_spill] sm:$0xff] %v14337_v56  ;;  %v4171_v38 = vsel %vm4160_vm10, %v4138_v55, %v19968_v47  ;;  %11524 = vmatprep.mubr.msk.bf16.mxu1 %vm5806_vm5, %v14337_v56  ;;  %v19971_v37 = vrot.slane %v14088_v53, 5  ;;  %v14357_v23 = vmax.f32 %v14264_v22, %v1686_v36  ;;  %v14360_v54 = vmax.f32 %v14269_v45, %v1678_v17  ;;  %v12557_v55 = vld [vmem:[#allocation2 + $0x378] sm:$0xff]   ;;  %v12558_v36 = vld [vmem:[#allocation2 + $0x380] sm:$0xff]  }
 0x278   :  { %v14334_v3 = vpop.f32.mrb[113].mxu0  ;;  %v4397_v57 = vsel %vm4160_vm10, %v4365_v42, %v19969_v4  ;;  %v4204_v39 = vsel %vm4193_vm11, %v4171_v38, %v19970_v41  ;;  %v5053_v20 = vpop.permute.xlu0 %5052  ;;  %v5441_v49 = vsel %vm5342_vm3, %v5435_v32, %v5440_v27  ;;  %v19972_v42 = vrot.slane %v14138_v6, 6  ;;  %6977 = vmatprep.subr.bf16.mxu0 %v19931_v40 }
 0x279   :  { %v14345_v11 = vpop.f32.mrb[114].mxu0  ;;  %v4429_v52 = vsel %vm4193_vm11, %v4397_v57, %v19971_v37  ;;  %v19973_v38 = vrot.slane %v14088_v53, 6  ;;  %v1689_v22 = vadd.f32 %v14221_v9, %v14151_v1  ;;  %v4073_v17 = vsel %vm4061_vm0, %v14297_v21, %v3080_v62  ;;  %5660 = vrot.lane.b32.xlu0 %v5441_v49, %s12978_s2  ;;  %v5285_v1 = vpop.permute.xlu1 %5284 }
 0x27a   :  { %v14362_v61 = vpop.f32.mrb[115].mxu0  ;;  %v4237_v47 = vsel %vm4226_vm4, %v4204_v39, %v19972_v42  ;;  %v19974_v32 = vrot.slane %v14138_v6, 7  ;;  %v19975_v57 = vrot.slane %v14088_v53, 7  ;;  %v12581_v39 = vld [vmem:[#allocation8 + $0xe8] sm:$0xff]   ;;  %v1681_v42 = vadd.f32 %v14221_v9, %v14159_v35 }
 0x27b   :  { %v4461_v4 = vsel %vm4226_vm4, %v4429_v52, %v19973_v38  ;;  %v2351_v52 = vmax.f32 %v14273_v15, %v1689_v22  ;;  %v5816_v62 = vsel %vm5806_vm5, %v13523_v58, %v5053_v20  ;;  %v2644_v49 = vrot.slane %v14357_v23, 1  ;;  %6978 = vmatpush1.bf16.msra.mxu0 %v12581_v39 }
 0x27c   :  { %v4269_v27 = vsel %vm2556_vm1, %v4237_v47, %v19974_v32  ;;  %v4493_v41 = vsel %vm2556_vm1, %v4461_v4, %v19975_v57  ;;  %v5883_v47 = vsel %vm5873_vm6, %v5816_v62, %v5285_v1  ;;  %12376 = vmatmul.mubr.bf16.gmra.mrb[220].mxu0 %v12557_v55  ;;  %v2349_v4 = vmax.f32 %v14277_v51, %v1681_v42 }
 0x27d   :  { %v4525_v37 = vpack.c.bf16 %v4493_v41, %v4269_v27  ;;  %v5649_v8 = vpop.permute.xlu0 %5648  ;;  %v2646_v15 = vrot.slane %v2351_v52, 1  ;;  %12379 = vmatprep.mubr.bf16.mxu0 %v12558_v36  ;;  %v19977_v20 = vrot.slane %v14297_v21, 2  ;;  %v2641_v32 = vrot.slane %v14360_v54, 1  ;;  %7827 = vmatprep.subr.bf16.mxu0 %v19931_v40 }
 0x27e   :  { %v14395_v35 = vsel %vm5940_vm7, %v5883_v47, %v5649_v8  ;;  %v5722_v55 = vrot.slane %v13606_v44, 2  ;;  %v5723_v27 = vrot.slane %v13609_v19, 2  ;;  %v12559_v8 = vld [vmem:[#allocation2 + $0x388] sm:$0xff]   ;;  %v14434_v47 = vadd.f32 %v14221_v9, %v14217_v0 }
 0x27f   :  { %v4591_v38 = vrot.slane %v4525_v37, 7  ;;  %19976 = vst [vmem:[#allocation38_spill] sm:$0xff] %v14395_v35  ;;  %v14397_v58 = vpop.f32.mrb[116].mxu0  ;;  %v4106_v22 = vsel %vm4094_vm8, %v4073_v17, %v19977_v20  ;;  %6299 = vmatmul.mubr.bf16.gmra.mrb[16].mxu1 %v14395_v35  ;;  %v2647_v41 = vsel %vm2556_vm1, %v2644_v49, %v2646_v15  ;;  %v14415_v17 = vmax.f32 %v2351_v52, %v2646_v15  ;;  %v12561_v15 = vld [vmem:[#allocation2 + $0x390] sm:$0xff]  }
 0x280   :  { %v14406_v57 = vpop.f32.mrb[117].mxu0  ;;  %v14423_v39 = vmax.f32 %v14357_v23, %v2647_v41  ;;  %v14430_v52 = vadd.f32 %v14221_v9, %v14206_v29  ;;  %v4139_v23 = vsel %vm4127_vm9, %v4106_v22, %v3208_v48  ;;  %v14448_v53 = vadd.f32 %v14221_v9, %v14233_v46 }
 0x281   :  { %v14409_v51 = vsel %vm4061_vm0, 0, %v4591_v38  ;;  %v14412_v36 = vsel %vm4061_vm0, %v4591_v38, 0  ;;  %v14417_v37 = vpop.f32.mrb[118].mxu0  ;;  %v14438_v38 = vadd.f32 %v14221_v9, %v14227_v13  ;;  %v2642_v48 = vrot.slane %v2349_v4, 1 }
 0x282   :  { %19978 = vst [vmem:[#allocation39_spill] sm:$0xff] %v14409_v51  ;;  %19979 = vst [vmem:[#allocation40_spill] sm:$0xff] %v14412_v36  ;;  %v5210_v1 = vrot.slane %v14409_v51, 1  ;;  %v5211_v19 = vrot.slane %v14412_v36, 1  ;;  %v4824_v42 = vshrl.u32 %v14409_v51, 16  ;;  %v14426_v62 = vpop.f32.mrb[119].mxu0  ;;  %v4172_v46 = vsel %vm4160_vm10, %v4139_v23, %v3304_v26 }
 0x283   :  { %v3593_v41 = vrot.slane %v14423_v39, 1  ;;  %v3657_v0 = vrot.slane %v14423_v39, 2  ;;  %v4826_v13 = vshll.u32 %v14409_v51, 16  ;;  %v4830_v21 = vshll.u32 %v14412_v36, 16 }
 0x284   :  { %v5212_v20 = vsel %vm2556_vm1, %v5210_v1, %v5211_v19  ;;  %v5442_v22 = vrot.slane %v4824_v42, 1  ;;  %v5445_v1 = vshrl.u32 %v14412_v36, 16  ;;  %v14456_v19 = vsel %vm4226_vm4, %v5722_v55, %v5723_v27  ;;  %12380 = vmatmul.mubr.bf16.gmra.mrb[224].mxu0 %v12559_v8 }
 0x285   :  { %5298 = vrot.lane.b32.xlu0 %v5212_v20, %s12967_s21  ;;  %19980 = vst [vmem:[#allocation41_spill] sm:$0xff] %v14456_v19  ;;  %v4303_v20 = vsel %vm4061_vm0, %v14423_v39, %v3593_v41  ;;  %v4828_v29 = vrot.slane %v4826_v13, 1  ;;  %v4832_v6 = vrot.slane %v4830_v21, 1  ;;  %v2643_v45 = vsel %vm2556_vm1, %v2641_v32, %v2642_v48  ;;  %11525 = vmatprep.mubr.msk.bf16.mxu1 %vm5806_vm5, %v14456_v19 }
 0x286   :  { %12383 = vmatprep.mubr.bf16.mxu0 %v12561_v15  ;;  %v2645_v55 = vsel %vm2556_vm1, %v2642_v48, %v2644_v49  ;;  %v14470_v27 = vmax.f32 %v14360_v54, %v2643_v45  ;;  %v5443_v26 = vrot.slane %v4826_v13, 2  ;;  %v5447_v8 = vrot.slane %v5445_v1, 1  ;;  %v12562_v48 = vld [vmem:[#allocation2 + $0x398] sm:$0xff]  }
 0x287   :  { %v14466_v51 = vpop.f32.mrb[120].mxu0  ;;  %v4829_v41 = vor.u32 %v4828_v29, %v4824_v42  ;;  %v14474_v36 = vmax.f32 %v2349_v4, %v2645_v55  ;;  %v5448_v40 = vrot.slane %v4830_v21, 2  ;;  %v19981_v32 = vrot.slane %v14299_v34, 5 }
 0x288   :  { %v14472_v23 = vpop.f32.mrb[121].mxu0  ;;  %v5444_v45 = vor.u32 %v5443_v26, %v5442_v22  ;;  %v14488_v42 = vsel %vm4094_vm8, %v4303_v20, %v3657_v0  ;;  %v3081_v21 = vrot.slane %v14470_v27, 1  ;;  %v3145_v55 = vrot.slane %v14470_v27, 2 }
 0x289   :  { %v4205_v19 = vsel %vm4193_vm11, %v4172_v46, %v19981_v32  ;;  %v14479_v35 = vpop.f32.mrb[122].mxu0  ;;  %v4833_v29 = vsel %vm4713_vm2, %v4829_v41, %v4832_v6  ;;  %v12563_v46 = vld [vmem:[#allocation2 + $0x3a0] sm:$0xff]   ;;  %v5449_v26 = vor.u32 %v5448_v40, %v5447_v8  ;;  %v19982_v32 = vrot.slane %v14299_v34, 6 }
 0x28a   :  { %v14484_v13 = vpop.f32.mrb[123].mxu0  ;;  %v5055_v1 = vpop.permute.xlu1 %5054  ;;  %5066 = vrot.lane.b32.xlu1 %v4833_v29, %s12977_s8  ;;  %v19983_v20 = vrot.slane %v14299_v34, 7  ;;  %v19984_v41 = vrot.slane %v14258_v7, 3  ;;  %v1718_v49 = vadd.f32 %v14221_v9, %v14279_v5  ;;  %v19985_v8 = vrot.slane %v14248_v24, 4 }
 0x28b   :  { %v4238_v54 = vsel %vm4226_vm4, %v4205_v19, %v19982_v32  ;;  %v5450_v40 = vsel %vm5342_vm3, %v5444_v45, %v5449_v26  ;;  %v1710_v32 = vadd.f32 %v14221_v9, %v14285_v18  ;;  %v1721_v34 = vadd.f32 %v14221_v9, %v14293_v63  ;;  %v5287_v5 = vpop.permute.xlu0 %5286 }
 0x28c   :  { %v4270_v6 = vsel %vm2556_vm1, %v4238_v54, %v19983_v20  ;;  %v4366_v29 = vsel %vm4127_vm9, %v14310_v30, %v19984_v41  ;;  %12384 = vmatmul.mubr.bf16.gmra.mrb[228].mxu0 %v12562_v48  ;;  %v19986_v7 = vrot.slane %v14248_v24, 5  ;;  %v2354_v54 = vmax.f32 %v14430_v52, %v1718_v49 }
 0x28d   :  { %v4398_v19 = vsel %vm4160_vm10, %v4366_v29, %v19985_v8  ;;  %v1713_v45 = vadd.f32 %v14221_v9, %v14301_v14  ;;  %v5818_v26 = vsel %vm5806_vm5, %v13606_v44, %v5055_v1  ;;  %12387 = vmatprep.mubr.bf16.mxu0 %v12563_v46  ;;  %v19987_v63 = vrot.slane %v14248_v24, 6 }
 0x28e   :  { %v4430_v30 = vsel %vm4193_vm11, %v4398_v19, %v19986_v7  ;;  %5662 = vrot.lane.b32.xlu1 %v5450_v40, %s12978_s2  ;;  %v2352_v52 = vmax.f32 %v14434_v47, %v1710_v32  ;;  %v2355_v49 = vmax.f32 %v14438_v38, %v1721_v34  ;;  %v4074_v44 = vsel %vm4061_vm0, %v14470_v27, %v3081_v21  ;;  %v12564_v7 = vld [vmem:[#allocation2 + $0x3a8] sm:$0xff]  }
 0x28f   :  { %v14524_v20 = vpop.f32.mrb[124].mxu0  ;;  %v4462_v48 = vsel %vm4226_vm4, %v4430_v30, %v19987_v63  ;;  %v5651_v41 = vpop.permute.xlu1 %5650  ;;  %v19988_v1 = vrot.slane %v14248_v24, 7  ;;  %v2353_v29 = vmax.f32 %v14448_v53, %v1713_v45  ;;  %v5885_v40 = vsel %vm5873_vm6, %v5818_v26, %v5287_v5  ;;  %v12565_v53 = vld [vmem:[#allocation2 + $0x3b0] sm:$0xff]  }
 0x290   :  { %v14533_v14 = vpop.f32.mrb[125].mxu0  ;;  %v2651_v47 = vrot.slane %v2354_v54, 1  ;;  %v2653_v32 = vrot.slane %v2355_v49, 1  ;;  %v14545_v38 = vsel %vm5940_vm7, %v5885_v40, %v5651_v41  ;;  %v2648_v30 = vrot.slane %v2352_v52, 1 }
 0x291   :  { %v4494_v46 = vsel %vm2556_vm1, %v4462_v48, %v19988_v1  ;;  %v14542_v8 = vpop.f32.mrb[126].mxu0  ;;  %19989 = vst [vmem:[#allocation42_spill] sm:$0xff] %v14545_v38  ;;  %v2649_v63 = vrot.slane %v2353_v29, 1  ;;  %6307 = vmatmul.mubr.bf16.gmra.mrb[20].mxu1 %v14545_v38  ;;  %v4107_v5 = vsel %vm4094_vm8, %v4074_v44, %v3145_v55 }
 0x292   :  { %v4526_v19 = vpack.c.bf16 %v4494_v46, %v4270_v6  ;;  %v14547_v34 = vpop.f32.mrb[127].mxu0  ;;  %v2654_v45 = vsel %vm2556_vm1, %v2651_v47, %v2653_v32  ;;  %v14554_v26 = vmax.f32 %v2355_v49, %v2653_v32  ;;  %v14562_v46 = vadd.f32 %v14221_v9, %v14320_v59 }
 0x293   :  { %v14556_v48 = vmax.f32 %v2354_v54, %v2654_v45  ;;  %v2650_v41 = vsel %vm2556_vm1, %v2648_v30, %v2649_v63  ;;  %v2652_v1 = vsel %vm2556_vm1, %v2649_v63, %v2651_v47  ;;  %v14572_v49 = vadd.f32 %v14221_v9, %v14334_v3 }
 0x294   :  { %v4592_v6 = vrot.slane %v4526_v19, 7  ;;  %v14576_v54 = vadd.f32 %v14221_v9, %v14345_v11  ;;  %12388 = vmatmul.mubr.bf16.gmra.mrb[232].mxu0 %v12564_v7  ;;  %v14583_v47 = vadd.f32 %v14221_v9, %v14362_v61  ;;  %v5725_v11 = vrot.slane %v13709_v60, 2 }
 0x295   :  { %v3594_v19 = vrot.slane %v14556_v48, 1  ;;  %12391 = vmatprep.mubr.bf16.mxu0 %v12565_v53  ;;  %v5726_v7 = vrot.slane %v13712_v31, 2  ;;  %v3658_v45 = vrot.slane %v14556_v48, 2  ;;  %v14602_v3 = vmax.f32 %v2352_v52, %v2650_v41 }
 0x296   :  { %v14565_v40 = vsel %vm4061_vm0, 0, %v4592_v6  ;;  %v14568_v55 = vsel %vm4061_vm0, %v4592_v6, 0  ;;  %v14604_v31 = vmax.f32 %v2353_v29, %v2652_v1 }
 0x297   :  { %19990 = vst [vmem:[#allocation43_spill] sm:$0xff] %v14565_v40  ;;  %19991 = vst [vmem:[#allocation44_spill] sm:$0xff] %v14568_v55  ;;  %v5213_v44 = vrot.slane %v14565_v40, 1  ;;  %v5214_v59 = vrot.slane %v14568_v55, 1  ;;  %v14585_v32 = vpop.f32.mrb[128].mxu0  ;;  %v4834_v30 = vshrl.u32 %v14565_v40, 16  ;;  %v4304_v53 = vsel %vm4061_vm0, %v14556_v48, %v3594_v19 }
 0x298   :  { %v14591_v63 = vpop.f32.mrb[129].mxu0  ;;  %v4836_v61 = vshll.u32 %v14565_v40, 16  ;;  %v4840_v24 = vshll.u32 %v14568_v55, 16  ;;  %v5454_v22 = vshrl.u32 %v14568_v55, 16  ;;  %v12567_v40 = vld [vmem:[#allocation2 + $0x3c0] sm:$0xff]   ;;  %v3082_v29 = vrot.slane %v14602_v3, 1 }
 0x299   :  { %v5215_v6 = vsel %vm2556_vm1, %v5213_v44, %v5214_v59  ;;  %v14597_v15 = vpop.f32.mrb[130].mxu0  ;;  %v5451_v21 = vrot.slane %v4834_v30, 1  ;;  %v12566_v44 = vld [vmem:[#allocation2 + $0x3b8] sm:$0xff]   ;;  %v14615_v41 = vsel %vm4094_vm8, %v4304_v53, %v3658_v45  ;;  %v3146_v59 = vrot.slane %v14602_v3, 2 }
 0x29a   :  { %5300 = vrot.lane.b32.xlu1 %v5215_v6, %s12967_s21  ;;  %v14606_v18 = vpop.f32.mrb[131].mxu0  ;;  %v4838_v4 = vrot.slane %v4836_v61, 1  ;;  %v5452_v0 = vrot.slane %v4836_v61, 2  ;;  %v4842_v19 = vrot.slane %v4840_v24, 1  ;;  %v3210_v61 = vrot.slane %v14602_v3, 3 }
 0x29b   :  { %v5456_v55 = vrot.slane %v5454_v22, 1  ;;  %v5457_v33 = vrot.slane %v4840_v24, 2  ;;  %v4075_v52 = vsel %vm4061_vm0, %v14602_v3, %v3082_v29  ;;  %v14623_v6 = vsel %vm4226_vm4, %v5725_v11, %v5726_v7 }
 0x29c   :  { %v4839_v1 = vor.u32 %v4838_v4, %v4834_v30  ;;  %v5453_v56 = vor.u32 %v5452_v0, %v5451_v21  ;;  %v5057_v12 = vpop.permute.xlu0 %5056  ;;  %12392 = vmatmul.mubr.bf16.gmra.mrb[236].mxu0 %v12566_v44  ;;  %19992 = vst [vmem:[#allocation45_spill] sm:$0xff] %v14623_v6  ;;  %v19993_v4 = vrot.slane %v14470_v27, 3  ;;  %v3306_v22 = vrot.slane %v14604_v31, 4  ;;  %11526 = vmatprep.mubr.msk.bf16.mxu1 %vm5806_vm5, %v14623_v6 }
 0x29d   :  { %12395 = vmatprep.mubr.bf16.mxu0 %v12567_v40  ;;  %v5458_v0 = vor.u32 %v5457_v33, %v5456_v55  ;;  %v19994_v21 = vrot.slane %v14474_v36, 4  ;;  %v19995_v11 = vrot.slane %v14423_v39, 3  ;;  %v19996_v40 = vrot.slane %v14474_v36, 5 }
 0x29e   :  { %v4843_v38 = vsel %vm4713_vm2, %v4839_v1, %v4842_v19  ;;  %v4140_v30 = vsel %vm4127_vm9, %v4107_v5, %v19993_v4  ;;  %v19997_v33 = vrot.slane %v14415_v17, 4  ;;  %v1750_v7 = vadd.f32 %v14221_v9, %v14397_v58  ;;  %v12568_v58 = vld [vmem:[#allocation2 + $0x3c8] sm:$0xff]  }
 0x29f   :  { %v14628_v45 = vpop.f32.mrb[132].mxu0  ;;  %5068 = vrot.lane.b32.xlu0 %v4843_v38, %s12977_s8  ;;  %v4173_v24 = vsel %vm4160_vm10, %v4140_v30, %v19994_v21  ;;  %v4367_v27 = vsel %vm4127_vm9, %v14488_v42, %v19995_v11  ;;  %v1742_v53 = vadd.f32 %v14221_v9, %v14406_v57  ;;  %v5459_v42 = vsel %vm5342_vm3, %v5453_v56, %v5458_v0 }
 0x2a0   :  { %v14641_v5 = vpop.f32.mrb[133].mxu0  ;;  %v4206_v38 = vsel %vm4193_vm11, %v4173_v24, %v19996_v40  ;;  %v4399_v55 = vsel %vm4160_vm10, %v4367_v27, %v19997_v33  ;;  %v19998_v44 = vrot.slane %v14474_v36, 6  ;;  %v19999_v1 = vrot.slane %v14415_v17, 5  ;;  %v12570_v27 = vld [vmem:[#allocation2 + $0x3d0] sm:$0xff]  }
 0x2a1   :  { %v14653_v39 = vpop.f32.mrb[134].mxu0  ;;  %v1753_v4 = vadd.f32 %v14221_v9, %v14417_v37  ;;  %v20000_v57 = vrot.slane %v14474_v36, 7  ;;  %v20001_v56 = vrot.slane %v14415_v17, 6  ;;  %v2358_v24 = vmax.f32 %v14562_v46, %v1750_v7 }
 0x2a2   :  { %v4239_v29 = vsel %vm4226_vm4, %v4206_v38, %v19998_v44  ;;  %v4431_v19 = vsel %vm4193_vm11, %v4399_v55, %v19999_v1  ;;  %v14664_v30 = vpop.f32.mrb[135].mxu0  ;;  %v2356_v11 = vmax.f32 %v14572_v49, %v1742_v53  ;;  %v20002_v37 = vrot.slane %v14415_v17, 7  ;;  %v5653_v55 = vpop.permute.xlu0 %5652 }
 0x2a3   :  { %v4271_v21 = vsel %vm2556_vm1, %v4239_v29, %v20000_v57  ;;  %v4463_v0 = vsel %vm4226_vm4, %v4431_v19, %v20001_v56  ;;  %5664 = vrot.lane.b32.xlu0 %v5459_v42, %s12978_s2  ;;  %v2359_v38 = vmax.f32 %v14576_v54, %v1753_v4  ;;  %v1745_v36 = vadd.f32 %v14221_v9, %v14426_v62  ;;  %v5289_v42 = vpop.permute.xlu1 %5288 }
 0x2a4   :  { %v4495_v40 = vsel %vm2556_vm1, %v4463_v0, %v20002_v37  ;;  %v5820_v33 = vsel %vm5806_vm5, %v13709_v60, %v5057_v12  ;;  %v2658_v17 = vrot.slane %v2358_v24, 1  ;;  %12396 = vmatmul.mubr.bf16.gmra.mrb[240].mxu0 %v12568_v58  ;;  %v4108_v62 = vsel %vm4094_vm8, %v4075_v52, %v3146_v59 }
 0x2a5   :  { %v4527_v53 = vpack.c.bf16 %v4495_v40, %v4271_v21  ;;  %v2660_v44 = vrot.slane %v2359_v38, 1  ;;  %v2357_v29 = vmax.f32 %v14583_v47, %v1745_v36  ;;  %v5887_v54 = vsel %vm5873_vm6, %v5820_v33, %v5289_v42  ;;  %12399 = vmatprep.mubr.bf16.mxu0 %v12570_v27  ;;  %v12571_v33 = vld [vmem:[#allocation2 + $0x3d8] sm:$0xff]   ;;  %v12574_v42 = vld [vmem:[#allocation2 + $0x3e0] sm:$0xff]  }
 0x2a6   :  { %v14690_v12 = vsel %vm5940_vm7, %v5887_v54, %v5653_v55  ;;  %v5728_v60 = vrot.slane %v13825_v25, 2  ;;  %v2655_v4 = vrot.slane %v2356_v11, 1  ;;  %v14700_v47 = vadd.f32 %v14221_v9, %v14466_v51 }
 0x2a7   :  { %v4593_v1 = vrot.slane %v4527_v53, 7  ;;  %20003 = vst [vmem:[#allocation46_spill] sm:$0xff] %v14690_v12  ;;  %v14693_v19 = vpop.f32.mrb[136].mxu0  ;;  %v2661_v57 = vsel %vm2556_vm1, %v2658_v17, %v2660_v44  ;;  %v14696_v21 = vmax.f32 %v2359_v38, %v2660_v44  ;;  %6315 = vmatmul.mubr.bf16.gmra.mrb[24].mxu1 %v14690_v12  ;;  %v2656_v0 = vrot.slane %v2357_v29, 1 }
 0x2a8   :  { %v14703_v59 = vpop.f32.mrb[137].mxu0  ;;  %v14711_v56 = vmax.f32 %v2358_v24, %v2661_v57  ;;  %v14719_v40 = vadd.f32 %v14221_v9, %v14472_v23  ;;  %v14723_v38 = vadd.f32 %v14221_v9, %v14479_v35  ;;  %v14730_v55 = vadd.f32 %v14221_v9, %v14484_v13 }
 0x2a9   :  { %v14706_v52 = vsel %vm4061_vm0, 0, %v4593_v1  ;;  %v14709_v58 = vsel %vm4061_vm0, %v4593_v1, 0  ;;  %v14713_v27 = vpop.f32.mrb[138].mxu0  ;;  %v5729_v53 = vrot.slane %v13828_v50, 2  ;;  %v4141_v23 = vsel %vm4127_vm9, %v4108_v62, %v3210_v61 }
 0x2aa   :  { %20004 = vst [vmem:[#allocation47_spill] sm:$0xff] %v14706_v52  ;;  %20005 = vst [vmem:[#allocation48_spill] sm:$0xff] %v14709_v58  ;;  %v5216_v37 = vrot.slane %v14706_v52, 1  ;;  %v5217_v51 = vrot.slane %v14709_v58, 1  ;;  %v14725_v36 = vpop.f32.mrb[139].mxu0  ;;  %v3595_v24 = vrot.slane %v14711_v56, 1  ;;  %v2657_v50 = vsel %vm2556_vm1, %v2655_v4, %v2656_v0 }
 0x2ab   :  { %v4844_v54 = vshrl.u32 %v14706_v52, 16  ;;  %v4846_v1 = vshll.u32 %v14706_v52, 16  ;;  %v3659_v13 = vrot.slane %v14711_v56, 2  ;;  %v4850_v57 = vshll.u32 %v14709_v58, 16 }
 0x2ac   :  { %v5218_v44 = vsel %vm2556_vm1, %v5216_v37, %v5217_v51  ;;  %v2659_v3 = vsel %vm2556_vm1, %v2656_v0, %v2658_v17  ;;  %v4305_v61 = vsel %vm4061_vm0, %v14711_v56, %v3595_v24  ;;  %v14747_v37 = vmax.f32 %v2356_v11, %v2657_v50  ;;  %12400 = vmatmul.mubr.bf16.gmra.mrb[244].mxu0 %v12571_v33 }
 0x2ad   :  { %5302 = vrot.lane.b32.xlu0 %v5218_v44, %s12967_s21  ;;  %v4848_v62 = vrot.slane %v4846_v1, 1  ;;  %v14749_v51 = vmax.f32 %v2357_v29, %v2659_v3  ;;  %v5460_v44 = vrot.slane %v4844_v54, 1  ;;  %v5461_v7 = vrot.slane %v4846_v1, 2  ;;  %12403 = vmatprep.mubr.bf16.mxu0 %v12574_v42  ;;  %v12575_v29 = vld [vmem:[#allocation2 + $0x3e8] sm:$0xff]  }
 0x2ae   :  { %v5463_v49 = vshrl.u32 %v14709_v58, 16  ;;  %v4852_v0 = vrot.slane %v4850_v57, 1  ;;  %v3083_v24 = vrot.slane %v14747_v37, 1  ;;  %v14762_v50 = vsel %vm4094_vm8, %v4305_v61, %v3659_v13 }
 0x2af   :  { %v14753_v46 = vpop.f32.mrb[140].mxu0  ;;  %v4849_v4 = vor.u32 %v4848_v62, %v4844_v54  ;;  %v3147_v1 = vrot.slane %v14747_v37, 2  ;;  %v5462_v33 = vor.u32 %v5461_v7, %v5460_v44  ;;  %v5466_v13 = vrot.slane %v4850_v57, 2  ;;  %v12578_v54 = vld [vmem:[#allocation2 + $0x3f0] sm:$0xff]  }
 0x2b0   :  { %v14757_v11 = vpop.f32.mrb[141].mxu0  ;;  %v4076_v62 = vsel %vm4061_vm0, %v14747_v37, %v3083_v24  ;;  %v5465_v35 = vrot.slane %v5463_v49, 1  ;;  %v14777_v61 = vsel %vm4226_vm4, %v5728_v60, %v5729_v53  ;;  %v20007_v49 = vrot.slane %v14604_v31, 5 }
 0x2b1   :  { %v14765_v3 = vpop.f32.mrb[142].mxu0  ;;  %v4853_v42 = vsel %vm4713_vm2, %v4849_v4, %v4852_v0  ;;  %20006 = vst [vmem:[#allocation49_spill] sm:$0xff] %v14777_v61  ;;  %v4174_v4 = vsel %vm4160_vm10, %v4141_v23, %v3306_v22  ;;  %v5059_v0 = vpop.permute.xlu1 %5058  ;;  %11527 = vmatprep.mubr.msk.bf16.mxu1 %vm5806_vm5, %v14777_v61  ;;  %v20008_v7 = vrot.slane %v14556_v48, 3  ;;  %v1782_v60 = vadd.f32 %v14221_v9, %v14524_v20 }
 0x2b2   :  { %v14771_v17 = vpop.f32.mrb[143].mxu0  ;;  %5070 = vrot.lane.b32.xlu1 %v4853_v42, %s12977_s8  ;;  %v4207_v24 = vsel %vm4193_vm11, %v4174_v4, %v20007_v49  ;;  %v1774_v22 = vadd.f32 %v14221_v9, %v14533_v14  ;;  %v5467_v53 = vor.u32 %v5466_v13, %v5465_v35  ;;  %v20009_v23 = vrot.slane %v14604_v31, 6 }
 0x2b3   :  { %v4368_v57 = vsel %vm4127_vm9, %v14615_v41, %v20008_v7  ;;  %v20010_v42 = vrot.slane %v14554_v26, 4  ;;  %v1785_v48 = vadd.f32 %v14221_v9, %v14542_v8  ;;  %v20011_v41 = vrot.slane %v14604_v31, 7 }
 0x2b4   :  { %v4240_v44 = vsel %vm4226_vm4, %v4207_v24, %v20009_v23  ;;  %v20012_v20 = vrot.slane %v14554_v26, 5  ;;  %v14810_v35 = vmax.f32 %v14700_v47, %v1782_v60  ;;  %v14813_v13 = vmax.f32 %v14719_v40, %v1774_v22  ;;  %12404 = vmatmul.mubr.bf16.gmra.mrb[248].mxu0 %v12575_v29 }
 0x2b5   :  { %v4400_v4 = vsel %vm4160_vm10, %v4368_v57, %v20010_v42  ;;  %v4272_v49 = vsel %vm2556_vm1, %v4240_v44, %v20011_v41  ;;  %v5468_v24 = vsel %vm5342_vm3, %v5462_v33, %v5467_v53  ;;  %v20013_v7 = vrot.slane %v14554_v26, 6  ;;  %12407 = vmatprep.mubr.bf16.mxu0 %v12578_v54  ;;  %v5655_v44 = vpop.permute.xlu1 %5654  ;;  %v5291_v41 = vpop.permute.xlu0 %5290 }
 0x2b6   :  { %v4432_v14 = vsel %vm4193_vm11, %v4400_v4, %v20012_v20  ;;  %v2363_v31 = vmax.f32 %v14723_v38, %v1785_v48  ;;  %v1777_v57 = vadd.f32 %v14221_v9, %v14547_v34  ;;  %5666 = vrot.lane.b32.xlu1 %v5468_v24, %s12978_s2  ;;  %v20014_v29 = vrot.slane %v14554_v26, 7 }
 0x2b7   :  { %v4464_v8 = vsel %vm4226_vm4, %v4432_v14, %v20013_v7  ;;  %v14822_v23 = vpop.f32.mrb[144].mxu0  ;;  %v5822_v60 = vsel %vm5806_vm5, %v13825_v25, %v5059_v0  ;;  %v2665_v34 = vrot.slane %v14810_v35, 1  ;;  %v14841_v48 = vsel %vm4094_vm8, %v4076_v62, %v3147_v1 }
 0x2b8   :  { %v4496_v33 = vsel %vm2556_vm1, %v4464_v8, %v20014_v29  ;;  %v14832_v38 = vpop.f32.mrb[145].mxu0  ;;  %v2667_v53 = vrot.slane %v2363_v31, 1  ;;  %v2361_v54 = vmax.f32 %v14730_v55, %v1777_v57  ;;  %v2662_v25 = vrot.slane %v14813_v13, 1 }
 0x2b9   :  { %v4528_v22 = vpack.c.bf16 %v4496_v33, %v4272_v49  ;;  %v14836_v42 = vpop.f32.mrb[146].mxu0  ;;  %v12579_v49 = vld [vmem:[#allocation2 + $0x3f8] sm:$0xff]   ;;  %v14849_v55 = vadd.f32 %v14221_v9, %v14585_v32  ;;  %v5889_v24 = vsel %vm5873_vm6, %v5822_v60, %v5291_v41  ;;  %v14858_v62 = vadd.f32 %v14221_v9, %v14591_v63 }
 0x2ba   :  { %v14844_v0 = vpop.f32.mrb[147].mxu0  ;;  %v2668_v14 = vsel %vm2556_vm1, %v2665_v34, %v2667_v53  ;;  %v14854_v1 = vsel %vm5940_vm7, %v5889_v24, %v5655_v44  ;;  %v14862_v8 = vadd.f32 %v14221_v9, %v14597_v15  ;;  %v14870_v29 = vmax.f32 %v2363_v31, %v2667_v53 }
 0x2bb   :  { %v4594_v20 = vrot.slane %v4528_v22, 7  ;;  %v2971_v7 = vmax.f32 %v14810_v35, %v2668_v14  ;;  %20015 = vst [vmem:[#allocation50_spill] sm:$0xff] %v14854_v1  ;;  %v2663_v35 = vrot.slane %v2361_v54, 1  ;;  %6323 = vmatmul.mubr.bf16.gmra.mrb[28].mxu1 %v14854_v1  ;;  %v5731_v41 = vrot.slane %v13959_v43, 2 }
 0x2bc   :  { %20018 = vst [vmem:[#allocation53_spill] sm:$0xff] %v14870_v29  ;;  %12408 = vmatmul.mubr.bf16.gmra.mrb[252].mxu0 %v12579_v49  ;;  %v3820_v4 = vrot.slane %v14870_v29, 4 }
 0x2bd   :  { %v14865_v57 = vsel %vm4061_vm0, 0, %v4594_v20  ;;  %v14868_v32 = vsel %vm4061_vm0, %v4594_v20, 0  ;;  %v3596_v60 = vrot.slane %v2971_v7, 1  ;;  %v3660_v22 = vrot.slane %v2971_v7, 2  ;;  %11604 = vmatprep.mubr.msk.bf16.mxu0 %vm5806_vm5, %v13292_v2 }
 0x2be   :  { %20016 = vst [vmem:[#allocation51_spill] sm:$0xff] %v14865_v57  ;;  %20017 = vst [vmem:[#allocation52_spill] sm:$0xff] %v14868_v32  ;;  %v5219_v33 = vrot.slane %v14865_v57, 1  ;;  %v5220_v63 = vrot.slane %v14868_v32, 1  ;;  %v3724_v15 = vrot.slane %v2971_v7, 3  ;;  %v4854_v44 = vshrl.u32 %v14865_v57, 16 }
 0x2bf   :  { %v5732_v20 = vrot.slane %v13962_v10, 2  ;;  %v14880_v31 = vpop.f32.mrb[148].mxu0  ;;  %v4306_v14 = vsel %vm4061_vm0, %v2971_v7, %v3596_v60  ;;  %v4856_v24 = vshll.u32 %v14865_v57, 16  ;;  %v4860_v49 = vshll.u32 %v14868_v32, 16 }
 0x2c0   :  { %v5221_v53 = vsel %vm2556_vm1, %v5219_v33, %v5220_v63  ;;  %v14886_v26 = vpop.f32.mrb[149].mxu0  ;;  %v4338_v10 = vsel %vm4094_vm8, %v4306_v14, %v3660_v22  ;;  %v2664_v40 = vsel %vm2556_vm1, %v2662_v25, %v2663_v35  ;;  %v2666_v47 = vsel %vm2556_vm1, %v2663_v35, %v2665_v34 }
 0x2c1   :  { %5304 = vrot.lane.b32.xlu1 %v5221_v53, %s12967_s21  ;;  %v14893_v2 = vpop.f32.mrb[150].mxu0  ;;  %v4370_v7 = vsel %vm4127_vm9, %v4338_v10, %v3724_v15  ;;  %v4858_v33 = vrot.slane %v4856_v24, 1  ;;  %v2969_v63 = vmax.f32 %v14813_v13, %v2664_v40  ;;  %v5469_v60 = vrot.slane %v4854_v44, 1 }
 0x2c2   :  { %v14897_v57 = vpop.f32.mrb[151].mxu0  ;;  %v14900_v53 = vsel %vm4160_vm10, %v4370_v7, %v3820_v4  ;;  %v14902_v58 = vmax.f32 %v2361_v54, %v2666_v47  ;;  %v5470_v22 = vrot.slane %v4856_v24, 2  ;;  %v5472_v25 = vshrl.u32 %v14868_v32, 16  ;;  %v5061_v7 = vpop.permute.xlu0 %5060 }
 0x2c3   :  { %20019 = vst [vmem:[#allocation54_spill] sm:$0xff] %v14900_v53  ;;  %v4859_v14 = vor.u32 %v4858_v33, %v4854_v44  ;;  %v4862_v34 = vrot.slane %v4860_v49, 1  ;;  %v3084_v35 = vrot.slane %v2969_v63, 1  ;;  %v3148_v52 = vrot.slane %v2969_v63, 2 }
 0x2c4   :  { %20020 = vst [vmem:[#allocation55_spill] sm:$0xff] %v14902_v58  ;;  %v3212_v10 = vrot.slane %v2969_v63, 3  ;;  %v3308_v13 = vrot.slane %v14902_v58, 4  ;;  %v1793_v40 = vadd.f32 %v14221_v9, %v14606_v18  ;;  %v5471_v54 = vor.u32 %v5470_v22, %v5469_v60  ;;  %6992 = vmatmul.mubr.bf16.vlgmr.msra.gmra.mrb[0].mxu0 %v13942_v28  ;;  %v20043_v28 = vld [vmem:[#allocation37_spill] sm:$0xff]  ;;  %v20045_v58 = vld [vmem:[#allocation38_spill] sm:$0xff] }
 0x2c5   :  { %v4863_v4 = vsel %vm4713_vm2, %v4859_v14, %v4862_v34  ;;  %v4077_v47 = vsel %vm4061_vm0, %v2969_v63, %v3084_v35  ;;  %v5474_v24 = vrot.slane %v5472_v25, 1  ;;  %v5475_v33 = vrot.slane %v4860_v49, 2  ;;  %11605 = vmatprep.mubr.msk.bf16.mxu0 %vm5806_vm5, %v14021_v16 }
 0x2c6   :  { %5072 = vrot.lane.b32.xlu0 %v4863_v4, %s12977_s8  ;;  %v4110_v44 = vsel %vm4094_vm8, %v4077_v47, %v3148_v52  ;;  %v14915_v15 = vsel %vm4226_vm4, %v5731_v41, %v5732_v20  ;;  %v20022_v53 = vrot.slane %v14747_v37, 3  ;;  %v20023_v52 = vrot.slane %v14749_v51, 4 }
 0x2c7   :  { %20021 = vst [vmem:[#allocation56_spill] sm:$0xff] %v14915_v15  ;;  %v14923_v18 = vpop.f32.mrb[152].mxu0  ;;  %v4143_v63 = vsel %vm4127_vm9, %v4110_v44, %v3212_v10  ;;  %11528 = vmatprep.mubr.msk.bf16.mxu1 %vm5806_vm5, %v14915_v15  ;;  %v20024_v20 = vrot.slane %v14711_v56, 3  ;;  %v5476_v22 = vor.u32 %v5475_v33, %v5474_v24  ;;  %v20026_v25 = vrot.slane %v14749_v51, 5 }
 0x2c8   :  { %v4142_v9 = vsel %vm4127_vm9, %v14841_v48, %v20022_v53  ;;  %v14935_v48 = vld [vmem:[#allocation7] ss:$0 sm:$0xff]  ;;  %v14939_v60 = vpop.f32.mrb[153].mxu0  ;;  %v14942_v53 = vsel %vm4160_vm10, %v4143_v63, %v3308_v13  ;;  %v20027_v56 = vrot.slane %v14696_v21, 4  ;;  %v20028_v35 = vrot.slane %v14749_v51, 6 }
 0x2c9   :  { %v4175_v41 = vsel %vm4160_vm10, %v4142_v9, %v20023_v52  ;;  %v4369_v37 = vsel %vm4127_vm9, %v14762_v50, %v20024_v20  ;;  %v1814_v49 = vadd.f32 %v14935_v48, %v14628_v45  ;;  %20025 = vst [vmem:[#allocation57_spill] sm:$0xff] %v14942_v53  ;;  %v14950_v50 = vpop.f32.mrb[154].mxu0  ;;  %v20029_v10 = vrot.slane %v14696_v21, 5 }
 0x2ca   :  { %v4208_v14 = vsel %vm4193_vm11, %v4175_v41, %v20026_v25  ;;  %v4401_v34 = vsel %vm4160_vm10, %v4369_v37, %v20027_v56  ;;  %v1806_v47 = vadd.f32 %v14935_v48, %v14641_v5  ;;  %v14963_v24 = vpop.f32.mrb[155].mxu0  ;;  %v5477_v44 = vsel %vm5342_vm3, %v5471_v54, %v5476_v22  ;;  %v5657_v37 = vpop.permute.xlu0 %5656 }
 0x2cb   :  { %v4241_v45 = vsel %vm4226_vm4, %v4208_v14, %v20028_v35  ;;  %v4433_v13 = vsel %vm4193_vm11, %v4401_v34, %v20029_v10  ;;  %v14959_v4 = vmax.f32 %v14849_v55, %v1814_v49  ;;  %v20030_v33 = vrot.slane %v14749_v51, 7  ;;  %5668 = vrot.lane.b32.xlu0 %v5477_v44, %s12978_s2  ;;  %v5293_v25 = vpop.permute.xlu1 %5292  ;;  %v20033_v35 = vld [vmem:[#allocation32_spill] sm:$0xff] }
 0x2cc   :  { %v20031_v63 = vrot.slane %v14696_v21, 6  ;;  %v1817_v41 = vadd.f32 %v14935_v48, %v14653_v39  ;;  %v20032_v5 = vrot.slane %v14696_v21, 7  ;;  %v2364_v54 = vmax.f32 %v14858_v62, %v1806_v47  ;;  %7000 = vmatmul.mubr.bf16.gmra.mrb[4].mxu0 %v20033_v35  ;;  %v20036_v47 = vld [vmem:[#allocation33_spill] sm:$0xff] }
 0x2cd   :  { %v4273_v9 = vsel %vm2556_vm1, %v4241_v45, %v20030_v33  ;;  %v1809_v51 = vadd.f32 %v14935_v48, %v14664_v30  ;;  %v5824_v14 = vsel %vm5806_vm5, %v13959_v43, %v5061_v7  ;;  %v14990_v30 = vpop.f32.mrb[0].mxu1  ;;  %v2672_v10 = vrot.slane %v14959_v4, 1  ;;  %11606 = vmatprep.mubr.msk.bf16.mxu0 %vm5806_vm5, %v20036_v47 }
 0x2ce   :  { %v4465_v52 = vsel %vm4226_vm4, %v4433_v13, %v20031_v63  ;;  %v2367_v39 = vmax.f32 %v14862_v8, %v1817_v41  ;;  %v5891_v62 = vsel %vm5873_vm6, %v5824_v14, %v5293_v25  ;;  %20034 = vst [vmem:[#allocation58_spill] sm:$0xff] %v14990_v30  ;;  %v6270_v7 = vpop.f32.mrb[1].mxu1  ;;  %v2669_v44 = vrot.slane %v2364_v54, 1 }
 0x2cf   :  { %v4497_v20 = vsel %vm2556_vm1, %v4465_v52, %v20032_v5  ;;  %v2365_v34 = vmax.f32 %v1793_v40, %v1809_v51  ;;  %v14994_v8 = vsel %vm5940_vm7, %v5891_v62, %v5657_v37  ;;  %v14998_v43 = vpop.f32.mrb[156].mxu0  ;;  %v15003_v33 = vadd.f32 %v14935_v48, %v14693_v19  ;;  %v15021_v19 = vpop.f32.mrb[2].mxu1  ;;  %v20040_v40 = vld [vmem:[#allocation30_spill] sm:$0xff] }
 0x2d0   :  { %v4529_v22 = vpack.c.bf16 %v4497_v20, %v4273_v9  ;;  %v2674_v13 = vrot.slane %v2367_v39, 1  ;;  %20035 = vst [vmem:[#allocation59_spill] sm:$0xff] %v14994_v8  ;;  %v15007_v9 = vadd.f32 %v14935_v48, %v14703_v59  ;;  %6331 = vmatmul.mubr.bf16.gmra.mrb[32].mxu1 %v14994_v8  ;;  %v15010_v63 = vpop.f32.mrb[157].mxu0  ;;  %20039 = vst [vmem:[#allocation62_spill] sm:$0xff] %v15021_v19  ;;  %v6273_v62 = vpop.f32.mrb[3].mxu1  ;;  %v5734_v55 = vrot.slane %v20040_v40, 2 }
 0x2d1   :  { %v2670_v20 = vrot.slane %v2365_v34, 1  ;;  %v15019_v51 = vpop.f32.mrb[158].mxu0  ;;  %v1833_v7 = vadd.f32 %v14935_v48, %v14713_v27  ;;  %v1825_v49 = vadd.f32 %v14935_v48, %v14725_v36 }
 0x2d2   :  { %v4595_v45 = vrot.slane %v4529_v22, 7  ;;  %v2675_v5 = vsel %vm2556_vm1, %v2672_v10, %v2674_v13  ;;  %v15028_v25 = vmax.f32 %v2367_v39, %v2674_v13  ;;  %v15030_v14 = vpop.f32.mrb[159].mxu0  ;;  %v20041_v13 = vld [vmem:[#allocation31_spill] sm:$0xff] }
 0x2d3   :  { %v15026_v22 = vmax.f32 %v14959_v4, %v2675_v5  ;;  %v5735_v5 = vrot.slane %v20041_v13, 2  ;;  %v2671_v27 = vsel %vm2556_vm1, %v2669_v44, %v2670_v20  ;;  %v2673_v36 = vsel %vm2556_vm1, %v2670_v20, %v2672_v10  ;;  %v20042_v13 = vld [vmem:[#allocation34_spill] sm:$0xff] }
 0x2d4   :  { %v15013_v52 = vsel %vm4061_vm0, 0, %v4595_v45  ;;  %v15016_v41 = vsel %vm4061_vm0, %v4595_v45, 0  ;;  %v15052_v30 = vmax.f32 %v2365_v34, %v2673_v36  ;;  %7008 = vmatmul.mubr.bf16.gmra.mrb[8].mxu0 %v20042_v13  ;;  %v1849_v20 = vadd.f32 %v14935_v48, %v14765_v3 }
 0x2d5   :  { %20037 = vst [vmem:[#allocation60_spill] sm:$0xff] %v15013_v52  ;;  %20038 = vst [vmem:[#allocation61_spill] sm:$0xff] %v15016_v41  ;;  %v5222_v59 = vrot.slane %v15013_v52, 1  ;;  %v5223_v37 = vrot.slane %v15016_v41, 1  ;;  %v4864_v45 = vshrl.u32 %v15013_v52, 16  ;;  %v3597_v4 = vrot.slane %v15026_v22, 1  ;;  %11607 = vmatprep.mubr.msk.bf16.mxu0 %vm5806_vm5, %v20043_v28 }
 0x2d6   :  { %v3661_v39 = vrot.slane %v15026_v22, 2  ;;  %v4866_v62 = vshll.u32 %v15013_v52, 16  ;;  %v4870_v56 = vshll.u32 %v15016_v41, 16 }
 0x2d7   :  { %v5224_v21 = vsel %vm2556_vm1, %v5222_v59, %v5223_v37  ;;  %v4307_v59 = vsel %vm4061_vm0, %v15026_v22, %v3597_v4  ;;  %v15050_v37 = vmax.f32 %v2364_v54, %v2671_v27  ;;  %v5478_v35 = vrot.slane %v4864_v45, 1  ;;  %v15058_v10 = vpop.f32.mrb[160].mxu0  ;;  %v5063_v4 = vpop.permute.xlu1 %5062 }
 0x2d8   :  { %5306 = vrot.lane.b32.xlu0 %v5224_v21, %s12967_s21  ;;  %v4868_v47 = vrot.slane %v4866_v62, 1  ;;  %v5479_v16 = vrot.slane %v4866_v62, 2  ;;  %v15064_v34 = vsel %vm4094_vm8, %v4307_v59, %v3661_v39  ;;  %v15066_v27 = vpop.f32.mrb[161].mxu0  ;;  %v4872_v21 = vrot.slane %v4870_v56, 1 }
 0x2d9   :  { %v3085_v62 = vrot.slane %v15050_v37, 1  ;;  %v3149_v19 = vrot.slane %v15050_v37, 2  ;;  %v15070_v28 = vpop.f32.mrb[162].mxu0  ;;  %v3213_v44 = vrot.slane %v15050_v37, 3  ;;  %v5481_v54 = vshrl.u32 %v15016_v41, 16 }
 0x2da   :  { %v4869_v36 = vor.u32 %v4868_v47, %v4864_v45  ;;  %v5484_v13 = vrot.slane %v4870_v56, 2  ;;  %v15075_v39 = vpop.f32.mrb[163].mxu0  ;;  %v5480_v29 = vor.u32 %v5479_v16, %v5478_v35  ;;  %v15079_v47 = vsel %vm4226_vm4, %v5734_v55, %v5735_v5 }
 0x2db   :  { %20044 = vst [vmem:[#allocation30_spill] sm:$0xff] %v15079_v47  ;;  %v1846_v45 = vadd.f32 %v14935_v48, %v14753_v46  ;;  %v5483_v53 = vrot.slane %v5481_v54, 1  ;;  %11529 = vmatprep.mubr.msk.bf16.mxu1 %vm5806_vm5, %v15079_v47  ;;  %v1838_v56 = vadd.f32 %v14935_v48, %v14757_v11  ;;  %v1841_v16 = vadd.f32 %v14935_v48, %v14771_v17  ;;  %v5295_v54 = vpop.permute.xlu0 %5294  ;;  %v5659_v3 = vpop.permute.xlu1 %5658 }
 0x2dc   :  { %v4873_v59 = vsel %vm4713_vm2, %v4869_v36, %v4872_v21  ;;  %v4078_v46 = vsel %vm4061_vm0, %v15050_v37, %v3085_v62  ;;  %v5826_v5 = vsel %vm5806_vm5, %v20040_v40, %v5063_v4  ;;  %v2371_v36 = vmax.f32 %v1833_v7, %v1849_v20  ;;  %7016 = vmatmul.mubr.bf16.gmra.mrb[12].mxu0 %v20045_v58  ;;  %v20048_v62 = vld [vmem:[#allocation35_spill] sm:$0xff] }
 0x2dd   :  { %5074 = vrot.lane.b32.xlu1 %v4873_v59, %s12977_s8  ;;  %v2370_v35 = vmax.f32 %v15003_v33, %v1846_v45  ;;  %v5485_v21 = vor.u32 %v5484_v13, %v5483_v53  ;;  %v2368_v11 = vmax.f32 %v15007_v9, %v1838_v56  ;;  %v2369_v59 = vmax.f32 %v1825_v49, %v1841_v16  ;;  %v20046_v33 = vld [vmem:[#allocation41_spill] sm:$0xff]  ;;  %v20049_v56 = vld [vmem:[#allocation36_spill] sm:$0xff]  ;;  %v12582_v58 = vld [vmem:[#allocation8] sm:$0xff]  }
 0x2de   :  { %v3437_v17 = vrot.slane %v15052_v30, 6  ;;  %v5893_v37 = vsel %vm5873_vm6, %v5826_v5, %v5295_v54  ;;  %11608 = vmatprep.mubr.msk.bf16.mxu0 %vm5806_vm5, %v20046_v33  ;;  %v2681_v7 = vrot.slane %v2371_v36, 1  ;;  %v4111_v20 = vsel %vm4094_vm8, %v4078_v46, %v3149_v19  ;;  %6584 = vmatpush1.bf16.msra.mxu1 %v12582_v58 }
 0x2df   :  { %v2679_v41 = vrot.slane %v2370_v35, 1  ;;  %v15105_v40 = vpop.f32.mrb[164].mxu0  ;;  %v5486_v53 = vsel %vm5342_vm3, %v5480_v29, %v5485_v21  ;;  %v2676_v9 = vrot.slane %v2368_v11, 1  ;;  %v2677_v49 = vrot.slane %v2369_v59, 1 }
 0x2e0   :  { %v15108_v13 = vpop.f32.mrb[165].mxu0  ;;  %v15113_v4 = vsel %vm5940_vm7, %v5893_v37, %v5659_v3  ;;  %v5737_v45 = vrot.slane %v20048_v62, 2  ;;  %v5738_v16 = vrot.slane %v20049_v56, 2  ;;  %v15120_v21 = vmax.f32 %v2371_v36, %v2681_v7 }
 0x2e1   :  { %5670 = vrot.lane.b32.xlu1 %v5486_v53, %s12978_s2  ;;  %20047 = vst [vmem:[#allocation31_spill] sm:$0xff] %v15113_v4  ;;  %v15117_v5 = vpop.f32.mrb[166].mxu0  ;;  %v2682_v29 = vsel %vm2556_vm1, %v2679_v41, %v2681_v7  ;;  %v2678_v54 = vsel %vm2556_vm1, %v2676_v9, %v2677_v49  ;;  %v2680_v55 = vsel %vm2556_vm1, %v2677_v49, %v2679_v41  ;;  %v20052_v49 = vrot.slane %v15052_v30, 4 }
 0x2e2   :  { %6339 = vmatmul.mubr.bf16.gmra.mrb[36].mxu1 %v15113_v4  ;;  %v15125_v19 = vpop.f32.mrb[167].mxu0  ;;  %v15127_v46 = vmax.f32 %v2370_v35, %v2682_v29  ;;  %v15129_v3 = vmax.f32 %v2368_v11, %v2678_v54  ;;  %v15131_v37 = vmax.f32 %v2369_v59, %v2680_v55  ;;  %v15134_v53 = vsel %vm4226_vm4, %v5737_v45, %v5738_v16 }
 0x2e3   :  { %20050 = vst [vmem:[#allocation35_spill] sm:$0xff] %v15134_v53  ;;  %v1862_v36 = vadd.f32 %v14935_v48, %v14822_v23  ;;  %v1854_v9 = vadd.f32 %v14935_v48, %v14832_v38  ;;  %v1865_v41 = vadd.f32 %v14935_v48, %v14836_v42  ;;  %v1857_v35 = vadd.f32 %v14935_v48, %v14844_v0  ;;  %v20051_v0 = vld [vmem:[#allocation42_spill] sm:$0xff] }
 0x2e4   :  { %11530 = vmatprep.mubr.msk.bf16.mxu1 %vm5806_vm5, %v15134_v53  ;;  %v3598_v55 = vrot.slane %v15127_v46, 1  ;;  %v4144_v23 = vsel %vm4127_vm9, %v4111_v20, %v3213_v44  ;;  %v3662_v7 = vrot.slane %v15127_v46, 2  ;;  %7024 = vmatmul.mubr.bf16.gmra.mrb[16].mxu0 %v20051_v0  ;;  %v3086_v45 = vrot.slane %v15129_v3, 1 }
 0x2e5   :  { %v3150_v56 = vrot.slane %v15129_v3, 2  ;;  %11609 = vmatprep.mubr.msk.bf16.mxu0 %vm5806_vm5, %v14623_v6  ;;  %v4177_v42 = vsel %vm4160_vm10, %v4144_v23, %v20052_v49  ;;  %v20053_v59 = vrot.slane %v15026_v22, 3  ;;  %v20054_v29 = vrot.slane %v15052_v30, 5 }
 0x2e6   :  { %v4308_v20 = vsel %vm4061_vm0, %v15127_v46, %v3598_v55  ;;  %v20055_v6 = vrot.slane %v15028_v25, 4  ;;  %v1878_v54 = vadd.f32 %v14935_v48, %v14880_v31  ;;  %v1870_v23 = vadd.f32 %v14935_v48, %v14886_v26 }
 0x2e7   :  { %v15161_v44 = vpop.f32.mrb[168].mxu0  ;;  %v4371_v11 = vsel %vm4127_vm9, %v15064_v34, %v20053_v59  ;;  %v4210_v16 = vsel %vm4193_vm11, %v4177_v42, %v20054_v29  ;;  %v5065_v22 = vpop.permute.xlu0 %5064  ;;  %v20056_v59 = vrot.slane %v15028_v25, 5  ;;  %v1881_v42 = vadd.f32 %v14935_v48, %v14893_v2 }
 0x2e8   :  { %v15173_v38 = vpop.f32.mrb[169].mxu0  ;;  %v4403_v55 = vsel %vm4160_vm10, %v4371_v11, %v20055_v6  ;;  %v4243_v34 = vsel %vm4226_vm4, %v4210_v16, %v3437_v17  ;;  %v1873_v6 = vadd.f32 %v14935_v48, %v14897_v57  ;;  %v20058_v31 = vrot.slane %v15052_v30, 7 }
 0x2e9   :  { %v15185_v49 = vpop.f32.mrb[170].mxu0  ;;  %v4435_v0 = vsel %vm4193_vm11, %v4403_v55, %v20056_v59  ;;  %v20059_v29 = vrot.slane %v15028_v25, 6  ;;  %v2374_v16 = vmax.f32 %v1862_v36, %v1878_v54  ;;  %v2372_v33 = vmax.f32 %v1854_v9, %v1870_v23 }
 0x2ea   :  { %v15195_v11 = vpop.f32.mrb[171].mxu0  ;;  %v4275_v26 = vsel %vm2556_vm1, %v4243_v34, %v20058_v31  ;;  %v20060_v55 = vrot.slane %v15028_v25, 7  ;;  %v2375_v59 = vmax.f32 %v1865_v41, %v1881_v42  ;;  %v2373_v52 = vmax.f32 %v1857_v35, %v1873_v6 }
 0x2eb   :  { %20057 = vst [vmem:[#allocation36_spill] sm:$0xff] %v15195_v11  ;;  %v4467_v17 = vsel %vm4226_vm4, %v4435_v0, %v20059_v29  ;;  %v5828_v57 = vsel %vm5806_vm5, %v20048_v62, %v5065_v22  ;;  %v2686_v32 = vrot.slane %v2374_v16, 1  ;;  %v5297_v11 = vpop.permute.xlu1 %5296  ;;  %v2683_v36 = vrot.slane %v2372_v33, 1  ;;  %v5661_v54 = vpop.permute.xlu0 %5660 }
 0x2ec   :  { %v4499_v2 = vsel %vm2556_vm1, %v4467_v17, %v20060_v55  ;;  %v2688_v9 = vrot.slane %v2375_v59, 1  ;;  %v2684_v0 = vrot.slane %v2373_v52, 1  ;;  %v5895_v25 = vsel %vm5873_vm6, %v5828_v57, %v5297_v11  ;;  %7032 = vmatmul.mubr.bf16.gmra.mrb[20].mxu0 %v14690_v12 }
 0x2ed   :  { %v4531_v31 = vpack.c.bf16 %v4499_v2, %v4275_v26  ;;  %v20061_v41 = vmov 0   ;;  %v15214_v62 = vsel %vm4094_vm8, %v4308_v20, %v3662_v7  ;;  %v4079_v35 = vsel %vm4061_vm0, %v15129_v3, %v3086_v45  ;;  %11610 = vmatprep.mubr.msk.bf16.mxu0 %vm5806_vm5, %v14777_v61  ;;  %v20066_v61 = vld [vmem:[#allocation40_spill] sm:$0xff] }
 0x2ee   :  { %6585 = vmatprep.subr.bf16.mxu1 %v20061_v41  ;;  %v15219_v22 = vsel %vm5940_vm7, %v5895_v25, %v5661_v54  ;;  %v2689_v42 = vsel %vm2556_vm1, %v2686_v32, %v2688_v9  ;;  %v15226_v6 = vmax.f32 %v2375_v59, %v2688_v9  ;;  %v2685_v11 = vsel %vm2556_vm1, %v2683_v36, %v2684_v0 }
 0x2ef   :  { %v4597_v23 = vrot.slane %v4531_v31, 7  ;;  %20062 = vst [vmem:[#allocation63_spill] sm:$0xff] %v15219_v22  ;;  %v15223_v58 = vpop.f32.mrb[172].mxu0  ;;  %v2687_v7 = vsel %vm2556_vm1, %v2684_v0, %v2686_v32  ;;  %6347 = vmatmul.mubr.bf16.gmra.mrb[40].mxu1 %v15219_v22  ;;  %v15239_v29 = vmax.f32 %v2374_v16, %v2689_v42  ;;  %v15241_v17 = vmax.f32 %v2372_v33, %v2685_v11 }
 0x2f0   :  { %v15231_v45 = vpop.f32.mrb[173].mxu0  ;;  %v4112_v2 = vsel %vm4094_vm8, %v4079_v35, %v3150_v56  ;;  %v1894_v57 = vadd.f32 %v14935_v48, %v14923_v18  ;;  %v1886_v33 = vadd.f32 %v14935_v48, %v14939_v60  ;;  %v15258_v9 = vadd.f32 %v14935_v48, %v14950_v50 }
 0x2f1   :  { %v15234_v20 = vsel %vm4061_vm0, 0, %v4597_v23  ;;  %v15237_v26 = vsel %vm4061_vm0, %v4597_v23, 0  ;;  %v15243_v55 = vpop.f32.mrb[174].mxu0  ;;  %v3599_v36 = vrot.slane %v15239_v29, 1  ;;  %v3663_v16 = vrot.slane %v15239_v29, 2 }
 0x2f2   :  { %20063 = vst [vmem:[#allocation64_spill] sm:$0xff] %v15234_v20  ;;  %20064 = vst [vmem:[#allocation65_spill] sm:$0xff] %v15237_v26  ;;  %v5228_v32 = vrot.slane %v15234_v20, 1  ;;  %v5229_v59 = vrot.slane %v15237_v26, 1  ;;  %v15250_v31 = vpop.f32.mrb[175].mxu0  ;;  %v4884_v0 = vshrl.u32 %v15234_v20, 16  ;;  %v15265_v18 = vadd.f32 %v14935_v48, %v14963_v24 }
 0x2f3   :  { %v4886_v54 = vshll.u32 %v15234_v20, 16  ;;  %v4309_v60 = vsel %vm4061_vm0, %v15239_v29, %v3599_v36  ;;  %v4890_v50 = vshll.u32 %v15237_v26, 16  ;;  %v15272_v35 = vmax.f32 %v2373_v52, %v2687_v7 }
 0x2f4   :  { %v5230_v56 = vsel %vm2556_vm1, %v5228_v32, %v5229_v59  ;;  %7040 = vmatmul.mubr.bf16.gmra.mrb[24].mxu0 %v14854_v1  ;;  %v15280_v59 = vsel %vm4094_vm8, %v4309_v60, %v3663_v16  ;;  %v3087_v36 = vrot.slane %v15241_v17, 1  ;;  %v5496_v25 = vrot.slane %v4884_v0, 1 }
 0x2f5   :  { %5310 = vrot.lane.b32.xlu1 %v5230_v56, %s12967_s21  ;;  %v4888_v32 = vrot.slane %v4886_v54, 1  ;;  %11611 = vmatprep.mubr.msk.bf16.mxu0 %vm5806_vm5, %v14915_v15  ;;  %v4892_v42 = vrot.slane %v4890_v50, 1  ;;  %v5497_v16 = vrot.slane %v4886_v54, 2  ;;  %v5499_v60 = vshrl.u32 %v15237_v26, 16  ;;  %v20065_v15 = vld [vmem:[#allocation39_spill] sm:$0xff] }
 0x2f6   :  { %v5502_v34 = vrot.slane %v4890_v50, 2  ;;  %v5740_v1 = vrot.slane %v20065_v15, 2  ;;  %v20067_v12 = vrot.slane %v15129_v3, 3  ;;  %v20068_v50 = vrot.slane %v15131_v37, 4 }
 0x2f7   :  { %v15286_v52 = vpop.f32.mrb[176].mxu0  ;;  %v4889_v7 = vor.u32 %v4888_v32, %v4884_v0  ;;  %v5741_v32 = vrot.slane %v20066_v61, 2  ;;  %v5498_v54 = vor.u32 %v5497_v16, %v5496_v25  ;;  %v5501_v24 = vrot.slane %v5499_v60, 1 }
 0x2f8   :  { %v15289_v23 = vpop.f32.mrb[177].mxu0  ;;  %v4145_v0 = vsel %vm4127_vm9, %v4112_v2, %v20067_v12  ;;  %v20071_v12 = vrot.slane %v15131_v37, 5  ;;  %v20072_v2 = vrot.slane %v15120_v21, 4 }
 0x2f9   :  { %v15293_v30 = vpop.f32.mrb[178].mxu0  ;;  %v4893_v56 = vsel %vm4713_vm2, %v4889_v7, %v4892_v42  ;;  %v4178_v26 = vsel %vm4160_vm10, %v4145_v0, %v20068_v50  ;;  %v20069_v42 = vrot.slane %v15127_v46, 3  ;;  %v15312_v61 = vsel %vm4226_vm4, %v5740_v1, %v5741_v32 }
 0x2fa   :  { %v15301_v11 = vpop.f32.mrb[179].mxu0  ;;  %5078 = vrot.lane.b32.xlu0 %v4893_v56, %s12977_s8  ;;  %20070 = vst [vmem:[#allocation39_spill] sm:$0xff] %v15312_v61  ;;  %v4211_v3 = vsel %vm4193_vm11, %v4178_v26, %v20071_v12  ;;  %v1910_v56 = vadd.f32 %v14935_v48, %v14998_v43  ;;  %v5503_v16 = vor.u32 %v5502_v34, %v5501_v24  ;;  %v20073_v46 = vrot.slane %v15131_v37, 6 }
 0x2fb   :  { %v4372_v7 = vsel %vm4127_vm9, %v15214_v62, %v20069_v42  ;;  %11531 = vmatprep.mubr.msk.bf16.mxu1 %vm5806_vm5, %v15312_v61  ;;  %v20074_v62 = vrot.slane %v15120_v21, 5  ;;  %v1902_v26 = vadd.f32 %v14935_v48, %v15010_v63  ;;  %v20075_v32 = vrot.slane %v15131_v37, 7 }
 0x2fc   :  { %v4404_v25 = vsel %vm4160_vm10, %v4372_v7, %v20072_v2  ;;  %v4244_v1 = vsel %vm4226_vm4, %v4211_v3, %v20073_v46  ;;  %v20076_v43 = vrot.slane %v15120_v21, 6  ;;  %v2378_v24 = vmax.f32 %v1894_v57, %v1910_v56  ;;  %v5067_v42 = vpop.permute.xlu1 %5066  ;;  %7048 = vmatmul.mubr.bf16.gmra.mrb[28].mxu0 %v14994_v8 }
 0x2fd   :  { %v4436_v60 = vsel %vm4193_vm11, %v4404_v25, %v20074_v62  ;;  %v4276_v0 = vsel %vm2556_vm1, %v4244_v1, %v20075_v32  ;;  %v1913_v50 = vadd.f32 %v14935_v48, %v15019_v51  ;;  %v5504_v7 = vsel %vm5342_vm3, %v5498_v54, %v5503_v16  ;;  %11612 = vmatprep.mubr.msk.bf16.mxu0 %vm5806_vm5, %v15079_v47  ;;  %v5299_v16 = vpop.permute.xlu0 %5298 }
 0x2fe   :  { %v4468_v34 = vsel %vm4226_vm4, %v4436_v60, %v20076_v43  ;;  %v20077_v12 = vrot.slane %v15120_v21, 7  ;;  %v2376_v37 = vmax.f32 %v1886_v33, %v1902_v26  ;;  %v1905_v3 = vadd.f32 %v14935_v48, %v15030_v14  ;;  %5674 = vrot.lane.b32.xlu0 %v5504_v7, %s12978_s2 }
 0x2ff   :  { %v15349_v57 = vpop.f32.mrb[180].mxu0  ;;  %v4080_v51 = vsel %vm4061_vm0, %v15241_v17, %v3087_v36  ;;  %v2379_v54 = vmax.f32 %v15258_v9, %v1913_v50  ;;  %v5830_v21 = vsel %vm5806_vm5, %v20065_v15, %v5067_v42  ;;  %v2693_v62 = vrot.slane %v2378_v24, 1 }
 0x300   :  { %v4500_v63 = vsel %vm2556_vm1, %v4468_v34, %v20077_v12  ;;  %v15357_v33 = vpop.f32.mrb[181].mxu0  ;;  %v2377_v46 = vmax.f32 %v15265_v18, %v1905_v3  ;;  %v5897_v9 = vsel %vm5873_vm6, %v5830_v21, %v5299_v16  ;;  %v5663_v26 = vpop.permute.xlu1 %5662  ;;  %v20078_v32 = vrot.slane %v15241_v17, 2 }
 0x301   :  { %v4532_v2 = vpack.c.bf16 %v4500_v63, %v4276_v0  ;;  %v15363_v36 = vpop.f32.mrb[182].mxu0  ;;  %v2695_v60 = vrot.slane %v2379_v54, 1  ;;  %v2690_v43 = vrot.slane %v2376_v37, 1  ;;  %v15373_v34 = vadd.f32 %v14935_v48, %v15058_v10 }
 0x302   :  { %v15366_v15 = vpop.f32.mrb[183].mxu0  ;;  %v4113_v0 = vsel %vm4094_vm8, %v4080_v51, %v20078_v32  ;;  %v15376_v18 = vsel %vm5940_vm7, %v5897_v9, %v5663_v26  ;;  %v2691_v12 = vrot.slane %v2377_v46, 1  ;;  %v15395_v21 = vadd.f32 %v14935_v48, %v15066_v27  ;;  %v20082_v9 = vld [vmem:[#allocation43_spill] sm:$0xff] }
 0x303   :  { %v4598_v1 = vrot.slane %v4532_v2, 7  ;;  %20079 = vst [vmem:[#allocation40_spill] sm:$0xff] %v15376_v18  ;;  %v2696_v7 = vsel %vm2556_vm1, %v2693_v62, %v2695_v60  ;;  %6355 = vmatmul.mubr.bf16.gmra.mrb[44].mxu1 %v15376_v18  ;;  %v15390_v51 = vmax.f32 %v2379_v54, %v2695_v60  ;;  %v15399_v16 = vadd.f32 %v14935_v48, %v15070_v28 }
 0x304   :  { %v15388_v10 = vmax.f32 %v2378_v24, %v2696_v7  ;;  %7056 = vmatmul.mubr.bf16.gmra.mrb[32].mxu0 %v15113_v4  ;;  %v5743_v26 = vrot.slane %v20082_v9, 2  ;;  %v2692_v32 = vsel %vm2556_vm1, %v2690_v43, %v2691_v12  ;;  %v2694_v7 = vsel %vm2556_vm1, %v2691_v12, %v2693_v62 }
 0x305   :  { %v15379_v50 = vsel %vm4061_vm0, 0, %v4598_v1  ;;  %v15382_v42 = vsel %vm4061_vm0, %v4598_v1, 0  ;;  %v15403_v1 = vadd.f32 %v14935_v48, %v15075_v39  ;;  %11613 = vmatprep.mubr.msk.bf16.mxu0 %vm5806_vm5, %v15134_v53  ;;  %v15424_v25 = vmax.f32 %v2376_v37, %v2692_v32 }
 0x306   :  { %20080 = vst [vmem:[#allocation66_spill] sm:$0xff] %v15379_v50  ;;  %20081 = vst [vmem:[#allocation67_spill] sm:$0xff] %v15382_v42  ;;  %v5231_v63 = vrot.slane %v15379_v50, 1  ;;  %v5232_v3 = vrot.slane %v15382_v42, 1  ;;  %v4894_v2 = vshrl.u32 %v15379_v50, 16  ;;  %v3600_v54 = vrot.slane %v15388_v10, 1 }
 0x307   :  { %v3664_v60 = vrot.slane %v15388_v10, 2  ;;  %v15412_v27 = vpop.f32.mrb[184].mxu0  ;;  %v4896_v28 = vshll.u32 %v15379_v50, 16  ;;  %v4900_v39 = vshll.u32 %v15382_v42, 16  ;;  %v15426_v14 = vmax.f32 %v2377_v46, %v2694_v7 }
 0x308   :  { %v5233_v24 = vsel %vm2556_vm1, %v5231_v63, %v5232_v3  ;;  %v15419_v63 = vpop.f32.mrb[185].mxu0  ;;  %v4310_v56 = vsel %vm4061_vm0, %v15388_v10, %v3600_v54  ;;  %v5505_v47 = vrot.slane %v4894_v2, 1  ;;  %v3088_v37 = vrot.slane %v15424_v25, 1  ;;  %v12583_v54 = vld [vmem:[#allocation8 + $0x8] sm:$0xff]  }
 0x309   :  { %5312 = vrot.lane.b32.xlu0 %v5233_v24, %s12967_s21  ;;  %v15428_v24 = vpop.f32.mrb[186].mxu0  ;;  %v4898_v4 = vrot.slane %v4896_v28, 1  ;;  %v5506_v43 = vrot.slane %v4896_v28, 2  ;;  %v15438_v46 = vsel %vm4094_vm8, %v4310_v56, %v3664_v60  ;;  %v4902_v7 = vrot.slane %v4900_v39, 1  ;;  %6586 = vmatpush1.bf16.msra.mxu1 %v12583_v54 }
 0x30a   :  { %20083 = vst [vmem:[#allocation43_spill] sm:$0xff] %v15428_v24  ;;  %v15431_v8 = vpop.f32.mrb[187].mxu0  ;;  %v3152_v53 = vrot.slane %v15424_v25, 2  ;;  %v4081_v50 = vsel %vm4061_vm0, %v15424_v25, %v3088_v37  ;;  %v5508_v62 = vshrl.u32 %v15382_v42, 16  ;;  %v5511_v12 = vrot.slane %v4900_v39, 2  ;;  %6587 = vmatprep.subr.bf16.mxu1 %v20061_v41 }
 0x30b   :  { %20084 = vst [vmem:[#allocation68_spill] sm:$0xff] %v15431_v8  ;;  %v4899_v32 = vor.u32 %v4898_v4, %v4894_v2  ;;  %v5507_v20 = vor.u32 %v5506_v43, %v5505_v47  ;;  %v20085_v8 = vld [vmem:[#allocation44_spill] sm:$0xff]  ;;  %v20086_v56 = vrot.slane %v15241_v17, 3  ;;  %v20087_v60 = vrot.slane %v15272_v35, 4 }
 0x30c   :  { %v5744_v24 = vrot.slane %v20085_v8, 2  ;;  %7064 = vmatmul.mubr.bf16.gmra.mrb[36].mxu0 %v15219_v22  ;;  %v5510_v2 = vrot.slane %v5508_v62, 1  ;;  %v20088_v37 = vrot.slane %v15239_v29, 3  ;;  %v1942_v47 = vadd.f32 %v14935_v48, %v15105_v40 }
 0x30d   :  { %v4903_v3 = vsel %vm4713_vm2, %v4899_v32, %v4902_v7  ;;  %v4146_v4 = vsel %vm4127_vm9, %v4113_v0, %v20086_v56  ;;  %11614 = vmatprep.mubr.msk.bf16.mxu0 %vm5806_vm5, %v15312_v61  ;;  %v20091_v29 = vrot.slane %v15226_v6, 4  ;;  %v20093_v32 = vrot.slane %v15226_v6, 5 }
 0x30e   :  { %5080 = vrot.lane.b32.xlu1 %v4903_v3, %s12977_s8  ;;  %v4179_v39 = vsel %vm4160_vm10, %v4146_v4, %v20087_v60  ;;  %v4373_v8 = vsel %vm4127_vm9, %v15280_v59, %v20088_v37  ;;  %v15467_v0 = vsel %vm4226_vm4, %v5743_v26, %v5744_v24  ;;  %v20090_v3 = vrot.slane %v15272_v35, 5 }
 0x30f   :  { %v15464_v17 = vpop.f32.mrb[188].mxu0  ;;  %20089 = vst [vmem:[#allocation44_spill] sm:$0xff] %v15467_v0  ;;  %v4405_v62 = vsel %vm4160_vm10, %v4373_v8, %v20091_v29  ;;  %v1934_v59 = vadd.f32 %v14935_v48, %v15108_v13  ;;  %v5512_v54 = vor.u32 %v5511_v12, %v5510_v2  ;;  %11532 = vmatprep.mubr.msk.bf16.mxu1 %vm5806_vm5, %v15467_v0  ;;  %v20092_v26 = vrot.slane %v15272_v35, 6 }
 0x310   :  { %v4212_v43 = vsel %vm4193_vm11, %v4179_v39, %v20090_v3  ;;  %v15477_v40 = vpop.f32.mrb[189].mxu0  ;;  %v4437_v7 = vsel %vm4193_vm11, %v4405_v62, %v20093_v32  ;;  %v15488_v56 = vmax.f32 %v15373_v34, %v1942_v47  ;;  %v20094_v13 = vrot.slane %v15272_v35, 7 }
 0x311   :  { %v4245_v24 = vsel %vm4226_vm4, %v4212_v43, %v20092_v26  ;;  %v15490_v4 = vpop.f32.mrb[190].mxu0  ;;  %v20095_v2 = vrot.slane %v15226_v6, 6  ;;  %v2380_v39 = vmax.f32 %v15395_v21, %v1934_v59  ;;  %v1945_v37 = vadd.f32 %v14935_v48, %v15117_v5  ;;  %v5069_v8 = vpop.permute.xlu0 %5068 }
 0x312   :  { %v4277_v12 = vsel %vm2556_vm1, %v4245_v24, %v20094_v13  ;;  %v15501_v3 = vpop.f32.mrb[191].mxu0  ;;  %v5513_v47 = vsel %vm5342_vm3, %v5507_v20, %v5512_v54  ;;  %v20096_v35 = vrot.slane %v15226_v6, 7  ;;  %v1937_v29 = vadd.f32 %v14935_v48, %v15125_v19  ;;  %v5301_v54 = vpop.permute.xlu1 %5300  ;;  %v20102_v20 = vld [vmem:[#allocation47_spill] sm:$0xff] }
 0x313   :  { %v4469_v60 = vsel %vm4226_vm4, %v4437_v7, %v20095_v2  ;;  %5676 = vrot.lane.b32.xlu1 %v5513_v47, %s12978_s2  ;;  %v2383_v5 = vmax.f32 %v15399_v16, %v1945_v37  ;;  %v5832_v59 = vsel %vm5806_vm5, %v20082_v9, %v5069_v8  ;;  %v15518_v6 = vsel %vm4094_vm8, %v4081_v50, %v3152_v53 }
 0x314   :  { %v4501_v43 = vsel %vm2556_vm1, %v4469_v60, %v20096_v35  ;;  %v2381_v19 = vmax.f32 %v15403_v1, %v1937_v29  ;;  %v2700_v32 = vrot.slane %v15488_v56, 1  ;;  %v5899_v16 = vsel %vm5873_vm6, %v5832_v59, %v5301_v54  ;;  %7072 = vmatmul.mubr.bf16.gmra.mrb[40].mxu0 %v15376_v18 }
 0x315   :  { %v4533_v21 = vpack.c.bf16 %v4501_v43, %v4277_v12  ;;  %v2702_v7 = vrot.slane %v2383_v5, 1  ;;  %v5665_v13 = vpop.permute.xlu0 %5664  ;;  %v2697_v9 = vrot.slane %v2380_v39, 1  ;;  %v15526_v12 = vadd.f32 %v14935_v48, %v15161_v44  ;;  %11615 = vmatprep.mubr.msk.bf16.mxu0 %vm5806_vm5, %v15467_v0 }
 0x316   :  { %v15529_v53 = vsel %vm5940_vm7, %v5899_v16, %v5665_v13  ;;  %v15533_v50 = vadd.f32 %v14935_v48, %v15173_v38  ;;  %v2698_v37 = vrot.slane %v2381_v19, 1  ;;  %v15547_v8 = vpop.f32.mrb[4].mxu1  ;;  %v20101_v13 = vld [vmem:[#allocation36_spill] sm:$0xff]  ;;  %v5746_v26 = vrot.slane %v20102_v20, 2 }
 0x317   :  { %v4599_v24 = vrot.slane %v4533_v21, 7  ;;  %20097 = vst [vmem:[#allocation69_spill] sm:$0xff] %v15529_v53  ;;  %v15537_v1 = vpop.f32.mrb[192].mxu0  ;;  %v2703_v44 = vsel %vm2556_vm1, %v2700_v32, %v2702_v7  ;;  %6363 = vmatmul.mubr.bf16.gmra.mrb[48].mxu1 %v15529_v53  ;;  %20100 = vst [vmem:[#allocation72_spill] sm:$0xff] %v15547_v8  ;;  %v15556_v29 = vmax.f32 %v2383_v5, %v2702_v7  ;;  %v6278_v21 = vpop.f32.mrb[5].mxu1 }
 0x318   :  { %v15549_v38 = vpop.f32.mrb[193].mxu0  ;;  %v15554_v43 = vmax.f32 %v15488_v56, %v2703_v44  ;;  %v15567_v16 = vadd.f32 %v14935_v48, %v20101_v13  ;;  %v15570_v62 = vpop.f32.mrb[6].mxu1  ;;  %v20104_v21 = vld [vmem:[#allocation48_spill] sm:$0xff]  ;;  %v2699_v8 = vsel %vm2556_vm1, %v2697_v9, %v2698_v37 }
 0x319   :  { %v15540_v2 = vsel %vm4061_vm0, 0, %v4599_v24  ;;  %v15543_v60 = vsel %vm4061_vm0, %v4599_v24, 0  ;;  %v15558_v59 = vpop.f32.mrb[194].mxu0  ;;  %v15563_v24 = vadd.f32 %v14935_v48, %v15185_v49  ;;  %20103 = vst [vmem:[#allocation36_spill] sm:$0xff] %v15570_v62  ;;  %v5747_v34 = vrot.slane %v20104_v21, 2  ;;  %v6281_v49 = vpop.f32.mrb[7].mxu1 }
 0x31a   :  { %20098 = vst [vmem:[#allocation70_spill] sm:$0xff] %v15540_v2  ;;  %20099 = vst [vmem:[#allocation71_spill] sm:$0xff] %v15543_v60  ;;  %v5234_v47 = vrot.slane %v15540_v2, 1  ;;  %v5235_v35 = vrot.slane %v15543_v60, 1  ;;  %v4904_v54 = vshrl.u32 %v15540_v2, 16  ;;  %v15572_v56 = vpop.f32.mrb[195].mxu0  ;;  %v2701_v62 = vsel %vm2556_vm1, %v2698_v37, %v2700_v32 }
 0x31b   :  { %v3601_v7 = vrot.slane %v15554_v43, 1  ;;  %v3665_v44 = vrot.slane %v15554_v43, 2  ;;  %v4906_v13 = vshll.u32 %v15540_v2, 16  ;;  %v4910_v28 = vshll.u32 %v15543_v60, 16 }
 0x31c   :  { %v5236_v5 = vsel %vm2556_vm1, %v5234_v47, %v5235_v35  ;;  %v15586_v35 = vmax.f32 %v2380_v39, %v2699_v8  ;;  %v15588_v18 = vmax.f32 %v2381_v19, %v2701_v62  ;;  %v5514_v49 = vrot.slane %v4904_v54, 1  ;;  %7080 = vmatmul.mubr.bf16.gmra.mrb[44].mxu0 %v15529_v53 }
 0x31d   :  { %5314 = vrot.lane.b32.xlu1 %v5236_v5, %s12967_s21  ;;  %v4311_v47 = vsel %vm4061_vm0, %v15554_v43, %v3601_v7  ;;  %v4908_v5 = vrot.slane %v4906_v13, 1  ;;  %v5515_v61 = vrot.slane %v4906_v13, 2  ;;  %v4912_v19 = vrot.slane %v4910_v28, 1 }
 0x31e   :  { %v15596_v0 = vsel %vm4094_vm8, %v4311_v47, %v3665_v44  ;;  %v3089_v8 = vrot.slane %v15586_v35, 1  ;;  %v3153_v7 = vrot.slane %v15586_v35, 2  ;;  %v5517_v32 = vshrl.u32 %v15543_v60, 16 }
 0x31f   :  { %v15598_v39 = vpop.f32.mrb[196].mxu0  ;;  %v4909_v62 = vor.u32 %v4908_v5, %v4904_v54  ;;  %v5520_v37 = vrot.slane %v4910_v28, 2  ;;  %v5516_v47 = vor.u32 %v5515_v61, %v5514_v49  ;;  %v15611_v54 = vsel %vm4226_vm4, %v5746_v26, %v5747_v34 }
 0x320   :  { %v15602_v13 = vpop.f32.mrb[197].mxu0  ;;  %20105 = vst [vmem:[#allocation47_spill] sm:$0xff] %v15611_v54  ;;  %v20106_v5 = vrot.slane %v15424_v25, 3  ;;  %v5519_v9 = vrot.slane %v5517_v32, 1  ;;  %11533 = vmatprep.mubr.msk.bf16.mxu1 %vm5806_vm5, %v15611_v54  ;;  %v20107_v28 = vrot.slane %v15426_v14, 4  ;;  %v20108_v34 = vrot.slane %v15388_v10, 3  ;;  %11616 = vmatprep.mubr.msk.bf16.mxu0 %vm5806_vm5, %v15611_v54 }
 0x321   :  { %v15607_v53 = vpop.f32.mrb[198].mxu0  ;;  %v4913_v44 = vsel %vm4713_vm2, %v4909_v62, %v4912_v19  ;;  %v1974_v26 = vadd.f32 %v14935_v48, %v15223_v58  ;;  %v20110_v32 = vrot.slane %v15390_v51, 4  ;;  %v1966_v19 = vadd.f32 %v14935_v48, %v15231_v45 }
 0x322   :  { %v4147_v22 = vsel %vm4127_vm9, %v15518_v6, %v20106_v5  ;;  %v15617_v2 = vpop.f32.mrb[199].mxu0  ;;  %5082 = vrot.lane.b32.xlu0 %v4913_v44, %s12977_s8  ;;  %v4374_v25 = vsel %vm4127_vm9, %v15438_v46, %v20108_v34  ;;  %v20109_v6 = vrot.slane %v15426_v14, 5  ;;  %v5521_v10 = vor.u32 %v5520_v37, %v5519_v9 }
 0x323   :  { %v4180_v61 = vsel %vm4160_vm10, %v4147_v22, %v20107_v28  ;;  %v4406_v62 = vsel %vm4160_vm10, %v4374_v25, %v20110_v32  ;;  %v1977_v22 = vadd.f32 %v14935_v48, %v15243_v55  ;;  %v20111_v58 = vrot.slane %v15426_v14, 6 }
 0x324   :  { %v4213_v49 = vsel %vm4193_vm11, %v4180_v61, %v20109_v6  ;;  %v20112_v44 = vrot.slane %v15390_v51, 5  ;;  %v2386_v28 = vmax.f32 %v15526_v12, %v1974_v26  ;;  %v5071_v61 = vpop.permute.xlu1 %5070  ;;  %v20113_v45 = vrot.slane %v15426_v14, 7 }
 0x325   :  { %v4246_v46 = vsel %vm4226_vm4, %v4213_v49, %v20111_v58  ;;  %v20114_v55 = vrot.slane %v15390_v51, 6  ;;  %v2384_v9 = vmax.f32 %v15533_v50, %v1966_v19  ;;  %v2387_v37 = vmax.f32 %v15563_v24, %v1977_v22 }
 0x326   :  { %v4438_v5 = vsel %vm4193_vm11, %v4406_v62, %v20112_v44  ;;  %v4278_v34 = vsel %vm2556_vm1, %v4246_v46, %v20113_v45  ;;  %v4082_v6 = vsel %vm4061_vm0, %v15586_v35, %v3089_v8  ;;  %v5522_v49 = vsel %vm5342_vm3, %v5516_v47, %v5521_v10  ;;  %v5303_v10 = vpop.permute.xlu0 %5302 }
 0x327   :  { %v4470_v25 = vsel %vm4226_vm4, %v4438_v5, %v20114_v55  ;;  %v20115_v12 = vrot.slane %v15390_v51, 7  ;;  %v1969_v14 = vadd.f32 %v14935_v48, %v15250_v31  ;;  %v15666_v32 = vpop.f32.mrb[200].mxu0  ;;  %5678 = vrot.lane.b32.xlu0 %v5522_v49, %s12978_s2  ;;  %v2707_v50 = vrot.slane %v2386_v28, 1 }
 0x328   :  { %v2709_v19 = vrot.slane %v2387_v37, 1  ;;  %v5834_v24 = vsel %vm5806_vm5, %v20102_v20, %v5071_v61  ;;  %v15671_v8 = vpop.f32.mrb[201].mxu0  ;;  %v5667_v5 = vpop.permute.xlu1 %5666  ;;  %v4115_v45 = vsel %vm4094_vm8, %v4082_v6, %v3153_v7 }
 0x329   :  { %v4502_v26 = vsel %vm2556_vm1, %v4470_v25, %v20115_v12  ;;  %v2385_v48 = vmax.f32 %v15567_v16, %v1969_v14  ;;  %v15677_v31 = vpop.f32.mrb[202].mxu0  ;;  %v5901_v20 = vsel %vm5873_vm6, %v5834_v24, %v5303_v10  ;;  %v15697_v12 = vld [vmem:[#allocation7] ss:$0 sm:$0xff]  ;;  %v12584_v10 = vld [vmem:[#allocation8 + $0x10] sm:$0xff]  }
 0x32a   :  { %v4534_v62 = vpack.c.bf16 %v4502_v26, %v4278_v34  ;;  %v2710_v46 = vsel %vm2556_vm1, %v2707_v50, %v2709_v19  ;;  %v15680_v44 = vmax.f32 %v2387_v37, %v2709_v19  ;;  %v15683_v61 = vpop.f32.mrb[203].mxu0  ;;  %v2704_v34 = vrot.slane %v2384_v9, 1  ;;  %6588 = vmatpush1.bf16.msra.mxu1 %v12584_v10 }
 0x32b   :  { %v15686_v55 = vmax.f32 %v2386_v28, %v2710_v46  ;;  %v15689_v25 = vsel %vm5940_vm7, %v5901_v20, %v5667_v5  ;;  %v2705_v37 = vrot.slane %v2385_v48, 1  ;;  %v15701_v26 = vadd.f32 %v15697_v12, %v15286_v52  ;;  %6589 = vmatprep.subr.bf16.mxu1 %v20061_v41 }
 0x32c   :  { %v4600_v58 = vrot.slane %v4534_v62, 7  ;;  %20116 = vst [vmem:[#allocation48_spill] sm:$0xff] %v15689_v25  ;;  %6371 = vmatmul.mubr.bf16.gmra.mrb[52].mxu1 %v15689_v25  ;;  %7088 = vmatmul.mubr.bf16.gmra.mrb[48].mxu0 %v15689_v25  ;;  %v15710_v14 = vadd.f32 %v15697_v12, %v15289_v23  ;;  %v15716_v52 = vadd.f32 %v15697_v12, %v15293_v30 }
 0x32d   :  { %v3602_v6 = vrot.slane %v15686_v55, 1  ;;  %v15720_v24 = vadd.f32 %v15697_v12, %v15301_v11  ;;  %v3666_v30 = vrot.slane %v15686_v55, 2  ;;  %v2706_v11 = vsel %vm2556_vm1, %v2704_v34, %v2705_v37 }
 0x32e   :  { %v15692_v16 = vsel %vm4061_vm0, 0, %v4600_v58  ;;  %v15695_v49 = vsel %vm4061_vm0, %v4600_v58, 0  ;;  %v2708_v22 = vsel %vm2556_vm1, %v2705_v37, %v2707_v50  ;;  %v15736_v46 = vmax.f32 %v2384_v9, %v2706_v11 }
 0x32f   :  { %20117 = vst [vmem:[#allocation73_spill] sm:$0xff] %v15692_v16  ;;  %20118 = vst [vmem:[#allocation74_spill] sm:$0xff] %v15695_v49  ;;  %v5237_v7 = vrot.slane %v15692_v16, 1  ;;  %v5238_v28 = vrot.slane %v15695_v49, 1  ;;  %v4914_v19 = vshrl.u32 %v15692_v16, 16  ;;  %v4916_v23 = vshll.u32 %v15692_v16, 16 }
 0x330   :  { %v4920_v20 = vshll.u32 %v15695_v49, 16  ;;  %v15726_v5 = vpop.f32.mrb[204].mxu0  ;;  %v4312_v62 = vsel %vm4061_vm0, %v15686_v55, %v3602_v6  ;;  %v15738_v51 = vmax.f32 %v2385_v48, %v2708_v22  ;;  %v5526_v50 = vshrl.u32 %v15695_v49, 16  ;;  %v20144_v49 = vld [vmem:[#allocation60_spill] sm:$0xff] }
 0x331   :  { %v5239_v58 = vsel %vm2556_vm1, %v5237_v7, %v5238_v28  ;;  %v15734_v7 = vpop.f32.mrb[205].mxu0  ;;  %v4918_v28 = vrot.slane %v4916_v23, 1  ;;  %v5523_v47 = vrot.slane %v4914_v19, 1  ;;  %v5524_v34 = vrot.slane %v4916_v23, 2  ;;  %v15755_v6 = vpop.f32.mrb[8].mxu1 }
 0x332   :  { %5316 = vrot.lane.b32.xlu0 %v5239_v58, %s12967_s21  ;;  %v15740_v21 = vpop.f32.mrb[206].mxu0  ;;  %v4922_v25 = vrot.slane %v4920_v20, 1  ;;  %v3090_v9 = vrot.slane %v15736_v46, 1  ;;  %v5529_v22 = vrot.slane %v4920_v20, 2  ;;  %v15751_v11 = vsel %vm4094_vm8, %v4312_v62, %v3666_v30  ;;  %v20119_v58 = vld [vmem:[#allocation51_spill] sm:$0xff]  ;;  %v6286_v60 = vpop.f32.mrb[9].mxu1 }
 0x333   :  { %v15746_v37 = vpop.f32.mrb[207].mxu0  ;;  %v4919_v10 = vor.u32 %v4918_v28, %v4914_v19  ;;  %v3154_v54 = vrot.slane %v15736_v46, 2  ;;  %v5749_v16 = vrot.slane %v20119_v58, 2  ;;  %20120 = vst [vmem:[#allocation51_spill] sm:$0xff] %v15755_v6  ;;  %v5525_v19 = vor.u32 %v5524_v34, %v5523_v47  ;;  %v20121_v62 = vld [vmem:[#allocation52_spill] sm:$0xff] }
 0x334   :  { %v5528_v28 = vrot.slane %v5526_v50, 1  ;;  %v4083_v20 = vsel %vm4061_vm0, %v15736_v46, %v3090_v9  ;;  %v5750_v30 = vrot.slane %v20121_v62, 2  ;;  %v20122_v48 = vrot.slane %v15586_v35, 3 }
 0x335   :  { %v4923_v23 = vsel %vm4713_vm2, %v4919_v10, %v4922_v25  ;;  %v20123_v6 = vrot.slane %v15554_v43, 3  ;;  %v15770_v10 = vpop.f32.mrb[10].mxu1  ;;  %v20125_v60 = vrot.slane %v15588_v18, 4  ;;  %v20126_v50 = vrot.slane %v15556_v29, 4 }
 0x336   :  { %5084 = vrot.lane.b32.xlu1 %v4923_v23, %s12977_s8  ;;  %v4148_v42 = vsel %vm4127_vm9, %v4115_v45, %v20122_v48  ;;  %20124 = vst [vmem:[#allocation52_spill] sm:$0xff] %v15770_v10  ;;  %v5530_v47 = vor.u32 %v5529_v22, %v5528_v28  ;;  %v2006_v35 = vadd.f32 %v15697_v12, %v15349_v57  ;;  %v6289_v45 = vpop.f32.mrb[11].mxu1  ;;  %v20129_v22 = vrot.slane %v15556_v29, 5 }
 0x337   :  { %v4375_v25 = vsel %vm4127_vm9, %v15596_v0, %v20123_v6  ;;  %v4181_v34 = vsel %vm4160_vm10, %v4148_v42, %v20125_v60  ;;  %v15781_v43 = vsel %vm4226_vm4, %v5749_v16, %v5750_v30  ;;  %v20128_v0 = vrot.slane %v15588_v18, 5  ;;  %v15803_v60 = vpop.f32.mrb[208].mxu0 }
 0x338   :  { %v4407_v9 = vsel %vm4160_vm10, %v4375_v25, %v20126_v50  ;;  %20127 = vst [vmem:[#allocation75_spill] sm:$0xff] %v15781_v43  ;;  %v1998_v42 = vadd.f32 %v15697_v12, %v15357_v33  ;;  %v5531_v23 = vsel %vm5342_vm3, %v5525_v19, %v5530_v47  ;;  %11534 = vmatprep.mubr.msk.bf16.mxu1 %vm5806_vm5, %v15781_v43  ;;  %v20130_v57 = vrot.slane %v15588_v18, 6  ;;  %v5073_v25 = vpop.permute.xlu0 %5072 }
 0x339   :  { %v4214_v6 = vsel %vm4193_vm11, %v4181_v34, %v20128_v0  ;;  %v4439_v48 = vsel %vm4193_vm11, %v4407_v9, %v20129_v22  ;;  %v20131_v28 = vrot.slane %v15556_v29, 6  ;;  %v15801_v30 = vmax.f32 %v15701_v26, %v2006_v35  ;;  %v15815_v26 = vpop.f32.mrb[209].mxu0  ;;  %11617 = vmatprep.mubr.msk.bf16.mxu0 %vm5806_vm5, %v15781_v43 }
 0x33a   :  { %v4247_v16 = vsel %vm4226_vm4, %v4214_v6, %v20130_v57  ;;  %5680 = vrot.lane.b32.xlu1 %v5531_v23, %s12978_s2  ;;  %v20132_v33 = vrot.slane %v15588_v18, 7  ;;  %v20133_v47 = vrot.slane %v15556_v29, 7  ;;  %v2388_v50 = vmax.f32 %v15710_v14, %v1998_v42  ;;  %v15824_v29 = vpop.f32.mrb[210].mxu0  ;;  %v5305_v23 = vpop.permute.xlu1 %5304 }
 0x33b   :  { %v4471_v62 = vsel %vm4226_vm4, %v4439_v48, %v20131_v28  ;;  %v2009_v9 = vadd.f32 %v15697_v12, %v15363_v36  ;;  %v2001_v0 = vadd.f32 %v15697_v12, %v15366_v15  ;;  %v5836_v18 = vsel %vm5806_vm5, %v20119_v58, %v5073_v25  ;;  %v15830_v48 = vpop.f32.mrb[211].mxu0 }
 0x33c   :  { %v4279_v19 = vsel %vm2556_vm1, %v4247_v16, %v20132_v33  ;;  %v4503_v34 = vsel %vm2556_vm1, %v4471_v62, %v20133_v47  ;;  %20134 = vst [vmem:[#allocation76_spill] sm:$0xff] %v15830_v48  ;;  %v15833_v15 = vsel %vm4094_vm8, %v4083_v20, %v3154_v54  ;;  %v2714_v58 = vrot.slane %v15801_v30, 1 }
 0x33d   :  { %v4535_v45 = vpack.c.bf16 %v4503_v34, %v4279_v19  ;;  %v2391_v22 = vmax.f32 %v15716_v52, %v2009_v9  ;;  %v2389_v57 = vmax.f32 %v15720_v24, %v2001_v0  ;;  %v2711_v16 = vrot.slane %v2388_v50, 1  ;;  %v5669_v25 = vpop.permute.xlu0 %5668 }
 0x33e   :  { %v15839_v62 = vadd.f32 %v15697_v12, %v15412_v27  ;;  %v5903_v52 = vsel %vm5873_vm6, %v5836_v18, %v5305_v23  ;;  %v15851_v24 = vpop.f32.mrb[12].mxu1  ;;  %v15867_v23 = vadd.f32 %v15697_v12, %v15419_v63 }
 0x33f   :  { %v4601_v42 = vrot.slane %v4535_v45, 7  ;;  %v2716_v28 = vrot.slane %v2391_v22, 1  ;;  %v2712_v20 = vrot.slane %v2389_v57, 1  ;;  %v15849_v19 = vsel %vm5940_vm7, %v5903_v52, %v5669_v25  ;;  %20138 = vst [vmem:[#allocation80_spill] sm:$0xff] %v15851_v24  ;;  %v6294_v45 = vpop.f32.mrb[13].mxu1 }
 0x340   :  { %20137 = vst [vmem:[#allocation79_spill] sm:$0xff] %v15849_v19  ;;  %6379 = vmatmul.mubr.bf16.gmra.mrb[56].mxu1 %v15849_v19  ;;  %7096 = vmatmul.mubr.bf16.gmra.mrb[52].mxu0 %v15849_v19  ;;  %v15869_v25 = vpop.f32.mrb[14].mxu1  ;;  %v20141_v45 = vld [vmem:[#allocation43_spill] sm:$0xff] }
 0x341   :  { %v15843_v33 = vsel %vm4061_vm0, 0, %v4601_v42  ;;  %v15846_v54 = vsel %vm4061_vm0, %v4601_v42, 0  ;;  %v2717_v34 = vsel %vm2556_vm1, %v2714_v58, %v2716_v28  ;;  %v15856_v9 = vmax.f32 %v2391_v22, %v2716_v28  ;;  %20139 = vst [vmem:[#allocation81_spill] sm:$0xff] %v15869_v25  ;;  %v15871_v22 = vpop.f32.mrb[212].mxu0  ;;  %v6297_v36 = vpop.f32.mrb[15].mxu1 }
 0x342   :  { %20135 = vst [vmem:[#allocation77_spill] sm:$0xff] %v15843_v33  ;;  %20136 = vst [vmem:[#allocation78_spill] sm:$0xff] %v15846_v54  ;;  %v5240_v47 = vrot.slane %v15843_v33, 1  ;;  %v5241_v27 = vrot.slane %v15846_v54, 1  ;;  %v15861_v0 = vmax.f32 %v15801_v30, %v2717_v34  ;;  %v4924_v18 = vshrl.u32 %v15843_v33, 16  ;;  %v20142_v34 = vld [vmem:[#allocation68_spill] sm:$0xff] }
 0x343   :  { %v4926_v42 = vshll.u32 %v15843_v33, 16  ;;  %20140 = vst [vmem:[#allocation82_spill] sm:$0xff] %v15871_v22  ;;  %v4930_v52 = vshll.u32 %v15846_v54, 16  ;;  %v2025_v30 = vadd.f32 %v15697_v12, %v20141_v45  ;;  %v15879_v6 = vadd.f32 %v15697_v12, %v20142_v34  ;;  %v15881_v14 = vpop.f32.mrb[213].mxu0 }
 0x344   :  { %v5242_v28 = vsel %vm2556_vm1, %v5240_v47, %v5241_v27  ;;  %20143 = vst [vmem:[#allocation43_spill] sm:$0xff] %v15881_v14  ;;  %v3603_v63 = vrot.slane %v15861_v0, 1  ;;  %v5752_v47 = vrot.slane %v20144_v49, 2  ;;  %v20145_v27 = vld [vmem:[#allocation61_spill] sm:$0xff]  ;;  %v15888_v24 = vpop.f32.mrb[214].mxu0  ;;  %v3667_v45 = vrot.slane %v15861_v0, 2 }
 0x345   :  { %5318 = vrot.lane.b32.xlu1 %v5242_v28, %s12967_s21  ;;  %v5753_v25 = vrot.slane %v20145_v27, 2  ;;  %20146 = vst [vmem:[#allocation68_spill] sm:$0xff] %v15888_v24  ;;  %v4928_v10 = vrot.slane %v4926_v42, 1  ;;  %v2713_v34 = vsel %vm2556_vm1, %v2711_v16, %v2712_v20  ;;  %v2715_v36 = vsel %vm2556_vm1, %v2712_v20, %v2714_v58  ;;  %v15893_v19 = vpop.f32.mrb[215].mxu0 }
 0x346   :  { %v4313_v28 = vsel %vm4061_vm0, %v15861_v0, %v3603_v63  ;;  %v15897_v43 = vmax.f32 %v2388_v50, %v2713_v34  ;;  %v15899_v35 = vmax.f32 %v2389_v57, %v2715_v36  ;;  %v5532_v33 = vrot.slane %v4924_v18, 1 }
 0x347   :  { %v4929_v27 = vor.u32 %v4928_v10, %v4924_v18  ;;  %v4932_v48 = vrot.slane %v4930_v52, 1  ;;  %v5533_v24 = vrot.slane %v4926_v42, 2  ;;  %v5535_v14 = vshrl.u32 %v15846_v54, 16  ;;  %v15914_v16 = vpop.f32.mrb[216].mxu0 }
 0x348   :  { %v3091_v20 = vrot.slane %v15897_v43, 1  ;;  %v15908_v50 = vsel %vm4094_vm8, %v4313_v28, %v3667_v45  ;;  %v3155_v10 = vrot.slane %v15897_v43, 2  ;;  %v3219_v18 = vrot.slane %v15897_v43, 3 }
 0x349   :  { %v4933_v57 = vsel %vm4713_vm2, %v4929_v27, %v4932_v48  ;;  %v5534_v42 = vor.u32 %v5533_v24, %v5532_v33  ;;  %v5537_v34 = vrot.slane %v5535_v14, 1  ;;  %v5538_v36 = vrot.slane %v4930_v52, 2  ;;  %v15929_v14 = vpop.f32.mrb[217].mxu0 }
 0x34a   :  { %5086 = vrot.lane.b32.xlu0 %v4933_v57, %s12977_s8  ;;  %v4084_v58 = vsel %vm4061_vm0, %v15897_v43, %v3091_v20  ;;  %v15919_v63 = vsel %vm4226_vm4, %v5752_v47, %v5753_v25  ;;  %v20148_v45 = vrot.slane %v15736_v46, 3  ;;  %v20149_v28 = vrot.slane %v15686_v55, 3 }
 0x34b   :  { %20147 = vst [vmem:[#allocation60_spill] sm:$0xff] %v15919_v63  ;;  %v5539_v24 = vor.u32 %v5538_v36, %v5537_v34  ;;  %11535 = vmatprep.mubr.msk.bf16.mxu1 %vm5806_vm5, %v15919_v63  ;;  %v20150_v52 = vrot.slane %v15738_v51, 4  ;;  %v20151_v46 = vrot.slane %v15680_v44, 4  ;;  %v2038_v55 = vadd.f32 %v15697_v12, %v15464_v17  ;;  %11618 = vmatprep.mubr.msk.bf16.mxu0 %vm5806_vm5, %v15919_v63 }
 0x34c   :  { %v4149_v48 = vsel %vm4127_vm9, %v15833_v15, %v20148_v45  ;;  %v4376_v33 = vsel %vm4127_vm9, %v15751_v11, %v20149_v28  ;;  %v15941_v15 = vpop.f32.mrb[218].mxu0  ;;  %v20152_v11 = vrot.slane %v15738_v51, 5  ;;  %v20153_v20 = vrot.slane %v15680_v44, 5 }
 0x34d   :  { %v4182_v25 = vsel %vm4160_vm10, %v4149_v48, %v20150_v52  ;;  %v4408_v47 = vsel %vm4160_vm10, %v4376_v33, %v20151_v46  ;;  %v2030_v34 = vadd.f32 %v15697_v12, %v15477_v40  ;;  %v2041_v36 = vadd.f32 %v15697_v12, %v15490_v4  ;;  %v15955_v17 = vpop.f32.mrb[219].mxu0 }
 0x34e   :  { %v4215_v27 = vsel %vm4193_vm11, %v4182_v25, %v20152_v11  ;;  %v4440_v57 = vsel %vm4193_vm11, %v4408_v47, %v20153_v20  ;;  %v5540_v45 = vsel %vm5342_vm3, %v5534_v42, %v5539_v24  ;;  %v20154_v48 = vrot.slane %v15738_v51, 6 }
 0x34f   :  { %v20155_v33 = vrot.slane %v15680_v44, 6  ;;  %v2394_v40 = vmax.f32 %v15839_v62, %v2038_v55  ;;  %5682 = vrot.lane.b32.xlu0 %v5540_v45, %s12978_s2  ;;  %v20156_v4 = vrot.slane %v15738_v51, 7  ;;  %v20157_v46 = vrot.slane %v15680_v44, 7  ;;  %v5075_v11 = vpop.permute.xlu1 %5074 }
 0x350   :  { %v4248_v28 = vsel %vm4226_vm4, %v4215_v27, %v20154_v48  ;;  %v2392_v24 = vmax.f32 %v15867_v23, %v2030_v34  ;;  %v2395_v47 = vmax.f32 %v2025_v30, %v2041_v36  ;;  %v2033_v62 = vadd.f32 %v15697_v12, %v15501_v3  ;;  %v12585_v48 = vld [vmem:[#allocation8 + $0x18] sm:$0xff]   ;;  %v15983_v36 = vpop.f32.mrb[220].mxu0 }
 0x351   :  { %v4472_v52 = vsel %vm4226_vm4, %v4440_v57, %v20155_v33  ;;  %v4280_v25 = vsel %vm2556_vm1, %v4248_v28, %v20156_v4  ;;  %v2721_v45 = vrot.slane %v2394_v40, 1  ;;  %v4117_v28 = vsel %vm4094_vm8, %v4084_v58, %v3155_v10  ;;  %6590 = vmatpush1.bf16.msra.mxu1 %v12585_v48 }
 0x352   :  { %v4504_v42 = vsel %vm2556_vm1, %v4472_v52, %v20157_v46  ;;  %v2723_v44 = vrot.slane %v2395_v47, 1  ;;  %v2393_v30 = vmax.f32 %v15879_v6, %v2033_v62  ;;  %v5838_v34 = vsel %vm5806_vm5, %v20144_v49, %v5075_v11  ;;  %v5307_v49 = vpop.permute.xlu0 %5306  ;;  %6591 = vmatprep.subr.bf16.mxu1 %v20061_v41 }
 0x353   :  { %v4536_v57 = vpack.c.bf16 %v4504_v42, %v4280_v25  ;;  %v2718_v33 = vrot.slane %v2392_v24, 1  ;;  %v15990_v4 = vadd.f32 %v15697_v12, %v15537_v1  ;;  %v15992_v25 = vpop.f32.mrb[221].mxu0  ;;  %v16002_v42 = vpop.f32.mrb[16].mxu1  ;;  %v5905_v11 = vsel %vm5873_vm6, %v5838_v34, %v5307_v49 }
 0x354   :  { %v2724_v3 = vsel %vm2556_vm1, %v2721_v45, %v2723_v44  ;;  %v15986_v52 = vmax.f32 %v2395_v47, %v2723_v44  ;;  %v2719_v46 = vrot.slane %v2393_v30, 1  ;;  %20160 = vst [vmem:[#allocation84_spill] sm:$0xff] %v16002_v42  ;;  %v6302_v62 = vpop.f32.mrb[17].mxu1  ;;  %v16010_v44 = vpop.f32.mrb[222].mxu0  ;;  %v16015_v48 = vadd.f32 %v15697_v12, %v15558_v59 }
 0x355   :  { %v4602_v23 = vrot.slane %v4536_v57, 7  ;;  %v16000_v10 = vmax.f32 %v2394_v40, %v2724_v3  ;;  %v2046_v57 = vadd.f32 %v15697_v12, %v15549_v38  ;;  %v4150_v34 = vsel %vm4127_vm9, %v4117_v28, %v3219_v18  ;;  %v16024_v3 = vpop.f32.mrb[18].mxu1  ;;  %v16026_v38 = vpop.f32.mrb[223].mxu0 }
 0x356   :  { %20161 = vst [vmem:[#allocation85_spill] sm:$0xff] %v16024_v3  ;;  %v6305_v51 = vpop.f32.mrb[19].mxu1  ;;  %v2720_v18 = vsel %vm2556_vm1, %v2718_v33, %v2719_v46  ;;  %v2722_v28 = vsel %vm2556_vm1, %v2719_v46, %v2721_v45 }
 0x357   :  { %v15995_v58 = vsel %vm4061_vm0, 0, %v4602_v23  ;;  %v15998_v6 = vsel %vm4061_vm0, %v4602_v23, 0  ;;  %v3604_v40 = vrot.slane %v16000_v10, 1  ;;  %v16019_v23 = vadd.f32 %v15697_v12, %v15572_v56  ;;  %v16045_v3 = vpop.f32.mrb[224].mxu0 }
 0x358   :  { %20158 = vst [vmem:[#allocation61_spill] sm:$0xff] %v15995_v58  ;;  %20159 = vst [vmem:[#allocation83_spill] sm:$0xff] %v15998_v6  ;;  %v5243_v1 = vrot.slane %v15995_v58, 1  ;;  %v5244_v47 = vrot.slane %v15998_v6, 1  ;;  %v4934_v55 = vshrl.u32 %v15995_v58, 16  ;;  %v4936_v59 = vshll.u32 %v15995_v58, 16 }
 0x359   :  { %v3668_v56 = vrot.slane %v16000_v10, 2  ;;  %v4940_v43 = vshll.u32 %v15998_v6, 16  ;;  %v16039_v62 = vmax.f32 %v2392_v24, %v2720_v18  ;;  %v16041_v22 = vmax.f32 %v2393_v30, %v2722_v28  ;;  %v16049_v63 = vpop.f32.mrb[225].mxu0 }
 0x35a   :  { %v5245_v49 = vsel %vm2556_vm1, %v5243_v1, %v5244_v47  ;;  %v4314_v1 = vsel %vm4061_vm0, %v16000_v10, %v3604_v40  ;;  %v4938_v47 = vrot.slane %v4936_v59, 1  ;;  %v5541_v20 = vrot.slane %v4934_v55, 1  ;;  %v5671_v40 = vpop.permute.xlu1 %5670  ;;  %v16057_v28 = vpop.f32.mrb[226].mxu0 }
 0x35b   :  { %5320 = vrot.lane.b32.xlu0 %v5245_v49, %s12967_s21  ;;  %v5542_v49 = vrot.slane %v4936_v59, 2  ;;  %v5544_v27 = vshrl.u32 %v15998_v6, 16  ;;  %v4942_v45 = vrot.slane %v4940_v43, 1  ;;  %v3092_v46 = vrot.slane %v16039_v62, 1  ;;  %v16063_v6 = vpop.f32.mrb[227].mxu0 }
 0x35c   :  { %v4939_v42 = vor.u32 %v4938_v47, %v4934_v55  ;;  %v16054_v18 = vsel %vm4094_vm8, %v4314_v1, %v3668_v56  ;;  %v3156_v59 = vrot.slane %v16039_v62, 2  ;;  %v3220_v55 = vrot.slane %v16039_v62, 3 }
 0x35d   :  { %v4085_v47 = vsel %vm4061_vm0, %v16039_v62, %v3092_v46  ;;  %v5546_v33 = vrot.slane %v5544_v27, 1  ;;  %v5543_v30 = vor.u32 %v5542_v49, %v5541_v20  ;;  %v5547_v24 = vrot.slane %v4940_v43, 2 }
 0x35e   :  { %v4943_v51 = vsel %vm4713_vm2, %v4939_v42, %v4942_v45  ;;  %v16067_v56 = vsel %vm5940_vm7, %v5905_v11, %v5671_v40  ;;  %v20163_v1 = vrot.slane %v15899_v35, 4  ;;  %v20164_v42 = vrot.slane %v15899_v35, 5  ;;  %v20168_v40 = vld [vmem:[#allocation25_spill] sm:$0xff] }
 0x35f   :  { %5088 = vrot.lane.b32.xlu1 %v4943_v51, %s12977_s8  ;;  %20162 = vst [vmem:[#allocation86_spill] sm:$0xff] %v16067_v56  ;;  %6387 = vmatmul.mubr.bf16.gmra.mrb[60].mxu1 %v16067_v56  ;;  %v20165_v27 = vrot.slane %v15861_v0, 3  ;;  %v2070_v20 = vadd.f32 %v15697_v12, %v15598_v39  ;;  %v2062_v11 = vadd.f32 %v15697_v12, %v15602_v13  ;;  %v20167_v46 = vrot.slane %v15856_v9, 4 }
 0x360   :  { %v4183_v58 = vsel %vm4160_vm10, %v4150_v34, %v20163_v1  ;;  %v5548_v43 = vor.u32 %v5547_v24, %v5546_v33  ;;  %v20166_v34 = vrot.slane %v15899_v35, 6  ;;  %11536 = vmatprep.mubr.msk.bf16.mxu1 %vm5806_vm5, %v20168_v40  ;;  %v2073_v0 = vadd.f32 %v15697_v12, %v15607_v53  ;;  %7104 = vmatmul.mubr.bf16.gmra.mrb[56].mxu0 %v16067_v56 }
 0x361   :  { %v4216_v45 = vsel %vm4193_vm11, %v4183_v58, %v20164_v42  ;;  %v4377_v51 = vsel %vm4127_vm9, %v15908_v50, %v20165_v27  ;;  %v20169_v39 = vrot.slane %v15899_v35, 7  ;;  %v20170_v13 = vrot.slane %v15856_v9, 5 }
 0x362   :  { %v4249_v49 = vsel %vm4226_vm4, %v4216_v45, %v20166_v34  ;;  %v4409_v58 = vsel %vm4160_vm10, %v4377_v51, %v20167_v46  ;;  %v2398_v24 = vmax.f32 %v15990_v4, %v2070_v20  ;;  %v2396_v1 = vmax.f32 %v2046_v57, %v2062_v11  ;;  %v16109_v51 = vpop.f32.mrb[228].mxu0  ;;  %v20173_v20 = vld [vmem:[#allocation64_spill] sm:$0xff] }
 0x363   :  { %v4281_v50 = vsel %vm2556_vm1, %v4249_v49, %v20169_v39  ;;  %v4441_v33 = vsel %vm4193_vm11, %v4409_v58, %v20170_v13  ;;  %v5549_v42 = vsel %vm5342_vm3, %v5543_v30, %v5548_v43  ;;  %v20171_v45 = vrot.slane %v15856_v9, 6  ;;  %v16117_v43 = vpop.f32.mrb[229].mxu0 }
 0x364   :  { %v2399_v53 = vmax.f32 %v16015_v48, %v2073_v0  ;;  %v2065_v35 = vadd.f32 %v15697_v12, %v15617_v2  ;;  %5684 = vrot.lane.b32.xlu1 %v5549_v42, %s12978_s2  ;;  %v20172_v4 = vrot.slane %v15856_v9, 7  ;;  %v2728_v30 = vrot.slane %v2398_v24, 1  ;;  %v20174_v2 = vld [vmem:[#allocation65_spill] sm:$0xff]  ;;  %v16121_v0 = vpop.f32.mrb[230].mxu0 }
 0x365   :  { %v4473_v27 = vsel %vm4226_vm4, %v4441_v33, %v20171_v45  ;;  %v5758_v11 = vrot.slane %v20173_v20, 2  ;;  %v5759_v58 = vrot.slane %v20174_v2, 2  ;;  %v4118_v33 = vsel %vm4094_vm8, %v4085_v47, %v3156_v59  ;;  %v16127_v42 = vpop.f32.mrb[231].mxu0  ;;  %v16146_v47 = vpop.f32.mrb[20].mxu1 }
 0x366   :  { %v4505_v57 = vsel %vm2556_vm1, %v4473_v27, %v20172_v4  ;;  %v2730_v48 = vrot.slane %v2399_v53, 1  ;;  %v2397_v46 = vmax.f32 %v16019_v23, %v2065_v35  ;;  %v2725_v27 = vrot.slane %v2396_v1, 1  ;;  %v20175_v35 = vld [vmem:[#allocation26_spill] sm:$0xff]  ;;  %20177 = vst [vmem:[#allocation65_spill] sm:$0xff] %v16146_v47 }
 0x367   :  { %v4537_v49 = vpack.c.bf16 %v4505_v57, %v4281_v50  ;;  %6395 = vmatmul.mubr.bf16.gmra.mrb[64].mxu1 %v20175_v35  ;;  %v16136_v57 = vsel %vm4226_vm4, %v5758_v11, %v5759_v58  ;;  %v16140_v2 = vadd.f32 %v15697_v12, %v15666_v32  ;;  %v16144_v59 = vadd.f32 %v15697_v12, %v15671_v8  ;;  %v6310_v11 = vpop.f32.mrb[21].mxu1  ;;  %v16178_v47 = vpop.f32.mrb[232].mxu0 }
 0x368   :  { %v2731_v50 = vsel %vm2556_vm1, %v2728_v30, %v2730_v48  ;;  %v16130_v4 = vmax.f32 %v2399_v53, %v2730_v48  ;;  %20176 = vst [vmem:[#allocation64_spill] sm:$0xff] %v16136_v57  ;;  %11537 = vmatprep.mubr.msk.bf16.mxu1 %vm5806_vm5, %v16136_v57  ;;  %v16158_v32 = vadd.f32 %v15697_v12, %v15677_v31  ;;  %v20181_v11 = vrot.slane %v16000_v10, 3  ;;  %v16184_v35 = vpop.f32.mrb[233].mxu0 }
 0x369   :  { %v4603_v45 = vrot.slane %v4537_v49, 7  ;;  %v16132_v23 = vmax.f32 %v2398_v24, %v2731_v50  ;;  %v2726_v49 = vrot.slane %v2397_v46, 1  ;;  %v16165_v50 = vadd.f32 %v15697_v12, %v15683_v61 }
 0x36a   :  { %v4151_v31 = vsel %vm4127_vm9, %v4118_v33, %v3220_v55  ;;  %v4378_v39 = vsel %vm4127_vm9, %v16054_v18, %v20181_v11 }
 0x36b   :  { %v16149_v53 = vsel %vm4061_vm0, 0, %v4603_v45  ;;  %v16152_v24 = vsel %vm4061_vm0, %v4603_v45, 0  ;;  %v3605_v58 = vrot.slane %v16132_v23, 1  ;;  %v16167_v45 = vpop.f32.mrb[22].mxu1  ;;  %v3669_v10 = vrot.slane %v16132_v23, 2 }
 0x36c   :  { %20178 = vst [vmem:[#allocation87_spill] sm:$0xff] %v16149_v53  ;;  %20179 = vst [vmem:[#allocation88_spill] sm:$0xff] %v16152_v24  ;;  %v5246_v8 = vrot.slane %v16149_v53, 1  ;;  %v5247_v48 = vrot.slane %v16152_v24, 1  ;;  %v4944_v13 = vshrl.u32 %v16149_v53, 16  ;;  %v6313_v34 = vpop.f32.mrb[23].mxu1  ;;  %v2727_v18 = vsel %vm2556_vm1, %v2725_v27, %v2726_v49 }
 0x36d   :  { %20180 = vst [vmem:[#allocation89_spill] sm:$0xff] %v16167_v45  ;;  %v4946_v9 = vshll.u32 %v16149_v53, 16  ;;  %v4950_v56 = vshll.u32 %v16152_v24, 16  ;;  %v4315_v62 = vsel %vm4061_vm0, %v16132_v23, %v3605_v58  ;;  %v2729_v55 = vsel %vm2556_vm1, %v2726_v49, %v2728_v30  ;;  %v16192_v34 = vpop.f32.mrb[234].mxu0 }
 0x36e   :  { %v5248_v61 = vsel %vm2556_vm1, %v5246_v8, %v5247_v48  ;;  %v16194_v8 = vmax.f32 %v2396_v1, %v2727_v18  ;;  %v16196_v48 = vmax.f32 %v2397_v46, %v2729_v55  ;;  %v5550_v11 = vrot.slane %v4944_v13, 1  ;;  %v16198_v45 = vpop.f32.mrb[235].mxu0  ;;  %v12586_v18 = vld [vmem:[#allocation8 + $0x20] sm:$0xff]  }
 0x36f   :  { %5322 = vrot.lane.b32.xlu1 %v5248_v61, %s12967_s21  ;;  %v4948_v33 = vrot.slane %v4946_v9, 1  ;;  %v5551_v57 = vrot.slane %v4946_v9, 2  ;;  %v5553_v40 = vshrl.u32 %v16152_v24, 16  ;;  %v20182_v58 = vrot.slane %v16041_v22, 4  ;;  %6592 = vmatpush1.bf16.msra.mxu1 %v12586_v18 }
 0x370   :  { %v4952_v53 = vrot.slane %v4950_v56, 1  ;;  %v5556_v1 = vrot.slane %v4950_v56, 2  ;;  %v16208_v55 = vsel %vm4094_vm8, %v4315_v62, %v3669_v10  ;;  %v3093_v61 = vrot.slane %v16194_v8, 1  ;;  %6593 = vmatprep.subr.bf16.mxu1 %v20061_v41 }
 0x371   :  { %v4184_v27 = vsel %vm4160_vm10, %v4151_v31, %v20182_v58  ;;  %v4949_v49 = vor.u32 %v4948_v33, %v4944_v13  ;;  %v3157_v9 = vrot.slane %v16194_v8, 2  ;;  %v5552_v31 = vor.u32 %v5551_v57, %v5550_v11 }
 0x372   :  { %v5555_v58 = vrot.slane %v5553_v40, 1  ;;  %v20183_v13 = vrot.slane %v16041_v22, 5  ;;  %v20184_v62 = vrot.slane %v15986_v52, 4  ;;  %v20185_v40 = vrot.slane %v16041_v22, 6 }
 0x373   :  { %v4953_v24 = vsel %vm4713_vm2, %v4949_v49, %v4952_v53  ;;  %v2102_v53 = vadd.f32 %v15697_v12, %v15726_v5  ;;  %v16224_v49 = vpop.f32.mrb[236].mxu0  ;;  %v20186_v11 = vrot.slane %v15986_v52, 5  ;;  %v20187_v5 = vrot.slane %v16041_v22, 7 }
 0x374   :  { %5090 = vrot.lane.b32.xlu0 %v4953_v24, %s12977_s8  ;;  %v4217_v10 = vsel %vm4193_vm11, %v4184_v27, %v20183_v13  ;;  %v4410_v33 = vsel %vm4160_vm10, %v4378_v39, %v20184_v62  ;;  %v5557_v57 = vor.u32 %v5556_v1, %v5555_v58  ;;  %v2094_v27 = vadd.f32 %v15697_v12, %v15734_v7  ;;  %v16234_v13 = vpop.f32.mrb[237].mxu0 }
 0x375   :  { %v4250_v24 = vsel %vm4226_vm4, %v4217_v10, %v20185_v40  ;;  %v4442_v18 = vsel %vm4193_vm11, %v4410_v33, %v20186_v11  ;;  %v20188_v1 = vrot.slane %v15986_v52, 6  ;;  %v2402_v10 = vmax.f32 %v16140_v2, %v2102_v53  ;;  %v16246_v33 = vpop.f32.mrb[238].mxu0 }
 0x376   :  { %v4282_v39 = vsel %vm2556_vm1, %v4250_v24, %v20187_v5  ;;  %v2105_v62 = vadd.f32 %v15697_v12, %v15740_v21  ;;  %v5558_v7 = vsel %vm5342_vm3, %v5552_v31, %v5557_v57  ;;  %v20189_v40 = vrot.slane %v15986_v52, 7  ;;  %v16255_v5 = vpop.f32.mrb[239].mxu0 }
 0x377   :  { %v4474_v58 = vsel %vm4226_vm4, %v4442_v18, %v20188_v1  ;;  %v2400_v22 = vmax.f32 %v16144_v59, %v2094_v27  ;;  %v2097_v24 = vadd.f32 %v15697_v12, %v15746_v37  ;;  %v2735_v57 = vrot.slane %v2402_v10, 1  ;;  %v20190_v18 = vld [vmem:[#allocation55_spill] sm:$0xff]  ;;  %v20192_v59 = vld [vmem:[#allocation57_spill] sm:$0xff] }
 0x378   :  { %v4506_v11 = vsel %vm2556_vm1, %v4474_v58, %v20189_v40  ;;  %5686 = vrot.lane.b32.xlu0 %v5558_v7, %s12978_s2  ;;  %v2403_v31 = vmax.f32 %v16158_v32, %v2105_v62  ;;  %v20191_v1 = vrot.slane %v20190_v18, 5  ;;  %v20193_v37 = vld [vmem:[#allocation53_spill] sm:$0xff]  ;;  %v20195_v40 = vld [vmem:[#allocation54_spill] sm:$0xff]  ;;  %v20196_v7 = vrot.slane %v20190_v18, 6 }
 0x379   :  { %v4538_v21 = vpack.c.bf16 %v4506_v11, %v4282_v39  ;;  %v2401_v52 = vmax.f32 %v16165_v50, %v2097_v24  ;;  %v20194_v58 = vrot.slane %v20193_v37, 5  ;;  %v20197_v32 = vrot.slane %v20193_v37, 6  ;;  %v5079_v24 = vpop.permute.xlu0 %5078 }
 0x37a   :  { %v4209_v27 = vsel %vm4193_vm11, %v20192_v59, %v20191_v1  ;;  %v2737_v53 = vrot.slane %v2403_v31, 1  ;;  %v4086_v11 = vsel %vm4061_vm0, %v16194_v8, %v3093_v61  ;;  %v20198_v1 = vrot.slane %v20190_v18, 7  ;;  %v16310_v2 = vpop.f32.mrb[24].mxu1 }
 0x37b   :  { %v4434_v46 = vsel %vm4193_vm11, %v20195_v40, %v20194_v58  ;;  %v4604_v30 = vrot.slane %v4538_v21, 7  ;;  %v4242_v39 = vsel %vm4226_vm4, %v4209_v27, %v20196_v7  ;;  %v20199_v21 = vrot.slane %v20193_v37, 7  ;;  %v16296_v7 = vpop.f32.mrb[240].mxu0  ;;  %20204 = vst [vmem:[#allocation90_spill] sm:$0xff] %v16310_v2 }
 0x37c   :  { %v4466_v50 = vsel %vm4226_vm4, %v4434_v46, %v20197_v32  ;;  %v16282_v59 = vsel %vm2556_vm1, %v4242_v39, %v20198_v1  ;;  %v2738_v40 = vsel %vm2556_vm1, %v2735_v57, %v2737_v53  ;;  %v2733_v61 = vrot.slane %v2401_v52, 1  ;;  %20202 = vst [vmem:[#allocation53_spill] sm:$0xff] %v16296_v7 }
 0x37d   :  { %v16287_v58 = vsel %vm2556_vm1, %v4466_v50, %v20199_v21  ;;  %v16290_v27 = vsel %vm4061_vm0, 0, %v4604_v30  ;;  %v16293_v46 = vsel %vm4061_vm0, %v4604_v30, 0  ;;  %v16300_v32 = vmax.f32 %v2402_v10, %v2738_v40  ;;  %v16304_v50 = vpop.f32.mrb[241].mxu0 }
 0x37e   :  { %20200 = vst [vmem:[#allocation55_spill] sm:$0xff] %v16290_v27  ;;  %20201 = vst [vmem:[#allocation57_spill] sm:$0xff] %v16293_v46  ;;  %v5249_v18 = vrot.slane %v16290_v27, 1  ;;  %v5250_v39 = vrot.slane %v16293_v46, 1  ;;  %v16302_v37 = vmax.f32 %v2403_v31, %v2737_v53  ;;  %v4119_v1 = vsel %vm4094_vm8, %v4086_v11, %v3157_v9  ;;  %v16312_v56 = vpop.f32.mrb[242].mxu0  ;;  %v6318_v9 = vpop.f32.mrb[25].mxu1 }
 0x37f   :  { %20203 = vst [vmem:[#allocation54_spill] sm:$0xff] %v16304_v50  ;;  %v2732_v21 = vrot.slane %v2400_v22, 1  ;;  %v4954_v30 = vshrl.u32 %v16290_v27, 16  ;;  %v5842_v62 = vsel %vm5806_vm5, %v20173_v20, %v5079_v24  ;;  %20205 = vst [vmem:[#allocation91_spill] sm:$0xff] %v16312_v56  ;;  %v3606_v10 = vrot.slane %v16300_v32, 1  ;;  %v16321_v11 = vpop.f32.mrb[243].mxu0 }
 0x380   :  { %v5251_v54 = vsel %vm2556_vm1, %v5249_v18, %v5250_v39  ;;  %v3670_v53 = vrot.slane %v16300_v32, 2  ;;  %v16319_v31 = vadd.f32 %v15697_v12, %v15803_v60  ;;  %20206 = vst [vmem:[#allocation92_spill] sm:$0xff] %v16321_v11  ;;  %v4956_v20 = vshll.u32 %v16290_v27, 16  ;;  %v16328_v39 = vpop.f32.mrb[26].mxu1 }
 0x381   :  { %5324 = vrot.lane.b32.xlu0 %v5251_v54, %s12967_s21  ;;  %v4960_v24 = vshll.u32 %v16293_v46, 16  ;;  %v2734_v40 = vsel %vm2556_vm1, %v2732_v21, %v2733_v61  ;;  %v2736_v18 = vsel %vm2556_vm1, %v2733_v61, %v2735_v57  ;;  %20207 = vst [vmem:[#allocation93_spill] sm:$0xff] %v16328_v39  ;;  %v4316_v60 = vsel %vm4061_vm0, %v16300_v32, %v3606_v10  ;;  %v6321_v54 = vpop.f32.mrb[27].mxu1  ;;  %v5311_v10 = vpop.permute.xlu1 %5310 }
 0x382   :  { %v16333_v9 = vmax.f32 %v2400_v22, %v2734_v40  ;;  %v16335_v11 = vmax.f32 %v2401_v52, %v2736_v18  ;;  %v4958_v56 = vrot.slane %v4956_v20, 1  ;;  %v5559_v50 = vrot.slane %v4954_v30, 1  ;;  %v16346_v54 = vpop.f32.mrb[244].mxu0  ;;  %v5675_v61 = vpop.permute.xlu0 %5674 }
 0x383   :  { %v5560_v7 = vrot.slane %v4956_v20, 2  ;;  %v16342_v2 = vsel %vm4094_vm8, %v4316_v60, %v3670_v53  ;;  %v4962_v40 = vrot.slane %v4960_v24, 1  ;;  %v5562_v57 = vshrl.u32 %v16293_v46, 16  ;;  %v16351_v39 = vpop.f32.mrb[245].mxu0 }
 0x384   :  { %v4959_v22 = vor.u32 %v4958_v56, %v4954_v30  ;;  %v3094_v52 = vrot.slane %v16333_v9, 1  ;;  %v5565_v21 = vrot.slane %v4960_v24, 2  ;;  %v4530_v60 = vpack.c.bf16 %v16287_v58, %v16282_v59  ;;  %v16357_v18 = vpop.f32.mrb[246].mxu0  ;;  %v20209_v59 = vld [vmem:[#allocation66_spill] sm:$0xff] }
 0x385   :  { %v5561_v30 = vor.u32 %v5560_v7, %v5559_v50  ;;  %v5564_v20 = vrot.slane %v5562_v57, 1  ;;  %v2110_v27 = vadd.f32 %v15697_v12, %v15815_v26  ;;  %v2121_v24 = vadd.f32 %v15697_v12, %v15824_v29  ;;  %v20210_v50 = vld [vmem:[#allocation67_spill] sm:$0xff] }
 0x386   :  { %v4963_v53 = vsel %vm4713_vm2, %v4959_v22, %v4962_v40  ;;  %v5909_v46 = vsel %vm5873_vm6, %v5842_v62, %v5311_v10  ;;  %v16365_v22 = vpop.f32.mrb[247].mxu0  ;;  %v4596_v40 = vrot.slane %v4530_v60, 7  ;;  %v5761_v58 = vrot.slane %v20209_v59, 2  ;;  %v20213_v60 = vld [vmem:[#allocation82_spill] sm:$0xff] }
 0x387   :  { %5092 = vrot.lane.b32.xlu1 %v4963_v53, %s12977_s8  ;;  %v16368_v7 = vsel %vm5940_vm7, %v5909_v46, %v5675_v61  ;;  %v5762_v56 = vrot.slane %v20210_v50, 2  ;;  %v5081_v53 = vpop.permute.xlu1 %5080  ;;  %v5566_v57 = vor.u32 %v5565_v21, %v5564_v20  ;;  %v20211_v26 = vrot.slane %v16194_v8, 3 }
 0x388   :  { %20208 = vst [vmem:[#allocation94_spill] sm:$0xff] %v16368_v7  ;;  %6403 = vmatmul.mubr.bf16.gmra.mrb[68].mxu1 %v16368_v7  ;;  %v20212_v62 = vrot.slane %v16132_v23, 3  ;;  %v2134_v46 = vadd.f32 %v15697_v12, %v20213_v60  ;;  %v16383_v61 = vsel %vm4061_vm0, 0, %v4596_v40  ;;  %v16386_v50 = vsel %vm4061_vm0, %v4596_v40, 0 }
 0x389   :  { %v4152_v29 = vsel %vm4127_vm9, %v4119_v1, %v20211_v26  ;;  %20214 = vst [vmem:[#allocation66_spill] sm:$0xff] %v16383_v61  ;;  %20215 = vst [vmem:[#allocation67_spill] sm:$0xff] %v16386_v50  ;;  %v16389_v21 = vsel %vm4226_vm4, %v5761_v58, %v5762_v56  ;;  %v20217_v8 = vrot.slane %v16196_v48, 4  ;;  %v5567_v23 = vsel %vm5342_vm3, %v5561_v30, %v5566_v57 }
 0x38a   :  { %v4379_v10 = vsel %vm4127_vm9, %v16208_v55, %v20212_v62  ;;  %20216 = vst [vmem:[#allocation82_spill] sm:$0xff] %v16389_v21  ;;  %v5755_v55 = vrot.slane %v16383_v61, 2  ;;  %v5756_v20 = vrot.slane %v16386_v50, 2  ;;  %11538 = vmatprep.mubr.msk.bf16.mxu1 %vm5806_vm5, %v16389_v21  ;;  %v20218_v26 = vrot.slane %v16196_v48, 5  ;;  %v20221_v62 = vld [vmem:[#allocation43_spill] sm:$0xff] }
 0x38b   :  { %v4185_v1 = vsel %vm4160_vm10, %v4152_v29, %v20217_v8  ;;  %5688 = vrot.lane.b32.xlu1 %v5567_v23, %s12978_s2  ;;  %v20219_v56 = vrot.slane %v16196_v48, 6  ;;  %v20220_v29 = vrot.slane %v16130_v4, 4  ;;  %v16410_v57 = vmax.f32 %v16319_v31, %v2134_v46  ;;  %v16414_v8 = vpop.f32.mrb[248].mxu0 }
 0x38c   :  { %v4218_v40 = vsel %vm4193_vm11, %v4185_v1, %v20218_v26  ;;  %v2126_v60 = vadd.f32 %v15697_v12, %v20221_v62  ;;  %v16417_v1 = vsel %vm4226_vm4, %v5755_v55, %v5756_v20  ;;  %v20223_v23 = vrot.slane %v16196_v48, 7  ;;  %v16427_v46 = vpop.f32.mrb[249].mxu0 }
 0x38d   :  { %v4251_v58 = vsel %vm4226_vm4, %v4218_v40, %v20219_v56  ;;  %v4411_v30 = vsel %vm4160_vm10, %v4379_v10, %v20220_v29  ;;  %20222 = vst [vmem:[#allocation43_spill] sm:$0xff] %v16417_v1  ;;  %v20224_v40 = vrot.slane %v16130_v4, 5  ;;  %v20225_v10 = vld [vmem:[#allocation68_spill] sm:$0xff]  ;;  %11619 = vmatprep.mubr.msk.bf16.mxu0 %vm5806_vm5, %v16417_v1  ;;  %v20228_v20 = vrot.slane %v16130_v4, 6 }
 0x38e   :  { %v4283_v26 = vsel %vm2556_vm1, %v4251_v58, %v20223_v23  ;;  %v2137_v31 = vadd.f32 %v15697_v12, %v20225_v10  ;;  %20226 = vst [vmem:[#allocation68_spill] sm:$0xff] %v16427_v46  ;;  %v20227_v29 = vld [vmem:[#allocation76_spill] sm:$0xff]  ;;  %v2404_v58 = vmax.f32 %v2110_v27, %v2126_v60  ;;  %v2129_v62 = vadd.f32 %v15697_v12, %v15893_v19  ;;  %v16438_v23 = vpop.f32.mrb[250].mxu0 }
 0x38f   :  { %v4443_v56 = vsel %vm4193_vm11, %v4411_v30, %v20224_v40  ;;  %v2113_v55 = vadd.f32 %v15697_v12, %v20227_v29  ;;  %v5677_v30 = vpop.permute.xlu1 %5676  ;;  %20229 = vst [vmem:[#allocation76_spill] sm:$0xff] %v16438_v23  ;;  %v12587_v40 = vld [vmem:[#allocation8 + $0x28] sm:$0xff]   ;;  %v4087_v10 = vsel %vm4061_vm0, %v16333_v9, %v3094_v52  ;;  %v20230_v1 = vrot.slane %v16130_v4, 7  ;;  %v5313_v29 = vpop.permute.xlu0 %5312  ;;  %v12588_v23 = vld [vmem:[#allocation8 + $0x30] sm:$0xff]  }
 0x390   :  { %v4475_v48 = vsel %vm4226_vm4, %v4443_v56, %v20228_v20  ;;  %v2407_v7 = vmax.f32 %v2121_v24, %v2137_v31  ;;  %v5844_v56 = vsel %vm5806_vm5, %v20209_v59, %v5081_v53  ;;  %v16447_v27 = vpop.f32.mrb[251].mxu0  ;;  %6594 = vmatpush1.bf16.msra.mxu1 %v12587_v40  ;;  %v2742_v4 = vrot.slane %v16410_v57, 1  ;;  %v16476_v40 = vpop.f32.mrb[28].mxu1 }
 0x391   :  { %v4507_v21 = vsel %vm2556_vm1, %v4475_v48, %v20230_v1  ;;  %20231 = vst [vmem:[#allocation95_spill] sm:$0xff] %v16447_v27  ;;  %v2405_v60 = vmax.f32 %v2113_v55, %v2129_v62  ;;  %v5911_v20 = vsel %vm5873_vm6, %v5844_v56, %v5313_v29  ;;  %6595 = vmatprep.subr.bf16.mxu1 %v20061_v41  ;;  %v20233_v24 = vrot.slane %v16333_v9, 2  ;;  %v16462_v55 = vld [vmem:[#allocation7] ss:$0 sm:$0xff] }
 0x392   :  { %v4539_v19 = vpack.c.bf16 %v4507_v21, %v4283_v26  ;;  %v2744_v50 = vrot.slane %v2407_v7, 1  ;;  %v16454_v1 = vsel %vm5940_vm7, %v5911_v20, %v5677_v30  ;;  %v2739_v21 = vrot.slane %v2404_v58, 1  ;;  %20234 = vst [vmem:[#allocation97_spill] sm:$0xff] %v16476_v40 }
 0x393   :  { %20232 = vst [vmem:[#allocation96_spill] sm:$0xff] %v16454_v1  ;;  %v4120_v59 = vsel %vm4094_vm8, %v4087_v10, %v20233_v24  ;;  %v2740_v26 = vrot.slane %v2405_v60, 1  ;;  %6411 = vmatmul.mubr.bf16.gmra.mrb[72].mxu1 %v16454_v1  ;;  %v16466_v48 = vadd.f32 %v16462_v55, %v15914_v16  ;;  %v16470_v62 = vadd.f32 %v16462_v55, %v15929_v14  ;;  %v16488_v14 = vpop.f32.mrb[252].mxu0 }
 0x394   :  { %v4605_v53 = vrot.slane %v4539_v19, 7  ;;  %v2745_v31 = vsel %vm2556_vm1, %v2742_v4, %v2744_v50  ;;  %v16474_v30 = vadd.f32 %v16462_v55, %v15941_v15  ;;  %v6326_v19 = vpop.f32.mrb[29].mxu1  ;;  %20236 = vst [vmem:[#allocation99_spill] sm:$0xff] %v16488_v14  ;;  %v16492_v24 = vmax.f32 %v2407_v7, %v2744_v50  ;;  %v16500_v12 = vpop.f32.mrb[253].mxu0  ;;  %6596 = vmatpush1.bf16.msra.mxu1 %v12588_v23 }
 0x395   :  { %v16485_v56 = vmax.f32 %v16410_v57, %v2745_v31  ;;  %v2741_v16 = vsel %vm2556_vm1, %v2739_v21, %v2740_v26  ;;  %v16496_v52 = vadd.f32 %v16462_v55, %v15955_v17  ;;  %20238 = vst [vmem:[#allocation101_spill] sm:$0xff] %v16500_v12  ;;  %v20239_v21 = vld [vmem:[#allocation70_spill] sm:$0xff]  ;;  %v20240_v19 = vld [vmem:[#allocation71_spill] sm:$0xff]  ;;  %v20241_v1 = vrot.slane %v16333_v9, 3  ;;  %v16508_v50 = vpop.f32.mrb[254].mxu0  ;;  %6597 = vmatprep.subr.bf16.mxu1 %v20061_v41 }
 0x396   :  { %v16479_v10 = vsel %vm4061_vm0, 0, %v4605_v53  ;;  %v16482_v29 = vsel %vm4061_vm0, %v4605_v53, 0  ;;  %v16498_v53 = vpop.f32.mrb[30].mxu1  ;;  %v5764_v31 = vrot.slane %v20239_v21, 2  ;;  %v5765_v40 = vrot.slane %v20240_v19, 2  ;;  %20242 = vst [vmem:[#allocation70_spill] sm:$0xff] %v16508_v50 }
 0x397   :  { %20235 = vst [vmem:[#allocation98_spill] sm:$0xff] %v16479_v10  ;;  %v5252_v20 = vrot.slane %v16479_v10, 1  ;;  %v5253_v15 = vrot.slane %v16482_v29, 1  ;;  %20237 = vst [vmem:[#allocation100_spill] sm:$0xff] %v16498_v53  ;;  %v3607_v57 = vrot.slane %v16485_v56, 1  ;;  %v4153_v61 = vsel %vm4127_vm9, %v4120_v59, %v20241_v1  ;;  %v6329_v7 = vpop.f32.mrb[31].mxu1 }
 0x398   :  { %v3671_v14 = vrot.slane %v16485_v56, 2  ;;  %v4964_v53 = vshrl.u32 %v16479_v10, 16  ;;  %v4966_v12 = vshll.u32 %v16479_v10, 16  ;;  %v16514_v27 = vpop.f32.mrb[255].mxu0  ;;  %v4970_v1 = vshll.u32 %v16482_v29, 16 }
 0x399   :  { %v5254_v17 = vsel %vm2556_vm1, %v5252_v20, %v5253_v15  ;;  %20243 = vst [vmem:[#allocation71_spill] sm:$0xff] %v16514_v27  ;;  %v4317_v9 = vsel %vm4061_vm0, %v16485_v56, %v3607_v57  ;;  %v2743_v59 = vsel %vm2556_vm1, %v2740_v26, %v2742_v4  ;;  %v16521_v19 = vmax.f32 %v2404_v58, %v2741_v16  ;;  %v5083_v20 = vpop.permute.xlu0 %5082 }
 0x39a   :  { %5326 = vrot.lane.b32.xlu1 %v5254_v17, %s12967_s21  ;;  %v4968_v7 = vrot.slane %v4966_v12, 1  ;;  %v16525_v50 = vmax.f32 %v2405_v60, %v2743_v59  ;;  %v5568_v57 = vrot.slane %v4964_v53, 1  ;;  %v16531_v46 = vsel %vm4094_vm8, %v4317_v9, %v3671_v14  ;;  %v16537_v17 = vpop.f32.mrb[0].mxu0 }
 0x39b   :  { %v4972_v4 = vrot.slane %v4970_v1, 1  ;;  %v3095_v26 = vrot.slane %v16521_v19, 1  ;;  %v3159_v16 = vrot.slane %v16521_v19, 2  ;;  %v5569_v59 = vrot.slane %v4966_v12, 2  ;;  %20244 = vst [vmem:[#allocation102_spill] sm:$0xff] %v16537_v17 }
 0x39c   :  { %v4969_v58 = vor.u32 %v4968_v7, %v4964_v53  ;;  %v5571_v15 = vshrl.u32 %v16482_v29, 16  ;;  %v5574_v9 = vrot.slane %v4970_v1, 2  ;;  %v16542_v53 = vsel %vm4226_vm4, %v5764_v31, %v5765_v40  ;;  %v6995_v7 = vpop.f32.mrb[1].mxu0 }
 0x39d   :  { %20245 = vst [vmem:[#allocation103_spill] sm:$0xff] %v16542_v53  ;;  %v5570_v12 = vor.u32 %v5569_v59, %v5568_v57  ;;  %11539 = vmatprep.mubr.msk.bf16.mxu1 %vm5806_vm5, %v16542_v53  ;;  %v20246_v23 = vrot.slane %v16335_v11, 4  ;;  %v16555_v31 = vpop.f32.mrb[2].mxu0  ;;  %v20249_v1 = vrot.slane %v16335_v11, 5  ;;  %v2166_v59 = vadd.f32 %v16462_v55, %v15983_v36 }
 0x39e   :  { %v4973_v27 = vsel %vm4713_vm2, %v4969_v58, %v4972_v4  ;;  %v5573_v10 = vrot.slane %v5571_v15, 1  ;;  %v20247_v4 = vrot.slane %v16300_v32, 3  ;;  %20248 = vst [vmem:[#allocation104_spill] sm:$0xff] %v16555_v31  ;;  %v20250_v15 = vrot.slane %v16302_v37, 4  ;;  %v6998_v32 = vpop.f32.mrb[3].mxu0 }
 0x39f   :  { %5094 = vrot.lane.b32.xlu0 %v4973_v27, %s12977_s8  ;;  %v4186_v58 = vsel %vm4160_vm10, %v4153_v61, %v20246_v23  ;;  %v2158_v61 = vadd.f32 %v16462_v55, %v15992_v25  ;;  %v20255_v32 = vrot.slane %v16302_v37, 7 }
 0x3a0   :  { %v4380_v40 = vsel %vm4127_vm9, %v16342_v2, %v20247_v4  ;;  %v4219_v27 = vsel %vm4193_vm11, %v4186_v58, %v20249_v1  ;;  %v5575_v7 = vor.u32 %v5574_v9, %v5573_v10  ;;  %v20251_v2 = vrot.slane %v16335_v11, 6 }
 0x3a1   :  { %v4412_v57 = vsel %vm4160_vm10, %v4380_v40, %v20250_v15  ;;  %v20252_v4 = vrot.slane %v16302_v37, 5  ;;  %v2169_v1 = vadd.f32 %v16462_v55, %v16010_v44  ;;  %v20253_v40 = vrot.slane %v16335_v11, 7 }
 0x3a2   :  { %v4252_v23 = vsel %vm4226_vm4, %v4219_v27, %v20251_v2  ;;  %v20254_v15 = vrot.slane %v16302_v37, 6  ;;  %v2410_v10 = vmax.f32 %v16466_v48, %v2166_v59  ;;  %v2408_v9 = vmax.f32 %v16470_v62, %v2158_v61  ;;  %v5679_v2 = vpop.permute.xlu0 %5678  ;;  %v5315_v62 = vpop.permute.xlu1 %5314 }
 0x3a3   :  { %v4444_v58 = vsel %vm4193_vm11, %v4412_v57, %v20252_v4  ;;  %v4284_v36 = vsel %vm2556_vm1, %v4252_v23, %v20253_v40  ;;  %v5576_v27 = vsel %vm5342_vm3, %v5570_v12, %v5575_v7  ;;  %v2411_v44 = vmax.f32 %v16474_v30, %v2169_v1 }
 0x3a4   :  { %v4476_v25 = vsel %vm4226_vm4, %v4444_v58, %v20254_v15  ;;  %v2161_v11 = vadd.f32 %v16462_v55, %v16026_v38  ;;  %v4088_v4 = vsel %vm4061_vm0, %v16521_v19, %v3095_v26  ;;  %5690 = vrot.lane.b32.xlu0 %v5576_v27, %s12978_s2  ;;  %v5846_v37 = vsel %vm5806_vm5, %v20239_v21, %v5083_v20  ;;  %v16598_v38 = vpop.f32.mrb[4].mxu0 }
 0x3a5   :  { %v4508_v57 = vsel %vm2556_vm1, %v4476_v25, %v20255_v32  ;;  %v2749_v12 = vrot.slane %v2410_v10, 1  ;;  %v2751_v59 = vrot.slane %v2411_v44, 1  ;;  %v5913_v61 = vsel %vm5873_vm6, %v5846_v37, %v5315_v62  ;;  %20256 = vst [vmem:[#allocation105_spill] sm:$0xff] %v16598_v38  ;;  %v7003_v40 = vpop.f32.mrb[5].mxu0 }
 0x3a6   :  { %v4540_v48 = vpack.c.bf16 %v4508_v57, %v4284_v36  ;;  %v2409_v30 = vmax.f32 %v16496_v52, %v2161_v11  ;;  %v16603_v1 = vsel %vm5940_vm7, %v5913_v61, %v5679_v2  ;;  %v4121_v36 = vsel %vm4094_vm8, %v4088_v4, %v3159_v16  ;;  %v16610_v52 = vpop.f32.mrb[32].mxu1  ;;  %v16612_v25 = vpop.f32.mrb[6].mxu0 }
 0x3a7   :  { %v2746_v21 = vrot.slane %v2408_v9, 1  ;;  %v2752_v20 = vsel %vm2556_vm1, %v2749_v12, %v2751_v59  ;;  %v16607_v15 = vmax.f32 %v2411_v44, %v2751_v59  ;;  %6419 = vmatmul.mubr.bf16.gmra.mrb[76].mxu1 %v16603_v1  ;;  %20257 = vst [vmem:[#allocation106_spill] sm:$0xff] %v16610_v52  ;;  %20258 = vst [vmem:[#allocation107_spill] sm:$0xff] %v16612_v25  ;;  %v6334_v11 = vpop.f32.mrb[33].mxu1  ;;  %v7006_v2 = vpop.f32.mrb[7].mxu0 }
 0x3a8   :  { %v4606_v26 = vrot.slane %v4540_v48, 7  ;;  %v16620_v57 = vmax.f32 %v2410_v10, %v2752_v20  ;;  %v2747_v16 = vrot.slane %v2409_v30, 1  ;;  %v2182_v48 = vadd.f32 %v16462_v55, %v16045_v3  ;;  %v16628_v37 = vpop.f32.mrb[34].mxu1  ;;  %v16655_v23 = vpop.f32.mrb[8].mxu0 }
 0x3a9   :  { %v2174_v62 = vadd.f32 %v16462_v55, %v16049_v63  ;;  %20259 = vst [vmem:[#allocation108_spill] sm:$0xff] %v16628_v37  ;;  %v16633_v10 = vadd.f32 %v16462_v55, %v16057_v28  ;;  %v16637_v61 = vadd.f32 %v16462_v55, %v16063_v6  ;;  %v6337_v20 = vpop.f32.mrb[35].mxu1  ;;  %v7011_v38 = vpop.f32.mrb[9].mxu0 }
 0x3aa   :  { %v16615_v27 = vsel %vm4061_vm0, 0, %v4606_v26  ;;  %v16618_v32 = vsel %vm4061_vm0, %v4606_v26, 0  ;;  %v3608_v59 = vrot.slane %v16620_v57, 1  ;;  %v20260_v26 = vld [vmem:[#allocation73_spill] sm:$0xff]  ;;  %v3672_v28 = vrot.slane %v16620_v57, 2  ;;  %v16661_v31 = vpop.f32.mrb[10].mxu0 }
 0x3ab   :  { %v5255_v44 = vrot.slane %v16615_v27, 1  ;;  %v5256_v4 = vrot.slane %v16618_v32, 1  ;;  %v5767_v40 = vrot.slane %v20260_v26, 2  ;;  %v4974_v63 = vshrl.u32 %v16615_v27, 16  ;;  %20261 = vst [vmem:[#allocation73_spill] sm:$0xff] %v16655_v23  ;;  %20262 = vst [vmem:[#allocation109_spill] sm:$0xff] %v16661_v31 }
 0x3ac   :  { %v4976_v2 = vshll.u32 %v16615_v27, 16  ;;  %v4980_v58 = vshll.u32 %v16618_v32, 16  ;;  %v2748_v6 = vsel %vm2556_vm1, %v2746_v21, %v2747_v16  ;;  %v2750_v7 = vsel %vm2556_vm1, %v2747_v16, %v2749_v12  ;;  %v5085_v21 = vpop.permute.xlu1 %5084 }
 0x3ad   :  { %v5257_v3 = vsel %vm2556_vm1, %v5255_v44, %v5256_v4  ;;  %v4318_v20 = vsel %vm4061_vm0, %v16620_v57, %v3608_v59  ;;  %v16651_v4 = vmax.f32 %v2408_v9, %v2748_v6  ;;  %v16653_v11 = vmax.f32 %v2409_v30, %v2750_v7  ;;  %v7014_v6 = vpop.f32.mrb[11].mxu0  ;;  %v20263_v30 = vld [vmem:[#allocation74_spill] sm:$0xff] }
 0x3ae   :  { %5328 = vrot.lane.b32.xlu0 %v5257_v3, %s12967_s21  ;;  %v4978_v44 = vrot.slane %v4976_v2, 1  ;;  %v5577_v14 = vrot.slane %v4974_v63, 1  ;;  %v5578_v60 = vrot.slane %v4976_v2, 2  ;;  %v5580_v25 = vshrl.u32 %v16618_v32, 16 }
 0x3af   :  { %v4982_v16 = vrot.slane %v4980_v58, 1  ;;  %v3096_v59 = vrot.slane %v16651_v4, 1  ;;  %v16666_v7 = vsel %vm4094_vm8, %v4318_v20, %v3672_v28  ;;  %v3160_v2 = vrot.slane %v16651_v4, 2 }
 0x3b0   :  { %v4979_v12 = vor.u32 %v4978_v44, %v4974_v63  ;;  %v3224_v3 = vrot.slane %v16651_v4, 3  ;;  %v5582_v44 = vrot.slane %v5580_v25, 1  ;;  %v5579_v9 = vor.u32 %v5578_v60, %v5577_v14 }
 0x3b1   :  { %v4089_v63 = vsel %vm4061_vm0, %v16651_v4, %v3096_v59  ;;  %v5583_v31 = vrot.slane %v4980_v58, 2  ;;  %v5768_v23 = vrot.slane %v20263_v30, 2  ;;  %v20264_v28 = vrot.slane %v16521_v19, 3 }
 0x3b2   :  { %v4983_v38 = vsel %vm4713_vm2, %v4979_v12, %v4982_v16  ;;  %v20265_v6 = vrot.slane %v16525_v50, 4  ;;  %v20266_v16 = vrot.slane %v16485_v56, 3  ;;  %v2198_v59 = vadd.f32 %v16462_v55, %v16109_v51 }
 0x3b3   :  { %5096 = vrot.lane.b32.xlu1 %v4983_v38, %s12977_s8  ;;  %v4154_v20 = vsel %vm4127_vm9, %v4121_v36, %v20264_v28  ;;  %v2190_v60 = vadd.f32 %v16462_v55, %v16117_v43  ;;  %v5584_v14 = vor.u32 %v5583_v31, %v5582_v44  ;;  %v16690_v19 = vsel %vm4226_vm4, %v5767_v40, %v5768_v23  ;;  %v16710_v38 = vpop.f32.mrb[12].mxu0 }
 0x3b4   :  { %v4187_v12 = vsel %vm4160_vm10, %v4154_v20, %v20265_v6  ;;  %v4381_v25 = vsel %vm4127_vm9, %v16531_v46, %v20266_v16  ;;  %v20267_v58 = vrot.slane %v16525_v50, 5  ;;  %v20268_v30 = vrot.slane %v16492_v24, 4  ;;  %11540 = vmatprep.mubr.msk.bf16.mxu1 %vm5806_vm5, %v16690_v19  ;;  %20271 = vst [vmem:[#allocation74_spill] sm:$0xff] %v16710_v38  ;;  %v20303_v38 = vld [vmem:[#allocation83_spill] sm:$0xff] }
 0x3b5   :  { %v20269_v51 = vrot.slane %v16525_v50, 6  ;;  %v20270_v43 = vrot.slane %v16492_v24, 5  ;;  %v16706_v23 = vmax.f32 %v2182_v48, %v2198_v59  ;;  %v16708_v40 = vmax.f32 %v2174_v62, %v2190_v60  ;;  %v5681_v60 = vpop.permute.xlu1 %5680 }
 0x3b6   :  { %v4220_v36 = vsel %vm4193_vm11, %v4187_v12, %v20267_v58  ;;  %v4413_v56 = vsel %vm4160_vm10, %v4381_v25, %v20268_v30  ;;  %v5585_v44 = vsel %vm5342_vm3, %v5579_v9, %v5584_v14  ;;  %v20272_v28 = vrot.slane %v16525_v50, 7  ;;  %v7019_v25 = vpop.f32.mrb[13].mxu0 }
 0x3b7   :  { %v4253_v46 = vsel %vm4226_vm4, %v4220_v36, %v20269_v51  ;;  %v4445_v31 = vsel %vm4193_vm11, %v4413_v56, %v20270_v43  ;;  %v20273_v6 = vrot.slane %v16492_v24, 6  ;;  %v2201_v16 = vadd.f32 %v16462_v55, %v16121_v0  ;;  %5692 = vrot.lane.b32.xlu1 %v5585_v44, %s12978_s2  ;;  %v16729_v14 = vpop.f32.mrb[14].mxu0  ;;  %v5317_v36 = vpop.permute.xlu0 %5316 }
 0x3b8   :  { %v4285_v20 = vsel %vm2556_vm1, %v4253_v46, %v20272_v28  ;;  %v20274_v9 = vrot.slane %v16492_v24, 7  ;;  %v2193_v59 = vadd.f32 %v16462_v55, %v16127_v42  ;;  %20275 = vst [vmem:[#allocation110_spill] sm:$0xff] %v16729_v14  ;;  %v5848_v56 = vsel %vm5806_vm5, %v20260_v26, %v5085_v21  ;;  %v7022_v51 = vpop.f32.mrb[15].mxu0  ;;  %v12589_v26 = vld [vmem:[#allocation8 + $0x38] sm:$0xff]  }
 0x3b9   :  { %v4477_v12 = vsel %vm4226_vm4, %v4445_v31, %v20273_v6  ;;  %v2415_v30 = vmax.f32 %v16633_v10, %v2201_v16  ;;  %v4122_v46 = vsel %vm4094_vm8, %v4089_v63, %v3160_v2  ;;  %v5915_v42 = vsel %vm5873_vm6, %v5848_v56, %v5317_v36  ;;  %v16739_v31 = vpop.f32.mrb[36].mxu1  ;;  %6598 = vmatpush1.bf16.msra.mxu1 %v12589_v26  ;;  %v20279_v51 = vld [vmem:[#allocation77_spill] sm:$0xff] }
 0x3ba   :  { %v4509_v50 = vsel %vm2556_vm1, %v4477_v12, %v20274_v9  ;;  %v2413_v43 = vmax.f32 %v16637_v61, %v2193_v59  ;;  %20276 = vst [vmem:[#allocation111_spill] sm:$0xff] %v16739_v31  ;;  %v2756_v28 = vrot.slane %v16706_v23, 1  ;;  %v16743_v10 = vsel %vm5940_vm7, %v5915_v42, %v5681_v60  ;;  %v6342_v6 = vpop.f32.mrb[37].mxu1  ;;  %6599 = vmatprep.subr.bf16.mxu1 %v20061_v41 }
 0x3bb   :  { %v4541_v0 = vpack.c.bf16 %v4509_v50, %v4285_v20  ;;  %v2758_v20 = vrot.slane %v2415_v30, 1  ;;  %v2753_v21 = vrot.slane %v16708_v40, 1  ;;  %v16748_v2 = vadd.f32 %v16462_v55, %v16178_v47  ;;  %6427 = vmatmul.mubr.bf16.gmra.mrb[80].mxu1 %v16743_v10  ;;  %v16759_v12 = vpop.f32.mrb[38].mxu1 }
 0x3bc   :  { %v16752_v61 = vadd.f32 %v16462_v55, %v16184_v35  ;;  %v16756_v63 = vadd.f32 %v16462_v55, %v16192_v34  ;;  %20277 = vst [vmem:[#allocation112_spill] sm:$0xff] %v16759_v12  ;;  %v2754_v9 = vrot.slane %v2413_v43, 1  ;;  %v6345_v50 = vpop.f32.mrb[39].mxu1  ;;  %v16781_v56 = vadd.f32 %v16462_v55, %v16198_v45  ;;  %v20423_v12 = vld [vmem:[#allocation44_spill] sm:$0xff] }
 0x3bd   :  { %v4607_v44 = vrot.slane %v4541_v0, 7  ;;  %v2759_v47 = vsel %vm2556_vm1, %v2756_v28, %v2758_v20  ;;  %v16773_v60 = vmax.f32 %v2415_v30, %v2758_v20  ;;  %v16775_v0 = vpop.f32.mrb[16].mxu0  ;;  %v5770_v42 = vrot.slane %v20279_v51, 2 }
 0x3be   :  { %v16771_v59 = vmax.f32 %v16706_v23, %v2759_v47  ;;  %20278 = vst [vmem:[#allocation113_spill] sm:$0xff] %v16775_v0  ;;  %v7027_v26 = vpop.f32.mrb[17].mxu0  ;;  %v4155_v47 = vsel %vm4127_vm9, %v4122_v46, %v3224_v3 }
 0x3bf   :  { %v16762_v16 = vsel %vm4061_vm0, 0, %v4607_v44  ;;  %v16765_v25 = vsel %vm4061_vm0, %v4607_v44, 0  ;;  %v20280_v44 = vld [vmem:[#allocation78_spill] sm:$0xff]  ;;  %v16791_v50 = vpop.f32.mrb[18].mxu0 }
 0x3c0   :  { %v5258_v35 = vrot.slane %v16762_v16, 1  ;;  %v5259_v34 = vrot.slane %v16765_v25, 1  ;;  %v4984_v36 = vshrl.u32 %v16762_v16, 16  ;;  %v5771_v6 = vrot.slane %v20280_v44, 2  ;;  %20281 = vst [vmem:[#allocation77_spill] sm:$0xff] %v16791_v50 }
 0x3c1   :  { %v3609_v30 = vrot.slane %v16771_v59, 1  ;;  %v3673_v20 = vrot.slane %v16771_v59, 2  ;;  %v4986_v45 = vshll.u32 %v16762_v16, 16  ;;  %v4990_v24 = vshll.u32 %v16765_v25, 16 }
 0x3c2   :  { %v5260_v23 = vsel %vm2556_vm1, %v5258_v35, %v5259_v34  ;;  %v2755_v44 = vsel %vm2556_vm1, %v2753_v21, %v2754_v9  ;;  %v2757_v35 = vsel %vm2556_vm1, %v2754_v9, %v2756_v28  ;;  %v7030_v34 = vpop.f32.mrb[19].mxu0  ;;  %v5586_v62 = vrot.slane %v4984_v36, 1 }
 0x3c3   :  { %5330 = vrot.lane.b32.xlu1 %v5260_v23, %s12967_s21  ;;  %v4319_v4 = vsel %vm4061_vm0, %v16771_v59, %v3609_v30  ;;  %v16802_v3 = vmax.f32 %v16708_v40, %v2755_v44  ;;  %v16804_v46 = vmax.f32 %v2413_v43, %v2757_v35  ;;  %v4988_v58 = vrot.slane %v4986_v45, 1  ;;  %v16819_v28 = vpop.f32.mrb[20].mxu0 }
 0x3c4   :  { %v5587_v48 = vrot.slane %v4986_v45, 2  ;;  %v16812_v30 = vsel %vm4094_vm8, %v4319_v4, %v3673_v20  ;;  %v4992_v44 = vrot.slane %v4990_v24, 1  ;;  %v5589_v23 = vshrl.u32 %v16765_v25, 16  ;;  %20282 = vst [vmem:[#allocation78_spill] sm:$0xff] %v16819_v28  ;;  %v5087_v4 = vpop.permute.xlu0 %5086  ;;  %v7035_v35 = vpop.f32.mrb[21].mxu0 }
 0x3c5   :  { %v3097_v34 = vrot.slane %v16802_v3, 1  ;;  %v4989_v40 = vor.u32 %v4988_v58, %v4984_v36  ;;  %v3161_v43 = vrot.slane %v16802_v3, 2  ;;  %v5592_v26 = vrot.slane %v4990_v24, 2 }
 0x3c6   :  { %v5588_v21 = vor.u32 %v5587_v48, %v5586_v62  ;;  %v16823_v20 = vsel %vm4226_vm4, %v5770_v42, %v5771_v6  ;;  %v20283_v58 = vrot.slane %v16653_v11, 4  ;;  %v20284_v24 = vrot.slane %v16653_v11, 5  ;;  %v16840_v6 = vpop.f32.mrb[40].mxu1 }
 0x3c7   :  { %v4090_v45 = vsel %vm4061_vm0, %v16802_v3, %v3097_v34  ;;  %v4993_v9 = vsel %vm4713_vm2, %v4989_v40, %v4992_v44  ;;  %v5591_v34 = vrot.slane %v5589_v23, 1  ;;  %11541 = vmatprep.mubr.msk.bf16.mxu1 %vm5806_vm5, %v16823_v20  ;;  %v20285_v48 = vrot.slane %v16620_v57, 3  ;;  %20286 = vst [vmem:[#allocation114_spill] sm:$0xff] %v16840_v6 }
 0x3c8   :  { %v4188_v36 = vsel %vm4160_vm10, %v4155_v47, %v20283_v58  ;;  %5098 = vrot.lane.b32.xlu0 %v4993_v9, %s12977_s8  ;;  %v2230_v42 = vadd.f32 %v16462_v55, %v16224_v49  ;;  %v16842_v47 = vpop.f32.mrb[22].mxu0  ;;  %v20288_v23 = vrot.slane %v16653_v11, 6  ;;  %v20289_v44 = vrot.slane %v16607_v15, 4  ;;  %v6350_v58 = vpop.f32.mrb[41].mxu1 }
 0x3c9   :  { %v4221_v40 = vsel %vm4193_vm11, %v4188_v36, %v20284_v24  ;;  %v4382_v62 = vsel %vm4127_vm9, %v16666_v7, %v20285_v48  ;;  %20287 = vst [vmem:[#allocation115_spill] sm:$0xff] %v16842_v47  ;;  %v2222_v57 = vadd.f32 %v16462_v55, %v16234_v13  ;;  %v2233_v7 = vadd.f32 %v16462_v55, %v16246_v33  ;;  %v7038_v49 = vpop.f32.mrb[23].mxu0 }
 0x3ca   :  { %v4254_v9 = vsel %vm4226_vm4, %v4221_v40, %v20288_v23  ;;  %v4414_v35 = vsel %vm4160_vm10, %v4382_v62, %v20289_v44  ;;  %v5593_v36 = vor.u32 %v5592_v26, %v5591_v34  ;;  %v20290_v24 = vrot.slane %v16653_v11, 7  ;;  %v16861_v62 = vpop.f32.mrb[42].mxu1 }
 0x3cb   :  { %v20291_v47 = vrot.slane %v16607_v15, 5  ;;  %v2418_v23 = vmax.f32 %v16748_v2, %v2230_v42  ;;  %20292 = vst [vmem:[#allocation116_spill] sm:$0xff] %v16861_v62  ;;  %v20293_v13 = vrot.slane %v16607_v15, 6  ;;  %v2416_v33 = vmax.f32 %v16752_v61, %v2222_v57  ;;  %v6353_v34 = vpop.f32.mrb[43].mxu1 }
 0x3cc   :  { %v4286_v48 = vsel %vm2556_vm1, %v4254_v9, %v20290_v24  ;;  %v2419_v26 = vmax.f32 %v16756_v63, %v2233_v7  ;;  %v2225_v11 = vadd.f32 %v16462_v55, %v16255_v5  ;;  %v20294_v2 = vrot.slane %v16607_v15, 7  ;;  %v5683_v5 = vpop.permute.xlu0 %5682  ;;  %v16885_v24 = vpop.f32.mrb[24].mxu0 }
 0x3cd   :  { %v4446_v40 = vsel %vm4193_vm11, %v4414_v35, %v20291_v47  ;;  %v5594_v47 = vsel %vm5342_vm3, %v5588_v21, %v5593_v36  ;;  %v5850_v35 = vsel %vm5806_vm5, %v20279_v51, %v5087_v4  ;;  %v2763_v57 = vrot.slane %v2418_v23, 1  ;;  %v5319_v36 = vpop.permute.xlu1 %5318  ;;  %20295 = vst [vmem:[#allocation117_spill] sm:$0xff] %v16885_v24 }
 0x3ce   :  { %v4478_v44 = vsel %vm4226_vm4, %v4446_v40, %v20293_v13  ;;  %5694 = vrot.lane.b32.xlu0 %v5594_v47, %s12978_s2  ;;  %v2765_v63 = vrot.slane %v2419_v26, 1  ;;  %v2417_v7 = vmax.f32 %v16781_v56, %v2225_v11  ;;  %v16883_v15 = vsel %vm4094_vm8, %v4090_v45, %v3161_v43  ;;  %v7043_v40 = vpop.f32.mrb[25].mxu0  ;;  %v20296_v11 = vld [vmem:[#allocation53_spill] sm:$0xff] }
 0x3cf   :  { %v4510_v42 = vsel %vm2556_vm1, %v4478_v44, %v20294_v2  ;;  %v5917_v56 = vsel %vm5873_vm6, %v5850_v35, %v5319_v36  ;;  %v2760_v13 = vrot.slane %v2416_v33, 1  ;;  %v16895_v34 = vadd.f32 %v16462_v55, %v20296_v11  ;;  %v16900_v45 = vpop.f32.mrb[26].mxu0  ;;  %v20299_v36 = vld [vmem:[#allocation91_spill] sm:$0xff]  ;;  %v20300_v40 = vld [vmem:[#allocation92_spill] sm:$0xff] }
 0x3d0   :  { %v4542_v61 = vpack.c.bf16 %v4510_v42, %v4286_v48  ;;  %v2766_v4 = vsel %vm2556_vm1, %v2763_v57, %v2765_v63  ;;  %v16888_v48 = vmax.f32 %v2419_v26, %v2765_v63  ;;  %v16898_v43 = vsel %vm5940_vm7, %v5917_v56, %v5683_v5  ;;  %20297 = vst [vmem:[#allocation53_spill] sm:$0xff] %v16900_v45  ;;  %v20298_v42 = vld [vmem:[#allocation54_spill] sm:$0xff]  ;;  %v7046_v35 = vpop.f32.mrb[27].mxu0 }
 0x3d1   :  { %v16891_v44 = vmax.f32 %v2418_v23, %v2766_v4  ;;  %v2761_v2 = vrot.slane %v2417_v7, 1  ;;  %v16910_v23 = vadd.f32 %v16462_v55, %v20298_v42  ;;  %6435 = vmatmul.mubr.bf16.gmra.mrb[84].mxu1 %v16898_v43  ;;  %v16918_v4 = vadd.f32 %v16462_v55, %v20299_v36  ;;  %v20301_v42 = vld [vmem:[#allocation61_spill] sm:$0xff]  ;;  %v12590_v36 = vld [vmem:[#allocation8 + $0x40] sm:$0xff]   ;;  %v16941_v50 = vpop.f32.mrb[28].mxu0  ;;  %v5089_v17 = vpop.permute.xlu1 %5088 }
 0x3d2   :  { %v4608_v51 = vrot.slane %v4542_v61, 7  ;;  %v16924_v11 = vadd.f32 %v16462_v55, %v20300_v40  ;;  %v5773_v35 = vrot.slane %v20301_v42, 2  ;;  %20302 = vst [vmem:[#allocation54_spill] sm:$0xff] %v16941_v50  ;;  %6600 = vmatpush1.bf16.msra.mxu1 %v12590_v36 }
 0x3d3   :  { %v3610_v5 = vrot.slane %v16891_v44, 1  ;;  %v2762_v40 = vsel %vm2556_vm1, %v2760_v13, %v2761_v2  ;;  %v2764_v24 = vsel %vm2556_vm1, %v2761_v2, %v2763_v57  ;;  %v7051_v13 = vpop.f32.mrb[29].mxu0  ;;  %6601 = vmatprep.subr.bf16.mxu1 %v20061_v41 }
 0x3d4   :  { %v16903_v47 = vsel %vm4061_vm0, 0, %v4608_v51  ;;  %v16906_v26 = vsel %vm4061_vm0, %v4608_v51, 0  ;;  %v3674_v51 = vrot.slane %v16891_v44, 2  ;;  %v16948_v2 = vpop.f32.mrb[30].mxu0 }
 0x3d5   :  { %v5261_v61 = vrot.slane %v16903_v47, 1  ;;  %v5262_v63 = vrot.slane %v16906_v26, 1  ;;  %v4994_v56 = vshrl.u32 %v16903_v47, 16  ;;  %v4996_v58 = vshll.u32 %v16903_v47, 16  ;;  %20304 = vst [vmem:[#allocation91_spill] sm:$0xff] %v16948_v2 }
 0x3d6   :  { %v5000_v9 = vshll.u32 %v16906_v26, 16  ;;  %v4320_v45 = vsel %vm4061_vm0, %v16891_v44, %v3610_v5  ;;  %v5598_v14 = vshrl.u32 %v16906_v26, 16  ;;  %v5774_v5 = vrot.slane %v20303_v38, 2 }
 0x3d7   :  { %v5263_v21 = vsel %vm2556_vm1, %v5261_v61, %v5262_v63  ;;  %v4998_v28 = vrot.slane %v4996_v58, 1  ;;  %v16937_v61 = vmax.f32 %v2416_v33, %v2762_v40  ;;  %v16939_v63 = vmax.f32 %v2417_v7, %v2764_v24 }
 0x3d8   :  { %5332 = vrot.lane.b32.xlu0 %v5263_v21, %s12967_s21  ;;  %v5595_v49 = vrot.slane %v4994_v56, 1  ;;  %v5596_v0 = vrot.slane %v4996_v58, 2  ;;  %v5002_v7 = vrot.slane %v5000_v9, 1  ;;  %v5601_v24 = vrot.slane %v5000_v9, 2  ;;  %v7054_v21 = vpop.f32.mrb[31].mxu0 }
 0x3d9   :  { %v4999_v57 = vor.u32 %v4998_v28, %v4994_v56  ;;  %v16952_v40 = vsel %vm4094_vm8, %v4320_v45, %v3674_v51  ;;  %v3098_v58 = vrot.slane %v16937_v61, 1  ;;  %v3162_v38 = vrot.slane %v16937_v61, 2 }
 0x3da   :  { %v3226_v50 = vrot.slane %v16937_v61, 3  ;;  %v5597_v33 = vor.u32 %v5596_v0, %v5595_v49  ;;  %v5600_v28 = vrot.slane %v5598_v14, 1  ;;  %v16961_v56 = vsel %vm4226_vm4, %v5773_v35, %v5774_v5  ;;  %v16981_v35 = vpop.f32.mrb[44].mxu1 }
 0x3db   :  { %v5003_v13 = vsel %vm4713_vm2, %v4999_v57, %v5002_v7  ;;  %v20305_v45 = vrot.slane %v16802_v3, 3  ;;  %v20306_v21 = vrot.slane %v16771_v59, 3  ;;  %11542 = vmatprep.mubr.msk.bf16.mxu1 %vm5806_vm5, %v16961_v56  ;;  %v20307_v14 = vrot.slane %v16804_v46, 4  ;;  %20309 = vst [vmem:[#allocation92_spill] sm:$0xff] %v16981_v35 }
 0x3dc   :  { %5100 = vrot.lane.b32.xlu1 %v5003_v13, %s12977_s8  ;;  %v5602_v7 = vor.u32 %v5601_v24, %v5600_v28  ;;  %v20308_v49 = vrot.slane %v16773_v60, 4  ;;  %v20310_v59 = vrot.slane %v16804_v46, 5  ;;  %v20311_v5 = vrot.slane %v16773_v60, 5 }
 0x3dd   :  { %v4156_v51 = vsel %vm4127_vm9, %v16883_v15, %v20305_v45  ;;  %v4383_v57 = vsel %vm4127_vm9, %v16812_v30, %v20306_v21  ;;  %v2262_v15 = vadd.f32 %v16462_v55, %v16346_v54  ;;  %v2254_v13 = vadd.f32 %v16462_v55, %v16351_v39  ;;  %v5685_v45 = vpop.permute.xlu1 %5684  ;;  %v17003_v39 = vpop.f32.mrb[32].mxu0 }
 0x3de   :  { %v4189_v0 = vsel %vm4160_vm10, %v4156_v51, %v20307_v14  ;;  %v4415_v3 = vsel %vm4160_vm10, %v4383_v57, %v20308_v49  ;;  %v2265_v28 = vadd.f32 %v16462_v55, %v16357_v18  ;;  %v6358_v51 = vpop.f32.mrb[45].mxu1  ;;  %v5603_v54 = vsel %vm5342_vm3, %v5597_v33, %v5602_v7  ;;  %20315 = vst [vmem:[#allocation83_spill] sm:$0xff] %v17003_v39 }
 0x3df   :  { %v4222_v30 = vsel %vm4193_vm11, %v4189_v0, %v20310_v59  ;;  %v4447_v24 = vsel %vm4193_vm11, %v4415_v3, %v20311_v5  ;;  %v20312_v21 = vrot.slane %v16804_v46, 6  ;;  %v20313_v14 = vrot.slane %v16773_v60, 6  ;;  %v17001_v3 = vpop.f32.mrb[46].mxu1 }
 0x3e0   :  { %v2422_v49 = vmax.f32 %v16895_v34, %v2262_v15  ;;  %20314 = vst [vmem:[#allocation61_spill] sm:$0xff] %v17001_v3  ;;  %5696 = vrot.lane.b32.xlu1 %v5603_v54, %s12978_s2  ;;  %v20316_v18 = vrot.slane %v16804_v46, 7  ;;  %v20317_v7 = vrot.slane %v16773_v60, 7  ;;  %v2423_v5 = vmax.f32 %v16918_v4, %v2265_v28  ;;  %v7059_v34 = vpop.f32.mrb[33].mxu0 }
 0x3e1   :  { %v4255_v57 = vsel %vm4226_vm4, %v4222_v30, %v20312_v21  ;;  %v4479_v0 = vsel %vm4226_vm4, %v4447_v24, %v20313_v14  ;;  %v2420_v30 = vmax.f32 %v16910_v23, %v2254_v13  ;;  %v6361_v24 = vpop.f32.mrb[47].mxu1  ;;  %v4091_v15 = vsel %vm4061_vm0, %v16937_v61, %v3098_v58  ;;  %v5321_v21 = vpop.permute.xlu0 %5320 }
 0x3e2   :  { %v4287_v33 = vsel %vm2556_vm1, %v4255_v57, %v20316_v18  ;;  %v4511_v59 = vsel %vm2556_vm1, %v4479_v0, %v20317_v7  ;;  %v2257_v46 = vadd.f32 %v16462_v55, %v16365_v22  ;;  %v5852_v54 = vsel %vm5806_vm5, %v20301_v42, %v5089_v17  ;;  %v17020_v60 = vpop.f32.mrb[34].mxu0 }
 0x3e3   :  { %v4543_v51 = vpack.c.bf16 %v4511_v59, %v4287_v33  ;;  %20318 = vst [vmem:[#allocation118_spill] sm:$0xff] %v17020_v60  ;;  %v2770_v23 = vrot.slane %v2422_v49, 1  ;;  %v2772_v13 = vrot.slane %v2423_v5, 1  ;;  %v5919_v4 = vsel %vm5873_vm6, %v5852_v54, %v5321_v21  ;;  %v7062_v28 = vpop.f32.mrb[35].mxu0  ;;  %v20320_v21 = vld [vmem:[#allocation88_spill] sm:$0xff] }
 0x3e4   :  { %v2421_v0 = vmax.f32 %v16924_v11, %v2257_v46  ;;  %v17027_v18 = vsel %vm5940_vm7, %v5919_v4, %v5685_v45  ;;  %v4124_v17 = vsel %vm4094_vm8, %v4091_v15, %v3162_v38  ;;  %v2767_v38 = vrot.slane %v2420_v30, 1  ;;  %v20319_v15 = vld [vmem:[#allocation87_spill] sm:$0xff]  ;;  %v17055_v4 = vpop.f32.mrb[36].mxu0 }
 0x3e5   :  { %v4609_v58 = vrot.slane %v4543_v51, 7  ;;  %v2773_v42 = vsel %vm2556_vm1, %v2770_v23, %v2772_v13  ;;  %v17032_v33 = vmax.f32 %v2423_v5, %v2772_v13  ;;  %6443 = vmatmul.mubr.bf16.gmra.mrb[88].mxu1 %v17027_v18  ;;  %v5776_v51 = vrot.slane %v20319_v15, 2  ;;  %20322 = vst [vmem:[#allocation87_spill] sm:$0xff] %v17055_v4 }
 0x3e6   :  { %v17041_v11 = vmax.f32 %v2422_v49, %v2773_v42  ;;  %v2768_v45 = vrot.slane %v2421_v0, 1  ;;  %v5777_v46 = vrot.slane %v20320_v21, 2  ;;  %v4157_v54 = vsel %vm4127_vm9, %v4124_v17, %v3226_v50  ;;  %v7067_v21 = vpop.f32.mrb[37].mxu0 }
 0x3e7   :  { %v17036_v7 = vsel %vm4061_vm0, 0, %v4609_v58  ;;  %v17039_v59 = vsel %vm4061_vm0, %v4609_v58, 0  ;;  %v20321_v13 = vrot.slane %v16891_v44, 3  ;;  %v17066_v17 = vpop.f32.mrb[38].mxu0 }
 0x3e8   :  { %v5264_v24 = vrot.slane %v17036_v7, 1  ;;  %v5265_v34 = vrot.slane %v17039_v59, 1  ;;  %v3611_v5 = vrot.slane %v17041_v11, 1  ;;  %v5004_v42 = vshrl.u32 %v17036_v7, 16  ;;  %20323 = vst [vmem:[#allocation88_spill] sm:$0xff] %v17066_v17  ;;  %v7070_v21 = vpop.f32.mrb[39].mxu0  ;;  %v5323_v17 = vpop.permute.xlu1 %5322 }
 0x3e9   :  { %v4384_v49 = vsel %vm4127_vm9, %v16952_v40, %v20321_v13  ;;  %v5006_v36 = vshll.u32 %v17036_v7, 16  ;;  %v3675_v50 = vrot.slane %v17041_v11, 2  ;;  %v5010_v44 = vshll.u32 %v17039_v59, 16 }
 0x3ea   :  { %v5266_v28 = vsel %vm2556_vm1, %v5264_v24, %v5265_v34  ;;  %v2769_v61 = vsel %vm2556_vm1, %v2767_v38, %v2768_v45  ;;  %v2771_v40 = vsel %vm2556_vm1, %v2768_v45, %v2770_v23  ;;  %v4321_v24 = vsel %vm4061_vm0, %v17041_v11, %v3611_v5 }
 0x3eb   :  { %5334 = vrot.lane.b32.xlu1 %v5266_v28, %s12967_s21  ;;  %v5008_v34 = vrot.slane %v5006_v36, 1  ;;  %v17070_v13 = vmax.f32 %v2420_v30, %v2769_v61  ;;  %v17072_v58 = vmax.f32 %v2421_v0, %v2771_v40  ;;  %v5604_v22 = vrot.slane %v5004_v42, 1  ;;  %v17095_v61 = vpop.f32.mrb[40].mxu0 }
 0x3ec   :  { %v5605_v14 = vrot.slane %v5006_v36, 2  ;;  %v5607_v57 = vshrl.u32 %v17039_v59, 16  ;;  %v5012_v45 = vrot.slane %v5010_v44, 1  ;;  %v17080_v30 = vsel %vm4094_vm8, %v4321_v24, %v3675_v50  ;;  %20325 = vst [vmem:[#allocation119_spill] sm:$0xff] %v17095_v61 }
 0x3ed   :  { %v5009_v23 = vor.u32 %v5008_v34, %v5004_v42  ;;  %v3099_v9 = vrot.slane %v17070_v13, 1  ;;  %v3163_v0 = vrot.slane %v17070_v13, 2  ;;  %v5091_v34 = vpop.permute.xlu0 %5090  ;;  %v5610_v5 = vrot.slane %v5010_v44, 2 }
 0x3ee   :  { %v5609_v42 = vrot.slane %v5607_v57, 1  ;;  %v5606_v28 = vor.u32 %v5605_v14, %v5604_v22  ;;  %v17090_v50 = vsel %vm4226_vm4, %v5776_v51, %v5777_v46  ;;  %v20324_v24 = vrot.slane %v16939_v63, 4  ;;  %v20328_v51 = vld [vmem:[#allocation68_spill] sm:$0xff] }
 0x3ef   :  { %v5013_v40 = vsel %vm4713_vm2, %v5009_v23, %v5012_v45  ;;  %v4092_v21 = vsel %vm4061_vm0, %v17070_v13, %v3099_v9  ;;  %11543 = vmatprep.mubr.msk.bf16.mxu1 %vm5806_vm5, %v17090_v50  ;;  %v20326_v9 = vrot.slane %v16939_v63, 5  ;;  %v20327_v23 = vrot.slane %v16888_v48, 4 }
 0x3f0   :  { %5102 = vrot.lane.b32.xlu0 %v5013_v40, %s12977_s8  ;;  %v4190_v38 = vsel %vm4160_vm10, %v4157_v54, %v20324_v24  ;;  %v2278_v22 = vadd.f32 %v16462_v55, %v16414_v8  ;;  %v2270_v46 = vadd.f32 %v16462_v55, %v20328_v51  ;;  %v7075_v54 = vpop.f32.mrb[41].mxu0  ;;  %v5611_v44 = vor.u32 %v5610_v5, %v5609_v42 }
 0x3f1   :  { %v4223_v57 = vsel %vm4193_vm11, %v4190_v38, %v20326_v9  ;;  %v4416_v14 = vsel %vm4160_vm10, %v4384_v49, %v20327_v23  ;;  %v20329_v45 = vrot.slane %v16939_v63, 6  ;;  %v20330_v24 = vrot.slane %v16888_v48, 5  ;;  %v20331_v9 = vld [vmem:[#allocation76_spill] sm:$0xff]  ;;  %v17117_v49 = vpop.f32.mrb[48].mxu1  ;;  %v17119_v23 = vpop.f32.mrb[42].mxu0 }
 0x3f2   :  { %v2281_v36 = vadd.f32 %v16462_v55, %v20331_v9  ;;  %20332 = vst [vmem:[#allocation68_spill] sm:$0xff] %v17117_v49  ;;  %20333 = vst [vmem:[#allocation76_spill] sm:$0xff] %v17119_v23  ;;  %v20334_v8 = vrot.slane %v16939_v63, 7  ;;  %v20335_v5 = vrot.slane %v16888_v48, 6  ;;  %v7078_v9 = vpop.f32.mrb[43].mxu0  ;;  %v5612_v61 = vsel %vm5342_vm3, %v5606_v28, %v5611_v44  ;;  %v20342_v44 = vld [vmem:[#allocation71_spill] sm:$0xff] }
 0x3f3   :  { %v4256_v40 = vsel %vm4226_vm4, %v4223_v57, %v20329_v45  ;;  %v4448_v38 = vsel %vm4193_vm11, %v4416_v14, %v20330_v24  ;;  %v20336_v57 = vld [vmem:[#allocation95_spill] sm:$0xff]  ;;  %v6366_v24 = vpop.f32.mrb[49].mxu1  ;;  %v20338_v23 = vrot.slane %v16888_v48, 7  ;;  %v2289_v48 = vadd.f32 %v16462_v55, %v20342_v44 }
 0x3f4   :  { %v4288_v51 = vsel %vm2556_vm1, %v4256_v40, %v20334_v8  ;;  %v4480_v42 = vsel %vm4226_vm4, %v4448_v38, %v20335_v5  ;;  %v2273_v54 = vadd.f32 %v16462_v55, %v20336_v57  ;;  %v20337_v45 = vld [vmem:[#allocation99_spill] sm:$0xff]  ;;  %v5854_v40 = vsel %vm5806_vm5, %v20319_v15, %v5091_v34  ;;  %v20339_v8 = vld [vmem:[#allocation101_spill] sm:$0xff]  ;;  %v17139_v5 = vpop.f32.mrb[50].mxu1  ;;  %5698 = vrot.lane.b32.xlu0 %v5612_v61, %s12978_s2  ;;  %v20341_v24 = vld [vmem:[#allocation70_spill] sm:$0xff] }
 0x3f5   :  { %v2294_v14 = vadd.f32 %v16462_v55, %v20337_v45  ;;  %v4512_v63 = vsel %vm2556_vm1, %v4480_v42, %v20338_v23  ;;  %v2286_v38 = vadd.f32 %v16462_v55, %v20339_v8  ;;  %20340 = vst [vmem:[#allocation95_spill] sm:$0xff] %v17139_v5  ;;  %v2297_v28 = vadd.f32 %v16462_v55, %v20341_v24  ;;  %v5687_v23 = vpop.permute.xlu0 %5686  ;;  %v6369_v42 = vpop.f32.mrb[51].mxu1  ;;  %v20343_v34 = vld [vmem:[#allocation55_spill] sm:$0xff]  ;;  %v20344_v8 = vld [vmem:[#allocation57_spill] sm:$0xff] }
 0x3f6   :  { %v4544_v57 = vpack.c.bf16 %v4512_v63, %v4288_v51  ;;  %v5921_v15 = vsel %vm5873_vm6, %v5854_v40, %v5323_v17  ;;  %v5779_v4 = vrot.slane %v20343_v34, 2  ;;  %v5780_v60 = vrot.slane %v20344_v8, 2  ;;  %v17154_v24 = vpop.f32.mrb[44].mxu0 }
 0x3f7   :  { %v2426_v45 = vmax.f32 %v2278_v22, %v2294_v14  ;;  %v2424_v9 = vmax.f32 %v2270_v46, %v2286_v38  ;;  %v2427_v61 = vmax.f32 %v2281_v36, %v2297_v28  ;;  %v2425_v51 = vmax.f32 %v2273_v54, %v2289_v48  ;;  %20345 = vst [vmem:[#allocation99_spill] sm:$0xff] %v17154_v24  ;;  %v12591_v46 = vld [vmem:[#allocation8 + $0x48] sm:$0xff]  }
 0x3f8   :  { %v4610_v39 = vrot.slane %v4544_v57, 7  ;;  %v4125_v14 = vsel %vm4094_vm8, %v4092_v21, %v3163_v0  ;;  %v17152_v55 = vsel %vm5940_vm7, %v5921_v15, %v5687_v23  ;;  %v17164_v36 = vsel %vm4226_vm4, %v5779_v4, %v5780_v60  ;;  %v7083_v0 = vpop.f32.mrb[45].mxu0  ;;  %6602 = vmatpush1.bf16.msra.mxu1 %v12591_v46 }
 0x3f9   :  { %v2777_v2 = vrot.slane %v2426_v45, 1  ;;  %v2774_v63 = vrot.slane %v2424_v9, 1  ;;  %v2779_v38 = vrot.slane %v2427_v61, 1  ;;  %6451 = vmatmul.mubr.bf16.gmra.mrb[92].mxu1 %v17152_v55  ;;  %7393 = vmatprep.subr.bf16.mxu1 %v20061_v41  ;;  %v2775_v0 = vrot.slane %v2425_v51, 1 }
 0x3fa   :  { %v17157_v17 = vsel %vm4061_vm0, 0, %v4610_v39  ;;  %v17160_v40 = vsel %vm4061_vm0, %v4610_v39, 0  ;;  %11544 = vmatprep.mubr.msk.bf16.mxu1 %vm5806_vm5, %v17164_v36  ;;  %v17172_v39 = vpop.f32.mrb[46].mxu0  ;;  %v20347_v24 = vrot.slane %v17070_v13, 3 }
 0x3fb   :  { %v5267_v21 = vrot.slane %v17157_v17, 1  ;;  %v5268_v54 = vrot.slane %v17160_v40, 1  ;;  %v5014_v57 = vshrl.u32 %v17157_v17, 16  ;;  %v5016_v28 = vshll.u32 %v17157_v17, 16  ;;  %20346 = vst [vmem:[#allocation101_spill] sm:$0xff] %v17172_v39  ;;  %v7086_v23 = vpop.f32.mrb[47].mxu0 }
 0x3fc   :  { %v5020_v44 = vshll.u32 %v17160_v40, 16  ;;  %v2780_v60 = vsel %vm2556_vm1, %v2777_v2, %v2779_v38  ;;  %v17176_v4 = vmax.f32 %v2427_v61, %v2779_v38  ;;  %v5616_v48 = vshrl.u32 %v17160_v40, 16 }
 0x3fd   :  { %v5269_v42 = vsel %vm2556_vm1, %v5267_v21, %v5268_v54  ;;  %v5018_v15 = vrot.slane %v5016_v28, 1  ;;  %v3035_v8 = vmax.f32 %v2426_v45, %v2780_v60  ;;  %v5613_v39 = vrot.slane %v5014_v57, 1  ;;  %v5093_v60 = vpop.permute.xlu1 %5092 }
 0x3fe   :  { %5336 = vrot.lane.b32.xlu0 %v5269_v42, %s12967_s21  ;;  %v5022_v22 = vrot.slane %v5020_v44, 1  ;;  %v3836_v46 = vrot.slane %v17176_v4, 4  ;;  %v4158_v61 = vsel %vm4127_vm9, %v4125_v14, %v20347_v24  ;;  %v3900_v3 = vrot.slane %v17176_v4, 5 }
 0x3ff   :  { %v5019_v38 = vor.u32 %v5018_v15, %v5014_v57  ;;  %v3612_v5 = vrot.slane %v3035_v8, 1  ;;  %v3676_v23 = vrot.slane %v3035_v8, 2  ;;  %v3740_v49 = vrot.slane %v3035_v8, 3 }
 0x400   :  { %v5614_v21 = vrot.slane %v5016_v28, 2  ;;  %v5618_v54 = vrot.slane %v5616_v48, 1  ;;  %v5619_v45 = vrot.slane %v5020_v44, 2  ;;  %v2776_v62 = vsel %vm2556_vm1, %v2774_v63, %v2775_v0 }
 0x401   :  { %v5023_v42 = vsel %vm4713_vm2, %v5019_v38, %v5022_v22  ;;  %v4322_v35 = vsel %vm4061_vm0, %v3035_v8, %v3612_v5  ;;  %v2778_v13 = vsel %vm2556_vm1, %v2775_v0, %v2777_v2  ;;  %v3033_v15 = vmax.f32 %v2424_v9, %v2776_v62  ;;  %v5689_v38 = vpop.permute.xlu1 %5688 }
 0x402   :  { %5104 = vrot.lane.b32.xlu1 %v5023_v42, %s12977_s8  ;;  %v4354_v14 = vsel %vm4094_vm8, %v4322_v35, %v3676_v23  ;;  %v5615_v24 = vor.u32 %v5614_v21, %v5613_v39  ;;  %v5620_v57 = vor.u32 %v5619_v45, %v5618_v54  ;;  %v3451_v28 = vrot.slane %v17072_v58, 6  ;;  %v17223_v42 = vpop.f32.mrb[52].mxu1 }
 0x403   :  { %v4386_v44 = vsel %vm4127_vm9, %v4354_v14, %v3740_v49  ;;  %v17195_v48 = vmax.f32 %v2425_v51, %v2778_v13  ;;  %v20348_v22 = vrot.slane %v17072_v58, 4  ;;  %v3100_v2 = vrot.slane %v3033_v15, 1  ;;  %20352 = vst [vmem:[#allocation70_spill] sm:$0xff] %v17223_v42  ;;  %v17225_v13 = vpop.f32.mrb[48].mxu0 }
 0x404   :  { %v4418_v63 = vsel %vm4160_vm10, %v4386_v44, %v3836_v46  ;;  %v3164_v8 = vrot.slane %v3033_v15, 2  ;;  %v20349_v0 = vrot.slane %v17041_v11, 3  ;;  %v5621_v49 = vsel %vm5342_vm3, %v5615_v24, %v5620_v57  ;;  %20353 = vst [vmem:[#allocation71_spill] sm:$0xff] %v17225_v13 }
 0x405   :  { %v4191_v5 = vsel %vm4160_vm10, %v4158_v61, %v20348_v22  ;;  %v17206_v62 = vsel %vm4193_vm11, %v4418_v63, %v3900_v3  ;;  %v3228_v9 = vrot.slane %v3033_v15, 3  ;;  %v3324_v51 = vrot.slane %v17195_v48, 4  ;;  %v6374_v22 = vpop.f32.mrb[53].mxu1 }
 0x406   :  { %v4385_v35 = vsel %vm4127_vm9, %v17080_v30, %v20349_v0  ;;  %v3515_v39 = vrot.slane %v17072_v58, 7  ;;  %5700 = vrot.lane.b32.xlu1 %v5621_v49, %s12978_s2  ;;  %v3388_v46 = vrot.slane %v17195_v48, 5  ;;  %v4093_v61 = vsel %vm4061_vm0, %v3033_v15, %v3100_v2  ;;  %v20355_v15 = vld [vmem:[#allocation66_spill] sm:$0xff]  ;;  %v17239_v0 = vpop.f32.mrb[54].mxu1 }
 0x407   :  { %v20350_v11 = vrot.slane %v17072_v58, 5  ;;  %v4027_v3 = vrot.slane %v17032_v33, 7  ;;  %v4126_v23 = vsel %vm4094_vm8, %v4093_v61, %v3164_v8  ;;  %v20351_v54 = vrot.slane %v17032_v33, 4  ;;  %20357 = vst [vmem:[#allocation55_spill] sm:$0xff] %v17239_v0 }
 0x408   :  { %v4159_v14 = vsel %vm4127_vm9, %v4126_v23, %v3228_v9  ;;  %v20354_v24 = vrot.slane %v17032_v33, 5  ;;  %v4876_v44 = vshll.u32 %v20355_v15, 16  ;;  %v20356_v63 = vrot.slane %v17032_v33, 6 }
 0x409   :  { %v4224_v30 = vsel %vm4193_vm11, %v4191_v5, %v20350_v11  ;;  %v4417_v45 = vsel %vm4160_vm10, %v4385_v35, %v20351_v54  ;;  %v4192_v5 = vsel %vm4160_vm10, %v4159_v14, %v3324_v51  ;;  %v5856_v8 = vsel %vm5806_vm5, %v20343_v34, %v5093_v60  ;;  %v6377_v51 = vpop.f32.mrb[55].mxu1  ;;  %v20359_v34 = vld [vmem:[#allocation67_spill] sm:$0xff] }
 0x40a   :  { %v4257_v21 = vsel %vm4226_vm4, %v4224_v30, %v3451_v28  ;;  %v4449_v57 = vsel %vm4193_vm11, %v4417_v45, %v20354_v24  ;;  %v7091_v28 = vpop.f32.mrb[49].mxu0  ;;  %v17244_v49 = vsel %vm4193_vm11, %v4192_v5, %v3388_v46  ;;  %v4878_v61 = vrot.slane %v4876_v44, 1  ;;  %v5325_v30 = vpop.permute.xlu0 %5324 }
 0x40b   :  { %v4289_v58 = vsel %vm2556_vm1, %v4257_v21, %v3515_v39  ;;  %v4481_v2 = vsel %vm4226_vm4, %v4449_v57, %v20356_v63  ;;  %v17241_v35 = vpop.f32.mrb[50].mxu0  ;;  %v4874_v39 = vshrl.u32 %v20355_v15, 16  ;;  %v5923_v23 = vsel %vm5873_vm6, %v5856_v8, %v5325_v30  ;;  %v20360_v57 = vld [vmem:[#allocation98_spill] sm:$0xff] }
 0x40c   :  { %20358 = vst [vmem:[#allocation57_spill] sm:$0xff] %v17241_v35  ;;  %v4513_v9 = vsel %vm2556_vm1, %v4481_v2, %v4027_v3  ;;  %v7094_v11 = vpop.f32.mrb[51].mxu0  ;;  %v4880_v60 = vshll.u32 %v20359_v34, 16  ;;  %v5490_v54 = vshrl.u32 %v20359_v34, 16  ;;  %v17252_v45 = vsel %vm5940_vm7, %v5923_v23, %v5689_v38 }
 0x40d   :  { %v4545_v33 = vpack.c.bf16 %v4513_v9, %v4289_v58  ;;  %v4879_v46 = vor.u32 %v4878_v61, %v4874_v39  ;;  %v5487_v14 = vrot.slane %v4874_v39, 1  ;;  %v5488_v3 = vrot.slane %v4876_v44, 2  ;;  %6459 = vmatmul.mubr.bf16.gmra.mrb[96].mxu1 %v17252_v45 }
 0x40e   :  { %v5782_v22 = vrot.slane %v20360_v57, 2  ;;  %v5783_v28 = vrot.slane %v16482_v29, 2  ;;  %v5492_v9 = vrot.slane %v5490_v54, 1  ;;  %v5493_v39 = vrot.slane %v4880_v60, 2 }
 0x40f   :  { %v4611_v21 = vrot.slane %v4545_v33, 7  ;;  %v3964_v29 = vrot.slane %v17176_v4, 6  ;;  %v4028_v35 = vrot.slane %v17176_v4, 7  ;;  %v4882_v54 = vrot.slane %v4880_v60, 1 }
 0x410   :  { %v5494_v42 = vor.u32 %v5493_v39, %v5492_v9  ;;  %v5225_v60 = vrot.slane %v20355_v15, 1 }
 0x411   :  { %v17256_v24 = vsel %vm4061_vm0, 0, %v4611_v21  ;;  %v17259_v58 = vsel %vm4061_vm0, %v4611_v21, 0  ;;  %v17273_v21 = vsel %vm4226_vm4, %v5782_v22, %v5783_v28  ;;  %v4883_v22 = vsel %vm4713_vm2, %v4879_v46, %v4882_v54  ;;  %v5327_v46 = vpop.permute.xlu1 %5326 }
 0x412   :  { %v5270_v5 = vrot.slane %v17256_v24, 1  ;;  %v5271_v38 = vrot.slane %v17259_v58, 1  ;;  %v5024_v63 = vshrl.u32 %v17256_v24, 16  ;;  %v5026_v44 = vshll.u32 %v17256_v24, 16  ;;  %11545 = vmatprep.mubr.msk.bf16.mxu1 %vm5806_vm5, %v17273_v21 }
 0x413   :  { %v5030_v2 = vshll.u32 %v17259_v58, 16  ;;  %v5625_v8 = vshrl.u32 %v17259_v58, 16 }
 0x414   :  { %v5272_v61 = vsel %vm2556_vm1, %v5270_v5, %v5271_v38  ;;  %v5028_v51 = vrot.slane %v5026_v44, 1  ;;  %v5622_v11 = vrot.slane %v5024_v63, 1  ;;  %v5623_v33 = vrot.slane %v5026_v44, 2 }
 0x415   :  { %5338 = vrot.lane.b32.xlu1 %v5272_v61, %s12967_s21  ;;  %v5627_v30 = vrot.slane %v5625_v8, 1  ;;  %v5628_v23 = vrot.slane %v5030_v2, 2  ;;  %v5032_v0 = vrot.slane %v5030_v2, 1  ;;  %v3452_v5 = vrot.slane %v17195_v48, 6  ;;  %v5095_v61 = vpop.permute.xlu0 %5094 }
 0x416   :  { %v5029_v13 = vor.u32 %v5028_v51, %v5024_v63  ;;  %v3516_v38 = vrot.slane %v17195_v48, 7  ;;  %v5489_v44 = vor.u32 %v5488_v3, %v5487_v14  ;;  %v5624_v28 = vor.u32 %v5623_v33, %v5622_v11  ;;  %v12593_v3 = vld [vmem:[#allocation8 + $0x140] sm:$0xff]  }
 0x417   :  { %v5629_v6 = vor.u32 %v5628_v23, %v5627_v30  ;;  %v5858_v4 = vsel %vm5806_vm5, %v20360_v57, %v5095_v61  ;;  %v5785_v48 = vrot.slane %v16615_v27, 2  ;;  %v5786_v14 = vrot.slane %v16618_v32, 2  ;;  %7828 = vmatpush1.bf16.msra.mxu0 %v12593_v3 }
 0x418   :  { %v5033_v8 = vsel %vm4713_vm2, %v5029_v13, %v5032_v0  ;;  %v5495_v13 = vsel %vm5342_vm3, %v5489_v44, %v5494_v42  ;;  %v5226_v0 = vrot.slane %v20359_v34, 1  ;;  %v4258_v63 = vsel %vm4226_vm4, %v17244_v49, %v3452_v5  ;;  %v17304_v49 = vpop.f32.mrb[56].mxu1  ;;  %7829 = vmatprep.subr.bf16.mxu0 %v20061_v41 }
 0x419   :  { %5106 = vrot.lane.b32.xlu0 %v5033_v8, %s12977_s8  ;;  %5076 = vrot.lane.b32.xlu1 %v4883_v22, %s12977_s8  ;;  %v4482_v2 = vsel %vm4226_vm4, %v17206_v62, %v3964_v29  ;;  %v5630_v57 = vsel %vm5342_vm3, %v5624_v28, %v5629_v6  ;;  %v5691_v9 = vpop.permute.xlu0 %5690  ;;  %v5925_v39 = vsel %vm5873_vm6, %v5858_v4, %v5327_v46  ;;  %v17306_v62 = vpop.f32.mrb[52].mxu0 }
 0x41a   :  { %v4290_v51 = vsel %vm2556_vm1, %v4258_v63, %v3516_v38  ;;  %v4514_v32 = vsel %vm2556_vm1, %v4482_v2, %v4028_v35  ;;  %v17302_v42 = vsel %vm5940_vm7, %v5925_v39, %v5691_v9  ;;  %20361 = vst [vmem:[#allocation66_spill] sm:$0xff] %v17304_v49  ;;  %20362 = vst [vmem:[#allocation67_spill] sm:$0xff] %v17306_v62  ;;  %v6382_v11 = vpop.f32.mrb[57].mxu1  ;;  %v7099_v35 = vpop.f32.mrb[53].mxu0  ;;  %v20422_v49 = vld [vmem:[#allocation40_spill] sm:$0xff] }
 0x41b   :  { %v4546_v6 = vpack.c.bf16 %v4514_v32, %v4290_v51  ;;  %6467 = vmatmul.mubr.bf16.gmra.mrb[100].mxu1 %v17302_v42  ;;  %v17310_v34 = vsel %vm4226_vm4, %v5785_v48, %v5786_v14  ;;  %v17315_v33 = vpop.f32.mrb[58].mxu1  ;;  %v17317_v29 = vpop.f32.mrb[54].mxu0  ;;  %v5227_v23 = vsel %vm2556_vm1, %v5225_v60, %v5226_v0  ;;  %v5788_v11 = vrot.slane %v16762_v16, 2 }
 0x41c   :  { %11546 = vmatprep.mubr.msk.bf16.mxu1 %vm5806_vm5, %v17310_v34  ;;  %20363 = vst [vmem:[#allocation98_spill] sm:$0xff] %v17315_v33  ;;  %20364 = vst [vmem:[#allocation120_spill] sm:$0xff] %v17317_v29  ;;  %v6385_v54 = vpop.f32.mrb[59].mxu1  ;;  %v7102_v5 = vpop.f32.mrb[55].mxu0  ;;  %v5789_v35 = vrot.slane %v16765_v25, 2  ;;  %v20397_v29 = vld [vmem:[#allocation33_spill] sm:$0xff] }
 0x41d   :  { %5702 = vrot.lane.b32.xlu0 %v5630_v57, %s12978_s2  ;;  %5672 = vrot.lane.b32.xlu1 %v5495_v13, %s12978_s2  ;;  %v4612_v30 = vrot.slane %v4546_v6, 7 }
 0x41f   :  { %v17322_v38 = vsel %vm4061_vm0, 0, %v4612_v30  ;;  %v17325_v44 = vsel %vm4061_vm0, %v4612_v30, 0 }
 0x420   :  { %v5034_v61 = vshrl.u32 %v17322_v38, 16  ;;  %v5036_v8 = vshll.u32 %v17322_v38, 16  ;;  %v5040_v22 = vshll.u32 %v17325_v44, 16  ;;  %v5273_v28 = vrot.slane %v17322_v38, 1  ;;  %v5329_v30 = vpop.permute.xlu0 %5328 }
 0x421   :  { %5308 = vrot.lane.b32.xlu0 %v5227_v23, %s12967_s21  ;;  %v5274_v4 = vrot.slane %v17325_v44, 1  ;;  %v5634_v60 = vshrl.u32 %v17325_v44, 16 }
 0x422   :  { %v5038_v48 = vrot.slane %v5036_v8, 1  ;;  %v5042_v14 = vrot.slane %v5040_v22, 1  ;;  %v5631_v3 = vrot.slane %v5034_v61, 1  ;;  %v5632_v13 = vrot.slane %v5036_v8, 2 }
 0x423   :  { %v5275_v0 = vsel %vm2556_vm1, %v5273_v28, %v5274_v4  ;;  %v5636_v46 = vrot.slane %v5634_v60, 1  ;;  %v5637_v63 = vrot.slane %v5040_v22, 2 }
 0x424   :  { %v5039_v2 = vor.u32 %v5038_v48, %v5034_v61  ;;  %5340 = vrot.lane.b32.xlu1 %v5275_v0, %s12967_s21  ;;  %v5633_v57 = vor.u32 %v5632_v13, %v5631_v3  ;;  %v17349_v61 = vsel %vm4226_vm4, %v5788_v11, %v5789_v35  ;;  %v5791_v0 = vrot.slane %v16903_v47, 2 }
 0x425   :  { %v5638_v9 = vor.u32 %v5637_v63, %v5636_v46  ;;  %v5097_v51 = vpop.permute.xlu1 %5096  ;;  %v5792_v46 = vrot.slane %v16906_v26, 2  ;;  %v12597_v26 = vld [vmem:[#allocation8 + $0x150] sm:$0xff]  }
 0x426   :  { %v5043_v39 = vsel %vm4713_vm2, %v5039_v2, %v5042_v14  ;;  %v5860_v6 = vsel %vm5806_vm5, %v16615_v27, %v5097_v51  ;;  %v12595_v27 = vld [vmem:[#allocation8 + $0x148] sm:$0xff]  }
 0x427   :  { %5108 = vrot.lane.b32.xlu0 %v5043_v39, %s12977_s8  ;;  %v5639_v32 = vsel %vm5342_vm3, %v5633_v57, %v5638_v9  ;;  %v5927_v23 = vsel %vm5873_vm6, %v5860_v6, %v5329_v30  ;;  %7830 = vmatpush1.bf16.msra.mxu0 %v12595_v27  ;;  %v5794_v30 = vrot.slane %v17036_v7, 2 }
 0x428   :  { %7831 = vmatprep.subr.bf16.mxu0 %v20061_v41 }
 0x429   :  { %v5693_v54 = vpop.permute.xlu1 %5692 }
 0x42a   :  { %v17345_v5 = vsel %vm5940_vm7, %v5927_v23, %v5693_v54  ;;  %v5795_v23 = vrot.slane %v17039_v59, 2 }
 0x42b   :  { %5704 = vrot.lane.b32.xlu0 %v5639_v32, %s12978_s2  ;;  %6475 = vmatmul.mubr.bf16.gmra.mrb[104].mxu1 %v17345_v5 }
 0x42c   :  { %11547 = vmatprep.mubr.msk.bf16.mxu1 %vm5806_vm5, %v17349_v61  ;;  %7832 = vmatpush1.bf16.msra.mxu0 %v12597_v26 }
 0x42d   :  { %7833 = vmatprep.subr.bf16.mxu0 %v20061_v41 }
 0x432   :  { %v17354_v25 = vpop.f32.mrb[60].mxu1 }
 0x433   :  { %20365 = vst [vmem:[#allocation121_spill] sm:$0xff] %v17354_v25  ;;  %v6390_v8 = vpop.f32.mrb[61].mxu1  ;;  %v17358_v28 = vpop.f32.mrb[56].mxu0  ;;  %v20417_v25 = vld [vmem:[#allocation35_spill] sm:$0xff] }
 0x434   :  { %v17356_v22 = vpop.f32.mrb[62].mxu1  ;;  %20367 = vst [vmem:[#allocation123_spill] sm:$0xff] %v17358_v28  ;;  %v7107_v60 = vpop.f32.mrb[57].mxu0 }
 0x435   :  { %20366 = vst [vmem:[#allocation122_spill] sm:$0xff] %v17356_v22  ;;  %v6393_v4 = vpop.f32.mrb[63].mxu1  ;;  %v17360_v14 = vpop.f32.mrb[58].mxu0  ;;  %v17391_v60 = vsel %vm4226_vm4, %v5794_v30, %v5795_v23  ;;  %v20416_v22 = vld [vmem:[#allocation31_spill] sm:$0xff] }
 0x436   :  { %20368 = vst [vmem:[#allocation124_spill] sm:$0xff] %v17360_v14  ;;  %v7110_v3 = vpop.f32.mrb[59].mxu0  ;;  %v5331_v63 = vpop.permute.xlu1 %5330  ;;  %v20394_v14 = vld [vmem:[#allocation29_spill] sm:$0xff] }
 0x43a   :  { %v5099_v48 = vpop.permute.xlu0 %5098  ;;  %v17366_v2 = vpop.f32.mrb[64].mxu1 }
 0x43b   :  { %v5862_v13 = vsel %vm5806_vm5, %v16762_v16, %v5099_v48  ;;  %20369 = vst [vmem:[#allocation125_spill] sm:$0xff] %v17366_v2  ;;  %v6398_v39 = vpop.f32.mrb[65].mxu1  ;;  %v17376_v16 = vsel %vm4226_vm4, %v5791_v0, %v5792_v46  ;;  %v12599_v46 = vld [vmem:[#allocation8 + $0x158] sm:$0xff]   ;;  %v12610_v2 = vld [vmem:[#allocation8 + $0x130] sm:$0xff]  }
 0x43c   :  { %v5929_v9 = vsel %vm5873_vm6, %v5862_v13, %v5331_v63  ;;  %v17372_v32 = vpop.f32.mrb[66].mxu1  ;;  %v5797_v63 = vrot.slane %v17157_v17, 2  ;;  %7834 = vmatpush1.bf16.msra.mxu0 %v12599_v46 }
 0x43d   :  { %20370 = vst [vmem:[#allocation126_spill] sm:$0xff] %v17372_v32  ;;  %v6401_v6 = vpop.f32.mrb[67].mxu1  ;;  %7835 = vmatprep.subr.bf16.mxu0 %v20061_v41 }
 0x440   :  { %v5695_v57 = vpop.permute.xlu0 %5694 }
 0x441   :  { %v17370_v51 = vsel %vm5940_vm7, %v5929_v9, %v5695_v57  ;;  %v5798_v57 = vrot.slane %v17160_v40, 2 }
 0x442   :  { %6483 = vmatmul.mubr.bf16.gmra.mrb[108].mxu1 %v17370_v51 }
 0x443   :  { %11548 = vmatprep.mubr.msk.bf16.mxu1 %vm5806_vm5, %v17376_v16 }
 0x44a   :  { %v5333_v54 = vpop.permute.xlu0 %5332 }
 0x44e   :  { %v5101_v11 = vpop.permute.xlu1 %5100 }
 0x44f   :  { %v5864_v35 = vsel %vm5806_vm5, %v16903_v47, %v5101_v11  ;;  %v17410_v11 = vsel %vm4226_vm4, %v5797_v63, %v5798_v57 }
 0x450   :  { %v5931_v27 = vsel %vm5873_vm6, %v5864_v35, %v5333_v54  ;;  %20374 = vst [vmem:[#allocation130_spill] sm:$0xff] %v17410_v11 }
 0x452   :  { %v5697_v8 = vpop.permute.xlu1 %5696 }
 0x453   :  { %v17387_v4 = vsel %vm5940_vm7, %v5931_v27, %v5697_v8  ;;  %v5800_v27 = vrot.slane %v17256_v24, 2  ;;  %v5801_v8 = vrot.slane %v17259_v58, 2  ;;  %v12601_v58 = vld [vmem:[#allocation8 + $0x160] sm:$0xff]  }
 0x454   :  { %6491 = vmatmul.mubr.bf16.gmra.mrb[112].mxu1 %v17387_v4  ;;  %7836 = vmatpush1.bf16.msra.mxu0 %v12601_v58 }
 0x455   :  { %11549 = vmatprep.mubr.msk.bf16.mxu1 %vm5806_vm5, %v17391_v60  ;;  %v17428_v46 = vsel %vm4226_vm4, %v5800_v27, %v5801_v8  ;;  %7837 = vmatprep.subr.bf16.mxu0 %v20061_v41  ;;  %v12603_v8 = vld [vmem:[#allocation8 + $0x170] sm:$0xff]  }
 0x456   :  { %20378 = vst [vmem:[#allocation134_spill] sm:$0xff] %v17428_v46 }
 0x45b   :  { %v17395_v47 = vpop.f32.mrb[68].mxu1 }
 0x45c   :  { %20371 = vst [vmem:[#allocation127_spill] sm:$0xff] %v17395_v47  ;;  %v6406_v48 = vpop.f32.mrb[69].mxu1 }
 0x45d   :  { %v17397_v59 = vpop.f32.mrb[70].mxu1  ;;  %v5335_v9 = vpop.permute.xlu1 %5334 }
 0x45e   :  { %20372 = vst [vmem:[#allocation128_spill] sm:$0xff] %v17397_v59  ;;  %v6409_v13 = vpop.f32.mrb[71].mxu1  ;;  %v20411_v59 = vld [vmem:[#allocation56_spill] sm:$0xff] }
 0x462   :  { %v5103_v3 = vpop.permute.xlu0 %5102 }
 0x463   :  { %v5866_v0 = vsel %vm5806_vm5, %v17036_v7, %v5103_v3 }
 0x464   :  { %v5933_v6 = vsel %vm5873_vm6, %v5866_v0, %v5335_v9 }
 0x466   :  { %v5699_v39 = vpop.permute.xlu0 %5698  ;;  %v17412_v7 = vpop.f32.mrb[72].mxu1 }
 0x467   :  { %v17406_v26 = vsel %vm5940_vm7, %v5933_v6, %v5699_v39  ;;  %20375 = vst [vmem:[#allocation131_spill] sm:$0xff] %v17412_v7  ;;  %v6414_v40 = vpop.f32.mrb[73].mxu1  ;;  %v12602_v6 = vld [vmem:[#allocation8 + $0x168] sm:$0xff]  }
 0x468   :  { %20373 = vst [vmem:[#allocation129_spill] sm:$0xff] %v17406_v26  ;;  %6499 = vmatmul.mubr.bf16.gmra.mrb[116].mxu1 %v17406_v26  ;;  %v17416_v35 = vpop.f32.mrb[74].mxu1  ;;  %7838 = vmatpush1.bf16.msra.mxu0 %v12602_v6 }
 0x469   :  { %11550 = vmatprep.mubr.msk.bf16.mxu1 %vm5806_vm5, %v17410_v11  ;;  %20376 = vst [vmem:[#allocation132_spill] sm:$0xff] %v17416_v35  ;;  %v6417_v30 = vpop.f32.mrb[75].mxu1  ;;  %7839 = vmatprep.subr.bf16.mxu0 %v20061_v41  ;;  %v20409_v35 = vld [vmem:[#allocation49_spill] sm:$0xff] }
 0x46c   :  { %7840 = vmatpush1.bf16.msra.mxu0 %v12603_v8  ;;  %v20387_v8 = vld [vmem:[#allocation26_spill] sm:$0xff] }
 0x46d   :  { %7841 = vmatprep.subr.bf16.mxu0 %v20061_v41 }
 0x470   :  { %v5337_v48 = vpop.permute.xlu0 %5336 }
 0x474   :  { %v5105_v23 = vpop.permute.xlu1 %5104 }
 0x475   :  { %v5868_v54 = vsel %vm5806_vm5, %v17157_v17, %v5105_v23 }
 0x476   :  { %v5935_v3 = vsel %vm5873_vm6, %v5868_v54, %v5337_v48 }
 0x478   :  { %v5701_v13 = vpop.permute.xlu1 %5700 }
 0x479   :  { %v17424_v0 = vsel %vm5940_vm7, %v5935_v3, %v5701_v13  ;;  %v12604_v3 = vld [vmem:[#allocation8 + $0x178] sm:$0xff]   ;;  %v20382_v13 = vld [vmem:[#allocation25_spill] sm:$0xff] }
 0x47a   :  { %20377 = vst [vmem:[#allocation133_spill] sm:$0xff] %v17424_v0  ;;  %6507 = vmatmul.mubr.bf16.gmra.mrb[120].mxu1 %v17424_v0  ;;  %v17432_v17 = vpop.f32.mrb[76].mxu1  ;;  %7842 = vmatpush1.bf16.msra.mxu0 %v12604_v3  ;;  %v12594_v3 = vld [vmem:[#allocation8 + $0xf8] sm:$0xff]  }
 0x47b   :  { %11551 = vmatprep.mubr.msk.bf16.mxu1 %vm5806_vm5, %v17428_v46  ;;  %20379 = vst [vmem:[#allocation135_spill] sm:$0xff] %v17432_v17  ;;  %v6422_v63 = vpop.f32.mrb[77].mxu1  ;;  %7843 = vmatprep.subr.bf16.mxu0 %v20061_v41 }
 0x47c   :  { %v17434_v57 = vpop.f32.mrb[78].mxu1 }
 0x47d   :  { %20380 = vst [vmem:[#allocation136_spill] sm:$0xff] %v17434_v57  ;;  %v6425_v9 = vpop.f32.mrb[79].mxu1  ;;  %v20407_v57 = vld [vmem:[#allocation46_spill] sm:$0xff] }
 0x487   :  { %v5339_v39 = vpop.permute.xlu1 %5338 }
 0x48b   :  { %v5107_v40 = vpop.permute.xlu0 %5106  ;;  %v5077_v23 = vpop.permute.xlu1 %5076 }
 0x48c   :  { %v5870_v30 = vsel %vm5806_vm5, %v17256_v24, %v5107_v40  ;;  %v5840_v24 = vsel %vm5806_vm5, %v20355_v15, %v5077_v23  ;;  %v20386_v15 = vld [vmem:[#allocation64_spill] sm:$0xff] }
 0x48d   :  { %v5937_v27 = vsel %vm5873_vm6, %v5870_v30, %v5339_v39  ;;  %v12592_v30 = vld [vmem:[#allocation8 + $0xf0] sm:$0xff]  }
 0x48e   :  { %v17451_v39 = vpop.f32.mrb[80].mxu1 }
 0x48f   :  { %v5703_v54 = vpop.permute.xlu0 %5702  ;;  %v5673_v58 = vpop.permute.xlu1 %5672  ;;  %20383 = vst [vmem:[#allocation138_spill] sm:$0xff] %v17451_v39 }
 0x490   :  { %v17442_v48 = vsel %vm5940_vm7, %v5937_v27, %v5703_v54  ;;  %v6430_v40 = vpop.f32.mrb[81].mxu1  ;;  %v12605_v27 = vld [vmem:[#allocation8 + $0x180] sm:$0xff]  }
 0x491   :  { %20381 = vst [vmem:[#allocation137_spill] sm:$0xff] %v17442_v48  ;;  %6515 = vmatmul.mubr.bf16.gmra.mrb[124].mxu1 %v17442_v48  ;;  %v17457_v54 = vpop.f32.mrb[82].mxu1  ;;  %7844 = vmatpush1.bf16.msra.mxu0 %v12605_v27  ;;  %v20390_v40 = vld [vmem:[#allocation27_spill] sm:$0xff]  ;;  %v20391_v27 = vld [vmem:[#allocation96_spill] sm:$0xff] }
 0x492   :  { %11562 = vmatprep.mubr.msk.bf16.mxu1 %vm5806_vm5, %v20382_v13  ;;  %20385 = vst [vmem:[#allocation140_spill] sm:$0xff] %v17457_v54  ;;  %v6433_v23 = vpop.f32.mrb[83].mxu1  ;;  %7845 = vmatprep.subr.bf16.mxu0 %v20061_v41  ;;  %v20403_v54 = vld [vmem:[#allocation41_spill] sm:$0xff] }
 0x493   :  { %v5309_v63 = vpop.permute.xlu0 %5308  ;;  %v12600_v23 = vld [vmem:[#allocation8 + $0x110] sm:$0xff]  }
 0x494   :  { %v5907_v9 = vsel %vm5873_vm6, %v5840_v24, %v5309_v63  ;;  %v12607_v24 = vld [vmem:[#allocation8 + $0x188] sm:$0xff]   ;;  %v20388_v63 = vld [vmem:[#allocation94_spill] sm:$0xff] }
 0x495   :  { %v17454_v6 = vsel %vm5940_vm7, %v5907_v9, %v5673_v58  ;;  %7846 = vmatpush1.bf16.msra.mxu0 %v12607_v24  ;;  %v12596_v58 = vld [vmem:[#allocation8 + $0x100] sm:$0xff]   ;;  %v20389_v9 = vld [vmem:[#allocation82_spill] sm:$0xff]  ;;  %v20392_v24 = vld [vmem:[#allocation28_spill] sm:$0xff] }
 0x496   :  { %20384 = vst [vmem:[#allocation139_spill] sm:$0xff] %v17454_v6  ;;  %7112 = vmatmul.mubr.bf16.gmra.mrb[60].mxu0 %v17454_v6  ;;  %10289 = vmatprep.subr.bf16.mxu0 %v20061_v41 }
 0x497   :  { %11620 = vmatprep.mubr.msk.bf16.mxu0 %vm5806_vm5, %v20386_v15 }
 0x499   :  { %6616 = vmatmul.mubr.bf16.vlgmr.msra.gmra.mrb[128].mxu1 %v20387_v8 }
 0x49a   :  { %7394 = vmatpush1.bf16.msra.mxu1 %v12592_v30  ;;  %11563 = vmatprep.mubr.msk.bf16.mxu1 %vm5806_vm5, %v20382_v13  ;;  %v12598_v30 = vld [vmem:[#allocation8 + $0x108] sm:$0xff]  }
 0x49b   :  { %7395 = vmatprep.subr.bf16.mxu1 %v20061_v41 }
 0x49e   :  { %7120 = vmatmul.mubr.bf16.gmra.mrb[64].mxu0 %v20388_v63  ;;  %7396 = vmatpush1.bf16.msra.mxu1 %v12594_v3 }
 0x49f   :  { %11621 = vmatprep.mubr.msk.bf16.mxu0 %vm5806_vm5, %v20389_v9  ;;  %7397 = vmatprep.subr.bf16.mxu1 %v20061_v41 }
 0x4a1   :  { %6624 = vmatmul.mubr.bf16.gmra.mrb[132].mxu1 %v20387_v8 }
 0x4a2   :  { %11564 = vmatprep.mubr.msk.bf16.mxu1 %vm5806_vm5, %v20390_v40  ;;  %7398 = vmatpush1.bf16.msra.mxu1 %v12596_v58  ;;  %v12606_v40 = vld [vmem:[#allocation8 + $0x118] sm:$0xff]  }
 0x4a3   :  { %7399 = vmatprep.subr.bf16.mxu1 %v20061_v41 }
 0x4a4   :  { %v17481_v3 = vpop.f32.mrb[84].mxu1 }
 0x4a5   :  { %20393 = vst [vmem:[#allocation64_spill] sm:$0xff] %v17481_v3  ;;  %v6438_v58 = vpop.f32.mrb[85].mxu1  ;;  %v20402_v3 = vld [vmem:[#allocation38_spill] sm:$0xff] }
 0x4a6   :  { %7128 = vmatmul.mubr.bf16.gmra.mrb[68].mxu0 %v20391_v27  ;;  %7400 = vmatpush1.bf16.msra.mxu1 %v12598_v30  ;;  %v17485_v28 = vpop.f32.mrb[86].mxu1  ;;  %v20398_v58 = vld [vmem:[#allocation34_spill] sm:$0xff] }
 0x4a7   :  { %11622 = vmatprep.mubr.msk.bf16.mxu0 %vm5806_vm5, %v16542_v53  ;;  %7401 = vmatprep.subr.bf16.mxu1 %v20061_v41  ;;  %20395 = vst [vmem:[#allocation94_spill] sm:$0xff] %v17485_v28  ;;  %v6441_v30 = vpop.f32.mrb[87].mxu1 }
 0x4a9   :  { %6632 = vmatmul.mubr.bf16.gmra.mrb[136].mxu1 %v20392_v24  ;;  %v20396_v24 = vld [vmem:[#allocation32_spill] sm:$0xff] }
 0x4aa   :  { %11565 = vmatprep.mubr.msk.bf16.mxu1 %vm5806_vm5, %v20394_v14  ;;  %7402 = vmatpush1.bf16.msra.mxu1 %v12600_v23  ;;  %v12608_v23 = vld [vmem:[#allocation8 + $0x120] sm:$0xff]  }
 0x4ab   :  { %7403 = vmatprep.subr.bf16.mxu1 %v20061_v41  ;;  %v20429_v14 = vld [vmem:[#allocation75_spill] sm:$0xff] }
 0x4ae   :  { %7136 = vmatmul.mubr.bf16.gmra.mrb[72].mxu0 %v16603_v1  ;;  %7404 = vmatpush1.bf16.msra.mxu1 %v12606_v40  ;;  %v20399_v40 = vld [vmem:[#allocation37_spill] sm:$0xff] }
 0x4af   :  { %11623 = vmatprep.mubr.msk.bf16.mxu0 %vm5806_vm5, %v16690_v19  ;;  %7405 = vmatprep.subr.bf16.mxu1 %v20061_v41 }
 0x4b1   :  { %6640 = vmatmul.mubr.bf16.gmra.mrb[140].mxu1 %v20396_v24  ;;  %v20428_v24 = vld [vmem:[#allocation48_spill] sm:$0xff] }
 0x4b2   :  { %11566 = vmatprep.mubr.msk.bf16.mxu1 %vm5806_vm5, %v20397_v29  ;;  %7406 = vmatpush1.bf16.msra.mxu1 %v12608_v23 }
 0x4b3   :  { %7407 = vmatprep.subr.bf16.mxu1 %v20061_v41 }
 0x4b6   :  { %7144 = vmatmul.mubr.bf16.gmra.mrb[76].mxu0 %v16743_v10 }
 0x4b7   :  { %11624 = vmatprep.mubr.msk.bf16.mxu0 %vm5806_vm5, %v16823_v20 }
 0x4b8   :  { %v17502_v30 = vpop.f32.mrb[88].mxu1 }
 0x4b9   :  { %6648 = vmatmul.mubr.bf16.gmra.mrb[144].mxu1 %v20398_v58  ;;  %20400 = vst [vmem:[#allocation27_spill] sm:$0xff] %v17502_v30  ;;  %v6446_v62 = vpop.f32.mrb[89].mxu1  ;;  %v20404_v30 = vld [vmem:[#allocation42_spill] sm:$0xff] }
 0x4ba   :  { %11567 = vmatprep.mubr.msk.bf16.mxu1 %vm5806_vm5, %v20399_v40  ;;  %v17504_v28 = vpop.f32.mrb[90].mxu1  ;;  %v20405_v62 = vld [vmem:[#allocation45_spill] sm:$0xff] }
 0x4bb   :  { %20401 = vst [vmem:[#allocation28_spill] sm:$0xff] %v17504_v28  ;;  %v6449_v23 = vpop.f32.mrb[91].mxu1  ;;  %v12609_v28 = vld [vmem:[#allocation8 + $0x128] sm:$0xff]  }
 0x4bc   :  { %7408 = vmatpush1.bf16.msra.mxu1 %v12609_v28  ;;  %v20410_v28 = vld [vmem:[#allocation50_spill] sm:$0xff] }
 0x4bd   :  { %7409 = vmatprep.subr.bf16.mxu1 %v20061_v41 }
 0x4be   :  { %7152 = vmatmul.mubr.bf16.gmra.mrb[80].mxu0 %v16898_v43 }
 0x4bf   :  { %11625 = vmatprep.mubr.msk.bf16.mxu0 %vm5806_vm5, %v16961_v56 }
 0x4c0   :  { %7410 = vmatpush1.bf16.msra.mxu1 %v12610_v2 }
 0x4c1   :  { %6656 = vmatmul.mubr.bf16.gmra.mrb[148].mxu1 %v20402_v3  ;;  %7411 = vmatprep.subr.bf16.mxu1 %v20061_v41 }
 0x4c2   :  { %11568 = vmatprep.mubr.msk.bf16.mxu1 %vm5806_vm5, %v20403_v54 }
 0x4c6   :  { %7160 = vmatmul.mubr.bf16.gmra.mrb[84].mxu0 %v17027_v18 }
 0x4c7   :  { %11626 = vmatprep.mubr.msk.bf16.mxu0 %vm5806_vm5, %v17090_v50 }
 0x4c9   :  { %6664 = vmatmul.mubr.bf16.gmra.mrb[152].mxu1 %v20404_v30 }
 0x4ca   :  { %11569 = vmatprep.mubr.msk.bf16.mxu1 %vm5806_vm5, %v20405_v62 }
 0x4cc   :  { %v17522_v23 = vpop.f32.mrb[92].mxu1 }
 0x4cd   :  { %20406 = vst [vmem:[#allocation33_spill] sm:$0xff] %v17522_v23  ;;  %v6454_v39 = vpop.f32.mrb[93].mxu1 }
 0x4ce   :  { %7168 = vmatmul.mubr.bf16.gmra.mrb[88].mxu0 %v17152_v55  ;;  %v17525_v17 = vpop.f32.mrb[94].mxu1  ;;  %v20412_v39 = vld [vmem:[#allocation59_spill] sm:$0xff] }
 0x4cf   :  { %11627 = vmatprep.mubr.msk.bf16.mxu0 %vm5806_vm5, %v17164_v36  ;;  %20408 = vst [vmem:[#allocation34_spill] sm:$0xff] %v17525_v17  ;;  %v6457_v7 = vpop.f32.mrb[95].mxu1  ;;  %v20413_v17 = vld [vmem:[#allocation30_spill] sm:$0xff] }
 0x4d1   :  { %6672 = vmatmul.mubr.bf16.gmra.mrb[156].mxu1 %v20407_v57 }
 0x4d2   :  { %11570 = vmatprep.mubr.msk.bf16.mxu1 %vm5806_vm5, %v20409_v35 }
 0x4d6   :  { %7176 = vmatmul.mubr.bf16.gmra.mrb[92].mxu0 %v17252_v45 }
 0x4d7   :  { %11628 = vmatprep.mubr.msk.bf16.mxu0 %vm5806_vm5, %v17273_v21 }
 0x4d9   :  { %6680 = vmatmul.mubr.bf16.gmra.mrb[160].mxu1 %v20410_v28 }
 0x4da   :  { %11571 = vmatprep.mubr.msk.bf16.mxu1 %vm5806_vm5, %v20411_v59 }
 0x4de   :  { %7184 = vmatmul.mubr.bf16.gmra.mrb[96].mxu0 %v17302_v42 }
 0x4df   :  { %11629 = vmatprep.mubr.msk.bf16.mxu0 %vm5806_vm5, %v17310_v34 }
 0x4e0   :  { %v17541_v7 = vpop.f32.mrb[96].mxu1 }
 0x4e1   :  { %6688 = vmatmul.mubr.bf16.gmra.mrb[164].mxu1 %v20412_v39  ;;  %20414 = vst [vmem:[#allocation37_spill] sm:$0xff] %v17541_v7  ;;  %v6462_v23 = vpop.f32.mrb[97].mxu1 }
 0x4e2   :  { %11572 = vmatprep.mubr.msk.bf16.mxu1 %vm5806_vm5, %v20413_v17  ;;  %v17543_v47 = vpop.f32.mrb[98].mxu1  ;;  %v20418_v23 = vld [vmem:[#allocation63_spill] sm:$0xff] }
 0x4e3   :  { %20415 = vst [vmem:[#allocation38_spill] sm:$0xff] %v17543_v47  ;;  %v6465_v32 = vpop.f32.mrb[99].mxu1  ;;  %v20420_v47 = vld [vmem:[#allocation39_spill] sm:$0xff] }
 0x4e6   :  { %7192 = vmatmul.mubr.bf16.gmra.mrb[100].mxu0 %v17345_v5 }
 0x4e7   :  { %11630 = vmatprep.mubr.msk.bf16.mxu0 %vm5806_vm5, %v17349_v61 }
 0x4e9   :  { %6696 = vmatmul.mubr.bf16.gmra.mrb[168].mxu1 %v20416_v22 }
 0x4ea   :  { %11573 = vmatprep.mubr.msk.bf16.mxu1 %vm5806_vm5, %v20417_v25 }
 0x4ee   :  { %7200 = vmatmul.mubr.bf16.gmra.mrb[104].mxu0 %v17370_v51  ;;  %v17556_v32 = vpop.f32.mrb[100].mxu1 }
 0x4ef   :  { %11631 = vmatprep.mubr.msk.bf16.mxu0 %vm5806_vm5, %v17376_v16  ;;  %20419 = vst [vmem:[#allocation41_spill] sm:$0xff] %v17556_v32  ;;  %v6470_v2 = vpop.f32.mrb[101].mxu1  ;;  %v12611_v32 = vld [vmem:[#allocation8 + $0x138] sm:$0xff]  }
 0x4f0   :  { %v17560_v7 = vpop.f32.mrb[102].mxu1  ;;  %v20424_v2 = vld [vmem:[#allocation69_spill] sm:$0xff]  ;;  %7412 = vmatpush1.bf16.msra.mxu1 %v12611_v32  ;;  %v5803_v32 = vrot.slane %v17322_v38, 2 }
 0x4f1   :  { %6704 = vmatmul.mubr.bf16.gmra.mrb[172].mxu1 %v20418_v23  ;;  %20421 = vst [vmem:[#allocation42_spill] sm:$0xff] %v17560_v7  ;;  %v6473_v33 = vpop.f32.mrb[103].mxu1  ;;  %v20425_v7 = vld [vmem:[#allocation47_spill] sm:$0xff]  ;;  %9494 = vmatprep.subr.bf16.mxu1 %v20061_v41  ;;  %v5804_v41 = vrot.slane %v17325_v44, 2 }
 0x4f2   :  { %11574 = vmatprep.mubr.msk.bf16.mxu1 %vm5806_vm5, %v20420_v47 }
 0x4f6   :  { %7208 = vmatmul.mubr.bf16.gmra.mrb[108].mxu0 %v17387_v4 }
 0x4f7   :  { %11632 = vmatprep.mubr.msk.bf16.mxu0 %vm5806_vm5, %v17391_v60 }
 0x4f9   :  { %6712 = vmatmul.mubr.bf16.gmra.mrb[176].mxu1 %v20422_v49 }
 0x4fa   :  { %11575 = vmatprep.mubr.msk.bf16.mxu1 %vm5806_vm5, %v20423_v12 }
 0x4fe   :  { %7216 = vmatmul.mubr.bf16.gmra.mrb[112].mxu0 %v17406_v26  ;;  %v17575_v33 = vpop.f32.mrb[104].mxu1 }
 0x4ff   :  { %11633 = vmatprep.mubr.msk.bf16.mxu0 %vm5806_vm5, %v17410_v11  ;;  %20426 = vst [vmem:[#allocation45_spill] sm:$0xff] %v17575_v33  ;;  %v6478_v31 = vpop.f32.mrb[105].mxu1  ;;  %v5109_v11 = vpop.permute.xlu0 %5108 }
 0x500   :  { %v17578_v37 = vpop.f32.mrb[106].mxu1  ;;  %v17589_v31 = vsel %vm4226_vm4, %v5803_v32, %v5804_v41  ;;  %v5341_v33 = vpop.permute.xlu1 %5340 }
 0x501   :  { %6720 = vmatmul.mubr.bf16.gmra.mrb[180].mxu1 %v20424_v2  ;;  %20427 = vst [vmem:[#allocation46_spill] sm:$0xff] %v17578_v37  ;;  %v6481_v52 = vpop.f32.mrb[107].mxu1  ;;  %20430 = vst [vmem:[#allocation49_spill] sm:$0xff] %v17589_v31  ;;  %v5872_v37 = vsel %vm5806_vm5, %v17322_v38, %v5109_v11 }
 0x502   :  { %11576 = vmatprep.mubr.msk.bf16.mxu1 %vm5806_vm5, %v20425_v7  ;;  %v20431_v52 = vld [vmem:[#allocation79_spill] sm:$0xff] }
 0x506   :  { %7224 = vmatmul.mubr.bf16.gmra.mrb[116].mxu0 %v17424_v0  ;;  %v5705_v0 = vpop.permute.xlu0 %5704 }
 0x507   :  { %11634 = vmatprep.mubr.msk.bf16.mxu0 %vm5806_vm5, %v17428_v46  ;;  %v5939_v46 = vsel %vm5873_vm6, %v5872_v37, %v5341_v33 }
 0x508   :  { %v17600_v44 = vsel %vm5940_vm7, %v5939_v46, %v5705_v0 }
 0x509   :  { %6728 = vmatmul.mubr.bf16.gmra.mrb[184].mxu1 %v20428_v24  ;;  %20432 = vst [vmem:[#allocation50_spill] sm:$0xff] %v17600_v44 }
 0x50a   :  { %11577 = vmatprep.mubr.msk.bf16.mxu1 %vm5806_vm5, %v20429_v14 }
 0x50e   :  { %7232 = vmatmul.mubr.bf16.gmra.mrb[120].mxu0 %v17442_v48 }
 0x50f   :  { %11635 = vmatprep.mubr.msk.bf16.mxu0 %vm5806_vm5, %v17589_v31 }
 0x511   :  { %6736 = vmatmul.mubr.bf16.gmra.mrb[188].mxu1 %v20431_v52 }
 0x512   :  { %11578 = vmatprep.mubr.msk.bf16.mxu1 %vm5806_vm5, %v20382_v13 }
 0x515   :  { %v17606_v41 = vpop.f32.mrb[108].mxu1 }
 0x516   :  { %7240 = vmatmul.mubr.bf16.gmra.mrb[124].mxu0 %v17600_v44  ;;  %20433 = vst [vmem:[#allocation56_spill] sm:$0xff] %v17606_v41  ;;  %v6486_v37 = vpop.f32.mrb[109].mxu1  ;;  %v20446_v41 = vld [vmem:[#allocation62_spill] sm:$0xff] }
 0x517   :  { %11688 = vmatprep.mubr.msk.bf16.mxu0 %vm5806_vm5, %v20397_v29  ;;  %v17610_v38 = vpop.f32.mrb[110].mxu1 }
 0x518   :  { %20434 = vst [vmem:[#allocation59_spill] sm:$0xff] %v17610_v38  ;;  %v6489_v11 = vpop.f32.mrb[111].mxu1 }
 0x519   :  { %6744 = vmatmul.mubr.bf16.gmra.mrb[192].mxu1 %v20387_v8 }
 0x51a   :  { %11579 = vmatprep.mubr.msk.bf16.mxu1 %vm5806_vm5, %v20382_v13 }
 0x51e   :  { %7860 = vmatmul.mubr.bf16.vlgmr.msra.gmra.mrb[128].mxu0 %v20398_v58 }
 0x51f   :  { %11689 = vmatprep.mubr.msk.bf16.mxu0 %vm5806_vm5, %v20399_v40 }
 0x521   :  { %6752 = vmatmul.mubr.bf16.gmra.mrb[196].mxu1 %v20387_v8 }
 0x522   :  { %11580 = vmatprep.mubr.msk.bf16.mxu1 %vm5806_vm5, %v20386_v15 }
 0x526   :  { %7868 = vmatmul.mubr.bf16.gmra.mrb[132].mxu0 %v20402_v3 }
 0x527   :  { %11690 = vmatprep.mubr.msk.bf16.mxu0 %vm5806_vm5, %v20403_v54  ;;  %v17624_v0 = vpop.f32.mrb[112].mxu1 }
 0x528   :  { %20435 = vst [vmem:[#allocation30_spill] sm:$0xff] %v17624_v0  ;;  %v6494_v46 = vpop.f32.mrb[113].mxu1  ;;  %v20445_v0 = vld [vmem:[#allocation58_spill] sm:$0xff] }
 0x529   :  { %6760 = vmatmul.mubr.bf16.gmra.mrb[200].mxu1 %v20388_v63  ;;  %v17626_v33 = vpop.f32.mrb[114].mxu1 }
 0x52a   :  { %11581 = vmatprep.mubr.msk.bf16.mxu1 %vm5806_vm5, %v20389_v9  ;;  %20436 = vst [vmem:[#allocation31_spill] sm:$0xff] %v17626_v33  ;;  %v6497_v32 = vpop.f32.mrb[115].mxu1 }
 0x52e   :  { %7876 = vmatmul.mubr.bf16.gmra.mrb[136].mxu0 %v20404_v30 }
 0x52f   :  { %11691 = vmatprep.mubr.msk.bf16.mxu0 %vm5806_vm5, %v20405_v62 }
 0x531   :  { %6768 = vmatmul.mubr.bf16.gmra.mrb[204].mxu1 %v20391_v27 }
 0x532   :  { %11582 = vmatprep.mubr.msk.bf16.mxu1 %vm5806_vm5, %v16542_v53 }
 0x536   :  { %7884 = vmatmul.mubr.bf16.gmra.mrb[140].mxu0 %v20407_v57 }
 0x537   :  { %11692 = vmatprep.mubr.msk.bf16.mxu0 %vm5806_vm5, %v20409_v35 }
 0x539   :  { %6776 = vmatmul.mubr.bf16.gmra.mrb[208].mxu1 %v16603_v1 }
 0x53a   :  { %11583 = vmatprep.mubr.msk.bf16.mxu1 %vm5806_vm5, %v16690_v19 }
 0x53b   :  { %v17643_v15 = vpop.f32.mrb[116].mxu1 }
 0x53c   :  { %20437 = vst [vmem:[#allocation35_spill] sm:$0xff] %v17643_v15  ;;  %v6502_v63 = vpop.f32.mrb[117].mxu1 }
 0x53d   :  { %v17646_v37 = vpop.f32.mrb[118].mxu1 }
 0x53e   :  { %7892 = vmatmul.mubr.bf16.gmra.mrb[144].mxu0 %v20410_v28  ;;  %20438 = vst [vmem:[#allocation63_spill] sm:$0xff] %v17646_v37  ;;  %v6505_v11 = vpop.f32.mrb[119].mxu1 }
 0x53f   :  { %11693 = vmatprep.mubr.msk.bf16.mxu0 %vm5806_vm5, %v20411_v59 }
 0x541   :  { %6784 = vmatmul.mubr.bf16.gmra.mrb[212].mxu1 %v16743_v10 }
 0x542   :  { %11584 = vmatprep.mubr.msk.bf16.mxu1 %vm5806_vm5, %v16823_v20 }
 0x546   :  { %7900 = vmatmul.mubr.bf16.gmra.mrb[148].mxu0 %v20412_v39 }
 0x547   :  { %11694 = vmatprep.mubr.msk.bf16.mxu0 %vm5806_vm5, %v20413_v17 }
 0x549   :  { %6792 = vmatmul.mubr.bf16.gmra.mrb[216].mxu1 %v16898_v43 }
 0x54a   :  { %11585 = vmatprep.mubr.msk.bf16.mxu1 %vm5806_vm5, %v16961_v56 }
 0x54d   :  { %v17659_v46 = vpop.f32.mrb[120].mxu1 }
 0x54e   :  { %7908 = vmatmul.mubr.bf16.gmra.mrb[152].mxu0 %v20416_v22  ;;  %20439 = vst [vmem:[#allocation39_spill] sm:$0xff] %v17659_v46  ;;  %v6510_v32 = vpop.f32.mrb[121].mxu1 }
 0x54f   :  { %11695 = vmatprep.mubr.msk.bf16.mxu0 %vm5806_vm5, %v20417_v25  ;;  %v17662_v63 = vpop.f32.mrb[122].mxu1 }
 0x550   :  { %20440 = vst [vmem:[#allocation40_spill] sm:$0xff] %v17662_v63  ;;  %v6513_v11 = vpop.f32.mrb[123].mxu1 }
 0x551   :  { %6800 = vmatmul.mubr.bf16.gmra.mrb[220].mxu1 %v17027_v18 }
 0x552   :  { %11586 = vmatprep.mubr.msk.bf16.mxu1 %vm5806_vm5, %v17090_v50 }
 0x556   :  { %7916 = vmatmul.mubr.bf16.gmra.mrb[156].mxu0 %v20418_v23 }
 0x557   :  { %11696 = vmatprep.mubr.msk.bf16.mxu0 %vm5806_vm5, %v20420_v47 }
 0x559   :  { %6808 = vmatmul.mubr.bf16.gmra.mrb[224].mxu1 %v17152_v55 }
 0x55a   :  { %11587 = vmatprep.mubr.msk.bf16.mxu1 %vm5806_vm5, %v17164_v36 }
 0x55e   :  { %7924 = vmatmul.mubr.bf16.gmra.mrb[160].mxu0 %v20422_v49 }
 0x55f   :  { %11697 = vmatprep.mubr.msk.bf16.mxu0 %vm5806_vm5, %v20423_v12 }
 0x561   :  { %6816 = vmatmul.mubr.bf16.gmra.mrb[228].mxu1 %v17252_v45 }
 0x562   :  { %11588 = vmatprep.mubr.msk.bf16.mxu1 %vm5806_vm5, %v17273_v21 }
 0x564   :  { %v17678_v32 = vpop.f32.mrb[124].mxu1 }
 0x565   :  { %20441 = vst [vmem:[#allocation44_spill] sm:$0xff] %v17678_v32  ;;  %v6518_v11 = vpop.f32.mrb[125].mxu1 }
 0x566   :  { %v17680_v63 = vpop.f32.mrb[126].mxu1  ;;  %7932 = vmatmul.mubr.bf16.gmra.mrb[164].mxu0 %v20424_v2 }
 0x567   :  { %20442 = vst [vmem:[#allocation69_spill] sm:$0xff] %v17680_v63  ;;  %v6521_v46 = vpop.f32.mrb[127].mxu1  ;;  %11698 = vmatprep.mubr.msk.bf16.mxu0 %vm5806_vm5, %v20425_v7 }
 0x569   :  { %6824 = vmatmul.mubr.bf16.gmra.mrb[232].mxu1 %v17302_v42  ;;  %v17686_v37 = vpop.f32.mrb[60].mxu0 }
 0x56a   :  { %20443 = vst [vmem:[#allocation47_spill] sm:$0xff] %v17686_v37  ;;  %11589 = vmatprep.mubr.msk.bf16.mxu1 %vm5806_vm5, %v17310_v34  ;;  %v7115_v15 = vpop.f32.mrb[61].mxu0 }
 0x56b   :  { %v17690_v33 = vpop.f32.mrb[62].mxu0 }
 0x56c   :  { %20444 = vst [vmem:[#allocation141_spill] sm:$0xff] %v17690_v33  ;;  %v6617_v32 = vpop.f32.mrb[128].mxu1  ;;  %v7118_v11 = vpop.f32.mrb[63].mxu0  ;;  %v20449_v33 = vld [vmem:[#allocation72_spill] sm:$0xff] }
 0x56d   :  { %v17693_v63 = vadd.f32 %v6617_v32, %v20445_v0  ;;  %v6619_v38 = vpop.f32.mrb[129].mxu1 }
 0x56e   :  { %v6620_v46 = vpop.f32.mrb[130].mxu1  ;;  %7940 = vmatmul.mubr.bf16.gmra.mrb[168].mxu0 %v20428_v24 }
 0x56f   :  { %v17697_v27 = vadd.f32 %v6620_v46, %v20446_v41  ;;  %v6622_v9 = vpop.f32.mrb[131].mxu1  ;;  %11699 = vmatprep.mubr.msk.bf16.mxu0 %vm5806_vm5, %v20429_v14  ;;  %v20450_v46 = vld [vmem:[#allocation36_spill] sm:$0xff] }
 0x571   :  { %6832 = vmatmul.mubr.bf16.gmra.mrb[236].mxu1 %v17345_v5  ;;  %v17702_v15 = vpop.f32.mrb[64].mxu0 }
 0x572   :  { %20447 = vst [vmem:[#allocation58_spill] sm:$0xff] %v17702_v15  ;;  %11590 = vmatprep.mubr.msk.bf16.mxu1 %vm5806_vm5, %v17349_v61  ;;  %v7123_v0 = vpop.f32.mrb[65].mxu0  ;;  %v20451_v15 = vld [vmem:[#allocation60_spill] sm:$0xff] }
 0x573   :  { %v17706_v32 = vpop.f32.mrb[66].mxu0 }
 0x574   :  { %20448 = vst [vmem:[#allocation62_spill] sm:$0xff] %v17706_v32  ;;  %v6625_v38 = vpop.f32.mrb[132].mxu1  ;;  %v7126_v11 = vpop.f32.mrb[67].mxu0  ;;  %v20454_v32 = vld [vmem:[#allocation51_spill] sm:$0xff] }
 0x575   :  { %v17709_v37 = vadd.f32 %v6625_v38, %v20449_v33  ;;  %v6627_v41 = vpop.f32.mrb[133].mxu1 }
 0x576   :  { %v6628_v9 = vpop.f32.mrb[134].mxu1  ;;  %7948 = vmatmul.mubr.bf16.gmra.mrb[172].mxu0 %v20431_v52 }
 0x577   :  { %v17713_v44 = vadd.f32 %v6628_v9, %v20450_v46  ;;  %v6630_v31 = vpop.f32.mrb[135].mxu1  ;;  %11700 = vmatprep.mubr.msk.bf16.mxu0 %vm5806_vm5, %v20451_v15  ;;  %v20455_v46 = vld [vmem:[#allocation86_spill] sm:$0xff]  ;;  %v20456_v15 = vld [vmem:[#allocation52_spill] sm:$0xff] }
 0x579   :  { %6840 = vmatmul.mubr.bf16.gmra.mrb[240].mxu1 %v17370_v51  ;;  %v17718_v0 = vpop.f32.mrb[68].mxu0 }
 0x57a   :  { %20452 = vst [vmem:[#allocation72_spill] sm:$0xff] %v17718_v0  ;;  %11591 = vmatprep.mubr.msk.bf16.mxu1 %vm5806_vm5, %v17376_v16  ;;  %v7131_v33 = vpop.f32.mrb[69].mxu0  ;;  %v20458_v0 = vld [vmem:[#allocation43_spill] sm:$0xff] }
 0x57b   :  { %v17722_v38 = vpop.f32.mrb[70].mxu0 }
 0x57c   :  { %20453 = vst [vmem:[#allocation36_spill] sm:$0xff] %v17722_v38  ;;  %v6633_v11 = vpop.f32.mrb[136].mxu1  ;;  %v7134_v41 = vpop.f32.mrb[71].mxu0  ;;  %v20461_v38 = vld [vmem:[#allocation80_spill] sm:$0xff] }
 0x57d   :  { %v17725_v48 = vadd.f32 %v6633_v11, %v20454_v32  ;;  %v6635_v9 = vpop.f32.mrb[137].mxu1 }
 0x57e   :  { %v6636_v31 = vpop.f32.mrb[138].mxu1  ;;  %7956 = vmatmul.mubr.bf16.gmra.mrb[176].mxu0 %v20455_v46 }
 0x57f   :  { %v17729_v52 = vadd.f32 %v6636_v31, %v20456_v15  ;;  %v6638_v14 = vpop.f32.mrb[139].mxu1  ;;  %11701 = vmatprep.mubr.msk.bf16.mxu0 %vm5806_vm5, %v20458_v0  ;;  %v20463_v31 = vld [vmem:[#allocation81_spill] sm:$0xff] }
 0x581   :  { %20457 = vst [vmem:[#allocation51_spill] sm:$0xff] %v17729_v52  ;;  %6848 = vmatmul.mubr.bf16.gmra.mrb[244].mxu1 %v17387_v4  ;;  %v17734_v33 = vpop.f32.mrb[72].mxu0 }
 0x582   :  { %20459 = vst [vmem:[#allocation52_spill] sm:$0xff] %v17734_v33  ;;  %11592 = vmatprep.mubr.msk.bf16.mxu1 %vm5806_vm5, %v17391_v60  ;;  %v7139_v32 = vpop.f32.mrb[73].mxu0  ;;  %v20468_v33 = vld [vmem:[#allocation84_spill] sm:$0xff] }
 0x583   :  { %v17738_v11 = vpop.f32.mrb[74].mxu0 }
 0x584   :  { %20460 = vst [vmem:[#allocation142_spill] sm:$0xff] %v17738_v11  ;;  %v6641_v41 = vpop.f32.mrb[140].mxu1  ;;  %v7142_v9 = vpop.f32.mrb[75].mxu0  ;;  %v20466_v11 = vld [vmem:[#allocation130_spill] sm:$0xff] }
 0x585   :  { %v17741_v46 = vadd.f32 %v6641_v41, %v20461_v38  ;;  %v6643_v15 = vpop.f32.mrb[141].mxu1 }
 0x586   :  { %v6644_v14 = vpop.f32.mrb[142].mxu1  ;;  %7964 = vmatmul.mubr.bf16.gmra.mrb[180].mxu0 %v17454_v6 }
 0x587   :  { %20462 = vst [vmem:[#allocation80_spill] sm:$0xff] %v17741_v46  ;;  %v17745_v0 = vadd.f32 %v6644_v14, %v20463_v31  ;;  %v6646_v24 = vpop.f32.mrb[143].mxu1  ;;  %11702 = vmatprep.mubr.msk.bf16.mxu0 %vm5806_vm5, %v20382_v13  ;;  %v20470_v31 = vld [vmem:[#allocation85_spill] sm:$0xff] }
 0x589   :  { %20464 = vst [vmem:[#allocation81_spill] sm:$0xff] %v17745_v0  ;;  %6856 = vmatmul.mubr.bf16.gmra.mrb[248].mxu1 %v17406_v26  ;;  %v17750_v32 = vpop.f32.mrb[76].mxu0 }
 0x58a   :  { %20465 = vst [vmem:[#allocation143_spill] sm:$0xff] %v17750_v32  ;;  %11593 = vmatprep.mubr.msk.bf16.mxu1 %vm5806_vm5, %v20466_v11  ;;  %v7147_v38 = vpop.f32.mrb[77].mxu0  ;;  %v20472_v32 = vld [vmem:[#allocation133_spill] sm:$0xff] }
 0x58b   :  { %v17754_v41 = vpop.f32.mrb[78].mxu0 }
 0x58c   :  { %20467 = vst [vmem:[#allocation144_spill] sm:$0xff] %v17754_v41  ;;  %v6649_v9 = vpop.f32.mrb[144].mxu1  ;;  %v7150_v15 = vpop.f32.mrb[79].mxu0 }
 0x58d   :  { %v17757_v6 = vadd.f32 %v6649_v9, %v20468_v33  ;;  %v6651_v14 = vpop.f32.mrb[145].mxu1  ;;  %v20474_v15 = vld [vmem:[#allocation29_spill] sm:$0xff] }
 0x58e   :  { %v6652_v24 = vpop.f32.mrb[146].mxu1  ;;  %7972 = vmatmul.mubr.bf16.gmra.mrb[184].mxu0 %v20387_v8 }
 0x58f   :  { %20469 = vst [vmem:[#allocation84_spill] sm:$0xff] %v17757_v6  ;;  %v17761_v0 = vadd.f32 %v6652_v24, %v20470_v31  ;;  %v6654_v46 = vpop.f32.mrb[147].mxu1  ;;  %11703 = vmatprep.mubr.msk.bf16.mxu0 %vm5806_vm5, %v20382_v13  ;;  %v20476_v6 = vld [vmem:[#allocation65_spill] sm:$0xff] }
 0x590   :  { %v20477_v31 = vld [vmem:[#allocation89_spill] sm:$0xff] }
 0x591   :  { %20471 = vst [vmem:[#allocation85_spill] sm:$0xff] %v17761_v0  ;;  %6864 = vmatmul.mubr.bf16.gmra.mrb[252].mxu1 %v20472_v32  ;;  %v17766_v38 = vpop.f32.mrb[80].mxu0 }
 0x592   :  { %20473 = vst [vmem:[#allocation145_spill] sm:$0xff] %v17766_v38  ;;  %v7155_v41 = vpop.f32.mrb[81].mxu0  ;;  %11646 = vmatprep.mubr.msk.bf16.mxu1 %vm5806_vm5, %v20474_v15  ;;  %v20479_v15 = vld [vmem:[#allocation32_spill] sm:$0xff] }
 0x593   :  { %v17770_v33 = vpop.f32.mrb[82].mxu0 }
 0x594   :  { %20475 = vst [vmem:[#allocation29_spill] sm:$0xff] %v17770_v33  ;;  %v6657_v9 = vpop.f32.mrb[148].mxu1  ;;  %v7158_v14 = vpop.f32.mrb[83].mxu0 }
 0x595   :  { %v17773_v52 = vadd.f32 %v6657_v9, %v20476_v6  ;;  %v6659_v24 = vpop.f32.mrb[149].mxu1 }
 0x596   :  { %v6660_v46 = vpop.f32.mrb[150].mxu1  ;;  %7980 = vmatmul.mubr.bf16.gmra.mrb[188].mxu0 %v20387_v8  ;;  %v20481_v24 = vld [vmem:[#allocation90_spill] sm:$0xff] }
 0x597   :  { %v17777_v13 = vadd.f32 %v6660_v46, %v20477_v31  ;;  %v6662_v0 = vpop.f32.mrb[151].mxu1  ;;  %11704 = vmatprep.mubr.msk.bf16.mxu0 %vm5806_vm5, %v16542_v53  ;;  %v20482_v31 = vld [vmem:[#allocation93_spill] sm:$0xff] }
 0x599   :  { %v17781_v41 = vpop.f32.mrb[84].mxu0  ;;  %7426 = vmatmul.mubr.bf16.vlgmr.msra.gmra.mrb[0].mxu1 %v20479_v15 }
 0x59a   :  { %20478 = vst [vmem:[#allocation65_spill] sm:$0xff] %v17781_v41  ;;  %v7163_v33 = vpop.f32.mrb[85].mxu0  ;;  %11647 = vmatprep.mubr.msk.bf16.mxu1 %vm5806_vm5, %v20397_v29 }
 0x59b   :  { %v17786_v6 = vpop.f32.mrb[86].mxu0 }
 0x59c   :  { %20480 = vst [vmem:[#allocation89_spill] sm:$0xff] %v17786_v6  ;;  %v6665_v9 = vpop.f32.mrb[152].mxu1  ;;  %v7166_v14 = vpop.f32.mrb[87].mxu0 }
 0x59d   :  { %v17789_v38 = vadd.f32 %v6665_v9, %v20481_v24  ;;  %v6667_v46 = vpop.f32.mrb[153].mxu1  ;;  %v20485_v24 = vld [vmem:[#allocation97_spill] sm:$0xff] }
 0x59e   :  { %v6668_v0 = vpop.f32.mrb[154].mxu1  ;;  %7988 = vmatmul.mubr.bf16.gmra.mrb[192].mxu0 %v16603_v1 }
 0x59f   :  { %v17793_v53 = vadd.f32 %v6668_v0, %v20482_v31  ;;  %v6670_v41 = vpop.f32.mrb[155].mxu1  ;;  %11705 = vmatprep.mubr.msk.bf16.mxu0 %vm5806_vm5, %v16690_v19  ;;  %v20486_v31 = vld [vmem:[#allocation100_spill] sm:$0xff] }
 0x5a1   :  { %v17797_v33 = vpop.f32.mrb[88].mxu0  ;;  %7434 = vmatmul.mubr.bf16.gmra.mrb[4].mxu1 %v20398_v58 }
 0x5a2   :  { %20483 = vst [vmem:[#allocation32_spill] sm:$0xff] %v17797_v33  ;;  %v7171_v29 = vpop.f32.mrb[89].mxu0  ;;  %11648 = vmatprep.mubr.msk.bf16.mxu1 %vm5806_vm5, %v20399_v40 }
 0x5a3   :  { %v17802_v15 = vpop.f32.mrb[90].mxu0 }
 0x5a4   :  { %20484 = vst [vmem:[#allocation90_spill] sm:$0xff] %v17802_v15  ;;  %v6673_v9 = vpop.f32.mrb[156].mxu1  ;;  %v7174_v14 = vpop.f32.mrb[91].mxu0 }
 0x5a5   :  { %v17805_v46 = vadd.f32 %v6673_v9, %v20485_v24  ;;  %v6675_v0 = vpop.f32.mrb[157].mxu1  ;;  %v20489_v24 = vld [vmem:[#allocation106_spill] sm:$0xff] }
 0x5a6   :  { %v6676_v41 = vpop.f32.mrb[158].mxu1  ;;  %7996 = vmatmul.mubr.bf16.gmra.mrb[196].mxu0 %v16743_v10 }
 0x5a7   :  { %v17809_v6 = vadd.f32 %v6676_v41, %v20486_v31  ;;  %v6678_v33 = vpop.f32.mrb[159].mxu1  ;;  %11706 = vmatprep.mubr.msk.bf16.mxu0 %vm5806_vm5, %v16823_v20  ;;  %v20490_v31 = vld [vmem:[#allocation108_spill] sm:$0xff] }
 0x5a9   :  { %v17813_v58 = vpop.f32.mrb[92].mxu0  ;;  %7442 = vmatmul.mubr.bf16.gmra.mrb[8].mxu1 %v20402_v3 }
 0x5aa   :  { %20487 = vst [vmem:[#allocation93_spill] sm:$0xff] %v17813_v58  ;;  %v7179_v40 = vpop.f32.mrb[93].mxu0  ;;  %11649 = vmatprep.mubr.msk.bf16.mxu1 %vm5806_vm5, %v20403_v54 }
 0x5ab   :  { %v17818_v29 = vpop.f32.mrb[94].mxu0 }
 0x5ac   :  { %20488 = vst [vmem:[#allocation97_spill] sm:$0xff] %v17818_v29  ;;  %v6681_v9 = vpop.f32.mrb[160].mxu1  ;;  %v7182_v14 = vpop.f32.mrb[95].mxu0 }
 0x5ad   :  { %v17821_v0 = vadd.f32 %v6681_v9, %v20489_v24  ;;  %v6683_v41 = vpop.f32.mrb[161].mxu1  ;;  %v20493_v24 = vld [vmem:[#allocation111_spill] sm:$0xff] }
 0x5ae   :  { %v6684_v33 = vpop.f32.mrb[162].mxu1  ;;  %8004 = vmatmul.mubr.bf16.gmra.mrb[200].mxu0 %v16898_v43 }
 0x5af   :  { %v17825_v15 = vadd.f32 %v6684_v33, %v20490_v31  ;;  %v6686_v58 = vpop.f32.mrb[163].mxu1  ;;  %11707 = vmatprep.mubr.msk.bf16.mxu0 %vm5806_vm5, %v16961_v56  ;;  %v20494_v31 = vld [vmem:[#allocation112_spill] sm:$0xff] }
 0x5b1   :  { %v17829_v3 = vpop.f32.mrb[96].mxu0  ;;  %7450 = vmatmul.mubr.bf16.gmra.mrb[12].mxu1 %v20404_v30 }
 0x5b2   :  { %20491 = vst [vmem:[#allocation100_spill] sm:$0xff] %v17829_v3  ;;  %v7187_v54 = vpop.f32.mrb[97].mxu0  ;;  %11650 = vmatprep.mubr.msk.bf16.mxu1 %vm5806_vm5, %v20405_v62 }
 0x5b3   :  { %v17834_v40 = vpop.f32.mrb[98].mxu0 }
 0x5b4   :  { %20492 = vst [vmem:[#allocation106_spill] sm:$0xff] %v17834_v40  ;;  %v6689_v9 = vpop.f32.mrb[164].mxu1  ;;  %v7190_v14 = vpop.f32.mrb[99].mxu0 }
 0x5b5   :  { %v17837_v41 = vadd.f32 %v6689_v9, %v20493_v24  ;;  %v6691_v33 = vpop.f32.mrb[165].mxu1  ;;  %v20497_v24 = vld [vmem:[#allocation114_spill] sm:$0xff] }
 0x5b6   :  { %v6692_v58 = vpop.f32.mrb[166].mxu1  ;;  %8012 = vmatmul.mubr.bf16.gmra.mrb[204].mxu0 %v17027_v18 }
 0x5b7   :  { %v17841_v29 = vadd.f32 %v6692_v58, %v20494_v31  ;;  %v6694_v3 = vpop.f32.mrb[167].mxu1  ;;  %11708 = vmatprep.mubr.msk.bf16.mxu0 %vm5806_vm5, %v17090_v50  ;;  %v20498_v31 = vld [vmem:[#allocation116_spill] sm:$0xff] }
 0x5b9   :  { %v17845_v30 = vpop.f32.mrb[100].mxu0  ;;  %7458 = vmatmul.mubr.bf16.gmra.mrb[16].mxu1 %v20407_v57 }
 0x5ba   :  { %20495 = vst [vmem:[#allocation108_spill] sm:$0xff] %v17845_v30  ;;  %v7195_v62 = vpop.f32.mrb[101].mxu0  ;;  %11651 = vmatprep.mubr.msk.bf16.mxu1 %vm5806_vm5, %v20409_v35 }
 0x5bb   :  { %v17850_v54 = vpop.f32.mrb[102].mxu0 }
 0x5bc   :  { %20496 = vst [vmem:[#allocation111_spill] sm:$0xff] %v17850_v54  ;;  %v6697_v9 = vpop.f32.mrb[168].mxu1  ;;  %v7198_v14 = vpop.f32.mrb[103].mxu0 }
 0x5bd   :  { %v17853_v33 = vadd.f32 %v6697_v9, %v20497_v24  ;;  %v6699_v58 = vpop.f32.mrb[169].mxu1  ;;  %v20501_v24 = vld [vmem:[#allocation92_spill] sm:$0xff] }
 0x5be   :  { %v6700_v3 = vpop.f32.mrb[170].mxu1  ;;  %8020 = vmatmul.mubr.bf16.gmra.mrb[208].mxu0 %v17152_v55 }
 0x5bf   :  { %v17857_v40 = vadd.f32 %v6700_v3, %v20498_v31  ;;  %v6702_v30 = vpop.f32.mrb[171].mxu1  ;;  %11709 = vmatprep.mubr.msk.bf16.mxu0 %vm5806_vm5, %v17164_v36  ;;  %v20502_v31 = vld [vmem:[#allocation61_spill] sm:$0xff] }
 0x5c1   :  { %v17861_v57 = vpop.f32.mrb[104].mxu0  ;;  %7466 = vmatmul.mubr.bf16.gmra.mrb[20].mxu1 %v20410_v28 }
 0x5c2   :  { %20499 = vst [vmem:[#allocation112_spill] sm:$0xff] %v17861_v57  ;;  %v7203_v35 = vpop.f32.mrb[105].mxu0  ;;  %11652 = vmatprep.mubr.msk.bf16.mxu1 %vm5806_vm5, %v20411_v59 }
 0x5c3   :  { %v17866_v62 = vpop.f32.mrb[106].mxu0 }
 0x5c4   :  { %20500 = vst [vmem:[#allocation114_spill] sm:$0xff] %v17866_v62  ;;  %v6705_v9 = vpop.f32.mrb[172].mxu1  ;;  %v7206_v14 = vpop.f32.mrb[107].mxu0 }
 0x5c5   :  { %v17869_v58 = vadd.f32 %v6705_v9, %v20501_v24  ;;  %v6707_v3 = vpop.f32.mrb[173].mxu1  ;;  %v20505_v24 = vld [vmem:[#allocation68_spill] sm:$0xff] }
 0x5c6   :  { %v6708_v30 = vpop.f32.mrb[174].mxu1  ;;  %8028 = vmatmul.mubr.bf16.gmra.mrb[212].mxu0 %v17252_v45 }
 0x5c7   :  { %v17873_v54 = vadd.f32 %v6708_v30, %v20502_v31  ;;  %v6710_v57 = vpop.f32.mrb[175].mxu1  ;;  %11710 = vmatprep.mubr.msk.bf16.mxu0 %vm5806_vm5, %v17273_v21  ;;  %v20506_v31 = vld [vmem:[#allocation95_spill] sm:$0xff] }
 0x5c9   :  { %v17877_v28 = vpop.f32.mrb[108].mxu0  ;;  %7474 = vmatmul.mubr.bf16.gmra.mrb[24].mxu1 %v20412_v39 }
 0x5ca   :  { %20503 = vst [vmem:[#allocation116_spill] sm:$0xff] %v17877_v28  ;;  %v7211_v59 = vpop.f32.mrb[109].mxu0  ;;  %11653 = vmatprep.mubr.msk.bf16.mxu1 %vm5806_vm5, %v20413_v17 }
 0x5cb   :  { %v17882_v35 = vpop.f32.mrb[110].mxu0 }
 0x5cc   :  { %20504 = vst [vmem:[#allocation92_spill] sm:$0xff] %v17882_v35  ;;  %v6713_v9 = vpop.f32.mrb[176].mxu1  ;;  %v7214_v14 = vpop.f32.mrb[111].mxu0 }
 0x5cd   :  { %v17885_v3 = vadd.f32 %v6713_v9, %v20505_v24  ;;  %v6715_v30 = vpop.f32.mrb[177].mxu1  ;;  %v20509_v24 = vld [vmem:[#allocation70_spill] sm:$0xff] }
 0x5ce   :  { %v6716_v57 = vpop.f32.mrb[178].mxu1  ;;  %8036 = vmatmul.mubr.bf16.gmra.mrb[216].mxu0 %v17302_v42 }
 0x5cf   :  { %v17889_v62 = vadd.f32 %v6716_v57, %v20506_v31  ;;  %v6718_v28 = vpop.f32.mrb[179].mxu1  ;;  %11711 = vmatprep.mubr.msk.bf16.mxu0 %vm5806_vm5, %v17310_v34  ;;  %v20510_v31 = vld [vmem:[#allocation55_spill] sm:$0xff] }
 0x5d1   :  { %v17893_v39 = vpop.f32.mrb[112].mxu0  ;;  %7482 = vmatmul.mubr.bf16.gmra.mrb[28].mxu1 %v20416_v22 }
 0x5d2   :  { %20507 = vst [vmem:[#allocation61_spill] sm:$0xff] %v17893_v39  ;;  %v7219_v17 = vpop.f32.mrb[113].mxu0  ;;  %11654 = vmatprep.mubr.msk.bf16.mxu1 %vm5806_vm5, %v20417_v25 }
 0x5d3   :  { %v17898_v59 = vpop.f32.mrb[114].mxu0 }
 0x5d4   :  { %20508 = vst [vmem:[#allocation68_spill] sm:$0xff] %v17898_v59  ;;  %v6721_v9 = vpop.f32.mrb[180].mxu1  ;;  %v7222_v14 = vpop.f32.mrb[115].mxu0 }
 0x5d5   :  { %v17901_v30 = vadd.f32 %v6721_v9, %v20509_v24  ;;  %v6723_v57 = vpop.f32.mrb[181].mxu1  ;;  %v20513_v24 = vld [vmem:[#allocation66_spill] sm:$0xff] }
 0x5d6   :  { %v6724_v28 = vpop.f32.mrb[182].mxu1  ;;  %8044 = vmatmul.mubr.bf16.gmra.mrb[220].mxu0 %v17345_v5 }
 0x5d7   :  { %v17905_v35 = vadd.f32 %v6724_v28, %v20510_v31  ;;  %v6726_v39 = vpop.f32.mrb[183].mxu1  ;;  %11712 = vmatprep.mubr.msk.bf16.mxu0 %vm5806_vm5, %v17349_v61  ;;  %v20514_v31 = vld [vmem:[#allocation102_spill] sm:$0xff] }
 0x5d9   :  { %v17909_v22 = vpop.f32.mrb[116].mxu0  ;;  %7490 = vmatmul.mubr.bf16.gmra.mrb[32].mxu1 %v20418_v23  ;;  %v20515_v23 = vld [vmem:[#allocation98_spill] sm:$0xff] }
 0x5da   :  { %20511 = vst [vmem:[#allocation95_spill] sm:$0xff] %v17909_v22  ;;  %v7227_v25 = vpop.f32.mrb[117].mxu0  ;;  %11655 = vmatprep.mubr.msk.bf16.mxu1 %vm5806_vm5, %v20420_v47  ;;  %v17922_v22 = vadd.f32 %v20514_v31, %v17693_v63  ;;  %v20516_v47 = vld [vmem:[#allocation104_spill] sm:$0xff] }
 0x5db   :  { %v17914_v17 = vpop.f32.mrb[118].mxu0 }
 0x5dc   :  { %20512 = vst [vmem:[#allocation70_spill] sm:$0xff] %v17914_v17  ;;  %v6729_v9 = vpop.f32.mrb[184].mxu1  ;;  %v7230_v14 = vpop.f32.mrb[119].mxu0 }
 0x5dd   :  { %v17917_v57 = vadd.f32 %v6729_v9, %v20513_v24  ;;  %v6731_v28 = vpop.f32.mrb[185].mxu1  ;;  %v17931_v14 = vadd.f32 %v20516_v47, %v17697_v27  ;;  %v20521_v27 = vld [vmem:[#allocation105_spill] sm:$0xff] }
 0x5de   :  { %v6732_v39 = vpop.f32.mrb[186].mxu1  ;;  %8052 = vmatmul.mubr.bf16.gmra.mrb[224].mxu0 %v17370_v51  ;;  %v17946_v47 = vadd.f32 %v20521_v27, %v17709_v37 }
 0x5df   :  { %v17925_v25 = vadd.f32 %v6732_v39, %v20515_v23  ;;  %v6734_v59 = vpop.f32.mrb[187].mxu1  ;;  %11713 = vmatprep.mubr.msk.bf16.mxu0 %vm5806_vm5, %v17376_v16  ;;  %20517 = vst [vmem:[#allocation55_spill] sm:$0xff] %v17931_v14  ;;  %v20553_v14 = vld [vmem:[#allocation137_spill] sm:$0xff] }
 0x5e0   :  { %v20520_v59 = vld [vmem:[#allocation121_spill] sm:$0xff]  ;;  %20522 = vst [vmem:[#allocation98_spill] sm:$0xff] %v17946_v47 }
 0x5e1   :  { %v17933_v9 = vpop.f32.mrb[120].mxu0  ;;  %7498 = vmatmul.mubr.bf16.gmra.mrb[36].mxu1 %v20422_v49  ;;  %v20523_v49 = vld [vmem:[#allocation122_spill] sm:$0xff] }
 0x5e2   :  { %20518 = vst [vmem:[#allocation66_spill] sm:$0xff] %v17933_v9  ;;  %v7235_v24 = vpop.f32.mrb[121].mxu0  ;;  %11656 = vmatprep.mubr.msk.bf16.mxu1 %vm5806_vm5, %v20423_v12  ;;  %v20524_v12 = vld [vmem:[#allocation107_spill] sm:$0xff] }
 0x5e3   :  { %v17938_v63 = vpop.f32.mrb[122].mxu0 }
 0x5e4   :  { %20519 = vst [vmem:[#allocation102_spill] sm:$0xff] %v17938_v63  ;;  %v6737_v28 = vpop.f32.mrb[188].mxu1  ;;  %v7238_v39 = vpop.f32.mrb[123].mxu0 }
 0x5e5   :  { %v17941_v31 = vadd.f32 %v6737_v28, %v20520_v59  ;;  %v6739_v23 = vpop.f32.mrb[189].mxu1  ;;  %v17955_v39 = vadd.f32 %v20524_v12, %v17713_v44  ;;  %v20529_v44 = vld [vmem:[#allocation73_spill] sm:$0xff] }
 0x5e6   :  { %v6740_v17 = vpop.f32.mrb[190].mxu1  ;;  %8060 = vmatmul.mubr.bf16.gmra.mrb[228].mxu0 %v17387_v4  ;;  %v17970_v12 = vadd.f32 %v20529_v44, %v17725_v48 }
 0x5e7   :  { %v17949_v24 = vadd.f32 %v6740_v17, %v20523_v49  ;;  %v6742_v9 = vpop.f32.mrb[191].mxu1  ;;  %11714 = vmatprep.mubr.msk.bf16.mxu0 %vm5806_vm5, %v17391_v60  ;;  %20525 = vst [vmem:[#allocation104_spill] sm:$0xff] %v17955_v39 }
 0x5e8   :  { %v20528_v9 = vld [vmem:[#allocation125_spill] sm:$0xff]  ;;  %20530 = vst [vmem:[#allocation122_spill] sm:$0xff] %v17970_v12 }
 0x5e9   :  { %v17957_v28 = vpop.f32.mrb[124].mxu0  ;;  %7506 = vmatmul.mubr.bf16.gmra.mrb[40].mxu1 %v20424_v2  ;;  %v20531_v2 = vld [vmem:[#allocation126_spill] sm:$0xff] }
 0x5ea   :  { %20526 = vst [vmem:[#allocation121_spill] sm:$0xff] %v17957_v28  ;;  %v7243_v59 = vpop.f32.mrb[125].mxu0  ;;  %11657 = vmatprep.mubr.msk.bf16.mxu1 %vm5806_vm5, %v20425_v7  ;;  %v20532_v7 = vld [vmem:[#allocation51_spill] sm:$0xff] }
 0x5eb   :  { %v17962_v37 = vpop.f32.mrb[126].mxu0 }
 0x5ec   :  { %20527 = vst [vmem:[#allocation105_spill] sm:$0xff] %v17962_v37  ;;  %v6745_v17 = vpop.f32.mrb[192].mxu1  ;;  %v7246_v23 = vpop.f32.mrb[127].mxu0 }
 0x5ed   :  { %v17965_v27 = vadd.f32 %v6745_v17, %v20528_v9  ;;  %v6747_v49 = vpop.f32.mrb[193].mxu1  ;;  %v20533_v23 = vld [vmem:[#allocation109_spill] sm:$0xff]  ;;  %v20535_v17 = vld [vmem:[#allocation48_spill] sm:$0xff] }
 0x5ee   :  { %v6748_v63 = vpop.f32.mrb[194].mxu1  ;;  %8068 = vmatmul.mubr.bf16.gmra.mrb[232].mxu0 %v17406_v26  ;;  %v17979_v37 = vadd.f32 %v20533_v23, %v20532_v7  ;;  %v20537_v49 = vld [vmem:[#allocation75_spill] sm:$0xff]  ;;  %v20540_v7 = vld [vmem:[#allocation80_spill] sm:$0xff]  ;;  %v20541_v23 = vld [vmem:[#allocation74_spill] sm:$0xff] }
 0x5ef   :  { %v17973_v59 = vadd.f32 %v6748_v63, %v20531_v2  ;;  %v6750_v28 = vpop.f32.mrb[195].mxu1  ;;  %11715 = vmatprep.mubr.msk.bf16.mxu0 %vm5806_vm5, %v20466_v11  ;;  %v20545_v26 = vld [vmem:[#allocation81_spill] sm:$0xff] }
 0x5f0   :  { %20534 = vst [vmem:[#allocation107_spill] sm:$0xff] %v17979_v37  ;;  %v20539_v28 = vld [vmem:[#allocation127_spill] sm:$0xff]  ;;  %v20543_v37 = vld [vmem:[#allocation128_spill] sm:$0xff] }
 0x5f1   :  { %7514 = vmatmul.mubr.bf16.gmra.mrb[44].mxu1 %v20535_v17  ;;  %v17982_v9 = vpop.f32.mrb[128].mxu0  ;;  %v17994_v17 = vadd.f32 %v20541_v23, %v20540_v7 }
 0x5f2   :  { %20536 = vst [vmem:[#allocation125_spill] sm:$0xff] %v17982_v9  ;;  %11658 = vmatprep.mubr.msk.bf16.mxu1 %vm5806_vm5, %v20537_v49  ;;  %v7863_v48 = vpop.f32.mrb[129].mxu0 }
 0x5f3   :  { %v17986_v44 = vpop.f32.mrb[130].mxu0  ;;  %20542 = vst [vmem:[#allocation126_spill] sm:$0xff] %v17994_v17  ;;  %v20544_v48 = vld [vmem:[#allocation134_spill] sm:$0xff] }
 0x5f4   :  { %20538 = vst [vmem:[#allocation73_spill] sm:$0xff] %v17986_v44  ;;  %v6753_v63 = vpop.f32.mrb[196].mxu1  ;;  %v7866_v2 = vpop.f32.mrb[131].mxu0 }
 0x5f5   :  { %v17989_v12 = vadd.f32 %v6753_v63, %v20539_v28  ;;  %v6755_v39 = vpop.f32.mrb[197].mxu1  ;;  %v20546_v2 = vld [vmem:[#allocation110_spill] sm:$0xff]  ;;  %v20548_v63 = vld [vmem:[#allocation79_spill] sm:$0xff]  ;;  %v20550_v28 = vld [vmem:[#allocation60_spill] sm:$0xff] }
 0x5f6   :  { %v6756_v47 = vpop.f32.mrb[198].mxu1  ;;  %8076 = vmatmul.mubr.bf16.gmra.mrb[236].mxu0 %v20472_v32  ;;  %v18003_v44 = vadd.f32 %v20546_v2, %v20545_v26  ;;  %v20554_v26 = vld [vmem:[#allocation84_spill] sm:$0xff]  ;;  %v20555_v2 = vld [vmem:[#allocation113_spill] sm:$0xff] }
 0x5f7   :  { %v17997_v11 = vadd.f32 %v6756_v47, %v20543_v37  ;;  %v6758_v49 = vpop.f32.mrb[199].mxu1  ;;  %11716 = vmatprep.mubr.msk.bf16.mxu0 %vm5806_vm5, %v20544_v48 }
 0x5f8   :  { %20547 = vst [vmem:[#allocation51_spill] sm:$0xff] %v18003_v44  ;;  %v20552_v49 = vld [vmem:[#allocation131_spill] sm:$0xff]  ;;  %v20557_v44 = vld [vmem:[#allocation132_spill] sm:$0xff] }
 0x5f9   :  { %7522 = vmatmul.mubr.bf16.gmra.mrb[48].mxu1 %v20548_v63  ;;  %v18006_v39 = vpop.f32.mrb[132].mxu0  ;;  %v18018_v63 = vadd.f32 %v20555_v2, %v20554_v26 }
 0x5fa   :  { %20549 = vst [vmem:[#allocation109_spill] sm:$0xff] %v18006_v39  ;;  %11659 = vmatprep.mubr.msk.bf16.mxu1 %vm5806_vm5, %v20550_v28  ;;  %v7871_v7 = vpop.f32.mrb[133].mxu0 }
 0x5fb   :  { %v18010_v23 = vpop.f32.mrb[134].mxu0  ;;  %20556 = vst [vmem:[#allocation75_spill] sm:$0xff] %v18018_v63  ;;  %v20559_v7 = vld [vmem:[#allocation49_spill] sm:$0xff] }
 0x5fc   :  { %20551 = vst [vmem:[#allocation48_spill] sm:$0xff] %v18010_v23  ;;  %v6761_v47 = vpop.f32.mrb[200].mxu1  ;;  %v7874_v37 = vpop.f32.mrb[135].mxu0  ;;  %v20560_v23 = vld [vmem:[#allocation85_spill] sm:$0xff] }
 0x5fd   :  { %v18013_v17 = vadd.f32 %v6761_v47, %v20552_v49  ;;  %v6763_v48 = vpop.f32.mrb[201].mxu1  ;;  %v20561_v37 = vld [vmem:[#allocation77_spill] sm:$0xff]  ;;  %v20563_v47 = vld [vmem:[#allocation86_spill] sm:$0xff]  ;;  %v20564_v49 = vld [vmem:[#allocation43_spill] sm:$0xff] }
 0x5fe   :  { %v6764_v32 = vpop.f32.mrb[202].mxu1  ;;  %8084 = vmatmul.mubr.bf16.gmra.mrb[240].mxu0 %v20553_v14  ;;  %v18027_v9 = vadd.f32 %v20561_v37, %v20560_v23  ;;  %v20568_v23 = vld [vmem:[#allocation78_spill] sm:$0xff] }
 0x5ff   :  { %v18021_v39 = vadd.f32 %v6764_v32, %v20557_v44  ;;  %v6766_v28 = vpop.f32.mrb[203].mxu1  ;;  %11717 = vmatprep.mubr.msk.bf16.mxu0 %vm5806_vm5, %v20559_v7  ;;  %v18042_v37 = vadd.f32 %v20568_v23, %v17773_v52 }
 0x600   :  { %20562 = vst [vmem:[#allocation80_spill] sm:$0xff] %v18027_v9  ;;  %v20566_v28 = vld [vmem:[#allocation135_spill] sm:$0xff] }
 0x601   :  { %20558 = vst [vmem:[#allocation127_spill] sm:$0xff] %v18021_v39  ;;  %7530 = vmatmul.mubr.bf16.gmra.mrb[52].mxu1 %v20563_v47  ;;  %v18030_v48 = vpop.f32.mrb[136].mxu0  ;;  %v20567_v39 = vld [vmem:[#allocation50_spill] sm:$0xff]  ;;  %20569 = vst [vmem:[#allocation128_spill] sm:$0xff] %v18042_v37  ;;  %v20570_v47 = vld [vmem:[#allocation136_spill] sm:$0xff] }
 0x602   :  { %11660 = vmatprep.mubr.msk.bf16.mxu1 %vm5806_vm5, %v20564_v49  ;;  %v7879_v26 = vpop.f32.mrb[137].mxu0 }
 0x603   :  { %v18034_v2 = vpop.f32.mrb[138].mxu0  ;;  %v20571_v26 = vld [vmem:[#allocation25_spill] sm:$0xff] }
 0x604   :  { %20565 = vst [vmem:[#allocation74_spill] sm:$0xff] %v18034_v2  ;;  %v6769_v32 = vpop.f32.mrb[204].mxu1  ;;  %v7882_v44 = vpop.f32.mrb[139].mxu0 }
 0x605   :  { %v18037_v63 = vadd.f32 %v6769_v32, %v20566_v28  ;;  %v6771_v7 = vpop.f32.mrb[205].mxu1  ;;  %v20572_v44 = vld [vmem:[#allocation115_spill] sm:$0xff] }
 0x606   :  { %v6772_v14 = vpop.f32.mrb[206].mxu1  ;;  %8092 = vmatmul.mubr.bf16.gmra.mrb[244].mxu0 %v20567_v39  ;;  %v18051_v2 = vadd.f32 %v20572_v44, %v17777_v13  ;;  %v20574_v32 = vld [vmem:[#allocation139_spill] sm:$0xff]  ;;  %v20577_v13 = vld [vmem:[#allocation117_spill] sm:$0xff] }
 0x607   :  { %v18045_v9 = vadd.f32 %v6772_v14, %v20570_v47  ;;  %v6774_v49 = vpop.f32.mrb[207].mxu1  ;;  %11718 = vmatprep.mubr.msk.bf16.mxu0 %vm5806_vm5, %v20571_v26  ;;  %v20576_v47 = vld [vmem:[#allocation138_spill] sm:$0xff]  ;;  %v18066_v44 = vadd.f32 %v20577_v13, %v17789_v38 }
 0x608   :  { %20573 = vst [vmem:[#allocation81_spill] sm:$0xff] %v18051_v2 }
 0x609   :  { %7538 = vmatmul.mubr.bf16.gmra.mrb[56].mxu1 %v20574_v32  ;;  %v18054_v7 = vpop.f32.mrb[140].mxu0  ;;  %20578 = vst [vmem:[#allocation79_spill] sm:$0xff] %v18066_v44  ;;  %v20579_v32 = vld [vmem:[#allocation140_spill] sm:$0xff] }
 0x60a   :  { %v7887_v28 = vpop.f32.mrb[141].mxu0  ;;  %11661 = vmatprep.mubr.msk.bf16.mxu1 %vm5806_vm5, %v20571_v26 }
 0x60b   :  { %v18058_v52 = vpop.f32.mrb[142].mxu0 }
 0x60c   :  { %20575 = vst [vmem:[#allocation110_spill] sm:$0xff] %v18058_v52  ;;  %v6777_v14 = vpop.f32.mrb[208].mxu1  ;;  %v7890_v23 = vpop.f32.mrb[143].mxu0 }
 0x60d   :  { %v18061_v49 = vadd.f32 %v6777_v14, %v20576_v47  ;;  %v6779_v37 = vpop.f32.mrb[209].mxu1  ;;  %v20580_v23 = vld [vmem:[#allocation53_spill] sm:$0xff]  ;;  %v20583_v14 = vld [vmem:[#allocation82_spill] sm:$0xff] }
 0x60e   :  { %v6780_v39 = vpop.f32.mrb[210].mxu1  ;;  %8100 = vmatmul.mubr.bf16.gmra.mrb[248].mxu0 %v20387_v8  ;;  %v18075_v52 = vadd.f32 %v20580_v23, %v17793_v53  ;;  %v20586_v53 = vld [vmem:[#allocation54_spill] sm:$0xff] }
 0x60f   :  { %v18069_v28 = vadd.f32 %v6780_v39, %v20579_v32  ;;  %v6782_v2 = vpop.f32.mrb[211].mxu1  ;;  %11719 = vmatprep.mubr.msk.bf16.mxu0 %vm5806_vm5, %v20571_v26  ;;  %v18090_v23 = vadd.f32 %v20586_v53, %v17805_v46 }
 0x610   :  { %20581 = vst [vmem:[#allocation60_spill] sm:$0xff] %v18075_v52  ;;  %v20585_v2 = vld [vmem:[#allocation64_spill] sm:$0xff]  ;;  %v20588_v52 = vld [vmem:[#allocation94_spill] sm:$0xff] }
 0x611   :  { %7546 = vmatmul.mubr.bf16.gmra.mrb[60].mxu1 %v20387_v8  ;;  %v18078_v37 = vpop.f32.mrb[144].mxu0  ;;  %20587 = vst [vmem:[#allocation113_spill] sm:$0xff] %v18090_v23  ;;  %v20596_v23 = vld [vmem:[#allocation27_spill] sm:$0xff] }
 0x612   :  { %20582 = vst [vmem:[#allocation131_spill] sm:$0xff] %v18078_v37  ;;  %11662 = vmatprep.mubr.msk.bf16.mxu1 %vm5806_vm5, %v20583_v14  ;;  %v7895_v38 = vpop.f32.mrb[145].mxu0 }
 0x613   :  { %v18082_v47 = vpop.f32.mrb[146].mxu0  ;;  %v20590_v38 = vld [vmem:[#allocation91_spill] sm:$0xff] }
 0x614   :  { %20584 = vst [vmem:[#allocation84_spill] sm:$0xff] %v18082_v47  ;;  %v6785_v39 = vpop.f32.mrb[212].mxu1  ;;  %v7898_v13 = vpop.f32.mrb[147].mxu0  ;;  %v18097_v47 = vadd.f32 %v20590_v38, %v17809_v6 }
 0x615   :  { %v18085_v32 = vadd.f32 %v6785_v39, %v20585_v2  ;;  %v6787_v44 = vpop.f32.mrb[213].mxu1  ;;  %v20592_v13 = vld [vmem:[#allocation96_spill] sm:$0xff] }
 0x616   :  { %v6788_v26 = vpop.f32.mrb[214].mxu1  ;;  %8108 = vmatmul.mubr.bf16.gmra.mrb[252].mxu0 %v20387_v8  ;;  %20591 = vst [vmem:[#allocation85_spill] sm:$0xff] %v18097_v47  ;;  %v20594_v44 = vld [vmem:[#allocation103_spill] sm:$0xff] }
 0x617   :  { %v18093_v37 = vadd.f32 %v6788_v26, %v20588_v52  ;;  %v6790_v14 = vpop.f32.mrb[215].mxu1 }
 0x618   :  { %v20598_v14 = vld [vmem:[#allocation24_spill] sm:$0xff] }
 0x619   :  { %20589 = vst [vmem:[#allocation132_spill] sm:$0xff] %v18093_v37  ;;  %7554 = vmatmul.mubr.bf16.gmra.mrb[64].mxu1 %v20592_v13  ;;  %v18100_v39 = vpop.f32.mrb[148].mxu0  ;;  %v18111_v6 = vsel %vm4193_vm11, %v20598_v14, 0 }
 0x61a   :  { %20593 = vst [vmem:[#allocation77_spill] sm:$0xff] %v18100_v39  ;;  %11663 = vmatprep.mubr.msk.bf16.mxu1 %vm5806_vm5, %v20594_v44  ;;  %v7903_v2 = vpop.f32.mrb[149].mxu0  ;;  %20599 = vst [vmem:[#allocation135_spill] sm:$0xff] %v18111_v6  ;;  %v8892_v13 = vshrl.u32 %v18111_v6, 16  ;;  %v8894_v47 = vshll.u32 %v18111_v6, 16  ;;  %v20600_v44 = vld [vmem:[#allocation83_spill] sm:$0xff] }
 0x61b   :  { %v18104_v8 = vpop.f32.mrb[150].mxu0  ;;  %v18117_v2 = vadd.f32 %v20600_v44, %v17821_v0 }
 0x61c   :  { %20595 = vst [vmem:[#allocation86_spill] sm:$0xff] %v18104_v8  ;;  %v6793_v46 = vpop.f32.mrb[216].mxu1  ;;  %v7906_v53 = vpop.f32.mrb[151].mxu0  ;;  %v20602_v8 = vld [vmem:[#allocation28_spill] sm:$0xff] }
 0x61d   :  { %v18107_v26 = vadd.f32 %v6793_v46, %v20596_v23  ;;  %v6795_v52 = vpop.f32.mrb[217].mxu1  ;;  %20601 = vst [vmem:[#allocation78_spill] sm:$0xff] %v18117_v2  ;;  %v8896_v23 = vrot.slane %v8894_v47, 1  ;;  %v20603_v46 = vld [vmem:[#allocation118_spill] sm:$0xff] }
 0x61e   :  { %v6796_v38 = vpop.f32.mrb[218].mxu1  ;;  %v18124_v52 = vadd.f32 %v20603_v46, %v17825_v15  ;;  %v20609_v2 = vld [vmem:[#allocation34_spill] sm:$0xff] }
 0x61f   :  { %20597 = vst [vmem:[#allocation43_spill] sm:$0xff] %v18107_v26  ;;  %v18120_v39 = vadd.f32 %v6796_v38, %v20602_v8  ;;  %v6798_v53 = vpop.f32.mrb[219].mxu1  ;;  %v8897_v37 = vor.u32 %v8896_v23, %v8892_v13  ;;  %v20607_v38 = vld [vmem:[#allocation33_spill] sm:$0xff]  ;;  %v9096_v23 = vrot.slane %v8892_v13, 1 }
 0x620   :  { %20604 = vst [vmem:[#allocation136_spill] sm:$0xff] %v18124_v52 }
 0x621   :  { %7562 = vmatmul.mubr.bf16.gmra.mrb[68].mxu1 %v16603_v1  ;;  %v18127_v14 = vpop.f32.mrb[152].mxu0  ;;  %8994 = vrot.lane.b32.xlu1 %v8897_v37, %s12977_s8  ;;  %v20608_v1 = vld [vmem:[#allocation87_spill] sm:$0xff] }
 0x622   :  { %20605 = vst [vmem:[#allocation115_spill] sm:$0xff] %v18127_v14  ;;  %11664 = vmatprep.mubr.msk.bf16.mxu1 %vm5806_vm5, %v16690_v19  ;;  %v7911_v26 = vpop.f32.mrb[153].mxu0  ;;  %v18139_v52 = vadd.f32 %v20608_v1, %v17837_v41  ;;  %v20612_v1 = vld [vmem:[#allocation119_spill] sm:$0xff] }
 0x623   :  { %v18131_v0 = vpop.f32.mrb[154].mxu0  ;;  %v9045_v26 = vrot.slane %v18111_v6, 1 }
 0x624   :  { %20606 = vst [vmem:[#allocation139_spill] sm:$0xff] %v18131_v0  ;;  %v6801_v44 = vpop.f32.mrb[220].mxu1  ;;  %v7914_v8 = vpop.f32.mrb[155].mxu0  ;;  %v9097_v0 = vrot.slane %v8894_v47, 2  ;;  %v20611_v47 = vld [vmem:[#allocation37_spill] sm:$0xff] }
 0x625   :  { %v18135_v53 = vadd.f32 %v6801_v44, %v20607_v38  ;;  %v6803_v15 = vpop.f32.mrb[221].mxu1  ;;  %v20610_v8 = vld [vmem:[#allocation88_spill] sm:$0xff]  ;;  %9062 = vrot.lane.b32.xlu1 %v9045_v26, %s12967_s21  ;;  %v20613_v26 = vld [vmem:[#allocation38_spill] sm:$0xff] }
 0x626   :  { %v6804_v46 = vpop.f32.mrb[222].mxu1  ;;  %v18147_v37 = vadd.f32 %v20610_v8, %v17841_v29 }
 0x627   :  { %v18142_v14 = vadd.f32 %v6804_v46, %v20609_v2  ;;  %v6806_v19 = vpop.f32.mrb[223].mxu1  ;;  %v9098_v2 = vor.u32 %v9097_v0, %v9096_v23  ;;  %v20614_v0 = vld [vmem:[#allocation76_spill] sm:$0xff] }
 0x628   :  { %v18163_v19 = vadd.f32 %v20612_v1, %v17853_v33  ;;  %v18170_v23 = vadd.f32 %v20614_v0, %v17857_v40  ;;  %v20617_v40 = vld [vmem:[#allocation99_spill] sm:$0xff] }
 0x629   :  { %7570 = vmatmul.mubr.bf16.gmra.mrb[72].mxu1 %v16743_v10  ;;  %v18150_v44 = vpop.f32.mrb[156].mxu0  ;;  %9147 = vrot.lane.b32.xlu1 %v9098_v2, %s12978_s2 }
 0x62a   :  { %11665 = vmatprep.mubr.msk.bf16.mxu1 %vm5806_vm5, %v16823_v20  ;;  %v7919_v41 = vpop.f32.mrb[157].mxu0  ;;  %20615 = vst [vmem:[#allocation138_spill] sm:$0xff] %v18170_v23  ;;  %v12612_v23 = vld [vmem:[#allocation11 + $0x50] sm:$0xff]  }
 0x62b   :  { %v18155_v38 = vpop.f32.mrb[158].mxu0  ;;  %9495 = vmatpush1.bf16.msra.mxu1 %v12612_v23  ;;  %v20639_v23 = vld [vmem:[#allocation124_spill] sm:$0xff] }
 0x62c   :  { %v6809_v15 = vpop.f32.mrb[224].mxu1  ;;  %v7922_v13 = vpop.f32.mrb[159].mxu0 }
 0x62d   :  { %v18158_v46 = vadd.f32 %v6809_v15, %v20611_v47  ;;  %v6811_v29 = vpop.f32.mrb[225].mxu1  ;;  %v20616_v47 = vld [vmem:[#allocation41_spill] sm:$0xff] }
 0x62e   :  { %v6812_v10 = vpop.f32.mrb[226].mxu1 }
 0x62f   :  { %v18166_v8 = vadd.f32 %v6812_v10, %v20613_v26  ;;  %v6814_v20 = vpop.f32.mrb[227].mxu1  ;;  %v18184_v26 = vadd.f32 %v20617_v40, %v17869_v58  ;;  %v20622_v40 = vld [vmem:[#allocation45_spill] sm:$0xff] }
 0x631   :  { %7578 = vmatmul.mubr.bf16.gmra.mrb[76].mxu1 %v16898_v43  ;;  %v18173_v41 = vpop.f32.mrb[160].mxu0  ;;  %20618 = vst [vmem:[#allocation117_spill] sm:$0xff] %v18184_v26  ;;  %v20619_v43 = vld [vmem:[#allocation42_spill] sm:$0xff] }
 0x632   :  { %11666 = vmatprep.mubr.msk.bf16.mxu1 %vm5806_vm5, %v16961_v56  ;;  %v7927_v2 = vpop.f32.mrb[161].mxu0  ;;  %v20620_v56 = vld [vmem:[#allocation101_spill] sm:$0xff] }
 0x633   :  { %v18177_v15 = vpop.f32.mrb[162].mxu0  ;;  %v18191_v2 = vadd.f32 %v20620_v56, %v17873_v54  ;;  %v20623_v54 = vld [vmem:[#allocation71_spill] sm:$0xff] }
 0x634   :  { %v6817_v33 = vpop.f32.mrb[228].mxu1  ;;  %v7930_v13 = vpop.f32.mrb[163].mxu0  ;;  %v18205_v56 = vadd.f32 %v20623_v54, %v17885_v3  ;;  %v20628_v54 = vld [vmem:[#allocation56_spill] sm:$0xff] }
 0x635   :  { %v18180_v29 = vadd.f32 %v6817_v33, %v20616_v47  ;;  %v6819_v10 = vpop.f32.mrb[229].mxu1  ;;  %20621 = vst [vmem:[#allocation140_spill] sm:$0xff] %v18191_v2 }
 0x636   :  { %v6820_v1 = vpop.f32.mrb[230].mxu1  ;;  %20624 = vst [vmem:[#allocation53_spill] sm:$0xff] %v18205_v56 }
 0x637   :  { %v18187_v20 = vadd.f32 %v6820_v1, %v20619_v43  ;;  %v6822_v0 = vpop.f32.mrb[231].mxu1 }
 0x639   :  { %7586 = vmatmul.mubr.bf16.gmra.mrb[80].mxu1 %v17027_v18  ;;  %v18194_v13 = vpop.f32.mrb[164].mxu0  ;;  %v20625_v18 = vld [vmem:[#allocation46_spill] sm:$0xff] }
 0x63a   :  { %11667 = vmatprep.mubr.msk.bf16.mxu1 %vm5806_vm5, %v17090_v50  ;;  %v7935_v33 = vpop.f32.mrb[165].mxu0  ;;  %v20626_v50 = vld [vmem:[#allocation57_spill] sm:$0xff] }
 0x63b   :  { %v18198_v47 = vpop.f32.mrb[166].mxu0  ;;  %v18212_v33 = vadd.f32 %v20626_v50, %v17889_v62  ;;  %v20629_v62 = vld [vmem:[#allocation67_spill] sm:$0xff] }
 0x63c   :  { %v6825_v58 = vpop.f32.mrb[232].mxu1  ;;  %v7938_v10 = vpop.f32.mrb[167].mxu0  ;;  %v18226_v50 = vadd.f32 %v20629_v62, %v17901_v30 }
 0x63d   :  { %v18201_v1 = vadd.f32 %v6825_v58, %v20622_v40  ;;  %v6827_v43 = vpop.f32.mrb[233].mxu1  ;;  %20627 = vst [vmem:[#allocation82_spill] sm:$0xff] %v18212_v33 }
 0x63e   :  { %v6828_v0 = vpop.f32.mrb[234].mxu1  ;;  %20630 = vst [vmem:[#allocation64_spill] sm:$0xff] %v18226_v50 }
 0x63f   :  { %v18208_v2 = vadd.f32 %v6828_v0, %v20625_v18  ;;  %v6830_v26 = vpop.f32.mrb[235].mxu1 }
 0x641   :  { %7594 = vmatmul.mubr.bf16.gmra.mrb[84].mxu1 %v17152_v55  ;;  %v18215_v10 = vpop.f32.mrb[168].mxu0  ;;  %v20631_v55 = vld [vmem:[#allocation59_spill] sm:$0xff] }
 0x642   :  { %11668 = vmatprep.mubr.msk.bf16.mxu1 %vm5806_vm5, %v17164_v36  ;;  %v7943_v58 = vpop.f32.mrb[169].mxu0  ;;  %v20632_v36 = vld [vmem:[#allocation120_spill] sm:$0xff] }
 0x643   :  { %v18219_v40 = vpop.f32.mrb[170].mxu0  ;;  %v18233_v58 = vadd.f32 %v20632_v36, %v17905_v35 }
 0x644   :  { %v6833_v3 = vpop.f32.mrb[236].mxu1  ;;  %v7946_v43 = vpop.f32.mrb[171].mxu0 }
 0x645   :  { %v18222_v0 = vadd.f32 %v6833_v3, %v20628_v54  ;;  %v6835_v26 = vpop.f32.mrb[237].mxu1  ;;  %20633 = vst [vmem:[#allocation54_spill] sm:$0xff] %v18233_v58  ;;  %v20634_v54 = vmov 0   ;;  %v20638_v58 = vld [vmem:[#allocation31_spill] sm:$0xff] }
 0x646   :  { %v6836_v18 = vpop.f32.mrb[238].mxu1  ;;  %9496 = vmatprep.subr.bf16.mxu1 %v20634_v54 }
 0x647   :  { %v18229_v33 = vadd.f32 %v6836_v18, %v20631_v55  ;;  %v6838_v56 = vpop.f32.mrb[239].mxu1  ;;  %v20635_v18 = vld [vmem:[#allocation30_spill] sm:$0xff] }
 0x649   :  { %7602 = vmatmul.mubr.bf16.gmra.mrb[88].mxu1 %v17252_v45  ;;  %v18236_v43 = vpop.f32.mrb[172].mxu0  ;;  %v20636_v45 = vld [vmem:[#allocation123_spill] sm:$0xff] }
 0x64a   :  { %11669 = vmatprep.mubr.msk.bf16.mxu1 %vm5806_vm5, %v17273_v21  ;;  %v7951_v3 = vpop.f32.mrb[173].mxu0  ;;  %v18248_v36 = vadd.f32 %v20636_v45, %v17917_v57  ;;  %v20641_v45 = vld [vmem:[#allocation35_spill] sm:$0xff] }
 0x64b   :  { %v18240_v30 = vpop.f32.mrb[174].mxu0  ;;  %v18255_v3 = vadd.f32 %v20639_v23, %v17925_v25  ;;  %v20642_v25 = vld [vmem:[#allocation47_spill] sm:$0xff] }
 0x64c   :  { %v6841_v26 = vpop.f32.mrb[240].mxu1  ;;  %v7954_v56 = vpop.f32.mrb[175].mxu0  ;;  %20637 = vst [vmem:[#allocation94_spill] sm:$0xff] %v18248_v36  ;;  %v18269_v23 = vadd.f32 %v20642_v25, %v17941_v31  ;;  %v20648_v25 = vld [vmem:[#allocation39_spill] sm:$0xff] }
 0x64d   :  { %v18244_v62 = vadd.f32 %v6841_v26, %v20635_v18  ;;  %v6843_v35 = vpop.f32.mrb[241].mxu1  ;;  %20640 = vst [vmem:[#allocation91_spill] sm:$0xff] %v18255_v3 }
 0x64e   :  { %v6844_v55 = vpop.f32.mrb[242].mxu1  ;;  %20643 = vst [vmem:[#allocation96_spill] sm:$0xff] %v18269_v23 }
 0x64f   :  { %v18251_v50 = vadd.f32 %v6844_v55, %v20638_v58  ;;  %v6846_v21 = vpop.f32.mrb[243].mxu1 }
 0x651   :  { %7610 = vmatmul.mubr.bf16.gmra.mrb[92].mxu1 %v17302_v42  ;;  %v18258_v56 = vpop.f32.mrb[176].mxu0  ;;  %v20644_v42 = vld [vmem:[#allocation63_spill] sm:$0xff] }
 0x652   :  { %11670 = vmatprep.mubr.msk.bf16.mxu1 %vm5806_vm5, %v17310_v34  ;;  %v7959_v26 = vpop.f32.mrb[177].mxu0  ;;  %v20645_v34 = vld [vmem:[#allocation141_spill] sm:$0xff] }
 0x653   :  { %v18262_v18 = vpop.f32.mrb[178].mxu0  ;;  %v18276_v26 = vadd.f32 %v20645_v34, %v17949_v24  ;;  %v20649_v24 = vld [vmem:[#allocation58_spill] sm:$0xff] }
 0x654   :  { %v6849_v57 = vpop.f32.mrb[244].mxu1  ;;  %v7962_v35 = vpop.f32.mrb[179].mxu0  ;;  %v18290_v34 = vadd.f32 %v20649_v24, %v17965_v27  ;;  %v20657_v24 = vld [vmem:[#allocation72_spill] sm:$0xff] }
 0x655   :  { %v18265_v58 = vadd.f32 %v6849_v57, %v20641_v45  ;;  %v6851_v55 = vpop.f32.mrb[245].mxu1  ;;  %20646 = vst [vmem:[#allocation103_spill] sm:$0xff] %v18276_v26 }
 0x656   :  { %v6852_v21 = vpop.f32.mrb[246].mxu1  ;;  %20650 = vst [vmem:[#allocation24_spill] sm:$0xff] %v18290_v34 }
 0x657   :  { %v18272_v3 = vadd.f32 %v6852_v21, %v20644_v42  ;;  %v6854_v36 = vpop.f32.mrb[247].mxu1  ;;  %v12613_v42 = vld [vmem:[#allocation11 + $0x58] sm:$0xff]  }
 0x658   :  { %9497 = vmatpush1.bf16.msra.mxu1 %v12613_v42 }
 0x659   :  { %7618 = vmatmul.mubr.bf16.gmra.mrb[96].mxu1 %v17345_v5  ;;  %v18279_v35 = vpop.f32.mrb[180].mxu0  ;;  %v20651_v5 = vld [vmem:[#allocation40_spill] sm:$0xff]  ;;  %9498 = vmatprep.subr.bf16.mxu1 %v20634_v54 }
 0x65a   :  { %20647 = vst [vmem:[#allocation27_spill] sm:$0xff] %v18279_v35  ;;  %11671 = vmatprep.mubr.msk.bf16.mxu1 %vm5806_vm5, %v17349_v61  ;;  %v7967_v57 = vpop.f32.mrb[181].mxu0  ;;  %v20652_v61 = vld [vmem:[#allocation62_spill] sm:$0xff] }
 0x65b   :  { %v18283_v45 = vpop.f32.mrb[182].mxu0  ;;  %v18297_v57 = vadd.f32 %v20652_v61, %v17973_v59 }
 0x65c   :  { %v6857_v31 = vpop.f32.mrb[248].mxu1  ;;  %v7970_v55 = vpop.f32.mrb[183].mxu0 }
 0x65d   :  { %v18286_v21 = vadd.f32 %v6857_v31, %v20648_v25  ;;  %v6859_v36 = vpop.f32.mrb[249].mxu1  ;;  %20653 = vst [vmem:[#allocation83_spill] sm:$0xff] %v18297_v57 }
 0x65e   :  { %v6860_v23 = vpop.f32.mrb[250].mxu1 }
 0x65f   :  { %v18293_v26 = vadd.f32 %v6860_v23, %v20651_v5  ;;  %v6862_v35 = vpop.f32.mrb[251].mxu1  ;;  %v18312_v5 = vadd.f32 %v20657_v24, %v17989_v12 }
 0x660   :  { %v20656_v35 = vld [vmem:[#allocation44_spill] sm:$0xff] }
 0x661   :  { %7626 = vmatmul.mubr.bf16.gmra.mrb[100].mxu1 %v17370_v51  ;;  %v18301_v31 = vpop.f32.mrb[184].mxu0  ;;  %20658 = vst [vmem:[#allocation33_spill] sm:$0xff] %v18312_v5  ;;  %v20659_v51 = vld [vmem:[#allocation69_spill] sm:$0xff] }
 0x662   :  { %20654 = vst [vmem:[#allocation28_spill] sm:$0xff] %v18301_v31  ;;  %11672 = vmatprep.mubr.msk.bf16.mxu1 %vm5806_vm5, %v17376_v16  ;;  %v7975_v27 = vpop.f32.mrb[185].mxu0  ;;  %v20660_v16 = vld [vmem:[#allocation36_spill] sm:$0xff] }
 0x663   :  { %v18305_v55 = vpop.f32.mrb[186].mxu0  ;;  %v18319_v27 = vadd.f32 %v20660_v16, %v17997_v11  ;;  %v20666_v16 = vld [vmem:[#allocation125_spill] sm:$0xff] }
 0x664   :  { %20655 = vst [vmem:[#allocation118_spill] sm:$0xff] %v18305_v55  ;;  %v6865_v23 = vpop.f32.mrb[252].mxu1  ;;  %v7978_v25 = vpop.f32.mrb[187].mxu0 }
 0x665   :  { %v18308_v36 = vadd.f32 %v6865_v23, %v20656_v35  ;;  %v6867_v42 = vpop.f32.mrb[253].mxu1  ;;  %20661 = vst [vmem:[#allocation87_spill] sm:$0xff] %v18319_v27  ;;  %v20667_v27 = vld [vmem:[#allocation55_spill] sm:$0xff] }
 0x666   :  { %v6868_v59 = vpop.f32.mrb[254].mxu1 }
 0x667   :  { %v18315_v61 = vadd.f32 %v6868_v59, %v20659_v51  ;;  %v6870_v57 = vpop.f32.mrb[255].mxu1  ;;  %v20664_v51 = vld [vmem:[#allocation52_spill] sm:$0xff] }
 0x668   :  { %v18331_v11 = vadd.f32 %v20664_v51, %v18013_v17 }
 0x669   :  { %7634 = vmatmul.mubr.bf16.gmra.mrb[104].mxu1 %v17387_v4  ;;  %v18322_v25 = vpop.f32.mrb[188].mxu0 }
 0x66a   :  { %20662 = vst [vmem:[#allocation34_spill] sm:$0xff] %v18322_v25  ;;  %11673 = vmatprep.mubr.msk.bf16.mxu1 %vm5806_vm5, %v17391_v60  ;;  %v7983_v23 = vpop.f32.mrb[189].mxu0  ;;  %20665 = vst [vmem:[#allocation37_spill] sm:$0xff] %v18331_v11  ;;  %v20668_v25 = vld [vmem:[#allocation127_spill] sm:$0xff]  ;;  %v20669_v60 = vld [vmem:[#allocation142_spill] sm:$0xff] }
 0x66b   :  { %v18326_v35 = vpop.f32.mrb[190].mxu0  ;;  %v18337_v23 = vadd.f32 %v20669_v60, %v20668_v25  ;;  %v20679_v60 = vld [vmem:[#allocation109_spill] sm:$0xff] }
 0x66c   :  { %20663 = vst [vmem:[#allocation88_spill] sm:$0xff] %v18326_v35  ;;  %v7427_v12 = vpop.f32.mrb[0].mxu1  ;;  %v7986_v42 = vpop.f32.mrb[191].mxu0  ;;  %v20671_v35 = vld [vmem:[#allocation73_spill] sm:$0xff] }
 0x66d   :  { %v7682_v59 = vadd.f32 %v7427_v12, %v17922_v22  ;;  %v7429_v24 = vpop.f32.mrb[1].mxu1  ;;  %20670 = vst [vmem:[#allocation119_spill] sm:$0xff] %v18337_v23  ;;  %v20672_v42 = vld [vmem:[#allocation129_spill] sm:$0xff]  ;;  %v20674_v12 = vld [vmem:[#allocation130_spill] sm:$0xff]  ;;  %v20680_v23 = vld [vmem:[#allocation104_spill] sm:$0xff] }
 0x66e   :  { %v7430_v57 = vpop.f32.mrb[2].mxu1 }
 0x66f   :  { %v8116_v4 = vadd.f32 %v20666_v16, %v7682_v59  ;;  %v7683_v5 = vadd.f32 %v7430_v57, %v20667_v27  ;;  %v7432_v34 = vpop.f32.mrb[3].mxu1  ;;  %v20676_v27 = vld [vmem:[#allocation98_spill] sm:$0xff]  ;;  %v18348_v16 = vld [vmem:[#allocation10] ss:$0 sm:$0xff] }
 0x671   :  { %v8117_v55 = vadd.f32 %v20671_v35, %v7683_v5  ;;  %7642 = vmatmul.mubr.bf16.gmra.mrb[108].mxu1 %v20672_v42  ;;  %v18341_v22 = vpop.f32.mrb[192].mxu0  ;;  %v20677_v5 = vld [vmem:[#allocation143_spill] sm:$0xff] }
 0x672   :  { %20673 = vst [vmem:[#allocation38_spill] sm:$0xff] %v18341_v22  ;;  %11674 = vmatprep.mubr.msk.bf16.mxu1 %vm5806_vm5, %v20674_v12  ;;  %v7991_v17 = vpop.f32.mrb[193].mxu0  ;;  %v18352_v35 = vadd.f32 %v20677_v5, %v18037_v63  ;;  %v20684_v22 = vld [vmem:[#allocation133_spill] sm:$0xff]  ;;  %v20685_v63 = vld [vmem:[#allocation134_spill] sm:$0xff] }
 0x673   :  { %v18345_v24 = vpop.f32.mrb[194].mxu0  ;;  %v20681_v17 = vld [vmem:[#allocation144_spill] sm:$0xff] }
 0x674   :  { %20675 = vst [vmem:[#allocation76_spill] sm:$0xff] %v18345_v24  ;;  %v7435_v59 = vpop.f32.mrb[4].mxu1  ;;  %v7994_v51 = vpop.f32.mrb[195].mxu0  ;;  %20678 = vst [vmem:[#allocation41_spill] sm:$0xff] %v18352_v35  ;;  %v18358_v24 = vadd.f32 %v20681_v17, %v18045_v9 }
 0x675   :  { %v7684_v34 = vadd.f32 %v7435_v59, %v20676_v27  ;;  %v7437_v57 = vpop.f32.mrb[5].mxu1  ;;  %v8187_v51 = vadd.f32 %v18348_v16, %v8116_v4  ;;  %v20683_v27 = vld [vmem:[#allocation48_spill] sm:$0xff]  ;;  %v12614_v4 = vld [vmem:[#allocation11 + $0x60] sm:$0xff]  }
 0x676   :  { %v7438_v25 = vpop.f32.mrb[6].mxu1  ;;  %20682 = vst [vmem:[#allocation99_spill] sm:$0xff] %v18358_v24  ;;  %9499 = vmatpush1.bf16.msra.mxu1 %v12614_v4 }
 0x677   :  { %v8118_v42 = vadd.f32 %v20679_v60, %v7684_v34  ;;  %v7685_v11 = vadd.f32 %v7438_v25, %v20680_v23  ;;  %v7440_v12 = vpop.f32.mrb[7].mxu1  ;;  %v8188_v23 = vadd.f32 %v18348_v16, %v8117_v55  ;;  %9500 = vmatprep.subr.bf16.mxu1 %v20634_v54 }
 0x679   :  { %v8189_v59 = vadd.f32 %v18348_v16, %v8118_v42  ;;  %v8119_v57 = vadd.f32 %v20683_v27, %v7685_v11  ;;  %7650 = vmatmul.mubr.bf16.gmra.mrb[112].mxu1 %v20684_v22  ;;  %v18364_v31 = vpop.f32.mrb[196].mxu0  ;;  %v20687_v11 = vld [vmem:[#allocation122_spill] sm:$0xff] }
 0x67a   :  { %11675 = vmatprep.mubr.msk.bf16.mxu1 %vm5806_vm5, %v20685_v63  ;;  %v7999_v34 = vpop.f32.mrb[197].mxu0  ;;  %v20688_v63 = vld [vmem:[#allocation145_spill] sm:$0xff] }
 0x67b   :  { %v8251_v25 = vmax.f32 %v8187_v51, %v8189_v59  ;;  %v8190_v9 = vadd.f32 %v18348_v16, %v8119_v57  ;;  %v18370_v5 = vpop.f32.mrb[198].mxu0  ;;  %v18376_v34 = vadd.f32 %v20688_v63, %v18061_v49  ;;  %v20690_v57 = vld [vmem:[#allocation107_spill] sm:$0xff]  ;;  %v20696_v63 = vld [vmem:[#allocation49_spill] sm:$0xff] }
 0x67c   :  { %20686 = vst [vmem:[#allocation42_spill] sm:$0xff] %v18370_v5  ;;  %v7443_v60 = vpop.f32.mrb[8].mxu1  ;;  %v8002_v42 = vpop.f32.mrb[199].mxu0 }
 0x67d   :  { %v8252_v12 = vmax.f32 %v8188_v23, %v8190_v9  ;;  %v7686_v17 = vadd.f32 %v7443_v60, %v20687_v11  ;;  %v7445_v22 = vpop.f32.mrb[9].mxu1  ;;  %20689 = vst [vmem:[#allocation101_spill] sm:$0xff] %v18376_v34  ;;  %v8315_v55 = vrot.slane %v8251_v25, 1  ;;  %v20691_v23 = vld [vmem:[#allocation29_spill] sm:$0xff]  ;;  %v20693_v60 = vld [vmem:[#allocation74_spill] sm:$0xff] }
 0x67e   :  { %v7446_v27 = vpop.f32.mrb[10].mxu1  ;;  %v18382_v9 = vadd.f32 %v20691_v23, %v18069_v28  ;;  %v20694_v11 = vld [vmem:[#allocation137_spill] sm:$0xff] }
 0x67f   :  { %v8316_v51 = vrot.slane %v8252_v12, 1  ;;  %v8120_v59 = vadd.f32 %v18030_v48, %v7686_v17  ;;  %v7687_v24 = vadd.f32 %v7446_v27, %v20690_v57  ;;  %v7448_v35 = vpop.f32.mrb[11].mxu1 }
 0x680   :  { %20692 = vst [vmem:[#allocation45_spill] sm:$0xff] %v18382_v9  ;;  %v20698_v9 = vld [vmem:[#allocation126_spill] sm:$0xff] }
 0x681   :  { %v8317_v4 = vsel %vm2556_vm1, %v8315_v55, %v8316_v51  ;;  %v8121_v42 = vadd.f32 %v20693_v60, %v7687_v24  ;;  %7658 = vmatmul.mubr.bf16.gmra.mrb[116].mxu1 %v20694_v11  ;;  %v18387_v22 = vpop.f32.mrb[200].mxu0  ;;  %v8396_v17 = vmax.f32 %v8252_v12, %v8316_v51  ;;  %v20701_v51 = vld [vmem:[#allocation51_spill] sm:$0xff] }
 0x682   :  { %20695 = vst [vmem:[#allocation71_spill] sm:$0xff] %v18387_v22  ;;  %v8395_v49 = vmax.f32 %v8251_v25, %v8317_v4  ;;  %11676 = vmatprep.mubr.msk.bf16.mxu1 %vm5806_vm5, %v20696_v63  ;;  %v8007_v48 = vpop.f32.mrb[201].mxu0  ;;  %v20699_v25 = vld [vmem:[#allocation65_spill] sm:$0xff] }
 0x683   :  { %v18391_v27 = vpop.f32.mrb[202].mxu0  ;;  %v18397_v4 = vadd.f32 %v20699_v25, %v18085_v32  ;;  %v8555_v63 = vrot.slane %v8396_v17, 4  ;;  %v8587_v5 = vrot.slane %v8396_v17, 5  ;;  %v8619_v32 = vrot.slane %v8396_v17, 6 }
 0x684   :  { %20697 = vst [vmem:[#allocation46_spill] sm:$0xff] %v18391_v27  ;;  %v8443_v35 = vrot.slane %v8395_v49, 1  ;;  %v8475_v57 = vrot.slane %v8395_v49, 2  ;;  %v7451_v28 = vpop.f32.mrb[12].mxu1  ;;  %v8010_v23 = vpop.f32.mrb[203].mxu0  ;;  %v8507_v24 = vrot.slane %v8395_v49, 3 }
 0x685   :  { %v7688_v55 = vadd.f32 %v7451_v28, %v20698_v9  ;;  %v7453_v34 = vpop.f32.mrb[13].mxu1  ;;  %20700 = vst [vmem:[#allocation57_spill] sm:$0xff] %v18397_v4  ;;  %v12615_v23 = vld [vmem:[#allocation11 + $0x68] sm:$0xff]  }
 0x686   :  { %v8683_v60 = vsel %vm4061_vm0, %v8395_v49, %v8443_v35  ;;  %v7454_v11 = vpop.f32.mrb[14].mxu1  ;;  %v8191_v34 = vadd.f32 %v18348_v16, %v8120_v59  ;;  %v20702_v49 = vld [vmem:[#allocation132_spill] sm:$0xff]  ;;  %v20703_v35 = vld [vmem:[#allocation89_spill] sm:$0xff]  ;;  %v20705_v4 = vld [vmem:[#allocation110_spill] sm:$0xff]  ;;  %v8651_v59 = vrot.slane %v8396_v17, 7  ;;  %9501 = vmatpush1.bf16.msra.mxu1 %v12615_v23 }
 0x687   :  { %v8122_v12 = vadd.f32 %v18054_v7, %v7688_v55  ;;  %v7689_v48 = vadd.f32 %v7454_v11, %v20701_v51  ;;  %v7456_v27 = vpop.f32.mrb[15].mxu1  ;;  %v8699_v22 = vsel %vm4094_vm8, %v8683_v60, %v8475_v57  ;;  %v18406_v28 = vadd.f32 %v20703_v35, %v20702_v49  ;;  %v20706_v55 = vld [vmem:[#allocation50_spill] sm:$0xff]  ;;  %v20708_v11 = vld [vmem:[#allocation25_spill] sm:$0xff]  ;;  %9502 = vmatprep.subr.bf16.mxu1 %v20634_v54 }
 0x688   :  { %v8715_v9 = vsel %vm4127_vm9, %v8699_v22, %v8507_v24  ;;  %v12616_v24 = vld [vmem:[#allocation11 + $0x70] sm:$0xff]   ;;  %v8192_v51 = vadd.f32 %v18348_v16, %v8121_v42 }
 0x689   :  { %20704 = vst [vmem:[#allocation56_spill] sm:$0xff] %v18406_v28  ;;  %v8193_v25 = vadd.f32 %v18348_v16, %v8122_v12  ;;  %v8123_v7 = vadd.f32 %v20705_v4, %v7689_v48  ;;  %7666 = vmatmul.mubr.bf16.gmra.mrb[120].mxu1 %v20706_v55  ;;  %v18411_v27 = vpop.f32.mrb[204].mxu0  ;;  %v8731_v57 = vsel %vm4160_vm10, %v8715_v9, %v8555_v63  ;;  %v20710_v55 = vld [vmem:[#allocation75_spill] sm:$0xff] }
 0x68a   :  { %20707 = vst [vmem:[#allocation67_spill] sm:$0xff] %v18411_v27  ;;  %v8015_v60 = vpop.f32.mrb[205].mxu0  ;;  %11677 = vmatprep.mubr.msk.bf16.mxu1 %vm5806_vm5, %v20708_v11  ;;  %v8747_v22 = vsel %vm4193_vm11, %v8731_v57, %v8587_v5  ;;  %9503 = vmatpush1.bf16.msra.mxu1 %v12616_v24 }
 0x68b   :  { %v8253_v12 = vmax.f32 %v8191_v34, %v8193_v25  ;;  %v8194_v4 = vadd.f32 %v18348_v16, %v8123_v7  ;;  %v18419_v48 = vpop.f32.mrb[206].mxu0  ;;  %v8763_v49 = vsel %vm4226_vm4, %v8747_v22, %v8619_v32  ;;  %v12617_v34 = vld [vmem:[#allocation11 + $0x78] sm:$0xff]   ;;  %v20711_v25 = vld [vmem:[#allocation43_spill] sm:$0xff]  ;;  %9504 = vmatprep.subr.bf16.mxu1 %v20634_v54 }
 0x68c   :  { %20709 = vst [vmem:[#allocation59_spill] sm:$0xff] %v18419_v48  ;;  %v7459_v63 = vpop.f32.mrb[16].mxu1  ;;  %v8018_v9 = vpop.f32.mrb[207].mxu0  ;;  %v8779_v35 = vsel %vm2556_vm1, %v8763_v49, %v8651_v59  ;;  %v20712_v7 = vld [vmem:[#allocation32_spill] sm:$0xff]  ;;  %v20714_v22 = vld [vmem:[#allocation131_spill] sm:$0xff] }
 0x68d   :  { %v8254_v17 = vmax.f32 %v8192_v51, %v8194_v4  ;;  %v7690_v5 = vadd.f32 %v7459_v63, %v20710_v55  ;;  %v7461_v23 = vpop.f32.mrb[17].mxu1  ;;  %v8795_v57 = vpack.c.bf16 %v8779_v35, %v8779_v35  ;;  %v8318_v60 = vrot.slane %v8253_v12, 1  ;;  %v20715_v48 = vld [vmem:[#allocation80_spill] sm:$0xff]  ;;  %v20716_v51 = vld [vmem:[#allocation90_spill] sm:$0xff] }
 0x68e   :  { %v7462_v42 = vpop.f32.mrb[18].mxu1  ;;  %v18427_v11 = vadd.f32 %v20712_v7, %v20711_v25  ;;  %v18434_v4 = vadd.f32 %v20716_v51, %v18120_v39  ;;  %v20718_v63 = vld [vmem:[#allocation84_spill] sm:$0xff]  ;;  %v20719_v55 = vld [vmem:[#allocation26_spill] sm:$0xff]  ;;  %9505 = vmatpush1.bf16.msra.mxu1 %v12617_v34 }
 0x68f   :  { %v8319_v32 = vrot.slane %v8254_v17, 1  ;;  %v8124_v28 = vadd.f32 %v20714_v22, %v7690_v5  ;;  %v7691_v9 = vadd.f32 %v7462_v42, %v20715_v48  ;;  %v7464_v27 = vpop.f32.mrb[19].mxu1  ;;  %v8827_v59 = vrot.slane %v8795_v57, 7  ;;  %v12618_v57 = vld [vmem:[#allocation11 + $0x80] sm:$0xff]   ;;  %9506 = vmatprep.subr.bf16.mxu1 %v20634_v54 }
 0x690   :  { %20713 = vst [vmem:[#allocation120_spill] sm:$0xff] %v18427_v11  ;;  %20717 = vst [vmem:[#allocation30_spill] sm:$0xff] %v18434_v4  ;;  %v20725_v4 = vld [vmem:[#allocation77_spill] sm:$0xff] }
 0x691   :  { %v8320_v24 = vsel %vm2556_vm1, %v8318_v60, %v8319_v32  ;;  %v18437_v49 = vmax.f32 %v8254_v17, %v8319_v32  ;;  %v8125_v35 = vadd.f32 %v20718_v63, %v7691_v9  ;;  %7674 = vmatmul.mubr.bf16.gmra.mrb[124].mxu1 %v20719_v55  ;;  %v18441_v23 = vpop.f32.mrb[208].mxu0  ;;  %v8844_v27 = vsel %vm4061_vm0, 0, %v8827_v59  ;;  %v20723_v9 = vld [vmem:[#allocation128_spill] sm:$0xff] }
 0x692   :  { %20720 = vst [vmem:[#allocation123_spill] sm:$0xff] %v18441_v23  ;;  %v8397_v5 = vmax.f32 %v8253_v12, %v8320_v24  ;;  %v8023_v48 = vpop.f32.mrb[209].mxu0  ;;  %v8195_v17 = vadd.f32 %v18348_v16, %v8124_v28  ;;  %v18449_v32 = vrot.slane %v18111_v6, 2  ;;  %v18454_v51 = vsel %vm4193_vm11, %v8844_v27, 0  ;;  %9507 = vmatpush1.bf16.msra.mxu1 %v12618_v57 }
 0x693   :  { %v18444_v42 = vpop.f32.mrb[210].mxu0  ;;  %v8556_v12 = vrot.slane %v18437_v49, 4  ;;  %20724 = vst [vmem:[#allocation35_spill] sm:$0xff] %v18454_v51  ;;  %v9046_v63 = vrot.slane %v18454_v51, 1  ;;  %v19914_v28 = vrot.slane %v18454_v51, 2  ;;  %v8898_v48 = vshrl.u32 %v18454_v51, 16  ;;  %9508 = vmatprep.subr.bf16.mxu1 %v20634_v54 }
 0x694   :  { %20721 = vst [vmem:[#allocation31_spill] sm:$0xff] %v18444_v42  ;;  %v8444_v39 = vrot.slane %v8397_v5, 1  ;;  %v8476_v60 = vrot.slane %v8397_v5, 2  ;;  %v7467_v25 = vpop.f32.mrb[20].mxu1  ;;  %v8026_v7 = vpop.f32.mrb[211].mxu0  ;;  %20722 = vst [vmem:[#allocation124_spill] sm:$0xff] %v18449_v32 }
 0x695   :  { %v8508_v22 = vrot.slane %v8397_v5, 3  ;;  %v7692_v59 = vadd.f32 %v7467_v25, %v20723_v9  ;;  %v7469_v34 = vpop.f32.mrb[21].mxu1  ;;  %v20726_v42 = vld [vmem:[#allocation81_spill] sm:$0xff]  ;;  %v8900_v27 = vshll.u32 %v18454_v51, 16  ;;  %9064 = vrot.lane.b32.xlu0 %v9046_v63, %s12967_s21  ;;  %v11722_v57 = vcombine.low %v18449_v32, %v19914_v28  ;;  %v12620_v51 = vld [vmem:[#allocation11 + $0x90] sm:$0xff]  }
 0x696   :  { %v8684_v24 = vsel %vm4061_vm0, %v8397_v5, %v8444_v39  ;;  %v7470_v55 = vpop.f32.mrb[22].mxu1  ;;  %v12619_v5 = vld [vmem:[#allocation11 + $0x88] sm:$0xff]   ;;  %v8588_v39 = vrot.slane %v18437_v49, 5  ;;  %v8620_v34 = vrot.slane %v18437_v49, 6  ;;  %v20728_v28 = vld [vmem:[#allocation93_spill] sm:$0xff] }
 0x697   :  { %v8700_v7 = vsel %vm4094_vm8, %v8684_v24, %v8476_v60  ;;  %v8126_v11 = vadd.f32 %v20725_v4, %v7692_v59  ;;  %v7693_v25 = vadd.f32 %v7470_v55, %v20726_v42  ;;  %v7472_v9 = vpop.f32.mrb[23].mxu1  ;;  %v20727_v60 = vld [vmem:[#allocation86_spill] sm:$0xff]  ;;  %v8902_v24 = vrot.slane %v8900_v27, 1  ;;  %11747 = vmatprep.mubr.msk.bf16.mxu1 %vm5806_vm5, %v11722_v57  ;;  %9509 = vmatpush1.bf16.msra.mxu1 %v12619_v5 }
 0x698   :  { %v8716_v4 = vsel %vm4127_vm9, %v8700_v7, %v8508_v22  ;;  %v9099_v9 = vrot.slane %v8898_v48, 1  ;;  %v9100_v6 = vrot.slane %v8900_v27, 2  ;;  %v18480_v32 = vadd.f32 %v20728_v28, %v18135_v53  ;;  %9510 = vmatprep.subr.bf16.mxu1 %v20634_v54 }
 0x699   :  { %v8197_v42 = vadd.f32 %v18348_v16, %v8126_v11  ;;  %v8127_v59 = vadd.f32 %v20727_v60, %v7693_v25  ;;  %v18474_v55 = vpop.f32.mrb[212].mxu0  ;;  %v8732_v63 = vsel %vm4160_vm10, %v8716_v4, %v8556_v12  ;;  %v20729_v11 = vld [vmem:[#allocation97_spill] sm:$0xff]  ;;  %v8196_v7 = vadd.f32 %v18348_v16, %v8125_v35 }
 0x69a   :  { %v8031_v23 = vpop.f32.mrb[213].mxu0  ;;  %v18484_v22 = vadd.f32 %v20729_v11, %v18142_v14  ;;  %v8903_v57 = vor.u32 %v8902_v24, %v8898_v48  ;;  %v8652_v12 = vrot.slane %v18437_v49, 7  ;;  %v8748_v53 = vsel %vm4193_vm11, %v8732_v63, %v8588_v39  ;;  %v20730_v14 = vld [vmem:[#allocation79_spill] sm:$0xff]  ;;  %v12621_v11 = vld [vmem:[#allocation11 + $0x98] sm:$0xff]  }
 0x69b   :  { %v8255_v25 = vmax.f32 %v8195_v17, %v8197_v42  ;;  %v8198_v60 = vadd.f32 %v18348_v16, %v8127_v59  ;;  %v18488_v23 = vpop.f32.mrb[214].mxu0  ;;  %v8764_v17 = vsel %vm4226_vm4, %v8748_v53, %v8620_v34  ;;  %v9101_v48 = vor.u32 %v9100_v6, %v9099_v9  ;;  %9511 = vmatpush1.bf16.msra.mxu1 %v12620_v51  ;;  %v20731_v49 = vld [vmem:[#allocation100_spill] sm:$0xff]  ;;  %v20733_v63 = vld [vmem:[#allocation115_spill] sm:$0xff]  ;;  %v20735_v6 = vld [vmem:[#allocation106_spill] sm:$0xff] }
 0x69c   :  { %v7475_v27 = vpop.f32.mrb[24].mxu1  ;;  %v8034_v5 = vpop.f32.mrb[215].mxu0  ;;  %8996 = vrot.lane.b32.xlu0 %v8903_v57, %s12977_s8  ;;  %v8780_v24 = vsel %vm2556_vm1, %v8764_v17, %v8652_v12  ;;  %9512 = vmatprep.subr.bf16.mxu1 %v20634_v54  ;;  %v18506_v34 = vadd.f32 %v20735_v6, %v18166_v8  ;;  %v20739_v6 = vld [vmem:[#allocation108_spill] sm:$0xff] }
 0x69d   :  { %v8256_v28 = vmax.f32 %v8196_v7, %v8198_v60  ;;  %v7694_v4 = vadd.f32 %v7475_v27, %v20730_v14  ;;  %v7477_v35 = vpop.f32.mrb[25].mxu1  ;;  %v8321_v42 = vrot.slane %v8255_v25, 1  ;;  %v18499_v5 = vadd.f32 %v20731_v49, %v18158_v46  ;;  %v20734_v60 = vld [vmem:[#allocation60_spill] sm:$0xff]  ;;  %v20737_v46 = vld [vmem:[#allocation139_spill] sm:$0xff] }
 0x69e   :  { %v7478_v59 = vpop.f32.mrb[26].mxu1  ;;  %v8796_v14 = vpack.c.bf16 %v8780_v24, %v8780_v24  ;;  %20736 = vst [vmem:[#allocation63_spill] sm:$0xff] %v18506_v34 }
 0x69f   :  { %20732 = vst [vmem:[#allocation47_spill] sm:$0xff] %v18499_v5  ;;  %v8322_v39 = vrot.slane %v8256_v28, 1  ;;  %v8128_v7 = vadd.f32 %v20733_v63, %v7694_v4  ;;  %v7695_v57 = vadd.f32 %v7478_v59, %v20734_v60  ;;  %v7480_v27 = vpop.f32.mrb[27].mxu1  ;;  %9513 = vmatpush1.bf16.msra.mxu1 %v12621_v11  ;;  %v12624_v5 = vld [vmem:[#allocation11 + $0x150] sm:$0xff]  }
 0x6a0   :  { %9149 = vrot.lane.b32.xlu0 %v9101_v48, %s12978_s2  ;;  %v8828_v17 = vrot.slane %v8796_v14, 7  ;;  %9693 = vmatprep.subr.bf16.mxu1 %v20634_v54  ;;  %v20738_v48 = vld [vmem:[#allocation113_spill] sm:$0xff] }
 0x6a1   :  { %v8323_v51 = vsel %vm2556_vm1, %v8321_v42, %v8322_v39  ;;  %v8400_v9 = vmax.f32 %v8256_v28, %v8322_v39  ;;  %v8129_v12 = vadd.f32 %v20737_v46, %v7695_v57  ;;  %v18511_v53 = vpop.f32.mrb[216].mxu0  ;;  %v8199_v28 = vadd.f32 %v18348_v16, %v8128_v7 }
 0x6a2   :  { %v8399_v4 = vmax.f32 %v8255_v25, %v8323_v51  ;;  %v8039_v35 = vpop.f32.mrb[217].mxu0  ;;  %v8846_v57 = vsel %vm4061_vm0, 0, %v8828_v17  ;;  %v18525_v51 = vadd.f32 %v20739_v6, %v18180_v29 }
 0x6a3   :  { %v18513_v59 = vpop.f32.mrb[218].mxu0  ;;  %v8557_v42 = vrot.slane %v8400_v9, 4  ;;  %v18521_v11 = vsel %vm4193_vm11, %v8846_v57, 0  ;;  %v8621_v34 = vrot.slane %v8400_v9, 6  ;;  %v8200_v6 = vadd.f32 %v18348_v16, %v8129_v12 }
 0x6a4   :  { %v8445_v24 = vrot.slane %v8399_v4, 1  ;;  %v8477_v8 = vrot.slane %v8399_v4, 2  ;;  %v7483_v49 = vpop.f32.mrb[28].mxu1  ;;  %v8042_v63 = vpop.f32.mrb[219].mxu0  ;;  %v8509_v25 = vrot.slane %v8399_v4, 3  ;;  %20740 = vst [vmem:[#allocation141_spill] sm:$0xff] %v18525_v51 }
 0x6a5   :  { %v7696_v39 = vadd.f32 %v7483_v49, %v20738_v48  ;;  %v7485_v60 = vpop.f32.mrb[29].mxu1  ;;  %v9047_v35 = vrot.slane %v18521_v11, 1  ;;  %v20741_v49 = vld [vmem:[#allocation85_spill] sm:$0xff]  ;;  %v20744_v51 = vld [vmem:[#allocation78_spill] sm:$0xff] }
 0x6a6   :  { %v8685_v27 = vsel %vm4061_vm0, %v8399_v4, %v8445_v24  ;;  %v7486_v14 = vpop.f32.mrb[30].mxu1  ;;  %v12622_v48 = vld [vmem:[#allocation11 + $0x140] sm:$0xff]   ;;  %v8589_v60 = vrot.slane %v8400_v9, 5  ;;  %v8904_v4 = vshrl.u32 %v18521_v11, 16  ;;  %v8906_v24 = vshll.u32 %v18521_v11, 16 }
 0x6a7   :  { %v8701_v46 = vsel %vm4094_vm8, %v8685_v27, %v8477_v8  ;;  %v8130_v7 = vadd.f32 %v18150_v44, %v7696_v39  ;;  %v7697_v63 = vadd.f32 %v7486_v14, %v20741_v49  ;;  %v7488_v17 = vpop.f32.mrb[31].mxu1  ;;  %9066 = vrot.lane.b32.xlu1 %v9047_v35, %s12967_s21  ;;  %10290 = vmatpush1.bf16.msra.mxu0 %v12622_v48  ;;  %v12623_v27 = vld [vmem:[#allocation11 + $0x148] sm:$0xff]   ;;  %v8653_v14 = vrot.slane %v8400_v9, 7 }
 0x6a8   :  { %v8717_v57 = vsel %vm4127_vm9, %v8701_v46, %v8509_v25  ;;  %v8908_v49 = vrot.slane %v8906_v24, 1  ;;  %10291 = vmatprep.subr.bf16.mxu0 %v20634_v54 }
 0x6a9   :  { %v8201_v29 = vadd.f32 %v18348_v16, %v8130_v7  ;;  %v8131_v44 = vadd.f32 %v18155_v38, %v7697_v63  ;;  %v18537_v8 = vpop.f32.mrb[220].mxu0  ;;  %v8733_v39 = vsel %vm4160_vm10, %v8717_v57, %v8557_v42  ;;  %v20743_v42 = vld [vmem:[#allocation111_spill] sm:$0xff]  ;;  %v9102_v57 = vrot.slane %v8904_v4, 1 }
 0x6aa   :  { %v8047_v17 = vpop.f32.mrb[221].mxu0  ;;  %v8749_v25 = vsel %vm4193_vm11, %v8733_v39, %v8589_v60  ;;  %v18549_v63 = vadd.f32 %v20743_v42, %v18187_v20  ;;  %v8909_v9 = vor.u32 %v8908_v49, %v8904_v4  ;;  %v20745_v20 = vld [vmem:[#allocation112_spill] sm:$0xff] }
 0x6ab   :  { %v8257_v46 = vmax.f32 %v8199_v28, %v8201_v29  ;;  %v8202_v7 = vadd.f32 %v18348_v16, %v8131_v44  ;;  %v18544_v35 = vpop.f32.mrb[222].mxu0  ;;  %v8765_v38 = vsel %vm4226_vm4, %v8749_v25, %v8621_v34  ;;  %v9103_v17 = vrot.slane %v8906_v24, 2  ;;  %10292 = vmatpush1.bf16.msra.mxu0 %v12623_v27  ;;  %v20747_v27 = vld [vmem:[#allocation114_spill] sm:$0xff] }
 0x6ac   :  { %20742 = vst [vmem:[#allocation39_spill] sm:$0xff] %v18544_v35  ;;  %v7491_v48 = vpop.f32.mrb[32].mxu1  ;;  %v8050_v12 = vpop.f32.mrb[223].mxu0  ;;  %v8781_v60 = vsel %vm2556_vm1, %v8765_v38, %v8653_v14  ;;  %8998 = vrot.lane.b32.xlu1 %v8909_v9, %s12977_s8  ;;  %10293 = vmatprep.subr.bf16.mxu0 %v20634_v54  ;;  %v18557_v49 = vadd.f32 %v20745_v20, %v18201_v1  ;;  %v20746_v14 = vld [vmem:[#allocation136_spill] sm:$0xff] }
 0x6ad   :  { %v8258_v39 = vmax.f32 %v8200_v6, %v8202_v7  ;;  %v7698_v28 = vadd.f32 %v7491_v48, %v20744_v51  ;;  %v7493_v29 = vpop.f32.mrb[33].mxu1  ;;  %v8797_v44 = vpack.c.bf16 %v8781_v60, %v8781_v60  ;;  %v8324_v35 = vrot.slane %v8257_v46, 1 }
 0x6ae   :  { %v7494_v34 = vpop.f32.mrb[34].mxu1  ;;  %v9104_v7 = vor.u32 %v9103_v17, %v9102_v57  ;;  %v18563_v38 = vadd.f32 %v20747_v27, %v18208_v2 }
 0x6af   :  { %v8325_v4 = vrot.slane %v8258_v39, 1  ;;  %v8132_v24 = vadd.f32 %v18173_v41, %v7698_v28  ;;  %v7699_v6 = vadd.f32 %v7494_v34, %v20746_v14  ;;  %v7496_v51 = vpop.f32.mrb[35].mxu1  ;;  %v8829_v25 = vrot.slane %v8797_v44, 7  ;;  %10294 = vmatpush1.bf16.msra.mxu0 %v12624_v5 }
 0x6b0   :  { %9151 = vrot.lane.b32.xlu1 %v9104_v7, %s12978_s2  ;;  %10295 = vmatprep.subr.bf16.mxu0 %v20634_v54 }
 0x6b1   :  { %v8326_v42 = vsel %vm2556_vm1, %v8324_v35, %v8325_v4  ;;  %v8402_v9 = vmax.f32 %v8258_v39, %v8325_v4  ;;  %v8133_v48 = vadd.f32 %v18177_v15, %v7699_v6  ;;  %v18567_v12 = vpop.f32.mrb[224].mxu0  ;;  %v8848_v60 = vsel %vm4061_vm0, 0, %v8829_v25 }
 0x6b2   :  { %v8401_v1 = vmax.f32 %v8257_v46, %v8326_v42  ;;  %v8055_v41 = vpop.f32.mrb[225].mxu0  ;;  %v8203_v35 = vadd.f32 %v18348_v16, %v8132_v24  ;;  %v18577_v34 = vsel %vm4193_vm11, %v8848_v60, 0  ;;  %v12625_v42 = vld [vmem:[#allocation11 + $0x158] sm:$0xff]  }
 0x6b3   :  { %v18572_v57 = vpop.f32.mrb[226].mxu0  ;;  %v8558_v28 = vrot.slane %v8402_v9, 4  ;;  %v8590_v44 = vrot.slane %v8402_v9, 5  ;;  %v9048_v4 = vrot.slane %v18577_v34, 1  ;;  %v8910_v6 = vshrl.u32 %v18577_v34, 16  ;;  %10296 = vmatpush1.bf16.msra.mxu0 %v12625_v42 }
 0x6b4   :  { %v8446_v2 = vrot.slane %v8401_v1, 1  ;;  %v8478_v17 = vrot.slane %v8401_v1, 2  ;;  %v7499_v39 = vpop.f32.mrb[36].mxu1  ;;  %v8058_v15 = vpop.f32.mrb[227].mxu0  ;;  %v8510_v29 = vrot.slane %v8401_v1, 3  ;;  %v8912_v51 = vshll.u32 %v18577_v34, 16  ;;  %10297 = vmatprep.subr.bf16.mxu0 %v20634_v54 }
 0x6b5   :  { %v7700_v5 = vadd.f32 %v7499_v39, %v18139_v52  ;;  %v7501_v46 = vpop.f32.mrb[37].mxu1  ;;  %v8622_v24 = vrot.slane %v8402_v9, 6  ;;  %v8654_v41 = vrot.slane %v8402_v9, 7  ;;  %v8204_v60 = vadd.f32 %v18348_v16, %v8133_v48  ;;  %9068 = vrot.lane.b32.xlu0 %v9048_v4, %s12967_s21 }
 0x6b6   :  { %v8686_v20 = vsel %vm4061_vm0, %v8401_v1, %v8446_v2  ;;  %v7502_v14 = vpop.f32.mrb[38].mxu1  ;;  %v8914_v1 = vrot.slane %v8912_v51, 1 }
 0x6b7   :  { %v8702_v25 = vsel %vm4094_vm8, %v8686_v20, %v8478_v17  ;;  %v8134_v7 = vadd.f32 %v18194_v13, %v7700_v5  ;;  %v7701_v52 = vadd.f32 %v7502_v14, %v18147_v37  ;;  %v7504_v27 = vpop.f32.mrb[39].mxu1  ;;  %v9105_v17 = vrot.slane %v8910_v6, 1  ;;  %v12626_v37 = vld [vmem:[#allocation11 + $0x160] sm:$0xff]  }
 0x6b8   :  { %v8718_v2 = vsel %vm4127_vm9, %v8702_v25, %v8510_v29  ;;  %v8915_v5 = vor.u32 %v8914_v1, %v8910_v6  ;;  %v9106_v20 = vrot.slane %v8912_v51, 2  ;;  %v20748_v29 = vld [vmem:[#allocation116_spill] sm:$0xff]  ;;  %10298 = vmatpush1.bf16.msra.mxu0 %v12626_v37  ;;  %v12627_v1 = vld [vmem:[#allocation11 + $0x168] sm:$0xff]  }
 0x6b9   :  { %v8205_v39 = vadd.f32 %v18348_v16, %v8134_v7  ;;  %v8135_v15 = vadd.f32 %v18198_v47, %v7701_v52  ;;  %v18591_v46 = vpop.f32.mrb[228].mxu0  ;;  %v8734_v13 = vsel %vm4160_vm10, %v8718_v2, %v8558_v28  ;;  %v18598_v4 = vadd.f32 %v20748_v29, %v18222_v0  ;;  %v20749_v7 = vld [vmem:[#allocation92_spill] sm:$0xff]  ;;  %10299 = vmatprep.subr.bf16.mxu0 %v20634_v54 }
 0x6ba   :  { %v8063_v9 = vpop.f32.mrb[229].mxu0  ;;  %v8750_v48 = vsel %vm4193_vm11, %v8734_v13, %v8590_v44  ;;  %v18606_v6 = vadd.f32 %v20749_v7, %v18229_v33  ;;  %9000 = vrot.lane.b32.xlu0 %v8915_v5, %s12977_s8  ;;  %v20750_v33 = vld [vmem:[#allocation61_spill] sm:$0xff]  ;;  %v20752_v37 = vld [vmem:[#allocation68_spill] sm:$0xff] }
 0x6bb   :  { %v8259_v14 = vmax.f32 %v8203_v35, %v8205_v39  ;;  %v8206_v47 = vadd.f32 %v18348_v16, %v8135_v15  ;;  %v18601_v25 = vpop.f32.mrb[230].mxu0  ;;  %v8766_v28 = vsel %vm4226_vm4, %v8750_v48, %v8622_v24  ;;  %v9107_v39 = vor.u32 %v9106_v20, %v9105_v17 }
 0x6bc   :  { %v7507_v44 = vpop.f32.mrb[40].mxu1  ;;  %v8066_v51 = vpop.f32.mrb[231].mxu0  ;;  %v8782_v52 = vsel %vm2556_vm1, %v8766_v28, %v8654_v41  ;;  %v18614_v15 = vadd.f32 %v20750_v33, %v18244_v62  ;;  %v20751_v41 = vld [vmem:[#allocation138_spill] sm:$0xff]  ;;  %v18621_v48 = vadd.f32 %v20752_v37, %v18251_v50  ;;  %10300 = vmatpush1.bf16.msra.mxu0 %v12627_v1  ;;  %v20753_v1 = vld [vmem:[#allocation117_spill] sm:$0xff] }
 0x6bd   :  { %v8260_v27 = vmax.f32 %v8204_v60, %v8206_v47  ;;  %v7702_v0 = vadd.f32 %v7507_v44, %v18163_v19  ;;  %v7509_v35 = vpop.f32.mrb[41].mxu1  ;;  %v8798_v42 = vpack.c.bf16 %v8782_v52, %v8782_v52  ;;  %v8327_v2 = vrot.slane %v8259_v14, 1  ;;  %10301 = vmatprep.subr.bf16.mxu0 %v20634_v54 }
 0x6be   :  { %v7510_v24 = vpop.f32.mrb[42].mxu1  ;;  %9153 = vrot.lane.b32.xlu0 %v9107_v39, %s12978_s2 }
 0x6bf   :  { %v8328_v13 = vrot.slane %v8260_v27, 1  ;;  %v8136_v5 = vadd.f32 %v18215_v10, %v7702_v0  ;;  %v7703_v60 = vadd.f32 %v7510_v24, %v20751_v41  ;;  %v7512_v9 = vpop.f32.mrb[43].mxu1  ;;  %v8830_v19 = vrot.slane %v8798_v42, 7  ;;  %v12628_v10 = vld [vmem:[#allocation11 + $0x170] sm:$0xff]  }
 0x6c0   :  { %10302 = vmatpush1.bf16.msra.mxu0 %v12628_v10 }
 0x6c1   :  { %v8329_v17 = vsel %vm2556_vm1, %v8327_v2, %v8328_v13  ;;  %v18624_v20 = vmax.f32 %v8260_v27, %v8328_v13  ;;  %v8137_v62 = vadd.f32 %v18219_v40, %v7703_v60  ;;  %v18627_v29 = vpop.f32.mrb[232].mxu0  ;;  %v8850_v7 = vsel %vm4061_vm0, 0, %v8830_v19  ;;  %10303 = vmatprep.subr.bf16.mxu0 %v20634_v54  ;;  %v20754_v19 = vld [vmem:[#allocation140_spill] sm:$0xff] }
 0x6c2   :  { %v8403_v47 = vmax.f32 %v8259_v14, %v8329_v17  ;;  %v8071_v28 = vpop.f32.mrb[233].mxu0  ;;  %v8207_v52 = vadd.f32 %v18348_v16, %v8136_v5  ;;  %v19918_v40 = vrot.slane %v18577_v34, 2  ;;  %v18638_v39 = vsel %vm4193_vm11, %v8850_v7, 0 }
 0x6c3   :  { %v18631_v44 = vpop.f32.mrb[234].mxu0  ;;  %v8559_v42 = vrot.slane %v18624_v20, 4  ;;  %v9049_v33 = vrot.slane %v18638_v39, 1  ;;  %v19917_v5 = vrot.slane %v18638_v39, 2  ;;  %v8916_v41 = vshrl.u32 %v18638_v39, 16  ;;  %v12629_v28 = vld [vmem:[#allocation11 + $0x178] sm:$0xff]  }
 0x6c4   :  { %v8447_v50 = vrot.slane %v8403_v47, 1  ;;  %v8479_v51 = vrot.slane %v8403_v47, 2  ;;  %v7515_v27 = vpop.f32.mrb[44].mxu1  ;;  %v8074_v0 = vpop.f32.mrb[235].mxu0  ;;  %v8511_v35 = vrot.slane %v8403_v47, 3  ;;  %v8918_v10 = vshll.u32 %v18638_v39, 16  ;;  %10304 = vmatpush1.bf16.msra.mxu0 %v12629_v28 }
 0x6c5   :  { %v7704_v14 = vadd.f32 %v7515_v27, %v20753_v1  ;;  %v7517_v2 = vpop.f32.mrb[45].mxu1  ;;  %9070 = vrot.lane.b32.xlu1 %v9049_v33, %s12967_s21  ;;  %v18655_v7 = vcombine.low %v19918_v40, %v19917_v5  ;;  %v8623_v27 = vrot.slane %v18624_v20, 6  ;;  %10305 = vmatprep.subr.bf16.mxu0 %v20634_v54  ;;  %v20758_v5 = vld [vmem:[#allocation53_spill] sm:$0xff] }
 0x6c6   :  { %v8687_v24 = vsel %vm4061_vm0, %v8403_v47, %v8447_v50  ;;  %v7518_v13 = vpop.f32.mrb[46].mxu1  ;;  %v8591_v47 = vrot.slane %v18624_v20, 5 }
 0x6c7   :  { %v8703_v60 = vsel %vm4094_vm8, %v8687_v24, %v8479_v51  ;;  %v8138_v9 = vadd.f32 %v18236_v43, %v7704_v14  ;;  %v7705_v37 = vadd.f32 %v7518_v13, %v20754_v19  ;;  %v7520_v17 = vpop.f32.mrb[47].mxu1  ;;  %20755 = vst [vmem:[#allocation58_spill] sm:$0xff] %v18655_v7  ;;  %v20756_v43 = vld [vmem:[#allocation95_spill] sm:$0xff]  ;;  %v8920_v14 = vrot.slane %v8918_v10, 1  ;;  %v12630_v24 = vld [vmem:[#allocation11 + $0x180] sm:$0xff]   ;;  %11841 = vmatprep.mubr.msk.bf16.mxu0 %vm5806_vm5, %v18655_v7 }
 0x6c8   :  { %v8719_v50 = vsel %vm4127_vm9, %v8703_v60, %v8511_v35  ;;  %v18660_v51 = vadd.f32 %v20756_v43, %v18265_v58  ;;  %v9108_v35 = vrot.slane %v8916_v41, 1  ;;  %v9109_v13 = vrot.slane %v8918_v10, 2  ;;  %v20757_v60 = vld [vmem:[#allocation70_spill] sm:$0xff]  ;;  %10306 = vmatpush1.bf16.msra.mxu0 %v12630_v24 }
 0x6c9   :  { %v8209_v0 = vadd.f32 %v18348_v16, %v8138_v9  ;;  %v8139_v1 = vadd.f32 %v18240_v30, %v7705_v37  ;;  %v18665_v2 = vpop.f32.mrb[236].mxu0  ;;  %v8735_v58 = vsel %vm4160_vm10, %v8719_v50, %v8559_v42  ;;  %v18673_v9 = vadd.f32 %v20757_v60, %v18272_v3  ;;  %10307 = vmatprep.subr.bf16.mxu0 %v20634_v54  ;;  %v20762_v24 = vld [vmem:[#allocation102_spill] sm:$0xff] }
 0x6ca   :  { %v8079_v33 = vpop.f32.mrb[237].mxu0  ;;  %v8208_v30 = vadd.f32 %v18348_v16, %v8137_v62  ;;  %v8921_v17 = vor.u32 %v8920_v14, %v8916_v41  ;;  %v8655_v43 = vrot.slane %v18624_v20, 7  ;;  %v8751_v42 = vsel %vm4193_vm11, %v8735_v58, %v8591_v47  ;;  %v12631_v20 = vld [vmem:[#allocation11 + $0x188] sm:$0xff]  }
 0x6cb   :  { %v8261_v19 = vmax.f32 %v8207_v52, %v8209_v0  ;;  %v8210_v37 = vadd.f32 %v18348_v16, %v8139_v1  ;;  %v18677_v28 = vpop.f32.mrb[238].mxu0  ;;  %v8767_v62 = vsel %vm4226_vm4, %v8751_v42, %v8623_v27  ;;  %v9110_v0 = vor.u32 %v9109_v13, %v9108_v35  ;;  %v20759_v14 = vld [vmem:[#allocation66_spill] sm:$0xff] }
 0x6cc   :  { %v7523_v33 = vpop.f32.mrb[48].mxu1  ;;  %v8082_v10 = vpop.f32.mrb[239].mxu0  ;;  %9002 = vrot.lane.b32.xlu1 %v8921_v17, %s12977_s8  ;;  %v8783_v1 = vsel %vm2556_vm1, %v8767_v62, %v8655_v43  ;;  %v18688_v47 = vadd.f32 %v20759_v14, %v18286_v21  ;;  %v18694_v35 = vadd.f32 %v20762_v24, %v18293_v26  ;;  %10308 = vmatpush1.bf16.msra.mxu0 %v12631_v20  ;;  %v20764_v14 = vld [vmem:[#allocation64_spill] sm:$0xff]  ;;  %v20767_v24 = vld [vmem:[#allocation27_spill] sm:$0xff] }
 0x6cd   :  { %v8262_v50 = vmax.f32 %v8208_v30, %v8210_v37  ;;  %v7706_v3 = vadd.f32 %v7523_v33, %v20758_v5  ;;  %v7525_v60 = vpop.f32.mrb[49].mxu1  ;;  %v8330_v52 = vrot.slane %v8261_v19, 1  ;;  %v20761_v5 = vld [vmem:[#allocation82_spill] sm:$0xff]  ;;  %v8799_v27 = vpack.c.bf16 %v8783_v1, %v8783_v1 }
 0x6ce   :  { %v7526_v41 = vpop.f32.mrb[50].mxu1  ;;  %20760 = vst [vmem:[#allocation40_spill] sm:$0xff] %v18688_v47  ;;  %20763 = vst [vmem:[#allocation62_spill] sm:$0xff] %v18694_v35 }
 0x6cf   :  { %v8331_v58 = vrot.slane %v8262_v50, 1  ;;  %v8140_v30 = vadd.f32 %v18258_v56, %v7706_v3  ;;  %v7707_v37 = vadd.f32 %v7526_v41, %v20761_v5  ;;  %v7528_v17 = vpop.f32.mrb[51].mxu1  ;;  %v8831_v56 = vrot.slane %v8799_v27, 7 }
 0x6d0   :  { %9155 = vrot.lane.b32.xlu1 %v9110_v0, %s12978_s2  ;;  %v20765_v17 = vld [vmem:[#allocation121_spill] sm:$0xff] }
 0x6d1   :  { %v8332_v13 = vsel %vm2556_vm1, %v8330_v52, %v8331_v58  ;;  %v8406_v43 = vmax.f32 %v8262_v50, %v8331_v58  ;;  %v8141_v33 = vadd.f32 %v18262_v18, %v7707_v37  ;;  %v18699_v21 = vpop.f32.mrb[240].mxu0  ;;  %v8211_v26 = vadd.f32 %v18348_v16, %v8140_v30 }
 0x6d2   :  { %v8405_v10 = vmax.f32 %v8261_v19, %v8332_v13  ;;  %v8087_v42 = vpop.f32.mrb[241].mxu0  ;;  %v8852_v18 = vsel %vm4061_vm0, 0, %v8831_v56  ;;  %v18712_v27 = vadd.f32 %v20765_v17, %v18308_v36 }
 0x6d3   :  { %v18701_v3 = vpop.f32.mrb[242].mxu0  ;;  %v8560_v52 = vrot.slane %v8406_v43, 4  ;;  %v8592_v50 = vrot.slane %v8406_v43, 5  ;;  %v18708_v20 = vsel %vm4193_vm11, %v8852_v18, 0  ;;  %v8656_v17 = vrot.slane %v8406_v43, 7 }
 0x6d4   :  { %v8448_v60 = vrot.slane %v8405_v10, 1  ;;  %v8480_v62 = vrot.slane %v8405_v10, 2  ;;  %v7531_v41 = vpop.f32.mrb[52].mxu1  ;;  %v8090_v1 = vpop.f32.mrb[243].mxu0  ;;  %v8512_v5 = vrot.slane %v8405_v10, 3  ;;  %20766 = vst [vmem:[#allocation44_spill] sm:$0xff] %v18712_v27 }
 0x6d5   :  { %v7708_v0 = vadd.f32 %v7531_v41, %v20764_v14  ;;  %v7533_v58 = vpop.f32.mrb[53].mxu1  ;;  %v9050_v42 = vrot.slane %v18708_v20, 1  ;;  %v20768_v41 = vld [vmem:[#allocation54_spill] sm:$0xff]  ;;  %v8624_v14 = vrot.slane %v8406_v43, 6 }
 0x6d6   :  { %v8688_v19 = vsel %vm4061_vm0, %v8405_v10, %v8448_v60  ;;  %v7534_v37 = vpop.f32.mrb[54].mxu1  ;;  %v8922_v10 = vshrl.u32 %v18708_v20, 16  ;;  %v8924_v60 = vshll.u32 %v18708_v20, 16 }
 0x6d7   :  { %v8704_v30 = vsel %vm4094_vm8, %v8688_v19, %v8480_v62  ;;  %v8142_v13 = vadd.f32 %v20767_v24, %v7708_v0  ;;  %v7709_v1 = vadd.f32 %v7534_v37, %v20768_v41  ;;  %v7536_v56 = vpop.f32.mrb[55].mxu1  ;;  %9072 = vrot.lane.b32.xlu0 %v9050_v42, %s12967_s21  ;;  %v20769_v19 = vld [vmem:[#allocation105_spill] sm:$0xff] }
 0x6d8   :  { %v8720_v58 = vsel %vm4127_vm9, %v8704_v30, %v8512_v5  ;;  %v18729_v37 = vadd.f32 %v20769_v19, %v18315_v61  ;;  %v8926_v24 = vrot.slane %v8924_v60, 1  ;;  %v8212_v5 = vadd.f32 %v18348_v16, %v8141_v33 }
 0x6d9   :  { %v8213_v18 = vadd.f32 %v18348_v16, %v8142_v13  ;;  %v8143_v36 = vadd.f32 %v18283_v45, %v7709_v1  ;;  %v18724_v62 = vpop.f32.mrb[244].mxu0  ;;  %v8736_v0 = vsel %vm4160_vm10, %v8720_v58, %v8560_v52  ;;  %v9111_v40 = vrot.slane %v8922_v10, 1 }
 0x6da   :  { %20770 = vst [vmem:[#allocation72_spill] sm:$0xff] %v18729_v37  ;;  %v8095_v41 = vpop.f32.mrb[245].mxu0  ;;  %v8752_v56 = vsel %vm4193_vm11, %v8736_v0, %v8592_v50  ;;  %v8927_v1 = vor.u32 %v8926_v24, %v8922_v10  ;;  %v9112_v61 = vrot.slane %v8924_v60, 2 }
 0x6db   :  { %v8263_v30 = vmax.f32 %v8211_v26, %v8213_v18  ;;  %v8214_v13 = vadd.f32 %v18348_v16, %v8143_v36  ;;  %v18734_v42 = vpop.f32.mrb[246].mxu0  ;;  %v8768_v45 = vsel %vm4226_vm4, %v8752_v56, %v8624_v14  ;;  %v20771_v41 = vld [vmem:[#allocation94_spill] sm:$0xff]  ;;  %v20772_v36 = vld [vmem:[#allocation28_spill] sm:$0xff]  ;;  %v20773_v14 = vld [vmem:[#allocation91_spill] sm:$0xff] }
 0x6dc   :  { %v7539_v52 = vpop.f32.mrb[56].mxu1  ;;  %v8098_v58 = vpop.f32.mrb[247].mxu0  ;;  %v8784_v43 = vsel %vm2556_vm1, %v8768_v45, %v8656_v17  ;;  %9004 = vrot.lane.b32.xlu0 %v8927_v1, %s12977_s8  ;;  %v9113_v10 = vor.u32 %v9112_v61, %v9111_v40  ;;  %v20774_v17 = vld [vmem:[#allocation118_spill] sm:$0xff] }
 0x6dd   :  { %v8264_v19 = vmax.f32 %v8212_v5, %v8214_v13  ;;  %v7710_v7 = vadd.f32 %v7539_v52, %v20771_v41  ;;  %v7541_v50 = vpop.f32.mrb[57].mxu1  ;;  %v8800_v0 = vpack.c.bf16 %v8784_v43, %v8784_v43  ;;  %v8333_v33 = vrot.slane %v8263_v30, 1 }
 0x6de   :  { %v7542_v26 = vpop.f32.mrb[58].mxu1 }
 0x6df   :  { %v8334_v18 = vrot.slane %v8264_v19, 1  ;;  %v8144_v37 = vadd.f32 %v20772_v36, %v7710_v7  ;;  %v7711_v24 = vadd.f32 %v7542_v26, %v20773_v14  ;;  %v7544_v56 = vpop.f32.mrb[59].mxu1  ;;  %v8832_v58 = vrot.slane %v8800_v0, 7 }
 0x6e0   :  { %9157 = vrot.lane.b32.xlu0 %v9113_v10, %s12978_s2 }
 0x6e1   :  { %v8335_v60 = vsel %vm2556_vm1, %v8333_v33, %v8334_v18  ;;  %v8145_v5 = vadd.f32 %v20774_v17, %v7711_v24  ;;  %v18744_v13 = vpop.f32.mrb[248].mxu0  ;;  %v8854_v1 = vsel %vm4061_vm0, 0, %v8832_v58  ;;  %v8408_v43 = vmax.f32 %v8264_v19, %v8334_v18  ;;  %v20777_v33 = vld [vmem:[#allocation96_spill] sm:$0xff]  ;;  %v20778_v17 = vld [vmem:[#allocation34_spill] sm:$0xff] }
 0x6e2   :  { %20775 = vst [vmem:[#allocation69_spill] sm:$0xff] %v18744_v13  ;;  %v8407_v45 = vmax.f32 %v8263_v30, %v8335_v60  ;;  %v8103_v52 = vpop.f32.mrb[249].mxu0  ;;  %v8215_v61 = vadd.f32 %v18348_v16, %v8144_v37  ;;  %v18753_v30 = vsel %vm4193_vm11, %v8854_v1, 0  ;;  %v20779_v37 = vld [vmem:[#allocation103_spill] sm:$0xff] }
 0x6e3   :  { %v18748_v41 = vpop.f32.mrb[250].mxu0  ;;  %v9051_v56 = vrot.slane %v18753_v30, 1  ;;  %v8928_v18 = vshrl.u32 %v18753_v30, 16  ;;  %v8930_v58 = vshll.u32 %v18753_v30, 16  ;;  %v8561_v10 = vrot.slane %v8408_v43, 4 }
 0x6e4   :  { %20776 = vst [vmem:[#allocation36_spill] sm:$0xff] %v18748_v41  ;;  %v8449_v7 = vrot.slane %v8407_v45, 1  ;;  %v8481_v50 = vrot.slane %v8407_v45, 2  ;;  %v7547_v26 = vpop.f32.mrb[60].mxu1  ;;  %v8106_v0 = vpop.f32.mrb[251].mxu0  ;;  %v8513_v40 = vrot.slane %v8407_v45, 3 }
 0x6e5   :  { %v7712_v36 = vadd.f32 %v7547_v26, %v20777_v33  ;;  %v7549_v14 = vpop.f32.mrb[61].mxu1  ;;  %v8593_v0 = vrot.slane %v8408_v43, 5  ;;  %v8625_v1 = vrot.slane %v8408_v43, 6  ;;  %9074 = vrot.lane.b32.xlu1 %v9051_v56, %s12967_s21  ;;  %v8657_v33 = vrot.slane %v8408_v43, 7  ;;  %v20780_v41 = vld [vmem:[#allocation88_spill] sm:$0xff] }
 0x6e6   :  { %v8689_v24 = vsel %vm4061_vm0, %v8407_v45, %v8449_v7  ;;  %v7550_v19 = vpop.f32.mrb[62].mxu1  ;;  %v8932_v45 = vrot.slane %v8930_v58, 1  ;;  %v18764_v14 = vld [vmem:[#allocation10] ss:$0 sm:$0xff] }
 0x6e7   :  { %v8705_v60 = vsel %vm4094_vm8, %v8689_v24, %v8481_v50  ;;  %v8146_v16 = vadd.f32 %v20778_v17, %v7712_v36  ;;  %v7713_v52 = vadd.f32 %v7550_v19, %v20779_v37  ;;  %v7552_v26 = vpop.f32.mrb[63].mxu1  ;;  %v9114_v17 = vrot.slane %v8928_v18, 1 }
 0x6e8   :  { %v8721_v7 = vsel %vm4127_vm9, %v8705_v60, %v8513_v40  ;;  %v8933_v24 = vor.u32 %v8932_v45, %v8928_v18  ;;  %v9115_v37 = vrot.slane %v8930_v58, 2  ;;  %v8216_v26 = vadd.f32 %v18764_v14, %v8145_v5  ;;  %v20783_v18 = vld [vmem:[#allocation24_spill] sm:$0xff] }
 0x6e9   :  { %v8217_v27 = vadd.f32 %v18764_v14, %v8146_v16  ;;  %v8147_v35 = vadd.f32 %v20780_v41, %v7713_v52  ;;  %v18768_v50 = vpop.f32.mrb[252].mxu0  ;;  %v8737_v36 = vsel %vm4160_vm10, %v8721_v7, %v8561_v10 }
 0x6ea   :  { %20781 = vst [vmem:[#allocation52_spill] sm:$0xff] %v18768_v50  ;;  %v8111_v19 = vpop.f32.mrb[253].mxu0  ;;  %v8753_v56 = vsel %vm4193_vm11, %v8737_v36, %v8593_v0  ;;  %9006 = vrot.lane.b32.xlu1 %v8933_v24, %s12977_s8  ;;  %v9116_v5 = vor.u32 %v9115_v37, %v9114_v17 }
 0x6eb   :  { %v8265_v40 = vmax.f32 %v8215_v61, %v8217_v27  ;;  %v8218_v43 = vadd.f32 %v18764_v14, %v8147_v35  ;;  %v18774_v60 = vpop.f32.mrb[254].mxu0  ;;  %v8769_v16 = vsel %vm4226_vm4, %v8753_v56, %v8625_v1  ;;  %v20784_v35 = vld [vmem:[#allocation38_spill] sm:$0xff] }
 0x6ec   :  { %20782 = vst [vmem:[#allocation125_spill] sm:$0xff] %v18774_v60  ;;  %v7555_v41 = vpop.f32.mrb[64].mxu1  ;;  %v8114_v52 = vpop.f32.mrb[255].mxu0  ;;  %v8785_v10 = vsel %vm2556_vm1, %v8769_v16, %v8657_v33  ;;  %v20785_v60 = vld [vmem:[#allocation83_spill] sm:$0xff]  ;;  %v20786_v33 = vld [vmem:[#allocation76_spill] sm:$0xff] }
 0x6ed   :  { %v8266_v45 = vmax.f32 %v8216_v26, %v8218_v43  ;;  %v7714_v58 = vadd.f32 %v7555_v41, %v20783_v18  ;;  %v7557_v7 = vpop.f32.mrb[65].mxu1  ;;  %v8801_v0 = vpack.c.bf16 %v8785_v10, %v8785_v10  ;;  %v8336_v36 = vrot.slane %v8265_v40, 1 }
 0x6ee   :  { %v7558_v27 = vpop.f32.mrb[66].mxu1  ;;  %9159 = vrot.lane.b32.xlu1 %v9116_v5, %s12978_s2 }
 0x6ef   :  { %v8337_v61 = vrot.slane %v8266_v45, 1  ;;  %v8148_v19 = vadd.f32 %v20784_v35, %v7714_v58  ;;  %v7715_v50 = vadd.f32 %v7558_v27, %v20785_v60  ;;  %v7560_v1 = vpop.f32.mrb[67].mxu1  ;;  %v8833_v56 = vrot.slane %v8801_v0, 7  ;;  %v20787_v58 = vld [vmem:[#allocation33_spill] sm:$0xff] }
 0x6f1   :  { %v8338_v24 = vsel %vm2556_vm1, %v8336_v36, %v8337_v61  ;;  %v8149_v26 = vadd.f32 %v20786_v33, %v7715_v50  ;;  %v8856_v16 = vsel %vm4061_vm0, 0, %v8833_v56  ;;  %v8410_v41 = vmax.f32 %v8266_v45, %v8337_v61 }
 0x6f2   :  { %v8409_v43 = vmax.f32 %v8265_v40, %v8338_v24  ;;  %v8219_v18 = vadd.f32 %v18764_v14, %v8148_v19  ;;  %v18789_v0 = vsel %vm4193_vm11, %v8856_v16, 0  ;;  %v20788_v19 = vld [vmem:[#allocation87_spill] sm:$0xff] }
 0x6f3   :  { %v9052_v50 = vrot.slane %v18789_v0, 1  ;;  %v8934_v5 = vshrl.u32 %v18789_v0, 16  ;;  %v8936_v45 = vshll.u32 %v18789_v0, 16  ;;  %v8562_v27 = vrot.slane %v8410_v41, 4 }
 0x6f4   :  { %v8450_v52 = vrot.slane %v8409_v43, 1  ;;  %v8482_v17 = vrot.slane %v8409_v43, 2  ;;  %v7563_v37 = vpop.f32.mrb[68].mxu1  ;;  %v8514_v10 = vrot.slane %v8409_v43, 3  ;;  %v8594_v24 = vrot.slane %v8410_v41, 5 }
 0x6f5   :  { %v7716_v60 = vadd.f32 %v7563_v37, %v20787_v58  ;;  %v7565_v7 = vpop.f32.mrb[69].mxu1  ;;  %v8626_v33 = vrot.slane %v8410_v41, 6  ;;  %9076 = vrot.lane.b32.xlu0 %v9052_v50, %s12967_s21 }
 0x6f6   :  { %v8690_v36 = vsel %vm4061_vm0, %v8409_v43, %v8450_v52  ;;  %v7566_v40 = vpop.f32.mrb[70].mxu1  ;;  %v8938_v43 = vrot.slane %v8936_v45, 1  ;;  %v8658_v52 = vrot.slane %v8410_v41, 7  ;;  %v20789_v7 = vld [vmem:[#allocation42_spill] sm:$0xff] }
 0x6f7   :  { %v8706_v61 = vsel %vm4094_vm8, %v8690_v36, %v8482_v17  ;;  %v8150_v35 = vadd.f32 %v18364_v31, %v7716_v60  ;;  %v7717_v1 = vadd.f32 %v7566_v40, %v20788_v19  ;;  %v7568_v56 = vpop.f32.mrb[71].mxu1  ;;  %v9117_v60 = vrot.slane %v8934_v5, 1 }
 0x6f8   :  { %v8722_v16 = vsel %vm4127_vm9, %v8706_v61, %v8514_v10  ;;  %v8939_v31 = vor.u32 %v8938_v43, %v8934_v5  ;;  %v9118_v36 = vrot.slane %v8936_v45, 2  ;;  %v8220_v19 = vadd.f32 %v18764_v14, %v8149_v26  ;;  %v20792_v26 = vld [vmem:[#allocation119_spill] sm:$0xff] }
 0x6f9   :  { %v8738_v37 = vsel %vm4160_vm10, %v8722_v16, %v8562_v27  ;;  %v8221_v58 = vadd.f32 %v18764_v14, %v8150_v35  ;;  %v8151_v13 = vadd.f32 %v20789_v7, %v7717_v1  ;;  %v20790_v35 = vld [vmem:[#allocation37_spill] sm:$0xff] }
 0x6fa   :  { %v8754_v17 = vsel %vm4193_vm11, %v8738_v37, %v8594_v24  ;;  %9008 = vrot.lane.b32.xlu0 %v8939_v31, %s12977_s8  ;;  %v9119_v24 = vor.u32 %v9118_v36, %v9117_v60  ;;  %v8995_v60 = vpop.permute.xlu1 %8994  ;;  %v20794_v36 = vld [vmem:[#allocation41_spill] sm:$0xff] }
 0x6fb   :  { %v8770_v40 = vsel %vm4226_vm4, %v8754_v17, %v8626_v33  ;;  %v8267_v10 = vmax.f32 %v8219_v18, %v8221_v58  ;;  %v8222_v50 = vadd.f32 %v18764_v14, %v8151_v13  ;;  %v20791_v33 = vld [vmem:[#allocation71_spill] sm:$0xff]  ;;  %v20793_v58 = vld [vmem:[#allocation46_spill] sm:$0xff] }
 0x6fc   :  { %v7571_v41 = vpop.f32.mrb[72].mxu1  ;;  %v18809_v27 = vsel %vm2556_vm1, %v8770_v40, %v8658_v52 }
 0x6fd   :  { %v8268_v61 = vmax.f32 %v8220_v19, %v8222_v50  ;;  %v7718_v1 = vadd.f32 %v7571_v41, %v20790_v35  ;;  %v7573_v56 = vpop.f32.mrb[73].mxu1  ;;  %v8339_v45 = vrot.slane %v8267_v10, 1 }
 0x6fe   :  { %v7574_v5 = vpop.f32.mrb[74].mxu1  ;;  %9161 = vrot.lane.b32.xlu0 %v9119_v24, %s12978_s2 }
 0x6ff   :  { %v8340_v16 = vrot.slane %v8268_v61, 1  ;;  %v8152_v43 = vadd.f32 %v20791_v33, %v7718_v1  ;;  %v7719_v18 = vadd.f32 %v7574_v5, %v20792_v26  ;;  %v7576_v37 = vpop.f32.mrb[75].mxu1  ;;  %v20795_v33 = vld [vmem:[#allocation67_spill] sm:$0xff] }
 0x700   :  { %v20796_v26 = vld [vmem:[#allocation99_spill] sm:$0xff] }
 0x701   :  { %v8341_v13 = vsel %vm2556_vm1, %v8339_v45, %v8340_v16  ;;  %v8153_v52 = vadd.f32 %v20793_v58, %v7719_v18  ;;  %v8412_v17 = vmax.f32 %v8268_v61, %v8340_v16  ;;  %v8223_v16 = vadd.f32 %v18764_v14, %v8152_v43 }
 0x702   :  { %v8411_v7 = vmax.f32 %v8267_v10, %v8341_v13 }
 0x703   :  { %v8563_v5 = vrot.slane %v8412_v17, 4  ;;  %v8595_v61 = vrot.slane %v8412_v17, 5  ;;  %v8627_v13 = vrot.slane %v8412_v17, 6 }
 0x704   :  { %v8451_v31 = vrot.slane %v8411_v7, 1  ;;  %v8483_v40 = vrot.slane %v8411_v7, 2  ;;  %v7579_v19 = vpop.f32.mrb[76].mxu1  ;;  %v8515_v35 = vrot.slane %v8411_v7, 3 }
 0x705   :  { %v7720_v50 = vadd.f32 %v7579_v19, %v20794_v36  ;;  %v7581_v41 = vpop.f32.mrb[77].mxu1  ;;  %v20797_v19 = vld [vmem:[#allocation59_spill] sm:$0xff] }
 0x706   :  { %v8691_v1 = vsel %vm4061_vm0, %v8411_v7, %v8451_v31  ;;  %v7582_v56 = vpop.f32.mrb[78].mxu1  ;;  %v8659_v31 = vrot.slane %v8412_v17, 7 }
 0x707   :  { %v8707_v24 = vsel %vm4094_vm8, %v8691_v1, %v8483_v40  ;;  %v8154_v45 = vadd.f32 %v20795_v33, %v7720_v50  ;;  %v7721_v18 = vadd.f32 %v7582_v56, %v20796_v26  ;;  %v7584_v10 = vpop.f32.mrb[79].mxu1  ;;  %v9065_v41 = vpop.permute.xlu0 %9064  ;;  %v8224_v1 = vadd.f32 %v18764_v14, %v8153_v52  ;;  %v20798_v26 = vld [vmem:[#allocation135_spill] sm:$0xff] }
 0x708   :  { %v8723_v37 = vsel %vm4127_vm9, %v8707_v24, %v8515_v35  ;;  %v9063_v40 = vpop.permute.xlu1 %9062 }
 0x709   :  { %v8225_v58 = vadd.f32 %v18764_v14, %v8154_v45  ;;  %v8155_v36 = vadd.f32 %v20797_v19, %v7721_v18  ;;  %v8739_v7 = vsel %vm4160_vm10, %v8723_v37, %v8563_v5  ;;  %v9199_v18 = vsel %vm5806_vm5, %v20798_v26, %v8995_v60  ;;  %v20799_v5 = vld [vmem:[#allocation101_spill] sm:$0xff]  ;;  %v20802_v60 = vld [vmem:[#allocation35_spill] sm:$0xff] }
 0x70a   :  { %v8755_v50 = vsel %vm4193_vm11, %v8739_v7, %v8595_v61  ;;  %v19921_v26 = vrot.slane %v18521_v11, 2 }
 0x70b   :  { %v8269_v56 = vmax.f32 %v8223_v16, %v8225_v58  ;;  %v8226_v33 = vadd.f32 %v18764_v14, %v8155_v36  ;;  %v8771_v43 = vsel %vm4226_vm4, %v8755_v50, %v8627_v13  ;;  %v20800_v16 = vld [vmem:[#allocation123_spill] sm:$0xff]  ;;  %v20801_v36 = vld [vmem:[#allocation45_spill] sm:$0xff] }
 0x70c   :  { %v7587_v35 = vpop.f32.mrb[80].mxu1  ;;  %v8787_v24 = vsel %vm2556_vm1, %v8771_v43, %v8659_v31  ;;  %v9233_v31 = vsel %vm5873_vm6, %v9199_v18, %v9063_v40 }
 0x70d   :  { %v8270_v45 = vmax.f32 %v8224_v1, %v8226_v33  ;;  %v7722_v17 = vadd.f32 %v7587_v35, %v20799_v5  ;;  %v7589_v10 = vpop.f32.mrb[81].mxu1  ;;  %v8803_v37 = vpack.c.bf16 %v8787_v24, %v8787_v24  ;;  %v8342_v19 = vrot.slane %v8269_v56, 1  ;;  %v9148_v1 = vpop.permute.xlu1 %9147  ;;  %v20803_v35 = vld [vmem:[#allocation31_spill] sm:$0xff] }
 0x70e   :  { %v7590_v61 = vpop.f32.mrb[82].mxu1  ;;  %v8997_v52 = vpop.permute.xlu0 %8996 }
 0x70f   :  { %v8343_v7 = vrot.slane %v8270_v45, 1  ;;  %v8156_v58 = vadd.f32 %v20800_v16, %v7722_v17  ;;  %v7723_v47 = vadd.f32 %v7590_v61, %v20801_v36  ;;  %v7592_v13 = vpop.f32.mrb[83].mxu1  ;;  %v8835_v50 = vrot.slane %v8803_v37, 7 }
 0x710   :  { %v9201_v43 = vsel %vm5806_vm5, %v20802_v60, %v8997_v52  ;;  %v18845_v61 = vsel %vm5940_vm7, %v9233_v31, %v9148_v1  ;;  %v20805_v37 = vrot.slane %v18577_v34, 2  ;;  %v20807_v13 = vld [vmem:[#allocation57_spill] sm:$0xff] }
 0x711   :  { %v8344_v33 = vsel %vm2556_vm1, %v8342_v19, %v8343_v7  ;;  %v8157_v24 = vadd.f32 %v20803_v35, %v7723_v47  ;;  %v8860_v10 = vsel %vm4061_vm0, 0, %v8835_v50  ;;  %20804 = vst [vmem:[#allocation55_spill] sm:$0xff] %v18845_v61  ;;  %v8414_v18 = vmax.f32 %v8270_v45, %v8343_v7 }
 0x712   :  { %v8413_v5 = vmax.f32 %v8269_v56, %v8344_v33  ;;  %v9150_v17 = vpop.permute.xlu0 %9149  ;;  %v18851_v40 = vcombine.low %v19921_v26, %v20805_v37  ;;  %v9235_v47 = vsel %vm5873_vm6, %v9201_v43, %v9065_v41  ;;  %v18859_v1 = vsel %vm4193_vm11, %v8860_v10, 0  ;;  %v20808_v37 = vld [vmem:[#allocation56_spill] sm:$0xff] }
 0x713   :  { %v18855_v56 = vsel %vm5940_vm7, %v9235_v47, %v9150_v17  ;;  %v9054_v7 = vrot.slane %v18859_v1, 1  ;;  %v8946_v41 = vshrl.u32 %v18859_v1, 16  ;;  %v8948_v10 = vshll.u32 %v18859_v1, 16 }
 0x714   :  { %20806 = vst [vmem:[#allocation127_spill] sm:$0xff] %v18851_v40  ;;  %v8452_v19 = vrot.slane %v8413_v5, 1  ;;  %v8484_v52 = vrot.slane %v8413_v5, 2  ;;  %v7595_v16 = vpop.f32.mrb[84].mxu1  ;;  %v8516_v36 = vrot.slane %v8413_v5, 3  ;;  %v11721_v45 = vcombine.low %v18845_v61, %v18855_v56 }
 0x715   :  { %v7724_v50 = vadd.f32 %v7595_v16, %v20807_v13  ;;  %v7597_v31 = vpop.f32.mrb[85].mxu1  ;;  %v8564_v13 = vrot.slane %v8414_v18, 4  ;;  %9080 = vrot.lane.b32.xlu0 %v9054_v7, %s12967_s21 }
 0x716   :  { %v8692_v33 = vsel %vm4061_vm0, %v8413_v5, %v8452_v19  ;;  %v7598_v35 = vpop.f32.mrb[86].mxu1  ;;  %v8227_v5 = vadd.f32 %v18764_v14, %v8156_v58  ;;  %9527 = vmatmul.mubr.bf16.vlgmr.msra.gmra.mrb[128].mxu1 %v11721_v45  ;;  %v8596_v31 = vrot.slane %v8414_v18, 5  ;;  %v8228_v58 = vadd.f32 %v18764_v14, %v8157_v24 }
 0x717   :  { %v8708_v43 = vsel %vm4094_vm8, %v8692_v33, %v8484_v52  ;;  %v8158_v17 = vadd.f32 %v18474_v55, %v7724_v50  ;;  %v7725_v47 = vadd.f32 %v7598_v35, %v20808_v37  ;;  %v7600_v16 = vpop.f32.mrb[87].mxu1  ;;  %11748 = vmatprep.mubr.msk.bf16.mxu1 %vm5806_vm5, %v18851_v40  ;;  %v8950_v52 = vrot.slane %v8948_v10, 1 }
 0x718   :  { %v8724_v19 = vsel %vm4127_vm9, %v8708_v43, %v8516_v36  ;;  %v8628_v50 = vrot.slane %v8414_v18, 6  ;;  %v9123_v33 = vrot.slane %v8946_v41, 1  ;;  %v9124_v35 = vrot.slane %v8948_v10, 2 }
 0x719   :  { %v8229_v26 = vadd.f32 %v18764_v14, %v8158_v17  ;;  %v8159_v55 = vadd.f32 %v18488_v23, %v7725_v47  ;;  %v8740_v37 = vsel %vm4160_vm10, %v8724_v19, %v8564_v13  ;;  %v9067_v36 = vpop.permute.xlu1 %9066  ;;  %v8951_v43 = vor.u32 %v8950_v52, %v8946_v41  ;;  %v20809_v23 = vld [vmem:[#allocation120_spill] sm:$0xff] }
 0x71a   :  { %v8660_v16 = vrot.slane %v8414_v18, 7  ;;  %v8756_v60 = vsel %vm4193_vm11, %v8740_v37, %v8596_v31  ;;  %v9125_v19 = vor.u32 %v9124_v35, %v9123_v33  ;;  %v20810_v18 = vld [vmem:[#allocation30_spill] sm:$0xff] }
 0x71b   :  { %v8271_v45 = vmax.f32 %v8227_v5, %v8229_v26  ;;  %v8230_v7 = vadd.f32 %v18764_v14, %v8159_v55  ;;  %9012 = vrot.lane.b32.xlu1 %v8951_v43, %s12977_s8  ;;  %v8772_v10 = vsel %vm4226_vm4, %v8756_v60, %v8628_v50 }
 0x71c   :  { %v7603_v17 = vpop.f32.mrb[88].mxu1  ;;  %v8788_v26 = vsel %vm2556_vm1, %v8772_v10, %v8660_v16 }
 0x71d   :  { %v8272_v40 = vmax.f32 %v8228_v58, %v8230_v7  ;;  %v7726_v47 = vadd.f32 %v7603_v17, %v20809_v23  ;;  %v7605_v61 = vpop.f32.mrb[89].mxu1  ;;  %v8345_v13 = vrot.slane %v8271_v45, 1  ;;  %v8804_v31 = vpack.c.bf16 %v8788_v26, %v8788_v26 }
 0x71e   :  { %v7606_v24 = vpop.f32.mrb[90].mxu1  ;;  %v8999_v37 = vpop.permute.xlu1 %8998 }
 0x71f   :  { %v8346_v5 = vrot.slane %v8272_v40, 1  ;;  %v8160_v41 = vadd.f32 %v18511_v53, %v7726_v47  ;;  %v7727_v55 = vadd.f32 %v7606_v24, %v20810_v18  ;;  %v7608_v52 = vpop.f32.mrb[91].mxu1  ;;  %v9203_v61 = vsel %vm5806_vm5, %v18521_v11, %v8999_v37  ;;  %9165 = vrot.lane.b32.xlu1 %v9125_v19, %s12978_s2 }
 0x720   :  { %v8836_v33 = vrot.slane %v8804_v31, 7  ;;  %v9237_v16 = vsel %vm5873_vm6, %v9203_v61, %v9067_v36 }
 0x721   :  { %v8347_v58 = vsel %vm2556_vm1, %v8345_v13, %v8346_v5  ;;  %v8416_v7 = vmax.f32 %v8272_v40, %v8346_v5  ;;  %v8161_v50 = vadd.f32 %v18513_v59, %v7727_v55  ;;  %v8231_v53 = vadd.f32 %v18764_v14, %v8160_v41 }
 0x722   :  { %v8415_v60 = vmax.f32 %v8271_v45, %v8347_v58  ;;  %v9152_v17 = vpop.permute.xlu1 %9151  ;;  %v8862_v45 = vsel %vm4061_vm0, 0, %v8836_v33 }
 0x723   :  { %v8565_v47 = vrot.slane %v8416_v7, 4  ;;  %v18895_v40 = vsel %vm5940_vm7, %v9237_v16, %v9152_v17  ;;  %v18905_v36 = vsel %vm4193_vm11, %v8862_v45, 0  ;;  %v8597_v52 = vrot.slane %v8416_v7, 5 }
 0x724   :  { %v8453_v35 = vrot.slane %v8415_v60, 1  ;;  %v8485_v43 = vrot.slane %v8415_v60, 2  ;;  %v7611_v23 = vpop.f32.mrb[92].mxu1  ;;  %v8517_v19 = vrot.slane %v8415_v60, 3  ;;  %v18902_v24 = vcombine.low %v18855_v56, %v18895_v40 }
 0x725   :  { %v7728_v10 = vadd.f32 %v7611_v23, %v18480_v32  ;;  %v7613_v13 = vpop.f32.mrb[93].mxu1  ;;  %v9055_v32 = vrot.slane %v18905_v36, 1  ;;  %v8952_v31 = vshrl.u32 %v18905_v36, 16  ;;  %v8954_v37 = vshll.u32 %v18905_v36, 16 }
 0x726   :  { %v8693_v59 = vsel %vm4061_vm0, %v8415_v60, %v8453_v35  ;;  %v7614_v26 = vpop.f32.mrb[94].mxu1  ;;  %v8629_v58 = vrot.slane %v8416_v7, 6  ;;  %v20811_v60 = vld [vmem:[#allocation39_spill] sm:$0xff]  ;;  %v8661_v35 = vrot.slane %v8416_v7, 7  ;;  %v8232_v17 = vadd.f32 %v18764_v14, %v8161_v50 }
 0x727   :  { %v8709_v5 = vsel %vm4094_vm8, %v8693_v59, %v8485_v43  ;;  %v8162_v41 = vadd.f32 %v18537_v8, %v7728_v10  ;;  %v7729_v18 = vadd.f32 %v7614_v26, %v18484_v22  ;;  %v7616_v55 = vpop.f32.mrb[95].mxu1  ;;  %9082 = vrot.lane.b32.xlu0 %v9055_v32, %s12967_s21  ;;  %v9069_v43 = vpop.permute.xlu0 %9068  ;;  %v8956_v22 = vrot.slane %v8954_v37, 1 }
 0x728   :  { %v8725_v56 = vsel %vm4127_vm9, %v8709_v5, %v8517_v19  ;;  %v9126_v59 = vrot.slane %v8952_v31, 1  ;;  %v9127_v26 = vrot.slane %v8954_v37, 2 }
 0x729   :  { %v8233_v61 = vadd.f32 %v18764_v14, %v8162_v41  ;;  %v8163_v33 = vadd.f32 %v20811_v60, %v7729_v18  ;;  %v8741_v8 = vsel %vm4160_vm10, %v8725_v56, %v8565_v47  ;;  %v8957_v45 = vor.u32 %v8956_v22, %v8952_v31  ;;  %v20812_v47 = vld [vmem:[#allocation47_spill] sm:$0xff] }
 0x72a   :  { %v8757_v16 = vsel %vm4193_vm11, %v8741_v8, %v8597_v52  ;;  %v9128_v60 = vor.u32 %v9127_v26, %v9126_v59 }
 0x72b   :  { %v8273_v23 = vmax.f32 %v8231_v53, %v8233_v61  ;;  %v8234_v10 = vadd.f32 %v18764_v14, %v8163_v33  ;;  %v8773_v13 = vsel %vm4226_vm4, %v8757_v16, %v8629_v58  ;;  %9014 = vrot.lane.b32.xlu0 %v8957_v45, %s12977_s8  ;;  %v9186_v53 = vrot.slane %v18708_v20, 2  ;;  %v20813_v61 = vld [vmem:[#allocation63_spill] sm:$0xff] }
 0x72c   :  { %v7619_v19 = vpop.f32.mrb[96].mxu1  ;;  %v8789_v5 = vsel %vm2556_vm1, %v8773_v13, %v8661_v35  ;;  %v9001_v55 = vpop.permute.xlu0 %9000 }
 0x72d   :  { %v8274_v41 = vmax.f32 %v8232_v17, %v8234_v10  ;;  %v7730_v7 = vadd.f32 %v7619_v19, %v20812_v47  ;;  %v7621_v32 = vpop.f32.mrb[97].mxu1  ;;  %v8805_v18 = vpack.c.bf16 %v8789_v5, %v8789_v5  ;;  %v8348_v52 = vrot.slane %v8273_v23, 1 }
 0x72e   :  { %v7622_v50 = vpop.f32.mrb[98].mxu1  ;;  %v9205_v35 = vsel %vm5806_vm5, %v18577_v34, %v9001_v55 }
 0x72f   :  { %v8349_v56 = vrot.slane %v8274_v41, 1  ;;  %v8164_v58 = vadd.f32 %v18567_v12, %v7730_v7  ;;  %v7731_v31 = vadd.f32 %v7622_v50, %v20813_v61  ;;  %v7624_v37 = vpop.f32.mrb[99].mxu1  ;;  %v8837_v33 = vrot.slane %v8805_v18, 7  ;;  %9167 = vrot.lane.b32.xlu0 %v9128_v60, %s12978_s2 }
 0x730   :  { %v9154_v17 = vpop.permute.xlu0 %9153  ;;  %v20814_v12 = vrot.slane %v18638_v39, 2  ;;  %v9239_v26 = vsel %vm5873_vm6, %v9205_v35, %v9069_v43 }
 0x731   :  { %v8350_v8 = vsel %vm2556_vm1, %v8348_v52, %v8349_v56  ;;  %v8165_v22 = vadd.f32 %v18572_v57, %v7731_v31  ;;  %v8864_v10 = vsel %vm4061_vm0, 0, %v8837_v33  ;;  %v8418_v45 = vmax.f32 %v8274_v41, %v8349_v56 }
 0x732   :  { %v8417_v16 = vmax.f32 %v8273_v23, %v8350_v8  ;;  %v18938_v13 = vcombine.low %v20814_v12, %v9186_v53  ;;  %v18942_v57 = vsel %vm5940_vm7, %v9239_v26, %v9154_v17  ;;  %v20815_v23 = vld [vmem:[#allocation141_spill] sm:$0xff]  ;;  %v18946_v32 = vsel %vm4193_vm11, %v8864_v10, 0 }
 0x733   :  { %v18951_v41 = vcombine.low %v18895_v40, %v18942_v57  ;;  %v9056_v55 = vrot.slane %v18946_v32, 1  ;;  %v8958_v50 = vshrl.u32 %v18946_v32, 16  ;;  %v8960_v37 = vshll.u32 %v18946_v32, 16 }
 0x734   :  { %v8454_v19 = vrot.slane %v8417_v16, 1  ;;  %v8486_v59 = vrot.slane %v8417_v16, 2  ;;  %v7627_v34 = vpop.f32.mrb[100].mxu1  ;;  %v8518_v5 = vrot.slane %v8417_v16, 3  ;;  %v8566_v60 = vrot.slane %v8418_v45, 4 }
 0x735   :  { %v7732_v47 = vadd.f32 %v7627_v34, %v20815_v23  ;;  %v7629_v7 = vpop.f32.mrb[101].mxu1  ;;  %v8235_v33 = vadd.f32 %v18764_v14, %v8164_v58  ;;  %9535 = vmatmul.mubr.bf16.gmra.mrb[132].mxu1 %v18951_v41  ;;  %9084 = vrot.lane.b32.xlu1 %v9056_v55, %s12967_s21  ;;  %v8598_v8 = vrot.slane %v8418_v45, 5  ;;  %v9129_v10 = vrot.slane %v8958_v50, 1 }
 0x736   :  { %v8694_v18 = vsel %vm4061_vm0, %v8417_v16, %v8454_v19  ;;  %v7630_v43 = vpop.f32.mrb[102].mxu1  ;;  %11749 = vmatprep.mubr.msk.bf16.mxu1 %vm5806_vm5, %v18938_v13  ;;  %v8630_v16 = vrot.slane %v8418_v45, 6  ;;  %v9130_v12 = vrot.slane %v8960_v37, 2  ;;  %v8236_v19 = vadd.f32 %v18764_v14, %v8165_v22 }
 0x737   :  { %v8710_v52 = vsel %vm4094_vm8, %v8694_v18, %v8486_v59  ;;  %v8166_v56 = vadd.f32 %v18591_v46, %v7732_v47  ;;  %v7733_v61 = vadd.f32 %v7630_v43, %v18549_v63  ;;  %v7632_v31 = vpop.f32.mrb[103].mxu1  ;;  %v8962_v46 = vrot.slane %v8960_v37, 1  ;;  %v9071_v17 = vpop.permute.xlu1 %9070 }
 0x738   :  { %v8726_v40 = vsel %vm4127_vm9, %v8710_v52, %v8518_v5  ;;  %v8662_v5 = vrot.slane %v8418_v45, 7  ;;  %v9131_v52 = vor.u32 %v9130_v12, %v9129_v10  ;;  %v9187_v22 = vrot.slane %v18753_v30, 2 }
 0x739   :  { %v8237_v35 = vadd.f32 %v18764_v14, %v8166_v56  ;;  %v8167_v63 = vadd.f32 %v18601_v25, %v7733_v61  ;;  %v8742_v58 = vsel %vm4160_vm10, %v8726_v40, %v8566_v60  ;;  %v8963_v34 = vor.u32 %v8962_v46, %v8958_v50 }
 0x73a   :  { %v8758_v47 = vsel %vm4193_vm11, %v8742_v58, %v8598_v8 }
 0x73b   :  { %v8275_v59 = vmax.f32 %v8235_v33, %v8237_v35  ;;  %v8238_v26 = vadd.f32 %v18764_v14, %v8167_v63  ;;  %9016 = vrot.lane.b32.xlu1 %v8963_v34, %s12977_s8  ;;  %v8774_v55 = vsel %vm4226_vm4, %v8758_v47, %v8630_v16  ;;  %v12632_v63 = vld [vmem:[#allocation11] sm:$0xff]  }
 0x73c   :  { %v7635_v23 = vpop.f32.mrb[104].mxu1  ;;  %v8790_v61 = vsel %vm2556_vm1, %v8774_v55, %v8662_v5  ;;  %9694 = vmatpush1.bf16.msra.mxu1 %v12632_v63 }
 0x73d   :  { %v8276_v7 = vmax.f32 %v8236_v19, %v8238_v26  ;;  %v7734_v25 = vadd.f32 %v7635_v23, %v18557_v49  ;;  %v7637_v18 = vpop.f32.mrb[105].mxu1  ;;  %v8351_v43 = vrot.slane %v8275_v59, 1  ;;  %v8806_v33 = vpack.c.bf16 %v8790_v61, %v8790_v61  ;;  %9695 = vmatprep.subr.bf16.mxu1 %v20634_v54 }
 0x73e   :  { %v7638_v56 = vpop.f32.mrb[106].mxu1  ;;  %v9003_v45 = vpop.permute.xlu1 %9002 }
 0x73f   :  { %v8352_v50 = vrot.slane %v8276_v7, 1  ;;  %v8168_v31 = vadd.f32 %v18627_v29, %v7734_v25  ;;  %v7735_v37 = vadd.f32 %v7638_v56, %v18563_v38  ;;  %v7640_v60 = vpop.f32.mrb[107].mxu1  ;;  %v9207_v8 = vsel %vm5806_vm5, %v18638_v39, %v9003_v45  ;;  %9169 = vrot.lane.b32.xlu1 %v9131_v52, %s12978_s2  ;;  %v12633_v25 = vld [vmem:[#allocation11 + $0x8] sm:$0xff]  }
 0x740   :  { %v8838_v16 = vrot.slane %v8806_v33, 7  ;;  %v18987_v38 = vcombine.low %v9186_v53, %v9187_v22  ;;  %v9241_v39 = vsel %vm5873_vm6, %v9207_v8, %v9071_v17  ;;  %9696 = vmatpush1.bf16.msra.mxu1 %v12633_v25  ;;  %v12634_v8 = vld [vmem:[#allocation11 + $0x10] sm:$0xff]  }
 0x741   :  { %v8353_v49 = vsel %vm2556_vm1, %v8351_v43, %v8352_v50  ;;  %v8420_v40 = vmax.f32 %v8276_v7, %v8352_v50  ;;  %v8169_v35 = vadd.f32 %v18631_v44, %v7735_v37  ;;  %v8239_v58 = vadd.f32 %v18764_v14, %v8168_v31  ;;  %9697 = vmatprep.subr.bf16.mxu1 %v20634_v54 }
 0x742   :  { %v8419_v46 = vmax.f32 %v8275_v59, %v8353_v49  ;;  %v9156_v10 = vpop.permute.xlu1 %9155  ;;  %v8866_v53 = vsel %vm4061_vm0, 0, %v8838_v16  ;;  %v8802_v49 = vpack.c.bf16 %v18809_v27, %v18809_v27 }
 0x743   :  { %v8567_v44 = vrot.slane %v8420_v40, 4  ;;  %v18993_v59 = vsel %vm5940_vm7, %v9241_v39, %v9156_v10  ;;  %v19003_v17 = vsel %vm4193_vm11, %v8866_v53, 0  ;;  %v8599_v56 = vrot.slane %v8420_v40, 5 }
 0x744   :  { %v8455_v29 = vrot.slane %v8419_v46, 1  ;;  %v8487_v12 = vrot.slane %v8419_v46, 2  ;;  %v7643_v19 = vpop.f32.mrb[108].mxu1  ;;  %v8519_v5 = vrot.slane %v8419_v46, 3  ;;  %v19000_v47 = vcombine.low %v18942_v57, %v18993_v59  ;;  %9698 = vmatpush1.bf16.msra.mxu1 %v12634_v8 }
 0x745   :  { %v7736_v26 = vadd.f32 %v7643_v19, %v18598_v4  ;;  %v7645_v34 = vpop.f32.mrb[109].mxu1  ;;  %v9057_v4 = vrot.slane %v19003_v17, 1  ;;  %v8964_v57 = vshrl.u32 %v19003_v17, 16  ;;  %v8966_v61 = vshll.u32 %v19003_v17, 16  ;;  %9699 = vmatprep.subr.bf16.mxu1 %v20634_v54 }
 0x746   :  { %v8695_v23 = vsel %vm4061_vm0, %v8419_v46, %v8455_v29  ;;  %v7646_v7 = vpop.f32.mrb[110].mxu1  ;;  %10322 = vmatmul.mubr.bf16.vlgmr.msra.gmra.mrb[0].mxu0 %v19000_v47  ;;  %v8631_v45 = vrot.slane %v8420_v40, 6  ;;  %v8663_v37 = vrot.slane %v8420_v40, 7  ;;  %v8240_v63 = vadd.f32 %v18764_v14, %v8169_v35 }
 0x747   :  { %v8711_v18 = vsel %vm4094_vm8, %v8695_v23, %v8487_v12  ;;  %v8170_v55 = vadd.f32 %v18665_v2, %v7736_v26  ;;  %v7737_v43 = vadd.f32 %v7646_v7, %v18606_v6  ;;  %v7648_v52 = vpop.f32.mrb[111].mxu1  ;;  %11842 = vmatprep.mubr.msk.bf16.mxu0 %vm5806_vm5, %v18987_v38  ;;  %9086 = vrot.lane.b32.xlu0 %v9057_v4, %s12967_s21  ;;  %v8968_v60 = vrot.slane %v8966_v61, 1 }
 0x748   :  { %v8727_v50 = vsel %vm4127_vm9, %v8711_v18, %v8519_v5  ;;  %v9132_v40 = vrot.slane %v8964_v57, 1  ;;  %v9133_v39 = vrot.slane %v8966_v61, 2  ;;  %v9188_v53 = vrot.slane %v18789_v0, 2 }
 0x749   :  { %v8241_v31 = vadd.f32 %v18764_v14, %v8170_v55  ;;  %v8171_v6 = vadd.f32 %v18677_v28, %v7737_v43  ;;  %v8743_v2 = vsel %vm4160_vm10, %v8727_v50, %v8567_v44  ;;  %v9073_v10 = vpop.permute.xlu0 %9072  ;;  %v8969_v29 = vor.u32 %v8968_v60, %v8964_v57  ;;  %v12635_v43 = vld [vmem:[#allocation11 + $0x18] sm:$0xff]  }
 0x74a   :  { %v8759_v33 = vsel %vm4193_vm11, %v8743_v2, %v8599_v56  ;;  %v8834_v5 = vrot.slane %v8802_v49, 7  ;;  %9700 = vmatpush1.bf16.msra.mxu1 %v12635_v43 }
 0x74b   :  { %v8277_v46 = vmax.f32 %v8239_v58, %v8241_v31  ;;  %v8242_v16 = vadd.f32 %v18764_v14, %v8171_v6  ;;  %v8775_v28 = vsel %vm4226_vm4, %v8759_v33, %v8631_v45  ;;  %9018 = vrot.lane.b32.xlu0 %v8969_v29, %s12977_s8  ;;  %9701 = vmatprep.subr.bf16.mxu1 %v20634_v54 }
 0x74c   :  { %v7651_v12 = vpop.f32.mrb[112].mxu1  ;;  %v8791_v19 = vsel %vm2556_vm1, %v8775_v28, %v8663_v37 }
 0x74d   :  { %v8278_v44 = vmax.f32 %v8240_v63, %v8242_v16  ;;  %v7738_v27 = vadd.f32 %v7651_v12, %v18614_v15  ;;  %v7653_v26 = vpop.f32.mrb[113].mxu1  ;;  %v8807_v34 = vpack.c.bf16 %v8791_v19, %v8791_v19  ;;  %v8354_v35 = vrot.slane %v8277_v46, 1 }
 0x74e   :  { %v7654_v58 = vpop.f32.mrb[114].mxu1  ;;  %v9005_v4 = vpop.permute.xlu0 %9004  ;;  %v9134_v15 = vor.u32 %v9133_v39, %v9132_v40 }
 0x74f   :  { %v8355_v23 = vrot.slane %v8278_v44, 1  ;;  %v8172_v7 = vadd.f32 %v18699_v21, %v7738_v27  ;;  %v7739_v25 = vadd.f32 %v7654_v58, %v18621_v48  ;;  %v7656_v18 = vpop.f32.mrb[115].mxu1  ;;  %v8839_v55 = vrot.slane %v8807_v34, 7  ;;  %v12636_v27 = vld [vmem:[#allocation11 + $0x20] sm:$0xff]  }
 0x750   :  { %v9209_v56 = vsel %vm5806_vm5, %v18708_v20, %v9005_v4  ;;  %9171 = vrot.lane.b32.xlu0 %v9134_v15, %s12978_s2  ;;  %v19043_v48 = vcombine.low %v9187_v22, %v9188_v53  ;;  %v8858_v21 = vsel %vm4061_vm0, 0, %v8834_v5  ;;  %9702 = vmatpush1.bf16.msra.mxu1 %v12636_v27 }
 0x751   :  { %v8356_v52 = vsel %vm2556_vm1, %v8354_v35, %v8355_v23  ;;  %v8173_v61 = vadd.f32 %v18701_v3, %v7739_v25  ;;  %v8868_v50 = vsel %vm4061_vm0, 0, %v8839_v55  ;;  %v8422_v45 = vmax.f32 %v8278_v44, %v8355_v23  ;;  %9703 = vmatprep.subr.bf16.mxu1 %v20634_v54 }
 0x752   :  { %v8421_v57 = vmax.f32 %v8277_v46, %v8356_v52  ;;  %v9243_v6 = vsel %vm5873_vm6, %v9209_v56, %v9073_v10  ;;  %v9158_v2 = vpop.permute.xlu0 %9157  ;;  %v19053_v22 = vsel %vm4193_vm11, %v8868_v50, 0  ;;  %v8243_v19 = vadd.f32 %v18764_v14, %v8172_v7  ;;  %v20816_v56 = vld [vmem:[#allocation40_spill] sm:$0xff] }
 0x753   :  { %v19049_v60 = vsel %vm5940_vm7, %v9243_v6, %v9158_v2  ;;  %v9058_v46 = vrot.slane %v19053_v22, 1  ;;  %v8970_v10 = vshrl.u32 %v19053_v22, 16  ;;  %v8972_v40 = vshll.u32 %v19053_v22, 16 }
 0x754   :  { %v8456_v20 = vrot.slane %v8421_v57, 1  ;;  %v8488_v31 = vrot.slane %v8421_v57, 2  ;;  %v7659_v3 = vpop.f32.mrb[116].mxu1  ;;  %v8520_v37 = vrot.slane %v8421_v57, 3  ;;  %v19058_v63 = vcombine.low %v18993_v59, %v19049_v60 }
 0x755   :  { %v7740_v33 = vadd.f32 %v7659_v3, %v18660_v51  ;;  %v7661_v49 = vpop.f32.mrb[117].mxu1  ;;  %v8568_v39 = vrot.slane %v8422_v45, 4  ;;  %9088 = vrot.lane.b32.xlu1 %v9058_v46, %s12967_s21  ;;  %v19070_v59 = vsel %vm4193_vm11, %v8858_v21, 0  ;;  %v8600_v26 = vrot.slane %v8422_v45, 5 }
 0x756   :  { %v8696_v8 = vsel %vm4061_vm0, %v8421_v57, %v8456_v20  ;;  %v7662_v16 = vpop.f32.mrb[118].mxu1  ;;  %9543 = vmatmul.mubr.bf16.gmra.mrb[136].mxu1 %v19058_v63  ;;  %v8974_v34 = vrot.slane %v8972_v40, 1  ;;  %v8632_v35 = vrot.slane %v8422_v45, 6  ;;  %v9135_v5 = vrot.slane %v8970_v10, 1  ;;  %v20818_v49 = vld [vmem:[#allocation62_spill] sm:$0xff] }
 0x757   :  { %v8712_v28 = vsel %vm4094_vm8, %v8696_v8, %v8488_v31  ;;  %v8174_v29 = vadd.f32 %v18724_v62, %v7740_v33  ;;  %v7741_v51 = vadd.f32 %v7662_v16, %v18673_v9  ;;  %v7664_v12 = vpop.f32.mrb[119].mxu1  ;;  %11750 = vmatprep.mubr.msk.bf16.mxu1 %vm5806_vm5, %v19043_v48  ;;  %v9075_v58 = vpop.permute.xlu1 %9074  ;;  %v9136_v23 = vrot.slane %v8972_v40, 2  ;;  %v12637_v40 = vld [vmem:[#allocation11 + $0x28] sm:$0xff]  }
 0x758   :  { %v8728_v44 = vsel %vm4127_vm9, %v8712_v28, %v8520_v37  ;;  %v8244_v25 = vadd.f32 %v18764_v14, %v8173_v61  ;;  %v8975_v4 = vor.u32 %v8974_v34, %v8970_v10  ;;  %v8664_v15 = vrot.slane %v8422_v45, 7  ;;  %v20817_v37 = vld [vmem:[#allocation69_spill] sm:$0xff]  ;;  %9704 = vmatpush1.bf16.msra.mxu1 %v12637_v40 }
 0x759   :  { %v8245_v62 = vadd.f32 %v18764_v14, %v8174_v29  ;;  %v8175_v9 = vadd.f32 %v18734_v42, %v7741_v51  ;;  %v8744_v7 = vsel %vm4160_vm10, %v8728_v44, %v8568_v39  ;;  %v9137_v61 = vor.u32 %v9136_v23, %v9135_v5  ;;  %v20819_v51 = vld [vmem:[#allocation36_spill] sm:$0xff]  ;;  %9705 = vmatprep.subr.bf16.mxu1 %v20634_v54 }
 0x75a   :  { %v8760_v42 = vsel %vm4193_vm11, %v8744_v7, %v8600_v26  ;;  %9020 = vrot.lane.b32.xlu1 %v8975_v4, %s12977_s8  ;;  %v9189_v6 = vrot.slane %v19070_v59, 2  ;;  %v20820_v23 = vld [vmem:[#allocation44_spill] sm:$0xff] }
 0x75b   :  { %v8279_v18 = vmax.f32 %v8243_v19, %v8245_v62  ;;  %v8246_v55 = vadd.f32 %v18764_v14, %v8175_v9  ;;  %v8776_v21 = vsel %vm4226_vm4, %v8760_v42, %v8632_v35  ;;  %v20821_v42 = vld [vmem:[#allocation52_spill] sm:$0xff] }
 0x75c   :  { %v7667_v43 = vpop.f32.mrb[120].mxu1  ;;  %v9007_v20 = vpop.permute.xlu1 %9006  ;;  %v8792_v2 = vsel %vm2556_vm1, %v8776_v21, %v8664_v15  ;;  %v19098_v27 = vcombine.low %v9188_v53, %v9189_v6  ;;  %v12638_v15 = vld [vmem:[#allocation11 + $0x30] sm:$0xff]  }
 0x75d   :  { %v8280_v52 = vmax.f32 %v8244_v25, %v8246_v55  ;;  %v7742_v57 = vadd.f32 %v7667_v43, %v20816_v56  ;;  %v7669_v50 = vpop.f32.mrb[121].mxu1  ;;  %v8357_v3 = vrot.slane %v8279_v18, 1  ;;  %v8808_v16 = vpack.c.bf16 %v8792_v2, %v8792_v2  ;;  %9706 = vmatpush1.bf16.msra.mxu1 %v12638_v15 }
 0x75e   :  { %v7670_v31 = vpop.f32.mrb[122].mxu1  ;;  %v9211_v29 = vsel %vm5806_vm5, %v18753_v30, %v9007_v20  ;;  %9173 = vrot.lane.b32.xlu1 %v9137_v61, %s12978_s2  ;;  %9707 = vmatprep.subr.bf16.mxu1 %v20634_v54 }
 0x75f   :  { %v8358_v45 = vrot.slane %v8280_v52, 1  ;;  %v8176_v33 = vadd.f32 %v20817_v37, %v7742_v57  ;;  %v7743_v8 = vadd.f32 %v7670_v31, %v20818_v49  ;;  %v7672_v46 = vpop.f32.mrb[123].mxu1  ;;  %v8840_v44 = vrot.slane %v8808_v16, 7  ;;  %v20822_v57 = vld [vmem:[#allocation72_spill] sm:$0xff]  ;;  %v20823_v37 = vld [vmem:[#allocation125_spill] sm:$0xff] }
 0x760   :  { %v9160_v19 = vpop.permute.xlu1 %9159  ;;  %v9245_v30 = vsel %vm5873_vm6, %v9211_v29, %v9075_v58 }
 0x761   :  { %v8359_v10 = vsel %vm2556_vm1, %v8357_v3, %v8358_v45  ;;  %v8424_v28 = vmax.f32 %v8280_v52, %v8358_v45  ;;  %v8177_v12 = vadd.f32 %v20819_v51, %v7743_v8  ;;  %v8247_v9 = vadd.f32 %v18764_v14, %v8176_v33  ;;  %v12732_v3 = vld [vmem:[#allocation10] ss:$0 sm:$0xff] }
 0x762   :  { %v8423_v39 = vmax.f32 %v8279_v18, %v8359_v10  ;;  %v19104_v5 = vsel %vm5940_vm7, %v9245_v30, %v9160_v19  ;;  %v8870_v53 = vsel %vm4061_vm0, 0, %v8840_v44  ;;  %v8942_v10 = vshll.u32 %v19070_v59, 16 }
 0x763   :  { %v8569_v35 = vrot.slane %v8424_v28, 4  ;;  %v19111_v14 = vcombine.low %v19049_v60, %v19104_v5  ;;  %v19114_v58 = vsel %vm4193_vm11, %v8870_v53, 0  ;;  %v8601_v20 = vrot.slane %v8424_v28, 5 }
 0x764   :  { %v8457_v26 = vrot.slane %v8423_v39, 1  ;;  %v8489_v62 = vrot.slane %v8423_v39, 2  ;;  %v7675_v34 = vpop.f32.mrb[124].mxu1  ;;  %v8521_v18 = vrot.slane %v8423_v39, 3  ;;  %v9059_v56 = vrot.slane %v19114_v58, 1 }
 0x765   :  { %v7744_v7 = vadd.f32 %v7675_v34, %v20820_v23  ;;  %v7677_v25 = vpop.f32.mrb[125].mxu1  ;;  %10330 = vmatmul.mubr.bf16.gmra.mrb[4].mxu0 %v19111_v14  ;;  %v8976_v60 = vshrl.u32 %v19114_v58, 16  ;;  %v8978_v61 = vshll.u32 %v19114_v58, 16  ;;  %v8633_v2 = vrot.slane %v8424_v28, 6 }
 0x766   :  { %v8697_v55 = vsel %vm4061_vm0, %v8423_v39, %v8457_v26  ;;  %v7678_v4 = vpop.f32.mrb[126].mxu1  ;;  %11843 = vmatprep.mubr.msk.bf16.mxu0 %vm5806_vm5, %v19098_v27  ;;  %9090 = vrot.lane.b32.xlu0 %v9059_v56, %s12967_s21  ;;  %v8665_v8 = vrot.slane %v8424_v28, 7  ;;  %v8248_v51 = vadd.f32 %v12732_v3, %v8177_v12  ;;  %v8940_v53 = vshrl.u32 %v19070_v59, 16 }
 0x767   :  { %v8713_v43 = vsel %vm4094_vm8, %v8697_v55, %v8489_v62  ;;  %v8178_v52 = vadd.f32 %v20821_v42, %v7744_v7  ;;  %v7745_v50 = vadd.f32 %v7678_v4, %v20822_v57  ;;  %v7680_v21 = vpop.f32.mrb[127].mxu1  ;;  %v9077_v46 = vpop.permute.xlu0 %9076  ;;  %v8980_v16 = vrot.slane %v8978_v61, 1 }
 0x768   :  { %v8729_v31 = vsel %vm4127_vm9, %v8713_v43, %v8521_v18  ;;  %v9138_v26 = vrot.slane %v8976_v60, 1  ;;  %v9139_v62 = vrot.slane %v8978_v61, 2  ;;  %v8944_v4 = vrot.slane %v8942_v10, 1 }
 0x769   :  { %v8249_v45 = vadd.f32 %v12732_v3, %v8178_v52  ;;  %v8179_v33 = vadd.f32 %v20823_v37, %v7745_v50  ;;  %v8745_v49 = vsel %vm4160_vm10, %v8729_v31, %v8569_v35  ;;  %v8981_v44 = vor.u32 %v8980_v16, %v8976_v60  ;;  %v12639_v35 = vld [vmem:[#allocation11 + $0x38] sm:$0xff]  }
 0x76a   :  { %v8761_v29 = vsel %vm4193_vm11, %v8745_v49, %v8601_v20  ;;  %9708 = vmatpush1.bf16.msra.mxu1 %v12639_v35  ;;  %v9140_v55 = vor.u32 %v9139_v62, %v9138_v26  ;;  %v9190_v56 = vrot.slane %v18859_v1, 2  ;;  %v9120_v21 = vrot.slane %v8940_v53, 1 }
 0x76b   :  { %v8281_v40 = vmax.f32 %v8247_v9, %v8249_v45  ;;  %v8250_v39 = vadd.f32 %v12732_v3, %v8179_v33  ;;  %v8777_v19 = vsel %vm4226_vm4, %v8761_v29, %v8633_v2  ;;  %9022 = vrot.lane.b32.xlu0 %v8981_v44, %s12977_s8  ;;  %v12640_v9 = vld [vmem:[#allocation11 + $0x40] sm:$0xff]   ;;  %9709 = vmatprep.subr.bf16.mxu1 %v20634_v54  ;;  %v9121_v20 = vrot.slane %v8942_v10, 2  ;;  %v12641_v44 = vld [vmem:[#allocation11 + $0x48] sm:$0xff]  }
 0x76c   :  { %v8793_v30 = vsel %vm2556_vm1, %v8777_v19, %v8665_v8  ;;  %v9009_v23 = vpop.permute.xlu0 %9008  ;;  %v8945_v2 = vor.u32 %v8944_v4, %v8940_v53 }
 0x76d   :  { %v8282_v34 = vmax.f32 %v8248_v51, %v8250_v39  ;;  %v8809_v28 = vpack.c.bf16 %v8793_v30, %v8793_v30  ;;  %v8360_v7 = vrot.slane %v8281_v40, 1  ;;  %v9213_v18 = vsel %vm5806_vm5, %v18789_v0, %v9009_v23 }
 0x76e   :  { %v9247_v0 = vsel %vm5873_vm6, %v9213_v18, %v9077_v46  ;;  %9710 = vmatpush1.bf16.msra.mxu1 %v12640_v9  ;;  %v20824_v46 = vld [vmem:[#allocation124_spill] sm:$0xff]  ;;  %v9122_v39 = vor.u32 %v9121_v20, %v9120_v21  ;;  %v9053_v9 = vrot.slane %v19070_v59, 1 }
 0x76f   :  { %v8361_v25 = vrot.slane %v8282_v34, 1  ;;  %v8841_v12 = vrot.slane %v8809_v28, 7  ;;  %9175 = vrot.lane.b32.xlu0 %v9140_v55, %s12978_s2  ;;  %9711 = vmatprep.subr.bf16.mxu1 %v20634_v54  ;;  %v11730_v16 = vcombine.low %v20824_v46, %v9190_v56 }
 0x770   :  { %v9162_v52 = vpop.permute.xlu0 %9161 }
 0x771   :  { %v8362_v15 = vsel %vm2556_vm1, %v8360_v7, %v8361_v25  ;;  %v8872_v43 = vsel %vm4061_vm0, 0, %v8841_v12  ;;  %v8426_v50 = vmax.f32 %v8282_v34, %v8361_v25  ;;  %v19148_v31 = vsel %vm5940_vm7, %v9247_v0, %v9162_v52 }
 0x772   :  { %v8425_v42 = vmax.f32 %v8281_v40, %v8362_v15  ;;  %v19144_v57 = vsel %vm4193_vm11, %v8872_v43, 0  ;;  %v19153_v3 = vcombine.low %v19104_v5, %v19148_v31  ;;  %9712 = vmatpush1.bf16.msra.mxu1 %v12641_v44 }
 0x773   :  { %v9060_v45 = vrot.slane %v19144_v57, 1  ;;  %v8982_v37 = vshrl.u32 %v19144_v57, 16  ;;  %v8984_v33 = vshll.u32 %v19144_v57, 16  ;;  %9010 = vrot.lane.b32.xlu0 %v8945_v2, %s12977_s8  ;;  %v8570_v10 = vrot.slane %v8426_v50, 4  ;;  %9889 = vmatprep.subr.bf16.mxu1 %v20634_v54 }
 0x774   :  { %v8458_v60 = vrot.slane %v8425_v42, 1  ;;  %v8490_v61 = vrot.slane %v8425_v42, 2  ;;  %v8522_v49 = vrot.slane %v8425_v42, 3  ;;  %9551 = vmatmul.mubr.bf16.gmra.mrb[140].mxu1 %v19153_v3  ;;  %v8602_v51 = vrot.slane %v8426_v50, 5 }
 0x775   :  { %9092 = vrot.lane.b32.xlu1 %v9060_v45, %s12967_s21  ;;  %v8986_v5 = vrot.slane %v8984_v33, 1  ;;  %v8634_v40 = vrot.slane %v8426_v50, 6  ;;  %11751 = vmatprep.mubr.msk.bf16.mxu1 %vm5806_vm5, %v11730_v16  ;;  %v9141_v62 = vrot.slane %v8982_v37, 1  ;;  %v9142_v30 = vrot.slane %v8984_v33, 2 }
 0x776   :  { %v8698_v8 = vsel %vm4061_vm0, %v8425_v42, %v8458_v60  ;;  %v8666_v28 = vrot.slane %v8426_v50, 7  ;;  %v9192_v2 = vrot.slane %v18946_v32, 2 }
 0x777   :  { %v8714_v29 = vsel %vm4094_vm8, %v8698_v8, %v8490_v61  ;;  %v8987_v26 = vor.u32 %v8986_v5, %v8982_v37  ;;  %9163 = vrot.lane.b32.xlu0 %v9122_v39, %s12978_s2  ;;  %v9143_v25 = vor.u32 %v9142_v30, %v9141_v62  ;;  %v20825_v8 = vld [vmem:[#allocation55_spill] sm:$0xff] }
 0x778   :  { %v8730_v19 = vsel %vm4127_vm9, %v8714_v29, %v8522_v49  ;;  %v9191_v49 = vrot.slane %v18905_v36, 2 }
 0x779   :  { %v8746_v34 = vsel %vm4160_vm10, %v8730_v19, %v8570_v10  ;;  %9024 = vrot.lane.b32.xlu1 %v8987_v26, %s12977_s8 }
 0x77a   :  { %v8762_v35 = vsel %vm4193_vm11, %v8746_v34, %v8602_v51  ;;  %v19199_v10 = vcombine.low %v9191_v49, %v9192_v2  ;;  %v9194_v34 = vrot.slane %v19053_v22, 2 }
 0x77b   :  { %v8778_v23 = vsel %vm4226_vm4, %v8762_v35, %v8634_v40 }
 0x77c   :  { %v8794_v7 = vsel %vm2556_vm1, %v8778_v23, %v8666_v28 }
 0x77d   :  { %v8810_v53 = vpack.c.bf16 %v8794_v7, %v8794_v7  ;;  %9177 = vrot.lane.b32.xlu1 %v9143_v25, %s12978_s2  ;;  %v9193_v7 = vrot.slane %v19003_v17, 2 }
 0x77f   :  { %v8842_v12 = vrot.slane %v8810_v53, 7  ;;  %v19222_v53 = vcombine.low %v9193_v7, %v9194_v34 }
 0x781   :  { %v8874_v18 = vsel %vm4061_vm0, 0, %v8842_v12  ;;  %9078 = vrot.lane.b32.xlu1 %v9053_v9, %s12967_s21 }
 0x782   :  { %v19179_v55 = vsel %vm4193_vm11, %v8874_v18, 0 }
 0x783   :  { %v9061_v4 = vrot.slane %v19179_v55, 1  ;;  %v8988_v15 = vshrl.u32 %v19179_v55, 16  ;;  %v8990_v43 = vshll.u32 %v19179_v55, 16 }
 0x785   :  { %9094 = vrot.lane.b32.xlu0 %v9061_v4, %s12967_s21  ;;  %v8992_v42 = vrot.slane %v8990_v43, 1  ;;  %v9144_v50 = vrot.slane %v8988_v15, 1  ;;  %v9145_v0 = vrot.slane %v8990_v43, 2 }
 0x787   :  { %v8993_v52 = vor.u32 %v8992_v42, %v8988_v15  ;;  %v9146_v21 = vor.u32 %v9145_v0, %v9144_v50  ;;  %v9081_v61 = vpop.permute.xlu0 %9080 }
 0x789   :  { %9026 = vrot.lane.b32.xlu1 %v8993_v52, %s12977_s8  ;;  %v9196_v52 = vrot.slane %v19144_v57, 2 }
 0x78d   :  { %9179 = vrot.lane.b32.xlu1 %v9146_v21, %s12978_s2  ;;  %v9013_v20 = vpop.permute.xlu1 %9012 }
 0x78e   :  { %v9217_v60 = vsel %vm5806_vm5, %v18859_v1, %v9013_v20 }
 0x78f   :  { %v9251_v45 = vsel %vm5873_vm6, %v9217_v60, %v9081_v61  ;;  %v9195_v61 = vrot.slane %v19114_v58, 2 }
 0x791   :  { %v9166_v37 = vpop.permute.xlu1 %9165 }
 0x792   :  { %v9285_v33 = vsel %vm5940_vm7, %v9251_v45, %v9166_v37  ;;  %v19244_v45 = vcombine.low %v9195_v61, %v9196_v52 }
 0x793   :  { %v11729_v16 = vcombine.low %v20825_v8, %v9285_v33 }
 0x795   :  { %9559 = vmatmul.mubr.bf16.gmra.mrb[144].mxu1 %v11729_v16 }
 0x796   :  { %11752 = vmatprep.mubr.msk.bf16.mxu1 %vm5806_vm5, %v19199_v10 }
 0x799   :  { %v9083_v29 = vpop.permute.xlu0 %9082 }
 0x79d   :  { %v9015_v5 = vpop.permute.xlu0 %9014 }
 0x79e   :  { %v9219_v51 = vsel %vm5806_vm5, %v18905_v36, %v9015_v5 }
 0x79f   :  { %v9253_v40 = vsel %vm5873_vm6, %v9219_v51, %v9083_v29 }
 0x7a1   :  { %v9168_v39 = vpop.permute.xlu0 %9167 }
 0x7a2   :  { %v9287_v19 = vsel %vm5940_vm7, %v9253_v40, %v9168_v39 }
 0x7a3   :  { %v19207_v44 = vcombine.low %v9285_v33, %v9287_v19 }
 0x7a7   :  { %v9085_v26 = vpop.permute.xlu1 %9084 }
 0x7ad   :  { %v9017_v62 = vpop.permute.xlu1 %9016 }
 0x7ae   :  { %v9221_v30 = vsel %vm5806_vm5, %v18946_v32, %v9017_v62 }
 0x7af   :  { %v9255_v28 = vsel %vm5873_vm6, %v9221_v30, %v9085_v26 }
 0x7b1   :  { %v9170_v35 = vpop.permute.xlu1 %9169 }
 0x7b2   :  { %v19214_v23 = vsel %vm5940_vm7, %v9255_v28, %v9170_v35 }
 0x7b3   :  { %v19218_v25 = vcombine.low %v9287_v19, %v19214_v23 }
 0x7b5   :  { %9567 = vmatmul.mubr.bf16.gmra.mrb[148].mxu1 %v19218_v25 }
 0x7b6   :  { %11753 = vmatprep.mubr.msk.bf16.mxu1 %vm5806_vm5, %v19222_v53 }
 0x7b9   :  { %v9087_v12 = vpop.permute.xlu0 %9086 }
 0x7bd   :  { %v9019_v18 = vpop.permute.xlu0 %9018 }
 0x7be   :  { %v9223_v15 = vsel %vm5806_vm5, %v19003_v17, %v9019_v18 }
 0x7bf   :  { %v9257_v50 = vsel %vm5873_vm6, %v9223_v15, %v9087_v12 }
 0x7c2   :  { %v9172_v42 = vpop.permute.xlu0 %9171 }
 0x7c3   :  { %v9291_v20 = vsel %vm5940_vm7, %v9257_v50, %v9172_v42 }
 0x7c4   :  { %v19313_v32 = vcombine.low %v19214_v23, %v9291_v20  ;;  %v12647_v23 = vld [vmem:[#allocation11 + $0xc8] sm:$0xff]  }
 0x7c7   :  { %v9089_v9 = vpop.permute.xlu1 %9088 }
 0x7cc   :  { %v9021_v4 = vpop.permute.xlu1 %9020 }
 0x7cd   :  { %v9225_v43 = vsel %vm5806_vm5, %v19053_v22, %v9021_v4  ;;  %v19265_v4 = vcombine.low %v20824_v46, %v20824_v46  ;;  %v9197_v22 = vrot.slane %v19179_v55, 2 }
 0x7ce   :  { %v9259_v0 = vsel %vm5873_vm6, %v9225_v43, %v9089_v9 }
 0x7d0   :  { %v9174_v21 = vpop.permute.xlu1 %9173 }
 0x7d1   :  { %v19236_v60 = vsel %vm5940_vm7, %v9259_v0, %v9174_v21 }
 0x7d2   :  { %v19240_v17 = vcombine.low %v9291_v20, %v19236_v60 }
 0x7d4   :  { %9575 = vmatmul.mubr.bf16.gmra.mrb[152].mxu1 %v19240_v17 }
 0x7d5   :  { %11754 = vmatprep.mubr.msk.bf16.mxu1 %vm5806_vm5, %v19244_v45 }
 0x7d8   :  { %v9091_v37 = vpop.permute.xlu0 %9090 }
 0x7dd   :  { %v9023_v33 = vpop.permute.xlu0 %9022 }
 0x7de   :  { %v9227_v19 = vsel %vm5806_vm5, %v19114_v58, %v9023_v33  ;;  %v19286_v33 = vcombine.low %v20825_v8, %v20825_v8 }
 0x7df   :  { %v9261_v28 = vsel %vm5873_vm6, %v9227_v19, %v9091_v37  ;;  %v12642_v37 = vld [vmem:[#allocation11 + $0xa0] sm:$0xff]   ;;  %v19302_v19 = vcombine.low %v9192_v2, %v9193_v7  ;;  %v19317_v2 = vcombine.low %v9194_v34, %v9195_v61 }
 0x7e0   :  { %v12646_v7 = vld [vmem:[#allocation11 + $0xc0] sm:$0xff]  }
 0x7e1   :  { %v9176_v29 = vpop.permute.xlu0 %9175 }
 0x7e2   :  { %v9295_v9 = vsel %vm5940_vm7, %v9261_v28, %v9176_v29  ;;  %v20827_v29 = vld [vmem:[#allocation35_spill] sm:$0xff] }
 0x7e3   :  { %v19333_v20 = vcombine.low %v19236_v60, %v9295_v9 }
 0x7e5   :  { %v9011_v30 = vpop.permute.xlu0 %9010 }
 0x7e6   :  { %v9215_v15 = vsel %vm5806_vm5, %v19070_v59, %v9011_v30  ;;  %v11812_v59 = vcombine.low %v9197_v22, %v20824_v46 }
 0x7e7   :  { %v9093_v16 = vpop.permute.xlu1 %9092 }
 0x7e9   :  { %v19249_v5 = vpop.f32.mrb[128].mxu1  ;;  %v9164_v42 = vpop.permute.xlu0 %9163 }
 0x7ea   :  { %v9530_v51 = vpop.f32.mrb[129].mxu1 }
 0x7eb   :  { %v19251_v40 = vpop.f32.mrb[130].mxu1  ;;  %v9025_v39 = vpop.permute.xlu1 %9024  ;;  %v20828_v51 = vrot.slane %v20827_v29, 2 }
 0x7ec   :  { %v9533_v26 = vpop.f32.mrb[131].mxu1  ;;  %v9229_v62 = vsel %vm5806_vm5, %v19144_v57, %v9025_v39  ;;  %v12649_v57 = vld [vmem:[#allocation11 + $0xd8] sm:$0xff]  }
 0x7ed   :  { %v9263_v35 = vsel %vm5873_vm6, %v9229_v62, %v9093_v16  ;;  %v20826_v16 = vrot.slane %v18521_v11, 2  ;;  %v12644_v11 = vld [vmem:[#allocation11 + $0xb0] sm:$0xff]   ;;  %v20829_v26 = vld [vmem:[#allocation58_spill] sm:$0xff]  ;;  %v12645_v62 = vld [vmem:[#allocation11 + $0xb8] sm:$0xff]  }
 0x7ef   :  { %v9178_v12 = vpop.permute.xlu1 %9177  ;;  %v19294_v39 = vcombine.low %v20828_v51, %v20826_v16  ;;  %v11764_v51 = vcombine.low %v9190_v56, %v9191_v49 }
 0x7f0   :  { %v19261_v18 = vsel %vm5940_vm7, %v9263_v35, %v9178_v12 }
 0x7f1   :  { %v19268_v58 = vcombine.low %v9295_v9, %v19261_v18 }
 0x7f3   :  { %9583 = vmatmul.mubr.bf16.gmra.mrb[156].mxu1 %v19268_v58  ;;  %v9079_v43 = vpop.permute.xlu1 %9078 }
 0x7f4   :  { %v9249_v50 = vsel %vm5873_vm6, %v9215_v15, %v9079_v43  ;;  %11779 = vmatprep.mubr.msk.bf16.mxu1 %vm5806_vm5, %v19265_v4  ;;  %v19341_v15 = vcombine.low %v9196_v52, %v9197_v22 }
 0x7f5   :  { %v19277_v0 = vsel %vm5940_vm7, %v9249_v50, %v9164_v42  ;;  %v12648_v42 = vld [vmem:[#allocation11 + $0xd0] sm:$0xff]  }
 0x7f6   :  { %v19281_v21 = vcombine.low %v19148_v31, %v19277_v0  ;;  %v12643_v31 = vld [vmem:[#allocation11 + $0xa8] sm:$0xff]  }
 0x7f7   :  { %v9095_v50 = vpop.permute.xlu0 %9094 }
 0x7f8   :  { %10338 = vmatmul.mubr.bf16.gmra.mrb[8].mxu0 %v19281_v21 }
 0x7f9   :  { %11844 = vmatprep.mubr.msk.bf16.mxu0 %vm5806_vm5, %v19265_v4 }
 0x7fb   :  { %9726 = vmatmul.mubr.bf16.vlgmr.msra.gmra.mrb[160].mxu1 %v19286_v33  ;;  %v9027_v28 = vpop.permute.xlu1 %9026 }
 0x7fc   :  { %9890 = vmatpush1.bf16.msra.mxu1 %v12642_v37  ;;  %11780 = vmatprep.mubr.msk.bf16.mxu1 %vm5806_vm5, %v19294_v39  ;;  %v9231_v61 = vsel %vm5806_vm5, %v19179_v55, %v9027_v28  ;;  %v12650_v37 = vld [vmem:[#allocation11 + $0xe0] sm:$0xff]  }
 0x7fd   :  { %9891 = vmatprep.subr.bf16.mxu1 %v20634_v54  ;;  %v9265_v60 = vsel %vm5873_vm6, %v9231_v61, %v9095_v50 }
 0x7ff   :  { %v9180_v43 = vpop.permute.xlu1 %9179 }
 0x800   :  { %10346 = vmatmul.mubr.bf16.gmra.mrb[12].mxu0 %v19286_v33  ;;  %9892 = vmatpush1.bf16.msra.mxu1 %v12643_v31  ;;  %v19349_v9 = vsel %vm5940_vm7, %v9265_v60, %v9180_v43 }
 0x801   :  { %11845 = vmatprep.mubr.msk.bf16.mxu0 %vm5806_vm5, %v19302_v19  ;;  %9893 = vmatprep.subr.bf16.mxu1 %v20634_v54  ;;  %v19357_v52 = vcombine.low %v19261_v18, %v19349_v9 }
 0x803   :  { %9734 = vmatmul.mubr.bf16.gmra.mrb[164].mxu1 %v18902_v24 }
 0x804   :  { %11781 = vmatprep.mubr.msk.bf16.mxu1 %vm5806_vm5, %v20829_v26  ;;  %9894 = vmatpush1.bf16.msra.mxu1 %v12644_v11  ;;  %v12651_v11 = vld [vmem:[#allocation11 + $0xe8] sm:$0xff]  }
 0x805   :  { %9895 = vmatprep.subr.bf16.mxu1 %v20634_v54 }
 0x808   :  { %10354 = vmatmul.mubr.bf16.gmra.mrb[16].mxu0 %v19313_v32  ;;  %9896 = vmatpush1.bf16.msra.mxu1 %v12645_v62  ;;  %v19320_v30 = vpop.f32.mrb[132].mxu1 }
 0x809   :  { %11846 = vmatprep.mubr.msk.bf16.mxu0 %vm5806_vm5, %v19317_v2  ;;  %9897 = vmatprep.subr.bf16.mxu1 %v20634_v54  ;;  %v9538_v35 = vpop.f32.mrb[133].mxu1 }
 0x80a   :  { %v19325_v12 = vpop.f32.mrb[134].mxu1  ;;  %v12653_v35 = vld [vmem:[#allocation11 + $0xf8] sm:$0xff]  }
 0x80b   :  { %9742 = vmatmul.mubr.bf16.gmra.mrb[168].mxu1 %v19000_v47  ;;  %v9541_v34 = vpop.f32.mrb[135].mxu1 }
 0x80c   :  { %11782 = vmatprep.mubr.msk.bf16.mxu1 %vm5806_vm5, %v18987_v38  ;;  %9898 = vmatpush1.bf16.msra.mxu1 %v12646_v7  ;;  %v12654_v34 = vld [vmem:[#allocation11 + $0x100] sm:$0xff]  }
 0x80d   :  { %9899 = vmatprep.subr.bf16.mxu1 %v20634_v54 }
 0x810   :  { %10362 = vmatmul.mubr.bf16.gmra.mrb[20].mxu0 %v19333_v20  ;;  %9900 = vmatpush1.bf16.msra.mxu1 %v12647_v23 }
 0x811   :  { %11847 = vmatprep.mubr.msk.bf16.mxu0 %vm5806_vm5, %v19341_v15  ;;  %9901 = vmatprep.subr.bf16.mxu1 %v20634_v54 }
 0x813   :  { %9750 = vmatmul.mubr.bf16.gmra.mrb[172].mxu1 %v19111_v14 }
 0x814   :  { %11783 = vmatprep.mubr.msk.bf16.mxu1 %vm5806_vm5, %v19265_v4  ;;  %9902 = vmatpush1.bf16.msra.mxu1 %v12648_v42  ;;  %v12659_v42 = vld [vmem:[#allocation11 + $0x128] sm:$0xff]  }
 0x815   :  { %9903 = vmatprep.subr.bf16.mxu1 %v20634_v54 }
 0x818   :  { %10370 = vmatmul.mubr.bf16.gmra.mrb[24].mxu0 %v19357_v52  ;;  %9904 = vmatpush1.bf16.msra.mxu1 %v12649_v57 }
 0x819   :  { %v19360_v16 = vpop.f32.mrb[0].mxu0  ;;  %11848 = vmatprep.mubr.msk.bf16.mxu0 %vm5806_vm5, %v19265_v4  ;;  %9905 = vmatprep.subr.bf16.mxu1 %v20634_v54  ;;  %v12652_v4 = vld [vmem:[#allocation11 + $0xf0] sm:$0xff]  }
 0x81a   :  { %v10325_v29 = vpop.f32.mrb[1].mxu0 }
 0x81b   :  { %v19369_v31 = vpop.f32.mrb[2].mxu0  ;;  %9758 = vmatmul.mubr.bf16.gmra.mrb[176].mxu1 %v19286_v33 }
 0x81c   :  { %v10328_v18 = vpop.f32.mrb[3].mxu0  ;;  %11784 = vmatprep.mubr.msk.bf16.mxu1 %vm5806_vm5, %v11764_v51  ;;  %9906 = vmatpush1.bf16.msra.mxu1 %v12650_v37 }
 0x81d   :  { %9907 = vmatprep.subr.bf16.mxu1 %v20634_v54 }
 0x820   :  { %10378 = vmatmul.mubr.bf16.gmra.mrb[28].mxu0 %v19286_v33  ;;  %9908 = vmatpush1.bf16.msra.mxu1 %v12651_v11 }
 0x821   :  { %10095 = vmatprep.subr.bf16.mxu1 %v20634_v54 }
 0x823   :  { %9766 = vmatmul.mubr.bf16.gmra.mrb[180].mxu1 %v19207_v44 }
 0x824   :  { %11785 = vmatprep.mubr.msk.bf16.mxu1 %vm5806_vm5, %v19302_v19 }
 0x829   :  { %v19379_v1 = vpop.f32.mrb[136].mxu1 }
 0x82a   :  { %v9546_v36 = vpop.f32.mrb[137].mxu1 }
 0x82b   :  { %v19381_v56 = vpop.f32.mrb[138].mxu1  ;;  %9774 = vmatmul.mubr.bf16.gmra.mrb[184].mxu1 %v19313_v32 }
 0x82c   :  { %v9549_v49 = vpop.f32.mrb[139].mxu1  ;;  %11786 = vmatprep.mubr.msk.bf16.mxu1 %vm5806_vm5, %v19317_v2 }
 0x833   :  { %9782 = vmatmul.mubr.bf16.gmra.mrb[188].mxu1 %v19333_v20 }
 0x834   :  { %11801 = vmatprep.mubr.msk.bf16.mxu1 %vm5806_vm5, %v19294_v39  ;;  %v12655_v39 = vld [vmem:[#allocation11 + $0x108] sm:$0xff]  }
 0x838   :  { %v19389_v33 = vpop.f32.mrb[4].mxu0 }
 0x839   :  { %v10333_v62 = vpop.f32.mrb[5].mxu0 }
 0x83a   :  { %v19391_v7 = vpop.f32.mrb[6].mxu0 }
 0x83b   :  { %9922 = vmatmul.mubr.bf16.vlgmr.msra.gmra.mrb[192].mxu1 %v18902_v24  ;;  %v10336_v28 = vpop.f32.mrb[7].mxu0 }
 0x83c   :  { %10096 = vmatpush1.bf16.msra.mxu1 %v12652_v4  ;;  %11802 = vmatprep.mubr.msk.bf16.mxu1 %vm5806_vm5, %v20829_v26  ;;  %v12656_v26 = vld [vmem:[#allocation11 + $0x110] sm:$0xff]  }
 0x83d   :  { %10097 = vmatprep.subr.bf16.mxu1 %v20634_v54 }
 0x840   :  { %10098 = vmatpush1.bf16.msra.mxu1 %v12653_v35 }
 0x841   :  { %10099 = vmatprep.subr.bf16.mxu1 %v20634_v54 }
 0x843   :  { %9930 = vmatmul.mubr.bf16.gmra.mrb[196].mxu1 %v19000_v47  ;;  %v12658_v47 = vld [vmem:[#allocation11 + $0x120] sm:$0xff]  }
 0x844   :  { %11803 = vmatprep.mubr.msk.bf16.mxu1 %vm5806_vm5, %v18987_v38  ;;  %10100 = vmatpush1.bf16.msra.mxu1 %v12654_v34  ;;  %v12657_v38 = vld [vmem:[#allocation11 + $0x118] sm:$0xff]  }
 0x845   :  { %10101 = vmatprep.subr.bf16.mxu1 %v20634_v54 }
 0x847   :  { %v19402_v24 = vpop.f32.mrb[140].mxu1 }
 0x848   :  { %10102 = vmatpush1.bf16.msra.mxu1 %v12655_v39  ;;  %v9554_v23 = vpop.f32.mrb[141].mxu1 }
 0x849   :  { %10103 = vmatprep.subr.bf16.mxu1 %v20634_v54  ;;  %v19405_v61 = vpop.f32.mrb[142].mxu1 }
 0x84a   :  { %v9557_v43 = vpop.f32.mrb[143].mxu1 }
 0x84b   :  { %9938 = vmatmul.mubr.bf16.gmra.mrb[200].mxu1 %v19111_v14  ;;  %v12660_v14 = vld [vmem:[#allocation11 + $0x130] sm:$0xff]  }
 0x84c   :  { %11804 = vmatprep.mubr.msk.bf16.mxu1 %vm5806_vm5, %v19098_v27  ;;  %10104 = vmatpush1.bf16.msra.mxu1 %v12656_v26  ;;  %v12661_v27 = vld [vmem:[#allocation11 + $0x138] sm:$0xff]  }
 0x84d   :  { %10105 = vmatprep.subr.bf16.mxu1 %v20634_v54 }
 0x850   :  { %10106 = vmatpush1.bf16.msra.mxu1 %v12657_v38 }
 0x851   :  { %10107 = vmatprep.subr.bf16.mxu1 %v20634_v54 }
 0x853   :  { %9946 = vmatmul.mubr.bf16.gmra.mrb[204].mxu1 %v19281_v21 }
 0x854   :  { %11805 = vmatprep.mubr.msk.bf16.mxu1 %vm5806_vm5, %v11764_v51  ;;  %10108 = vmatpush1.bf16.msra.mxu1 %v12658_v47 }
 0x855   :  { %10109 = vmatprep.subr.bf16.mxu1 %v20634_v54 }
 0x858   :  { %10110 = vmatpush1.bf16.msra.mxu1 %v12659_v42 }
 0x859   :  { %10111 = vmatprep.subr.bf16.mxu1 %v20634_v54 }
 0x85b   :  { %9954 = vmatmul.mubr.bf16.gmra.mrb[208].mxu1 %v19207_v44 }
 0x85c   :  { %11806 = vmatprep.mubr.msk.bf16.mxu1 %vm5806_vm5, %v19302_v19  ;;  %10112 = vmatpush1.bf16.msra.mxu1 %v12660_v14 }
 0x85d   :  { %10113 = vmatprep.subr.bf16.mxu1 %v20634_v54  ;;  %v20830_v54 = vld [vmem:[#allocation127_spill] sm:$0xff] }
 0x860   :  { %10114 = vmatpush1.bf16.msra.mxu1 %v12661_v27 }
 0x863   :  { %9962 = vmatmul.mubr.bf16.gmra.mrb[212].mxu1 %v19313_v32 }
 0x864   :  { %11807 = vmatprep.mubr.msk.bf16.mxu1 %vm5806_vm5, %v19317_v2  ;;  %v11810_v2 = vcombine.low %v9189_v6, %v20824_v46 }
 0x868   :  { %v19423_v21 = vpop.f32.mrb[144].mxu1 }
 0x869   :  { %v9562_v50 = vpop.f32.mrb[145].mxu1 }
 0x86a   :  { %v19425_v60 = vpop.f32.mrb[146].mxu1 }
 0x86b   :  { %v9565_v57 = vpop.f32.mrb[147].mxu1  ;;  %9970 = vmatmul.mubr.bf16.gmra.mrb[216].mxu1 %v19333_v20 }
 0x86c   :  { %11808 = vmatprep.mubr.msk.bf16.mxu1 %vm5806_vm5, %v19341_v15 }
 0x873   :  { %9978 = vmatmul.mubr.bf16.gmra.mrb[220].mxu1 %v19357_v52 }
 0x874   :  { %11823 = vmatprep.mubr.msk.bf16.mxu1 %vm5806_vm5, %v20830_v54 }
 0x87b   :  { %10128 = vmatmul.mubr.bf16.vlgmr.msra.gmra.mrb[224].mxu1 %v18951_v41 }
 0x87c   :  { %11824 = vmatprep.mubr.msk.bf16.mxu1 %vm5806_vm5, %v18938_v13  ;;  %v11809_v13 = vcombine.low %v19277_v0, %v20825_v8 }
 0x883   :  { %10136 = vmatmul.mubr.bf16.gmra.mrb[228].mxu1 %v19058_v63 }
 0x884   :  { %11825 = vmatprep.mubr.msk.bf16.mxu1 %vm5806_vm5, %v19043_v48 }
 0x888   :  { %v19439_v44 = vpop.f32.mrb[148].mxu1 }
 0x889   :  { %v9570_v19 = vpop.f32.mrb[149].mxu1 }
 0x88a   :  { %v19441_v32 = vpop.f32.mrb[150].mxu1 }
 0x88b   :  { %v9573_v20 = vpop.f32.mrb[151].mxu1  ;;  %10144 = vmatmul.mubr.bf16.gmra.mrb[232].mxu1 %v19153_v3  ;;  %v11811_v3 = vcombine.low %v19349_v9, %v20825_v8 }
 0x88c   :  { %11826 = vmatprep.mubr.msk.bf16.mxu1 %vm5806_vm5, %v11810_v2 }
 0x893   :  { %10152 = vmatmul.mubr.bf16.gmra.mrb[236].mxu1 %v11809_v13 }
 0x894   :  { %11827 = vmatprep.mubr.msk.bf16.mxu1 %vm5806_vm5, %v19199_v10 }
 0x89b   :  { %10160 = vmatmul.mubr.bf16.gmra.mrb[240].mxu1 %v19218_v25 }
 0x89c   :  { %11828 = vmatprep.mubr.msk.bf16.mxu1 %vm5806_vm5, %v19222_v53 }
 0x8a3   :  { %10168 = vmatmul.mubr.bf16.gmra.mrb[244].mxu1 %v19240_v17 }
 0x8a4   :  { %11829 = vmatprep.mubr.msk.bf16.mxu1 %vm5806_vm5, %v19244_v45 }
 0x8a7   :  { %v19458_v41 = vpop.f32.mrb[152].mxu1 }
 0x8a8   :  { %v9578_v48 = vpop.f32.mrb[153].mxu1 }
 0x8a9   :  { %v19460_v63 = vpop.f32.mrb[154].mxu1 }
 0x8aa   :  { %v9581_v6 = vpop.f32.mrb[155].mxu1 }
 0x8ab   :  { %10176 = vmatmul.mubr.bf16.gmra.mrb[248].mxu1 %v19268_v58 }
 0x8ac   :  { %11830 = vmatprep.mubr.msk.bf16.mxu1 %vm5806_vm5, %v11812_v59 }
 0x8b3   :  { %10184 = vmatmul.mubr.bf16.gmra.mrb[252].mxu1 %v11811_v3 }
 0x8c6   :  { %v19469_v10 = vpop.f32.mrb[156].mxu1 }
 0x8c7   :  { %v9586_v25 = vpop.f32.mrb[157].mxu1 }
 0x8c8   :  { %v19471_v53 = vpop.f32.mrb[158].mxu1 }
 0x8c9   :  { %v9589_v17 = vpop.f32.mrb[159].mxu1 }
 0x8cb   :  { %v19473_v45 = vpop.f32.mrb[8].mxu0 }
 0x8cc   :  { %v10341_v0 = vpop.f32.mrb[9].mxu0 }
 0x8cd   :  { %v19475_v55 = vpop.f32.mrb[10].mxu0 }
 0x8ce   :  { %v9727_v46 = vpop.f32.mrb[160].mxu1  ;;  %v10344_v22 = vpop.f32.mrb[11].mxu0 }
 0x8cf   :  { %v19478_v58 = vadd.f32 %v9727_v46, %v19249_v5  ;;  %v9729_v15 = vpop.f32.mrb[161].mxu1 }
 0x8d0   :  { %v9730_v52 = vpop.f32.mrb[162].mxu1 }
 0x8d1   :  { %v19481_v8 = vadd.f32 %v9730_v52, %v19251_v40  ;;  %v9732_v9 = vpop.f32.mrb[163].mxu1 }
 0x8d3   :  { %v19483_v37 = vpop.f32.mrb[12].mxu0 }
 0x8d4   :  { %v10349_v29 = vpop.f32.mrb[13].mxu0 }
 0x8d5   :  { %v19485_v51 = vpop.f32.mrb[14].mxu0 }
 0x8d6   :  { %v9735_v18 = vpop.f32.mrb[164].mxu1  ;;  %v10352_v11 = vpop.f32.mrb[15].mxu0 }
 0x8d7   :  { %v19488_v36 = vadd.f32 %v9735_v18, %v19320_v30  ;;  %v9737_v49 = vpop.f32.mrb[165].mxu1 }
 0x8d8   :  { %v9738_v4 = vpop.f32.mrb[166].mxu1 }
 0x8d9   :  { %v19491_v5 = vadd.f32 %v9738_v4, %v19325_v12  ;;  %v9740_v62 = vpop.f32.mrb[167].mxu1 }
 0x8db   :  { %v19493_v28 = vpop.f32.mrb[16].mxu0 }
 0x8dc   :  { %v10357_v40 = vpop.f32.mrb[17].mxu0 }
 0x8dd   :  { %v19495_v35 = vpop.f32.mrb[18].mxu0 }
 0x8de   :  { %v9743_v34 = vpop.f32.mrb[168].mxu1  ;;  %v10360_v39 = vpop.f32.mrb[19].mxu0 }
 0x8df   :  { %v9744_v26 = vadd.f32 %v9743_v34, %v19379_v1  ;;  %v9745_v23 = vpop.f32.mrb[169].mxu1 }
 0x8e0   :  { %v9746_v43 = vpop.f32.mrb[170].mxu1 }
 0x8e1   :  { %v9747_v30 = vadd.f32 %v9746_v43, %v19381_v56  ;;  %v9748_v38 = vpop.f32.mrb[171].mxu1 }
 0x8e3   :  { %v19499_v47 = vpop.f32.mrb[20].mxu0 }
 0x8e4   :  { %v10365_v42 = vpop.f32.mrb[21].mxu0 }
 0x8e5   :  { %v19501_v12 = vpop.f32.mrb[22].mxu0 }
 0x8e6   :  { %v9751_v14 = vpop.f32.mrb[172].mxu1  ;;  %v10368_v27 = vpop.f32.mrb[23].mxu0 }
 0x8e7   :  { %v9752_v50 = vadd.f32 %v9751_v14, %v19402_v24  ;;  %v9753_v57 = vpop.f32.mrb[173].mxu1 }
 0x8e8   :  { %v9754_v54 = vpop.f32.mrb[174].mxu1 }
 0x8e9   :  { %v19505_v19 = vadd.f32 %v9754_v54, %v19405_v61  ;;  %v9756_v1 = vpop.f32.mrb[175].mxu1 }
 0x8eb   :  { %v19507_v2 = vpop.f32.mrb[24].mxu0 }
 0x8ec   :  { %v10373_v20 = vpop.f32.mrb[25].mxu0 }
 0x8ed   :  { %v19509_v56 = vpop.f32.mrb[26].mxu0 }
 0x8ee   :  { %v9759_v13 = vpop.f32.mrb[176].mxu1  ;;  %v10376_v48 = vpop.f32.mrb[27].mxu0 }
 0x8ef   :  { %v19512_v59 = vadd.f32 %v9759_v13, %v19423_v21  ;;  %v9761_v6 = vpop.f32.mrb[177].mxu1 }
 0x8f0   :  { %v9762_v3 = vpop.f32.mrb[178].mxu1 }
 0x8f1   :  { %v19515_v24 = vadd.f32 %v9762_v3, %v19425_v60  ;;  %v9764_v25 = vpop.f32.mrb[179].mxu1  ;;  %v12662_v3 = vld [vmem:[#allocation14 + $0x40] sm:$0xff]  }
 0x8f2   :  { %v12663_v25 = vld [vmem:[#allocation14] sm:$0xff]   ;;  %12051 = vmatprep.subr.bf16.mxu1 %v12662_v3 }
 0x8f3   :  { %v19517_v17 = vpop.f32.mrb[28].mxu0  ;;  %12052 = vmatpush3.bf16.msra.mxu1 %v12663_v25  ;;  %v12675_v25 = vld [vmem:[#allocation14 + $0x30] sm:$0xff]  }
 0x8f4   :  { %v10381_v61 = vpop.f32.mrb[29].mxu0 }
 0x8f5   :  { %v19519_v0 = vpop.f32.mrb[30].mxu0  ;;  %v12664_v61 = vld [vmem:[#allocation14 + $0x48] sm:$0xff]  }
 0x8f6   :  { %v9767_v46 = vpop.f32.mrb[180].mxu1  ;;  %v10384_v22 = vpop.f32.mrb[31].mxu0  ;;  %12053 = vmatprep.subr.bf16.mxu1 %v12664_v61  ;;  %v12680_v61 = vld [vmem:[#allocation14 + $0x78] sm:$0xff]  }
 0x8f7   :  { %v19522_v15 = vadd.f32 %v9767_v46, %v19439_v44  ;;  %v9769_v52 = vpop.f32.mrb[181].mxu1  ;;  %v12665_v46 = vld [vmem:[#allocation14 + $0x8] sm:$0xff]  }
 0x8f8   :  { %v9770_v9 = vpop.f32.mrb[182].mxu1  ;;  %v12666_v52 = vld [vmem:[#allocation14 + $0x50] sm:$0xff]   ;;  %12054 = vmatpush3.bf16.msra.mxu1 %v12665_v46  ;;  %v12681_v46 = vld [vmem:[#allocation14 + $0x38] sm:$0xff]  }
 0x8f9   :  { %v19525_v21 = vadd.f32 %v9770_v9, %v19441_v32  ;;  %v9772_v29 = vpop.f32.mrb[183].mxu1  ;;  %v12676_v9 = vld [vmem:[#allocation14 + $0x140] sm:$0xff]   ;;  %12055 = vmatprep.subr.bf16.mxu1 %v12666_v52 }
 0x8fa   :  { %v12677_v29 = vld [vmem:[#allocation14 + $0x100] sm:$0xff]   ;;  %12095 = vmatprep.subr.bf16.mxu0 %v12676_v9 }
 0x8fb   :  { %12096 = vmatpush3.bf16.msra.mxu0 %v12677_v29 }
 0x8fe   :  { %v9775_v18 = vpop.f32.mrb[184].mxu1 }
 0x8ff   :  { %v19528_v60 = vadd.f32 %v9775_v18, %v19458_v41  ;;  %v9777_v11 = vpop.f32.mrb[185].mxu1  ;;  %v12678_v18 = vld [vmem:[#allocation14 + $0x148] sm:$0xff]  }
 0x900   :  { %v9778_v49 = vpop.f32.mrb[186].mxu1  ;;  %12097 = vmatprep.subr.bf16.mxu0 %v12678_v18 }
 0x901   :  { %v19531_v4 = vadd.f32 %v9778_v49, %v19460_v63  ;;  %v9780_v62 = vpop.f32.mrb[187].mxu1  ;;  %v12667_v49 = vld [vmem:[#allocation14 + $0x10] sm:$0xff]  }
 0x902   :  { %v12679_v62 = vld [vmem:[#allocation14 + $0x108] sm:$0xff]   ;;  %12056 = vmatpush3.bf16.msra.mxu1 %v12667_v49 }
 0x903   :  { %12098 = vmatpush3.bf16.msra.mxu0 %v12679_v62 }
 0x906   :  { %v9783_v40 = vpop.f32.mrb[188].mxu1 }
 0x907   :  { %v19534_v44 = vadd.f32 %v9783_v40, %v19469_v10  ;;  %v9785_v34 = vpop.f32.mrb[189].mxu1  ;;  %v12668_v40 = vld [vmem:[#allocation14 + $0x58] sm:$0xff]  }
 0x908   :  { %v9786_v39 = vpop.f32.mrb[190].mxu1  ;;  %12057 = vmatprep.subr.bf16.mxu1 %v12668_v40 }
 0x909   :  { %v19537_v32 = vadd.f32 %v9786_v39, %v19471_v53  ;;  %v9788_v23 = vpop.f32.mrb[191].mxu1  ;;  %v12669_v39 = vld [vmem:[#allocation14 + $0x18] sm:$0xff]  }
 0x90a   :  { %v12683_v23 = vld [vmem:[#allocation14 + $0x110] sm:$0xff]   ;;  %12058 = vmatpush3.bf16.msra.mxu1 %v12669_v39 }
 0x90e   :  { %v9923_v43 = vpop.f32.mrb[192].mxu1 }
 0x90f   :  { %v19540_v41 = vadd.f32 %v9923_v43, %v19478_v58  ;;  %v9925_v38 = vpop.f32.mrb[193].mxu1 }
 0x910   :  { %v9926_v42 = vpop.f32.mrb[194].mxu1  ;;  %v12670_v38 = vld [vmem:[#allocation14 + $0x60] sm:$0xff]  }
 0x911   :  { %v19543_v63 = vadd.f32 %v9926_v42, %v19481_v8  ;;  %v9928_v14 = vpop.f32.mrb[195].mxu1  ;;  %12059 = vmatprep.subr.bf16.mxu1 %v12670_v38 }
 0x916   :  { %v9931_v27 = vpop.f32.mrb[196].mxu1 }
 0x917   :  { %v19546_v10 = vadd.f32 %v9931_v27, %v19488_v36  ;;  %v9933_v57 = vpop.f32.mrb[197].mxu1 }
 0x918   :  { %v9934_v54 = vpop.f32.mrb[198].mxu1  ;;  %v12671_v57 = vld [vmem:[#allocation14 + $0x20] sm:$0xff]  }
 0x919   :  { %v19549_v53 = vadd.f32 %v9934_v54, %v19491_v5  ;;  %v9936_v1 = vpop.f32.mrb[199].mxu1  ;;  %v12672_v54 = vld [vmem:[#allocation14 + $0x68] sm:$0xff]   ;;  %12060 = vmatpush3.bf16.msra.mxu1 %v12671_v57 }
 0x91a   :  { %12061 = vmatprep.subr.bf16.mxu1 %v12672_v54 }
 0x91e   :  { %v9939_v20 = vpop.f32.mrb[200].mxu1 }
 0x91f   :  { %v19551_v13 = vadd.f32 %v9939_v20, %v9744_v26  ;;  %v9941_v58 = vpop.f32.mrb[201].mxu1  ;;  %v12673_v20 = vld [vmem:[#allocation14 + $0x28] sm:$0xff]  }
 0x920   :  { %v9942_v48 = vpop.f32.mrb[202].mxu1  ;;  %12062 = vmatpush3.bf16.msra.mxu1 %v12673_v20 }
 0x921   :  { %v19553_v6 = vadd.f32 %v9942_v48, %v9747_v30  ;;  %v9944_v8 = vpop.f32.mrb[203].mxu1  ;;  %v12674_v48 = vld [vmem:[#allocation14 + $0x70] sm:$0xff]  }
 0x922   :  { %12063 = vmatprep.subr.bf16.mxu1 %v12674_v48 }
 0x924   :  { %12064 = vmatpush3.bf16.msra.mxu1 %v12675_v25 }
 0x925   :  { %12065 = vmatprep.subr.bf16.mxu1 %v12680_v61 }
 0x926   :  { %v9947_v36 = vpop.f32.mrb[204].mxu1 }
 0x927   :  { %v19555_v22 = vadd.f32 %v9947_v36, %v9752_v50  ;;  %v9949_v5 = vpop.f32.mrb[205].mxu1  ;;  %v12682_v50 = vld [vmem:[#allocation14 + $0x150] sm:$0xff]  }
 0x928   :  { %v9950_v26 = vpop.f32.mrb[206].mxu1  ;;  %12099 = vmatprep.subr.bf16.mxu0 %v12682_v50  ;;  %12066 = vmatpush3.bf16.msra.mxu1 %v12681_v46 }
 0x929   :  { %v19558_v30 = vadd.f32 %v9950_v26, %v19505_v19  ;;  %v9952_v11 = vpop.f32.mrb[207].mxu1  ;;  %12100 = vmatpush3.bf16.msra.mxu0 %v12683_v23 }
 0x92e   :  { %v9955_v34 = vpop.f32.mrb[208].mxu1 }
 0x92f   :  { %v19561_v43 = vadd.f32 %v9955_v34, %v19512_v59  ;;  %v9957_v19 = vpop.f32.mrb[209].mxu1 }
 0x930   :  { %v9958_v42 = vpop.f32.mrb[210].mxu1  ;;  %v19587_v19 = vld [vmem:[#allocation13] ss:$0 sm:$0xff] }
 0x931   :  { %v19564_v14 = vadd.f32 %v9958_v42, %v19515_v24  ;;  %v9960_v27 = vpop.f32.mrb[211].mxu1 }
 0x936   :  { %v9963_v1 = vpop.f32.mrb[212].mxu1 }
 0x937   :  { %v19567_v59 = vadd.f32 %v9963_v1, %v19522_v15  ;;  %v9965_v58 = vpop.f32.mrb[213].mxu1 }
 0x938   :  { %v9966_v8 = vpop.f32.mrb[214].mxu1 }
 0x939   :  { %v19570_v3 = vadd.f32 %v9966_v8, %v19525_v21  ;;  %v9968_v24 = vpop.f32.mrb[215].mxu1 }
 0x93e   :  { %v9971_v36 = vpop.f32.mrb[216].mxu1 }
 0x93f   :  { %v19573_v5 = vadd.f32 %v9971_v36, %v19528_v60  ;;  %v9973_v15 = vpop.f32.mrb[217].mxu1 }
 0x940   :  { %v9974_v52 = vpop.f32.mrb[218].mxu1 }
 0x941   :  { %v19576_v9 = vadd.f32 %v9974_v52, %v19531_v4  ;;  %v9976_v26 = vpop.f32.mrb[219].mxu1 }
 0x946   :  { %v9979_v21 = vpop.f32.mrb[220].mxu1 }
 0x947   :  { %v19579_v29 = vadd.f32 %v9979_v21, %v19534_v44  ;;  %v9981_v18 = vpop.f32.mrb[221].mxu1 }
 0x948   :  { %v9982_v11 = vpop.f32.mrb[222].mxu1 }
 0x949   :  { %v19582_v49 = vadd.f32 %v9982_v11, %v19537_v32  ;;  %v9984_v62 = vpop.f32.mrb[223].mxu1 }
 0x94e   :  { %v10129_v60 = vpop.f32.mrb[224].mxu1 }
 0x94f   :  { %v10192_v40 = vadd.f32 %v10129_v60, %v19540_v41  ;;  %v10131_v50 = vpop.f32.mrb[225].mxu1 }
 0x950   :  { %v10132_v34 = vpop.f32.mrb[226].mxu1 }
 0x951   :  { %v10386_v4 = vadd.f32 %v19360_v16, %v10192_v40  ;;  %v10193_v39 = vadd.f32 %v10132_v34, %v19543_v63  ;;  %v10134_v23 = vpop.f32.mrb[227].mxu1 }
 0x953   :  { %v10387_v44 = vadd.f32 %v19369_v31, %v10193_v39  ;;  %v10409_v38 = vadd.f32 %v19587_v19, %v10386_v4 }
 0x955   :  { %v10410_v32 = vadd.f32 %v19587_v19, %v10387_v44 }
 0x956   :  { %v10137_v42 = vpop.f32.mrb[228].mxu1 }
 0x957   :  { %v10425_v27 = vmax.f32 %v10409_v38, %v10410_v32  ;;  %v10194_v57 = vadd.f32 %v10137_v42, %v19546_v10  ;;  %v10139_v41 = vpop.f32.mrb[229].mxu1 }
 0x958   :  { %v10140_v54 = vpop.f32.mrb[230].mxu1 }
 0x959   :  { %v10388_v1 = vadd.f32 %v19389_v33, %v10194_v57  ;;  %v10195_v16 = vadd.f32 %v10140_v54, %v19549_v53  ;;  %v10142_v63 = vpop.f32.mrb[231].mxu1  ;;  %v10441_v46 = vrot.slane %v10425_v27, 1 }
 0x95b   :  { %v10389_v20 = vadd.f32 %v19391_v7, %v10195_v16  ;;  %v10411_v58 = vadd.f32 %v19587_v19, %v10388_v1  ;;  %v10457_v11 = vmax.f32 %v10425_v27, %v10441_v46 }
 0x95d   :  { %v10412_v31 = vadd.f32 %v19587_v19, %v10389_v20  ;;  %v10473_v40 = vrot.slane %v10457_v11, 1  ;;  %v10489_v38 = vrot.slane %v10457_v11, 2 }
 0x95e   :  { %v10145_v48 = vpop.f32.mrb[232].mxu1 }
 0x95f   :  { %v10426_v8 = vmax.f32 %v10411_v58, %v10412_v31  ;;  %v10196_v24 = vadd.f32 %v10145_v48, %v19551_v13  ;;  %v10147_v25 = vpop.f32.mrb[233].mxu1 }
 0x960   :  { %v10148_v61 = vpop.f32.mrb[234].mxu1 }
 0x961   :  { %v10390_v10 = vadd.f32 %v19473_v45, %v10196_v24  ;;  %v10197_v36 = vadd.f32 %v10148_v61, %v19553_v6  ;;  %v10150_v33 = vpop.f32.mrb[235].mxu1  ;;  %v10442_v62 = vrot.slane %v10426_v8, 1 }
 0x963   :  { %v10391_v53 = vadd.f32 %v19475_v55, %v10197_v36  ;;  %v10413_v7 = vadd.f32 %v19587_v19, %v10390_v10  ;;  %v10458_v50 = vmax.f32 %v10426_v8, %v10442_v62 }
 0x965   :  { %v10414_v15 = vadd.f32 %v19587_v19, %v10391_v53  ;;  %v10490_v1 = vrot.slane %v10458_v50, 2  ;;  %v10506_v10 = vrot.slane %v10458_v50, 3 }
 0x966   :  { %v10153_v52 = vpop.f32.mrb[236].mxu1 }
 0x967   :  { %v10427_v26 = vmax.f32 %v10413_v7, %v10414_v15  ;;  %v10198_v21 = vadd.f32 %v10153_v52, %v19555_v22  ;;  %v10155_v18 = vpop.f32.mrb[237].mxu1 }
 0x968   :  { %v10156_v13 = vpop.f32.mrb[238].mxu1 }
 0x969   :  { %v10392_v45 = vadd.f32 %v19483_v37, %v10198_v21  ;;  %v10199_v6 = vadd.f32 %v10156_v13, %v19558_v30  ;;  %v10158_v60 = vpop.f32.mrb[239].mxu1  ;;  %v10443_v32 = vrot.slane %v10427_v26, 1  ;;  %v10521_v37 = vsel %vm4061_vm0, %v10457_v11, %v10473_v40  ;;  %v12684_v13 = vld [vmem:[#allocation14 + $0x158] sm:$0xff]  }
 0x96a   :  { %v10474_v30 = vrot.slane %v10458_v50, 1  ;;  %v10529_v54 = vsel %vm4094_vm8, %v10521_v37, %v10489_v38  ;;  %12101 = vmatprep.subr.bf16.mxu0 %v12684_v13 }
 0x96b   :  { %v10393_v55 = vadd.f32 %v19485_v51, %v10199_v6  ;;  %v10415_v34 = vadd.f32 %v19587_v19, %v10392_v45  ;;  %v19616_v16 = vmax.f32 %v10427_v26, %v10443_v32 }
 0x96c   :  { %v10522_v63 = vsel %vm4061_vm0, %v10458_v50, %v10474_v30 }
 0x96d   :  { %v10416_v4 = vadd.f32 %v19587_v19, %v10393_v55  ;;  %v10475_v24 = vrot.slane %v19616_v16, 1  ;;  %v10491_v26 = vrot.slane %v19616_v16, 2 }
 0x96e   :  { %v10161_v39 = vpop.f32.mrb[240].mxu1 }
 0x96f   :  { %v10428_v23 = vmax.f32 %v10415_v34, %v10416_v4  ;;  %v10200_v22 = vadd.f32 %v10161_v39, %v19561_v43  ;;  %v10163_v44 = vpop.f32.mrb[241].mxu1  ;;  %v10505_v43 = vrot.slane %v10457_v11, 3  ;;  %v10523_v21 = vsel %vm4061_vm0, %v19616_v16, %v10475_v24  ;;  %v12685_v11 = vld [vmem:[#allocation14 + $0x118] sm:$0xff]   ;;  %v12686_v39 = vld [vmem:[#allocation14 + $0xc0] sm:$0xff]  }
 0x970   :  { %v10164_v42 = vpop.f32.mrb[242].mxu1  ;;  %12102 = vmatpush3.bf16.msra.mxu0 %v12685_v11  ;;  %12073 = vmatprep.subr.bf16.mxu1 %v12686_v39 }
 0x971   :  { %v10394_v27 = vadd.f32 %v19493_v28, %v10200_v22  ;;  %v10201_v51 = vadd.f32 %v10164_v42, %v19564_v14  ;;  %v10166_v57 = vpop.f32.mrb[243].mxu1  ;;  %v10537_v8 = vsel %vm4127_vm9, %v10529_v54, %v10505_v43  ;;  %v10444_v25 = vrot.slane %v10428_v23, 1 }
 0x972   :  { %v10545_v7 = vpack.c.bf16 %v10537_v8, %v10537_v8  ;;  %v10531_v22 = vsel %vm4094_vm8, %v10523_v21, %v10491_v26  ;;  %v12689_v57 = vld [vmem:[#allocation14 + $0x120] sm:$0xff]  }
 0x973   :  { %v10395_v41 = vadd.f32 %v19495_v35, %v10201_v51  ;;  %v10417_v20 = vadd.f32 %v19587_v19, %v10394_v27  ;;  %v10530_v35 = vsel %vm4094_vm8, %v10522_v63, %v10490_v1  ;;  %v19632_v18 = vmax.f32 %v10428_v23, %v10444_v25  ;;  %v12688_v51 = vld [vmem:[#allocation14 + $0x160] sm:$0xff]  }
 0x974   :  { %v10538_v52 = vsel %vm4127_vm9, %v10530_v35, %v10506_v10  ;;  %v10555_v60 = vunpack.c.l.b16 %v10545_v7  ;;  %v10507_v23 = vrot.slane %v19616_v16, 3  ;;  %12103 = vmatprep.subr.bf16.mxu0 %v12688_v51 }
 0x975   :  { %v10418_v58 = vadd.f32 %v19587_v19, %v10395_v41  ;;  %v10476_v44 = vrot.slane %v19632_v18, 1  ;;  %v10492_v43 = vrot.slane %v19632_v18, 2  ;;  %12104 = vmatpush3.bf16.msra.mxu0 %v12689_v57 }
 0x976   :  { %v10169_v31 = vpop.f32.mrb[244].mxu1  ;;  %v10561_v54 = vrot.slane %v10555_v60, 1  ;;  %v10570_v1 = vrot.slane %v10555_v60, 3 }
 0x977   :  { %v10429_v48 = vmax.f32 %v10417_v20, %v10418_v58  ;;  %v10202_v28 = vadd.f32 %v10169_v31, %v19567_v59  ;;  %v10171_v14 = vpop.f32.mrb[245].mxu1 }
 0x978   :  { %v10172_v61 = vpop.f32.mrb[246].mxu1 }
 0x979   :  { %v10445_v36 = vrot.slane %v10429_v48, 1  ;;  %v10396_v33 = vadd.f32 %v19499_v47, %v10202_v28  ;;  %v10203_v53 = vadd.f32 %v10172_v61, %v19570_v3  ;;  %v10174_v46 = vpop.f32.mrb[247].mxu1 }
 0x97b   :  { %v10461_v15 = vmax.f32 %v10429_v48, %v10445_v36  ;;  %v10397_v59 = vadd.f32 %v19501_v12, %v10203_v53  ;;  %v10419_v3 = vadd.f32 %v19587_v19, %v10396_v33  ;;  %v10546_v12 = vpack.c.bf16 %v10538_v52, %v10538_v52  ;;  %v12692_v36 = vld [vmem:[#allocation14 + $0x168] sm:$0xff]  }
 0x97c   :  { %v10566_v48 = vrot.slane %v10555_v60, 2  ;;  %12105 = vmatprep.subr.bf16.mxu0 %v12692_v36 }
 0x97d   :  { %v10477_v62 = vrot.slane %v10461_v15, 1  ;;  %v10493_v47 = vrot.slane %v10461_v15, 2  ;;  %v10420_v45 = vadd.f32 %v19587_v19, %v10397_v59  ;;  %v10509_v55 = vrot.slane %v10461_v15, 3  ;;  %v12693_v59 = vld [vmem:[#allocation14 + $0x128] sm:$0xff]  }
 0x97e   :  { %v10177_v6 = vpop.f32.mrb[248].mxu1  ;;  %v19645_v16 = vunpack.c.l.b16 %v10546_v12  ;;  %12106 = vmatpush3.bf16.msra.mxu0 %v12693_v59  ;;  %v12697_v12 = vld [vmem:[#allocation14 + $0x130] sm:$0xff]  }
 0x97f   :  { %v10525_v40 = vsel %vm4061_vm0, %v10461_v15, %v10477_v62  ;;  %v10430_v50 = vmax.f32 %v10419_v3, %v10420_v45  ;;  %v10204_v34 = vadd.f32 %v10177_v6, %v19573_v5  ;;  %v10179_v4 = vpop.f32.mrb[249].mxu1  ;;  %v12696_v6 = vld [vmem:[#allocation14 + $0x170] sm:$0xff]  }
 0x980   :  { %v10180_v38 = vpop.f32.mrb[250].mxu1  ;;  %v10533_v32 = vsel %vm4094_vm8, %v10525_v40, %v10493_v47  ;;  %v10583_v4 = vrot.slane %v19645_v16, 1  ;;  %12107 = vmatprep.subr.bf16.mxu0 %v12696_v6  ;;  %v10588_v51 = vrot.slane %v19645_v16, 2 }
 0x981   :  { %v10446_v42 = vrot.slane %v10430_v50, 1  ;;  %v10398_v37 = vadd.f32 %v19507_v2, %v10204_v34  ;;  %v10205_v30 = vadd.f32 %v10180_v38, %v19576_v9  ;;  %v10182_v27 = vpop.f32.mrb[251].mxu1  ;;  %v10541_v5 = vsel %vm4127_vm9, %v10533_v32, %v10509_v55  ;;  %v12700_v38 = vld [vmem:[#allocation14 + $0x178] sm:$0xff]  }
 0x982   :  { %v10549_v41 = vpack.c.bf16 %v10541_v5, %v10541_v5  ;;  %v10539_v2 = vsel %vm4127_vm9, %v10531_v22, %v10507_v23  ;;  %v10524_v9 = vsel %vm4061_vm0, %v19632_v18, %v10476_v44  ;;  %12108 = vmatpush3.bf16.msra.mxu0 %v12697_v12  ;;  %v12701_v32 = vld [vmem:[#allocation14 + $0x138] sm:$0xff]  }
 0x983   :  { %v10462_v63 = vmax.f32 %v10430_v50, %v10446_v42  ;;  %v10399_v20 = vadd.f32 %v19509_v56, %v10205_v30  ;;  %v10421_v58 = vadd.f32 %v19587_v19, %v10398_v37  ;;  %v10532_v40 = vsel %vm4094_vm8, %v10524_v9, %v10492_v43  ;;  %12109 = vmatprep.subr.bf16.mxu0 %v12700_v38 }
 0x984   :  { %v10556_v31 = vunpack.c.l.b16 %v10549_v41 }
 0x985   :  { %v10478_v28 = vrot.slane %v10462_v63, 1  ;;  %v10494_v14 = vrot.slane %v10462_v63, 2  ;;  %v10510_v8 = vrot.slane %v10462_v63, 3  ;;  %v10422_v35 = vadd.f32 %v19587_v19, %v10399_v20 }
 0x986   :  { %v10185_v24 = vpop.f32.mrb[252].mxu1  ;;  %v10562_v25 = vsel %vm10558_vm12, %v10556_v31, %v10561_v54  ;;  %v10571_v56 = vrot.slane %v10556_v31, 2  ;;  %v10557_v61 = vrot.slane %v10556_v31, 7  ;;  %v10567_v10 = vrot.slane %v10556_v31, 1  ;;  %12110 = vmatpush3.bf16.msra.mxu0 %v12701_v32  ;;  %v12687_v32 = vld [vmem:[#allocation14 + $0x80] sm:$0xff]  }
 0x987   :  { %v10526_v33 = vsel %vm4061_vm0, %v10462_v63, %v10478_v28  ;;  %v10431_v53 = vmax.f32 %v10421_v58, %v10422_v35  ;;  %v10206_v46 = vadd.f32 %v10185_v24, %v19579_v29  ;;  %v10187_v7 = vpop.f32.mrb[253].mxu1  ;;  %v10563_v15 = vpack.c.b16 %v10562_v25, %v10562_v25 }
 0x988   :  { %v10188_v52 = vpop.f32.mrb[254].mxu1  ;;  %v10572_v26 = vsel %vm10558_vm12, %v10571_v56, %v10570_v1  ;;  %v10534_v21 = vsel %vm4094_vm8, %v10526_v33, %v10494_v14  ;;  %v19660_v13 = vsel %vm10558_vm12, %v10557_v61, %v10555_v60  ;;  %v19663_v11 = vsel %vm10558_vm12, %v10567_v10, %v10566_v48 }
 0x989   :  { %v10447_v62 = vrot.slane %v10431_v53, 1  ;;  %v10400_v47 = vadd.f32 %v19517_v17, %v10206_v46  ;;  %v10207_v29 = vadd.f32 %v10188_v52, %v19582_v49  ;;  %10564 = vrot.lane.b32.xlu1 %v10563_v15, %s12967_s21  ;;  %v10190_v3 = vpop.f32.mrb[255].mxu1  ;;  %v10573_v45 = vpack.c.b16 %v10572_v26, %v10572_v26 }
 0x98a   :  { %v10542_v55 = vsel %vm4127_vm9, %v10534_v21, %v10510_v8  ;;  %v10547_v60 = vpack.c.bf16 %v10539_v2, %v10539_v2  ;;  %v10508_v49 = vrot.slane %v19632_v18, 3 }
 0x98b   :  { %v10463_v50 = vmax.f32 %v10431_v53, %v10447_v62  ;;  %v10401_v34 = vadd.f32 %v19519_v0, %v10207_v29  ;;  %10574 = vrot.lane.b32.xlu0 %v10573_v45, %s12967_s21  ;;  %v10550_v17 = vpack.c.bf16 %v10542_v55, %v10542_v55  ;;  %v10423_v22 = vadd.f32 %v19587_v19, %v10400_v47 }
 0x98c   :  { %v10592_v0 = vrot.slane %v19645_v16, 3  ;;  %v10600_v37 = vunpack.c.l.b16 %v10547_v60  ;;  %v10540_v30 = vsel %vm4127_vm9, %v10532_v40, %v10508_v49 }
 0x98d   :  { %v10479_v39 = vrot.slane %v10463_v50, 1  ;;  %v10495_v23 = vrot.slane %v10463_v50, 2  ;;  %v10424_v44 = vadd.f32 %v19587_v19, %v10401_v34  ;;  %v10579_v42 = vunpack.c.l.b16 %v10550_v17 }
 0x98e   :  { %v10511_v27 = vrot.slane %v10463_v50, 3  ;;  %v10548_v28 = vpack.c.bf16 %v10540_v30, %v10540_v30  ;;  %v10605_v35 = vrot.slane %v10600_v37, 1  ;;  %v10614_v56 = vrot.slane %v10600_v37, 3  ;;  %v12691_v30 = vld [vmem:[#allocation14 + $0x88] sm:$0xff]  }
 0x98f   :  { %v10527_v18 = vsel %vm4061_vm0, %v10463_v50, %v10479_v39  ;;  %v10432_v5 = vmax.f32 %v10423_v22, %v10424_v44  ;;  %v10584_v57 = vsel %vm10558_vm12, %v10579_v42, %v10583_v4  ;;  %v10593_v41 = vrot.slane %v10579_v42, 2 }
 0x990   :  { %v10535_v19 = vsel %vm4094_vm8, %v10527_v18, %v10495_v23  ;;  %v10580_v54 = vrot.slane %v10579_v42, 7  ;;  %v10585_v43 = vpack.c.b16 %v10584_v57, %v10584_v57  ;;  %v10589_v20 = vrot.slane %v10579_v42, 1  ;;  %v12695_v18 = vld [vmem:[#allocation14 + $0x90] sm:$0xff]  }
 0x991   :  { %v10448_v1 = vrot.slane %v10432_v5, 1  ;;  %v10543_v63 = vsel %vm4127_vm9, %v10535_v19, %v10511_v27  ;;  %v10594_v2 = vsel %vm10558_vm12, %v10593_v41, %v10592_v0  ;;  %v10610_v61 = vrot.slane %v10600_v37, 2  ;;  %v12690_v0 = vld [vmem:[#allocation14 + $0xc8] sm:$0xff]   ;;  %v12694_v27 = vld [vmem:[#allocation14 + $0xd0] sm:$0xff]   ;;  %v12699_v41 = vld [vmem:[#allocation14 + $0x98] sm:$0xff]  }
 0x992   :  { %v10551_v9 = vpack.c.bf16 %v10543_v63, %v10543_v63  ;;  %v19686_v58 = vsel %vm10558_vm12, %v10580_v54, %v19645_v16  ;;  %10586 = vrot.lane.b32.xlu1 %v10585_v43, %s12967_s21  ;;  %v10595_v48 = vpack.c.b16 %v10594_v2, %v10594_v2  ;;  %v19690_v14 = vsel %vm10558_vm12, %v10589_v20, %v10588_v51  ;;  %v12702_v19 = vld [vmem:[#allocation14 + $0xe0] sm:$0xff]  }
 0x993   :  { %v10464_v31 = vmax.f32 %v10432_v5, %v10448_v1  ;;  %v10622_v15 = vunpack.c.l.b16 %v10548_v28  ;;  %v10569_v22 = vpack.c.b16 %v19663_v11, %v19663_v11  ;;  %v10560_v44 = vpack.c.b16 %v19660_v13, %v19660_v13  ;;  %v12698_v13 = vld [vmem:[#allocation14 + $0xd8] sm:$0xff]   ;;  %v12703_v20 = vld [vmem:[#allocation14 + $0xa0] sm:$0xff]   ;;  %v12706_v28 = vld [vmem:[#allocation14 + $0xf0] sm:$0xff]  }
 0x994   :  { %v10601_v8 = vunpack.c.l.b16 %v10551_v9  ;;  %10596 = vrot.lane.b32.xlu0 %v10595_v48, %s12967_s21  ;;  %v10591_v11 = vpack.c.b16 %v19690_v14, %v19690_v14  ;;  %v12704_v9 = vld [vmem:[#allocation14 + $0xe8] sm:$0xff]   ;;  %v12707_v14 = vld [vmem:[#allocation14 + $0xb0] sm:$0xff]  }
 0x995   :  { %v10480_v24 = vrot.slane %v10464_v31, 1  ;;  %v10496_v25 = vrot.slane %v10464_v31, 2  ;;  %v10512_v53 = vrot.slane %v10464_v31, 3  ;;  %v10627_v45 = vrot.slane %v10622_v15, 1  ;;  %v12705_v48 = vld [vmem:[#allocation14 + $0xa8] sm:$0xff]  }
 0x996   :  { %v10606_v10 = vsel %vm10558_vm12, %v10601_v8, %v10605_v35  ;;  %v10615_v16 = vrot.slane %v10601_v8, 2  ;;  %v10602_v36 = vrot.slane %v10601_v8, 7  ;;  %v10611_v33 = vrot.slane %v10601_v8, 1  ;;  %v12708_v8 = vld [vmem:[#allocation14 + $0xf8] sm:$0xff]  }
 0x997   :  { %v10528_v46 = vsel %vm4061_vm0, %v10464_v31, %v10480_v24  ;;  %v10607_v7 = vpack.c.b16 %v10606_v10, %v10606_v10  ;;  %v10636_v12 = vrot.slane %v10622_v15, 3  ;;  %v10632_v49 = vrot.slane %v10622_v15, 2  ;;  %v12709_v35 = vld [vmem:[#allocation14 + $0xb8] sm:$0xff]   ;;  %v12710_v24 = vld [vmem:[#allocation14 + $0x1c0] sm:$0xff]  }
 0x998   :  { %v10616_v59 = vsel %vm10558_vm12, %v10615_v16, %v10614_v56  ;;  %v10536_v52 = vsel %vm4094_vm8, %v10528_v46, %v10496_v25  ;;  %v10603_v26 = vsel %vm10558_vm12, %v10602_v36, %v10600_v37  ;;  %v10612_v21 = vsel %vm10558_vm12, %v10611_v33, %v10610_v61  ;;  %v12711_v61 = vld [vmem:[#allocation14 + $0x180] sm:$0xff]   ;;  %v12712_v16 = vld [vmem:[#allocation14 + $0x1c8] sm:$0xff]   ;;  %v12714_v46 = vld [vmem:[#allocation14 + $0x1d0] sm:$0xff]  }
 0x999   :  { %10608 = vrot.lane.b32.xlu1 %v10607_v7, %s12967_s21  ;;  %v10617_v62 = vpack.c.b16 %v10616_v59, %v10616_v59  ;;  %v10544_v47 = vsel %vm4127_vm9, %v10536_v52, %v10512_v53  ;;  %v10613_v1 = vpack.c.b16 %v10612_v21, %v10612_v21  ;;  %v10604_v43 = vpack.c.b16 %v10603_v26, %v10603_v26  ;;  %v12713_v53 = vld [vmem:[#allocation14 + $0x188] sm:$0xff]   ;;  %v12716_v7 = vld [vmem:[#allocation14 + $0x1d8] sm:$0xff]   ;;  %v12718_v59 = vld [vmem:[#allocation14 + $0x1e0] sm:$0xff]  }
 0x99a   :  { %v10552_v29 = vpack.c.bf16 %v10544_v47, %v10544_v47  ;;  %v10582_v25 = vpack.c.b16 %v19686_v58, %v19686_v58  ;;  %v12715_v58 = vld [vmem:[#allocation14 + $0x190] sm:$0xff]   ;;  %v12719_v52 = vld [vmem:[#allocation14 + $0x1a0] sm:$0xff]   ;;  %v12720_v26 = vld [vmem:[#allocation14 + $0x1e8] sm:$0xff]  }
 0x99b   :  { %10618 = vrot.lane.b32.xlu0 %v10617_v62, %s12967_s21  ;;  %v12721_v21 = vld [vmem:[#allocation14 + $0x1a8] sm:$0xff]   ;;  %v12722_v62 = vld [vmem:[#allocation14 + $0x1f0] sm:$0xff]  }
 0x99c   :  { %v10623_v3 = vunpack.c.l.b16 %v10552_v29  ;;  %v12723_v47 = vld [vmem:[#allocation14 + $0x1b0] sm:$0xff]   ;;  %v12724_v29 = vld [vmem:[#allocation14 + $0x1f8] sm:$0xff]  }
 0x99e   :  { %v10628_v6 = vsel %vm10558_vm12, %v10623_v3, %v10627_v45  ;;  %v10637_v55 = vrot.slane %v10623_v3, 2  ;;  %v10624_v60 = vrot.slane %v10623_v3, 7  ;;  %v10633_v4 = vrot.slane %v10623_v3, 1  ;;  %v12725_v3 = vld [vmem:[#allocation14 + $0x1b8] sm:$0xff]  }
 0x99f   :  { %v10629_v40 = vpack.c.b16 %v10628_v6, %v10628_v6 }
 0x9a0   :  { %v10638_v50 = vsel %vm10558_vm12, %v10637_v55, %v10636_v12  ;;  %v19705_v34 = vsel %vm10558_vm12, %v10624_v60, %v10622_v15  ;;  %v19710_v39 = vsel %vm10558_vm12, %v10633_v4, %v10632_v49  ;;  %v12717_v15 = vld [vmem:[#allocation14 + $0x198] sm:$0xff]  }
 0x9a1   :  { %10630 = vrot.lane.b32.xlu1 %v10629_v40, %s12967_s21  ;;  %v10639_v17 = vpack.c.b16 %v10638_v50, %v10638_v50  ;;  %v10635_v10 = vpack.c.b16 %v19710_v39, %v19710_v39  ;;  %v10626_v6 = vpack.c.b16 %v19705_v34, %v19705_v34 }
 0x9a3   :  { %10640 = vrot.lane.b32.xlu0 %v10639_v17, %s12967_s21  ;;  %s12979_s21 = smov [#allocation17]  }
 0x9a4   :  { %s11360_s20 = sshll.u32 %s12979_s21, 4  ;;  %s11361_s20 = int_to_ptr.vmem [resolvable:$true] %s11360_s20 }
 0x9a5   :  { %s12931_s17 = scalar_lea.vmem %s11361_s20, 32  ;;  %p12936_p3 = scmp.lt.s32.totalorder %s11361_s20, %s11361_s20 }
 0x9a6   :  { %p12932_p2 = scmp.ne.s32.totalorder %s11361_s20, %s12931_s17  ;;  %p12937_p4 = scmp.lt.s32.totalorder %s12931_s17, %s12931_s17 }
 0x9a8   :  { %p12938_p5 = por %p12937_p4, %p12936_p3 }
 0x9aa   :  { %p12939_p6 = pnand %p12938_p5, %p12932_p2 }
 0x9fb   :  { %v10565_v23 = vpop.permute.xlu1 %10564 }
 0x9fc   :  { %v10644_v37 = vsel %vm5873_vm6, %v10560_v44, %v10565_v23  ;;  %v11850_v44 = vld [vmem:[#allocation16] ss:$0 sm:$0xff] }
 0x9fd   :  { %v10575_v38 = vpop.permute.xlu0 %10574 }
 0x9fe   :  { %v10648_v42 = vsel %vm5873_vm6, %v10569_v22, %v10575_v38 }
 0x9ff   :  { %11225 = vmatprep.mubr.bf16.mxu1 %v10648_v42 }
 0xa00   :  { %11226 = vmatmul.mubr.bf16.vlgmr.msra.gmra.mrb[0].mxu1 %v10644_v37 }
 0xa01   :  { %12074 = vmatpush3.bf16.msra.mxu1 %v12687_v32 }
 0xa02   :  { %12075 = vmatprep.subr.bf16.mxu1 %v12690_v0 }
 0xa04   :  { %v10587_v51 = vpop.permute.xlu1 %10586 }
 0xa05   :  { %12076 = vmatpush3.bf16.msra.mxu1 %v12691_v30  ;;  %v10652_v36 = vsel %vm5873_vm6, %v10582_v25, %v10587_v51 }
 0xa06   :  { %12077 = vmatprep.subr.bf16.mxu1 %v12694_v27  ;;  %v10597_v5 = vpop.permute.xlu0 %10596 }
 0xa07   :  { %v10656_v57 = vsel %vm5873_vm6, %v10591_v11, %v10597_v5 }
 0xa08   :  { %11265 = vmatprep.mubr.bf16.mxu1 %v10656_v57 }
 0xa09   :  { %12078 = vmatpush3.bf16.msra.mxu1 %v12695_v18 }
 0xa0a   :  { %12079 = vmatprep.subr.bf16.mxu1 %v12698_v13 }
 0xa0b   :  { %v10609_v54 = vpop.permute.xlu1 %10608 }
 0xa0c   :  { %v10660_v31 = vsel %vm5873_vm6, %v10604_v43, %v10609_v54 }
 0xa0d   :  { %12080 = vmatpush3.bf16.msra.mxu1 %v12699_v41  ;;  %v10619_v63 = vpop.permute.xlu0 %10618 }
 0xa0e   :  { %12081 = vmatprep.subr.bf16.mxu1 %v12702_v19  ;;  %v10664_v2 = vsel %vm5873_vm6, %v10613_v1, %v10619_v63 }
 0xa0f   :  { %11305 = vmatprep.mubr.bf16.mxu0 %v10664_v2 }
 0xa10   :  { %11306 = vmatmul.mubr.bf16.vlgmr.msra.gmra.mrb[32].mxu0 %v10660_v31 }
 0xa11   :  { %12082 = vmatpush3.bf16.msra.mxu1 %v12703_v20 }
 0xa12   :  { %12083 = vmatprep.subr.bf16.mxu1 %v12704_v9 }
 0xa13   :  { %v10631_v45 = vpop.permute.xlu1 %10630 }
 0xa14   :  { %v10668_v12 = vsel %vm5873_vm6, %v10626_v6, %v10631_v45 }
 0xa15   :  { %12084 = vmatpush3.bf16.msra.mxu1 %v12705_v48  ;;  %v10641_v56 = vpop.permute.xlu0 %10640 }
 0xa16   :  { %12085 = vmatprep.subr.bf16.mxu1 %v12706_v28  ;;  %v10672_v33 = vsel %vm5873_vm6, %v10635_v10, %v10641_v56 }
 0xa19   :  { %12086 = vmatpush3.bf16.msra.mxu1 %v12707_v14 }
 0xa1a   :  { %12087 = vmatprep.subr.bf16.mxu1 %v12708_v8 }
 0xa1d   :  { %12088 = vmatpush3.bf16.msra.mxu1 %v12709_v35 }
 0xa1e   :  { %12117 = vmatprep.subr.bf16.mxu1 %v12710_v24 }
 0xa20   :  { %11266 = vmatmul.mubr.bf16.vlgmr.msra.gmra.mrb[4].mxu1 %v10652_v36 }
 0xa21   :  { %12118 = vmatpush3.bf16.msra.mxu1 %v12711_v61  ;;  %11345 = vmatprep.mubr.bf16.mxu1 %v10672_v33 }
 0xa22   :  { %12119 = vmatprep.subr.bf16.mxu1 %v12712_v16 }
 0xa25   :  { %12120 = vmatpush3.bf16.msra.mxu1 %v12713_v53 }
 0xa26   :  { %12121 = vmatprep.subr.bf16.mxu1 %v12714_v46 }
 0xa29   :  { %12122 = vmatpush3.bf16.msra.mxu1 %v12715_v58 }
 0xa2a   :  { %12123 = vmatprep.subr.bf16.mxu1 %v12716_v7 }
 0xa2d   :  { %12124 = vmatpush3.bf16.msra.mxu1 %v12717_v15 }
 0xa2e   :  { %12125 = vmatprep.subr.bf16.mxu1 %v12718_v59 }
 0xa31   :  { %12126 = vmatpush3.bf16.msra.mxu1 %v12719_v52 }
 0xa32   :  { %12127 = vmatprep.subr.bf16.mxu1 %v12720_v26 }
 0xa35   :  { %12128 = vmatpush3.bf16.msra.mxu1 %v12721_v21 }
 0xa36   :  { %12129 = vmatprep.subr.bf16.mxu1 %v12722_v62 }
 0xa39   :  { %12130 = vmatpush3.bf16.msra.mxu1 %v12723_v47 }
 0xa3a   :  { %12131 = vmatprep.subr.bf16.mxu1 %v12724_v29 }
 0xa3d   :  { %12132 = vmatpush3.bf16.msra.mxu1 %v12725_v3 }
 0xa40   :  { %11346 = vmatmul.mubr.bf16.vlgmr.msra.gmra.mrb[8].mxu1 %v10668_v12 }
 0xad3   :  { %v12067_v55 = vpop.f32.mrb[0].mxu1 }
 0xad4   :  { %v12068_v60 = vpop.f32.mrb[1].mxu1 }
 0xad5   :  { %v12069_v40 = vadd.f32 %v12068_v60, %v12067_v55  ;;  %v12070_v50 = vpop.f32.mrb[2].mxu1 }
 0xad6   :  { %v12071_v17 = vpop.f32.mrb[3].mxu1 }
 0xad7   :  { %v11228_v42 = vadd.f32 %v12069_v40, %v11850_v44 }
 0xae3   :  { %v12111_v49 = vpop.f32.mrb[32].mxu0 }
 0xae4   :  { %v12112_v4 = vpop.f32.mrb[33].mxu0 }
 0xae5   :  { %v12113_v39 = vadd.f32 %v12112_v4, %v12111_v49  ;;  %v12114_v23 = vpop.f32.mrb[34].mxu0 }
 0xae6   :  { %v12115_v22 = vpop.f32.mrb[35].mxu0 }
 0xaf3   :  { %v12089_v38 = vpop.f32.mrb[4].mxu1 }
 0xaf4   :  { %v12090_v32 = vpop.f32.mrb[5].mxu1 }
 0xaf5   :  { %v12091_v0 = vadd.f32 %v12090_v32, %v12089_v38  ;;  %v12092_v34 = vpop.f32.mrb[6].mxu1 }
 0xaf6   :  { %v12093_v37 = vpop.f32.mrb[7].mxu1 }
 0xaf7   :  { %v11268_v30 = vadd.f32 %v12091_v0, %v11228_v42 }
 0xaf9   :  { %v11308_v27 = vadd.f32 %v12113_v39, %v11268_v30 }
 0xb13   :  { %v12133_v18 = vpop.f32.mrb[8].mxu1 }
 0xb14   :  { %v12134_v11 = vpop.f32.mrb[9].mxu1 }
 0xb15   :  { %v12135_v13 = vadd.f32 %v12134_v11, %v12133_v18  ;;  %v12136_v5 = vpop.f32.mrb[10].mxu1 }
 0xb16   :  { %v12137_v51 = vpop.f32.mrb[11].mxu1 }
 0xb17   :  { %v11348_v57 = vadd.f32 %v12135_v13, %v11308_v27 }
 0xb19   :  { %11353 = vst [vmem:[#allocation17] sm:$0x3] %v11348_v57 }
 0xb1a   :  { %12942 = shalt.err (!%p12939_p6)
}
 0xb1b   :  { %s12943_s30 = scalar_lea.hbm %s19753_s9, 32 }
 0xb1c   :  { %p12944_p7 = scmp.ne.s32.totalorder %s19753_s9, %s12943_s30  ;;  %p12947_p8 = scmp.lt.u32.totalorder %s12943_s30, %s19753_s9 }
 0xb1e   :  { %p12949_p9 = pnand %p12947_p8, %p12944_p7 }
 0xb20   :  { %12952 = shalt.err (!%p12949_p9)
}
 0xb21   :  { %11363 = dma.vmem_to_hbm [thread:$0]  %s11361_s20, 32, %s19753_s9, [#allocation4]  }
 0xb22   :  { %12963 = dma.done.wait [#allocation4], 32  }
 0xb23   :  { %12964 = vsyncadd [#allocation4], 4294967264 }
 0xb24   :  { %11367 = vsyncpa [#allocation3], 1 }
 0xb25   :  { %11368 = vsyncpa [#allocation6], 1 }
 0xb26   :  { %11369 = vsyncpa [#allocation9], 1 }
 0xb27   :  { %11370 = vsyncpa [#allocation12], 1 }
 0xb28   :  { %11371 = vsyncpa [#allocation15], 1 }
 0xb29   :  { %11372 = vsyncpa [#allocation4], 1 }

</bundles_post_ra>
